<compile_context>
chip_gen: v6e
topology: v6e:2x2x1
jax: 0.10.0
libtpu: 0.0.40
codegen_flags: <defaults>
</compile_context>

<pallas_src>
import functools

import jax
import jax.numpy as jnp
from jax.experimental import pallas as pl
from jax.experimental.pallas import tpu as pltpu


def _round_up(x, m):
    return (x + m - 1) // m * m


def _vmem_limit(n_bytes):
    # Floor at the 32 MiB scoped default; cap at ~48 MiB so the tiles chosen
    # here stay safe on v7x (64 MiB physical VMEM).  v5e/v6e (128 MiB) have
    # more headroom but never need it at these sizes.
    return int(min(max(n_bytes + (8 << 20), 32 << 20), 48 << 20))


def _resident(block_shape, index_map):
    # Grid-constant block: its DMA only fires once, so the default second
    # pipeline buffer is pure VMEM waste -> single-buffer it.
    return pl.BlockSpec(block_shape, index_map, pipeline_mode=pl.Buffered(1))


# --------------------- Kernel 1: hoisted input projection --------------------
def _input_proj_kernel(x_ref, wih_ref, b_ref, xw_ref):
    # One row tile of  XW = X @ W_ih^T + (b_ih + b_hh).
    # f32 tile is cast to bf16 here (VPU, free in a mem-bound kernel) instead
    # of in the wrapper — saves a full HBM read+write cast pass.
    x_bf16 = x_ref[...].astype(jnp.bfloat16)
    xw_ref[...] = (
        jnp.dot(x_bf16, wih_ref[...], preferred_element_type=jnp.float32)
        + b_ref[...]
    )


# --------------- Kernel 2: LSTM recurrence + final Linear --------------------
def _lstm_recurrence_kernel(xw_ref, whh_ref, wl_ref, bl_ref, out_ref,
                            h_scr, c_scr, *, hidden_pad, chunk, seq_len):
    Hp = hidden_pad
    GH = 4 * Hp
    c_idx = pl.program_id(1)
    n_chunks = pl.num_programs(1)

    @pl.when(c_idx == 0)
    def _():
        h_scr[...] = jnp.zeros_like(h_scr)
        c_scr[...] = jnp.zeros_like(c_scr)

    h = h_scr[...]
    c = c_scr[...]
    whh = whh_ref[...]                     # resident bf16 weights, read once

    # Only emit tail masking when S is not a multiple of the unroll chunk.
    guard_tail = (seq_len % chunk) != 0

    # Fully unrolled so the LLO scheduler can overlap step t's EUP sigmoid/tanh
    # with step t+1's h @ W_hh MXU push and the next chunk's gate DMA.
    for j in range(chunk):
        gates = xw_ref[:, j * GH:(j + 1) * GH] + jnp.dot(
            h.astype(jnp.bfloat16), whh, preferred_element_type=jnp.float32)
        # Gate columns were reordered wrapper-side to (i, f, o, g): sigmoid and
        # tanh each touch one contiguous lane-aligned region.
        sig = jax.nn.sigmoid(gates[:, :3 * Hp])
        g_g = jnp.tanh(gates[:, 3 * Hp:])
        i_g = sig[:, :Hp]
        f_g = sig[:, Hp:2 * Hp]
        o_g = sig[:, 2 * Hp:3 * Hp]
        c_new = f_g * c + i_g * g_g
        h_new = o_g * jnp.tanh(c_new)
        if guard_tail:
            valid = (c_idx * chunk + j) < seq_len   # padded step: carry h/c
            c = jnp.where(valid, c_new, c)
            h = jnp.where(valid, h_new, h)
        else:
            c, h = c_new, h_new

    h_scr[...] = h
    c_scr[...] = c

    @pl.when(c_idx == n_chunks - 1)
    def _():
        out_ref[...] = (
            jnp.dot(h.astype(jnp.bfloat16), wl_ref[...],
                    preferred_element_type=jnp.float32)
            + bl_ref[...]
        )


# ------------------------------- wrapper -------------------------------------
def classification_text_forward(text_emb, params):
    """text_emb: (batch, seq, embed) float32.  Returns (batch,) float32."""
    B, S, E = text_emb.shape
    w_ih, w_hh = params["w_ih"], params["w_hh"]
    b_ih, b_hh = params["b_ih"], params["b_hh"]
    w_label, b_label = params["w_label"], params["b_label"]
    H = w_hh.shape[1]
    out_sz = w_label.shape[0]

    Bp = _round_up(B, 8)            # sublane-aligned batch
    Hp = _round_up(H, 128)          # lane-aligned hidden
    Ep = _round_up(E, 128)          # lane-aligned embedding (768 -> no pad)
    GH = 4 * Hp
    OUTp = _round_up(out_sz, 128)   # lane-dense classifier output slab

    # Unroll chunk for the recurrence: 16-32 where the sequence allows it,
    # bounded by the streamed gate-block VMEM budget, and never padding a short
    # sequence far past S.  Independent of S's divisors (tail steps masked).
    chunk = int(min(32,
                    max(8, (8 << 20) // (Bp * GH * 4 * 2)),
                    _round_up(S, 8)))
    Sp = _round_up(S, chunk)
    n_chunks = Sp // chunk

    # Batch tiling for the recurrence: two "parallel" tiles when the batch is
    # big enough — lets v7x's second TensorCore take half the recurrence;
    # neutral on single-TC v5e/v6e.
    tile_b = Bp // 2 if (Bp >= 16 and (Bp // 2) % 8 == 0) else Bp
    n_btiles = Bp // tile_b

    def reorder_pad_gate_rows(w):
        # PyTorch gate row order (i, f, g, o) -> (i, f, o, g); pad each gate
        # block to Hp rows with zeros (padding never affects real outputs).
        i, f, g, o = jnp.split(w, 4, axis=0)
        pad = lambda m: jnp.pad(m, ((0, Hp - H),) + ((0, 0),) * (m.ndim - 1))
        return jnp.concatenate([pad(i), pad(f), pad(o), pad(g)], axis=0)

    # W_ih: (4H, E) -> (Ep, 4Hp), bf16 MXU operand (weights cast once).
    wih_r = reorder_pad_gate_rows(w_ih.astype(jnp.float32))           # (4Hp, E)
    wih_r = jnp.pad(wih_r, ((0, 0), (0, Ep - E)))                     # (4Hp, Ep)
    wih_t = jnp.transpose(wih_r).astype(jnp.bfloat16)                 # (Ep, 4Hp)

    # W_hh: (4H, H) -> (Hp, 4Hp) in bf16 (explicit choice: default TPU MXU
    # precision truncates f32 operands to bf16 anyway; accumulation stays f32).
    whh_r = reorder_pad_gate_rows(w_hh.astype(jnp.float32))           # (4Hp, H)
    whh_r = jnp.pad(whh_r, ((0, 0), (0, Hp - H)))                     # (4Hp, Hp)
    whh_t = jnp.transpose(whh_r).astype(jnp.bfloat16)                 # (Hp, 4Hp)

    # Folded bias (b_ih + b_hh), reordered/padded: (1, 4Hp) f32.
    b = reorder_pad_gate_rows((b_ih + b_hh).astype(jnp.float32)[:, None])
    b = jnp.transpose(b)                                              # (1, 4Hp)

    # Label linear: (out, H) -> (Hp, OUTp) bf16;  bias (1, OUTp) f32.
    wl_t = jnp.transpose(
        jnp.pad(w_label.astype(jnp.float32),
                ((0, OUTp - out_sz), (0, Hp - H)))).astype(jnp.bfloat16)
    bl = jnp.pad(b_label.astype(jnp.float32),
                 (0, OUTp - out_sz)).reshape(1, OUTp)

    # Input: zero-pad batch / seq / embed (no-ops when already aligned, e.g.
    # E=768), flatten to (Bp*Sp, Ep) rows — contiguous reshape, no transpose,
    # and NO wrapper-side bf16 cast (kernel reads f32 once, casts on the VPU).
    x = jnp.pad(text_emb.astype(jnp.float32),
                ((0, Bp - B), (0, Sp - S), (0, Ep - E)))              # (Bp,Sp,Ep)
    x_flat = x.reshape(Bp * Sp, Ep)                                   # (R, Ep)
    R = Bp * Sp

    # Row tile for the hoisted GEMM: as large as the VMEM budget allows
    # (target 1024 — the kernel is HBM-bound and bigger tiles approach the HBM
    # roofline), a multiple of 8, and an exact divisor of R so xw never needs a
    # slice-copy between the two kernels.
    k1_budget = (40 << 20) - Ep * GH * 2
    tm = max(8, min(R, 1024, k1_budget // (8 * (Ep + GH))))
    tm -= tm % 8
    while R % tm:
        tm -= 8

    k1_vmem = 2 * tm * (Ep + GH) * 4 + Ep * GH * 2 + GH * 4

    # ---- kernel 1: one big GEMM over all timesteps (row-tiled) -------------
    xw = pl.pallas_call(
        _input_proj_kernel,
        out_shape=jax.ShapeDtypeStruct((R, GH), jnp.float32),
        grid=(R // tm,),
        in_specs=[
            pl.BlockSpec((tm, Ep), lambda r: (r, 0)),     # streamed row tiles
            _resident((Ep, GH), lambda r: (0, 0)),        # W_ih^T, 1 buffer
            _resident((1, GH), lambda r: (0, 0)),         # folded bias
        ],
        out_specs=pl.BlockSpec((tm, GH), lambda r: (r, 0)),
        compiler_params=pltpu.CompilerParams(
            dimension_semantics=("parallel",),
            vmem_limit_bytes=_vmem_limit(k1_vmem)),
    )(x_flat, wih_t, b)

    # Batch-major (Bp, Sp*4Hp) view of the gate pre-activations.  R == Bp*Sp
    # exactly, so this is a zero-copy reshape (no slice materialization).
    # TODO(synk): on v5e, storing this intermediate in bf16 would halve its HBM
    # traffic at a small additional precision cost.
    xw2d = xw.reshape(Bp, Sp * GH)

    k2_vmem = (2 * tile_b * chunk * GH * 4           # streamed gate blocks x2
               + Hp * GH * 2 + Hp * OUTp * 2         # resident bf16 weights x1
               + OUTp * 4                            # resident bias
               + 2 * tile_b * Hp * 4                 # h/c scratch
               + 2 * tile_b * OUTp * 4)              # output block

    # ---- kernel 2: recurrence over seq chunks, unrolled within a chunk -----
    kernel = functools.partial(_lstm_recurrence_kernel,
                               hidden_pad=Hp, chunk=chunk, seq_len=S)
    out = pl.pallas_call(
        kernel,
        out_shape=jax.ShapeDtypeStruct((Bp, OUTp), jnp.float32),
        grid=(n_btiles, n_chunks),
        in_specs=[
            pl.BlockSpec((tile_b, chunk * GH), lambda bt, ci: (bt, ci)),
            _resident((Hp, GH), lambda bt, ci: (0, 0)),     # W_hh^T resident
            _resident((Hp, OUTp), lambda bt, ci: (0, 0)),   # W_label^T resident
            _resident((1, OUTp), lambda bt, ci: (0, 0)),    # b_label resident
        ],
        out_specs=pl.BlockSpec((tile_b, OUTp), lambda bt, ci: (bt, 0)),
        scratch_shapes=[
            pltpu.VMEM((tile_b, Hp), jnp.float32),  # h, persists across chunks
            pltpu.VMEM((tile_b, Hp), jnp.float32),  # c
        ],
        compiler_params=pltpu.CompilerParams(
            dimension_semantics=("parallel", "arbitrary"),
            vmem_limit_bytes=_vmem_limit(k2_vmem)),
    )(xw2d, whh_t, wl_t, bl)

    final = out[:B, :out_sz]
    # PyTorch .squeeze(1) is a no-op when output_size != 1 — mirror that.
    return final[:, 0] if out_sz == 1 else final


# ----------------------------- pure-JAX reference ----------------------------
def _reference_forward(text_emb, p):
    w_ih, w_hh = p["w_ih"], p["w_hh"]
    bias = p["b_ih"] + p["b_hh"]
    w_label, b_label = p["w_label"], p["b_label"]
    H = w_hh.shape[1]
    B = text_emb.shape[0]

    def step(carry, x_t):
        h, c = carry
        gates = x_t @ w_ih.T + h @ w_hh.T + bias
        i, f, g, o = jnp.split(gates, 4, axis=-1)
        i, f, o = jax.nn.sigmoid(i), jax.nn.sigmoid(f), jax.nn.sigmoid(o)
        g = jnp.tanh(g)
        c = f * c + i * g
        h = o * jnp.tanh(c)
        return (h, c), None

    h0 = jnp.zeros((B, H), jnp.float32)
    c0 = jnp.zeros((B, H), jnp.float32)
    (h_T, _), _ = jax.lax.scan(step, (h0, c0), jnp.swapaxes(text_emb, 0, 1))
    out = h_T @ w_label.T + b_label
    return out[:, 0] if w_label.shape[0] == 1 else out


def init_params(key, embed, hidden, output_size):
    """Deterministic init matching PyTorch LSTM/Linear parameter shapes."""
    k = jax.random.split(key, 6)
    s = 1.0 / jnp.sqrt(hidden)
    return {
        # nn.LSTM(embed, hidden): weight_ih_l0 (4H,E), weight_hh_l0 (4H,H),
        #                         bias_ih_l0 (4H,),  bias_hh_l0 (4H,)
        "w_ih": jax.random.uniform(k[0], (4 * hidden, embed), minval=-s, maxval=s),
        "w_hh": jax.random.uniform(k[1], (4 * hidden, hidden), minval=-s, maxval=s),
        "b_ih": jax.random.uniform(k[2], (4 * hidden,), minval=-s, maxval=s),
        "b_hh": jax.random.uniform(k[3], (4 * hidden,), minval=-s, maxval=s),
        # nn.Linear(hidden, output_size): weight (out,H), bias (out,)
        "w_label": jax.random.uniform(k[4], (output_size, hidden),
                                      minval=-s, maxval=s),
        "b_label": jax.random.uniform(k[5], (output_size,), minval=-s, maxval=s),
    }


if __name__ == "__main__":
    # Module spec: embedding_length=768, hidden_size=256, output_size=1.
    # Small batch/seq for the example run.
    batch, seq, embed, hidden, out_sz = 2, 8, 768, 256, 1

    key = jax.random.PRNGKey(0)
    k_x, k_p = jax.random.split(key)
    text_emb = jax.random.normal(k_x, (batch, seq, embed), dtype=jnp.float32)
    params = init_params(k_p, embed, hidden, out_sz)

    fwd = jax.jit(classification_text_forward)
    out = fwd(text_emb, params)
    jax.block_until_ready(out)
    assert out.shape == (batch,), out.shape

    # Parity vs a pure-JAX reference (bf16 MXU operands -> loose tolerance).
    ref = _reference_forward(text_emb, params)
    err = float(jnp.max(jnp.abs(out - ref)))
    assert err < 5e-2, f"max abs err vs reference: {err}"

    print("KERNEL_OK")
</pallas_src>

<mosaic_0001>
module attributes {stable_mosaic.version = 11 : i64} {
  func.func @_input_proj_kernel(%arg0: i32, %arg1: memref<64x768xf32, #tpu.memory_space<vmem>>, %arg2: memref<768x1024xbf16, #tpu.memory_space<vmem>>, %arg3: memref<1x1024xf32, #tpu.memory_space<vmem>>, %arg4: memref<64x1024xf32, #tpu.memory_space<vmem>>) attributes {dimension_semantics = [#tpu.dimension_semantics<parallel>], iteration_bounds = array<i64: 1>, scalar_prefetch = 0 : i64, scratch_operands = 0 : i64, tpu.core_type = #tpu.core_type<tc>, window_params = [{transform_indices = @transform_0, window_bounds = array<i64: 64, 768>}, {pipeline_mode = #tpu.pipeline_mode<synchronous>, transform_indices = @transform_1, window_bounds = array<i64: 768, 1024>}, {pipeline_mode = #tpu.pipeline_mode<synchronous>, transform_indices = @transform_2, window_bounds = array<i64: 1, 1024>}, {transform_indices = @transform_3, window_bounds = array<i64: 64, 1024>}]} {
    %c0 = arith.constant 0 : index
    %c0_0 = arith.constant 0 : index
    %0 = vector.load %arg1[%c0, %c0_0] : memref<64x768xf32, #tpu.memory_space<vmem>>, vector<64x768xf32>
    %1 = arith.truncf %0 : vector<64x768xf32> to vector<64x768xbf16>
    %c0_1 = arith.constant 0 : index
    %c0_2 = arith.constant 0 : index
    %2 = vector.load %arg2[%c0_1, %c0_2] : memref<768x1024xbf16, #tpu.memory_space<vmem>>, vector<768x1024xbf16>
    %cst = arith.constant dense<0.000000e+00> : vector<64x1024xf32>
    %3 = tpu.matmul %1, %2, %cst {dimension_numbers = #tpu.dot_dimension_numbers<[1], [0], [0], [1], [0, 0, 1, 1], [], []>} : vector<64x768xbf16>, vector<768x1024xbf16>, vector<64x1024xf32> -> vector<64x1024xf32>
    %c0_3 = arith.constant 0 : index
    %c0_4 = arith.constant 0 : index
    %4 = vector.load %arg3[%c0_3, %c0_4] : memref<1x1024xf32, #tpu.memory_space<vmem>>, vector<1x1024xf32>
    %5 = vector.broadcast %4 : vector<1x1024xf32> to vector<64x1024xf32>
    %6 = arith.addf %3, %5 : vector<64x1024xf32>
    %c0_5 = arith.constant 0 : index
    %c0_6 = arith.constant 0 : index
    %7 = vector.load %arg4[%c0_5, %c0_6] : memref<64x1024xf32, #tpu.memory_space<vmem>>, vector<64x1024xf32>
    tpu.vector_store %arg4[%c0_5, %c0_6], %6 {strides = array<i32>} : memref<64x1024xf32, #tpu.memory_space<vmem>>, vector<64x1024xf32>,
    return
  }
  func.func @transform_0(%arg0: i32) -> (i32, i32) {
    %c0_i32 = arith.constant 0 : i32
    %c0_i32_0 = arith.constant 0 : i32
    return %arg0, %c0_i32 : i32, i32
  }
  func.func @transform_1(%arg0: i32) -> (i32, i32) {
    %c0_i32 = arith.constant 0 : i32
    %c0_i32_0 = arith.constant 0 : i32
    %c0_i32_1 = arith.constant 0 : i32
    return %c0_i32, %c0_i32_0 : i32, i32
  }
  func.func @transform_2(%arg0: i32) -> (i32, i32) {
    %c0_i32 = arith.constant 0 : i32
    %c0_i32_0 = arith.constant 0 : i32
    %c0_i32_1 = arith.constant 0 : i32
    return %c0_i32, %c0_i32_0 : i32, i32
  }
  func.func @transform_3(%arg0: i32) -> (i32, i32) {
    %c0_i32 = arith.constant 0 : i32
    %c0_i32_0 = arith.constant 0 : i32
    return %arg0, %c0_i32 : i32, i32
  }
}

module attributes {stable_mosaic.version = 11 : i64} {
  func.func @_lstm_recurrence_kernel(%arg0: i32, %arg1: i32, %arg2: memref<8x8192xf32, #tpu.memory_space<vmem>>, %arg3: memref<256x1024xbf16, #tpu.memory_space<vmem>>, %arg4: memref<256x128xbf16, #tpu.memory_space<vmem>>, %arg5: memref<1x128xf32, #tpu.memory_space<vmem>>, %arg6: memref<8x128xf32, #tpu.memory_space<vmem>>, %arg7: memref<8x256xf32, #tpu.memory_space<vmem>>, %arg8: memref<8x256xf32, #tpu.memory_space<vmem>>) attributes {dimension_semantics = [#tpu.dimension_semantics<parallel>, #tpu.dimension_semantics<arbitrary>], iteration_bounds = array<i64: 1, 1>, scalar_prefetch = 0 : i64, scratch_operands = 2 : i64, tpu.core_type = #tpu.core_type<tc>, window_params = [{transform_indices = @transform_0, window_bounds = array<i64: 8, 8192>}, {pipeline_mode = #tpu.pipeline_mode<synchronous>, transform_indices = @transform_1, window_bounds = array<i64: 256, 1024>}, {pipeline_mode = #tpu.pipeline_mode<synchronous>, transform_indices = @transform_2, window_bounds = array<i64: 256, 128>}, {pipeline_mode = #tpu.pipeline_mode<synchronous>, transform_indices = @transform_3, window_bounds = array<i64: 1, 128>}, {transform_indices = @transform_4, window_bounds = array<i64: 8, 128>}]} {
    %c0_i32 = arith.constant 0 : i32
    %0 = arith.cmpi eq, %arg1, %c0_i32 : i32
    %1 = arith.extui %0 : i1 to i32
    %c0_i32_0 = arith.constant 0 : i32
    %2 = arith.cmpi ne, %1, %c0_i32_0 : i32
    scf.if %2 {
      %cst_36 = arith.constant 0.000000e+00 : f32
      %171 = vector.broadcast %cst_36 : f32 to vector<8x256xf32>
      %c0_37 = arith.constant 0 : index
      %c0_38 = arith.constant 0 : index
      %172 = vector.load %arg7[%c0_37, %c0_38] : memref<8x256xf32, #tpu.memory_space<vmem>>, vector<8x256xf32>
      tpu.vector_store %arg7[%c0_37, %c0_38], %171 {strides = array<i32>} : memref<8x256xf32, #tpu.memory_space<vmem>>, vector<8x256xf32>,
      %cst_39 = arith.constant 0.000000e+00 : f32
      %173 = vector.broadcast %cst_39 : f32 to vector<8x256xf32>
      %c0_40 = arith.constant 0 : index
      %c0_41 = arith.constant 0 : index
      %174 = vector.load %arg8[%c0_40, %c0_41] : memref<8x256xf32, #tpu.memory_space<vmem>>, vector<8x256xf32>
      tpu.vector_store %arg8[%c0_40, %c0_41], %173 {strides = array<i32>} : memref<8x256xf32, #tpu.memory_space<vmem>>, vector<8x256xf32>,
    } else {
    }
    %c0 = arith.constant 0 : index
    %c0_1 = arith.constant 0 : index
    %3 = vector.load %arg7[%c0, %c0_1] : memref<8x256xf32, #tpu.memory_space<vmem>>, vector<8x256xf32>
    %c0_2 = arith.constant 0 : index
    %c0_3 = arith.constant 0 : index
    %4 = vector.load %arg8[%c0_2, %c0_3] : memref<8x256xf32, #tpu.memory_space<vmem>>, vector<8x256xf32>
    %c0_4 = arith.constant 0 : index
    %c0_5 = arith.constant 0 : index
    %5 = vector.load %arg3[%c0_4, %c0_5] : memref<256x1024xbf16, #tpu.memory_space<vmem>>, vector<256x1024xbf16>
    %c0_6 = arith.constant 0 : index
    %c0_7 = arith.constant 0 : index
    %6 = vector.load %arg2[%c0_6, %c0_7] : memref<8x8192xf32, #tpu.memory_space<vmem>>, vector<8x1024xf32>
    %7 = arith.truncf %3 : vector<8x256xf32> to vector<8x256xbf16>
    %cst = arith.constant dense<0.000000e+00> : vector<8x1024xf32>
    %8 = tpu.matmul %7, %5, %cst {dimension_numbers = #tpu.dot_dimension_numbers<[1], [0], [0], [1], [0, 0, 1, 1], [], []>} : vector<8x256xbf16>, vector<256x1024xbf16>, vector<8x1024xf32> -> vector<8x1024xf32>
    %9 = arith.addf %6, %8 : vector<8x1024xf32>
    %10 = vector.extract_strided_slice %9 {offsets = [0, 0], sizes = [8, 768], strides = [1, 1]} : vector<8x1024xf32> to vector<8x768xf32>
    %11 = arith.negf %10 : vector<8x768xf32>
    %12 = math.exp %11 : vector<8x768xf32>
    %cst_8 = arith.constant 1.000000e+00 : f32
    %13 = vector.broadcast %cst_8 : f32 to vector<8x768xf32>
    %14 = arith.addf %13, %12 : vector<8x768xf32>
    %15 = arith.divf %13, %14 : vector<8x768xf32>
    %16 = vector.extract_strided_slice %9 {offsets = [0, 768], sizes = [8, 256], strides = [1, 1]} : vector<8x1024xf32> to vector<8x256xf32>
    %17 = math.tanh %16 : vector<8x256xf32>
    %18 = vector.extract_strided_slice %15 {offsets = [0, 0], sizes = [8, 256], strides = [1, 1]} : vector<8x768xf32> to vector<8x256xf32>
    %19 = vector.extract_strided_slice %15 {offsets = [0, 256], sizes = [8, 256], strides = [1, 1]} : vector<8x768xf32> to vector<8x256xf32>
    %20 = vector.extract_strided_slice %15 {offsets = [0, 512], sizes = [8, 256], strides = [1, 1]} : vector<8x768xf32> to vector<8x256xf32>
    %21 = arith.mulf %19, %4 : vector<8x256xf32>
    %22 = arith.mulf %18, %17 : vector<8x256xf32>
    %23 = arith.addf %21, %22 : vector<8x256xf32>
    %24 = math.tanh %23 : vector<8x256xf32>
    %25 = arith.mulf %20, %24 : vector<8x256xf32>
    %c0_9 = arith.constant 0 : index
    %c1024 = arith.constant 1024 : index
    %26 = vector.load %arg2[%c0_9, %c1024] : memref<8x8192xf32, #tpu.memory_space<vmem>>, vector<8x1024xf32>
    %27 = arith.truncf %25 : vector<8x256xf32> to vector<8x256xbf16>
    %cst_10 = arith.constant dense<0.000000e+00> : vector<8x1024xf32>
    %28 = tpu.matmul %27, %5, %cst_10 {dimension_numbers = #tpu.dot_dimension_numbers<[1], [0], [0], [1], [0, 0, 1, 1], [], []>} : vector<8x256xbf16>, vector<256x1024xbf16>, vector<8x1024xf32> -> vector<8x1024xf32>
    %29 = arith.addf %26, %28 : vector<8x1024xf32>
    %30 = vector.extract_strided_slice %29 {offsets = [0, 0], sizes = [8, 768], strides = [1, 1]} : vector<8x1024xf32> to vector<8x768xf32>
    %31 = arith.negf %30 : vector<8x768xf32>
    %32 = math.exp %31 : vector<8x768xf32>
    %cst_11 = arith.constant 1.000000e+00 : f32
    %33 = vector.broadcast %cst_11 : f32 to vector<8x768xf32>
    %34 = arith.addf %33, %32 : vector<8x768xf32>
    %35 = arith.divf %33, %34 : vector<8x768xf32>
    %36 = vector.extract_strided_slice %29 {offsets = [0, 768], sizes = [8, 256], strides = [1, 1]} : vector<8x1024xf32> to vector<8x256xf32>
    %37 = math.tanh %36 : vector<8x256xf32>
    %38 = vector.extract_strided_slice %35 {offsets = [0, 0], sizes = [8, 256], strides = [1, 1]} : vector<8x768xf32> to vector<8x256xf32>
    %39 = vector.extract_strided_slice %35 {offsets = [0, 256], sizes = [8, 256], strides = [1, 1]} : vector<8x768xf32> to vector<8x256xf32>
    %40 = vector.extract_strided_slice %35 {offsets = [0, 512], sizes = [8, 256], strides = [1, 1]} : vector<8x768xf32> to vector<8x256xf32>
    %41 = arith.mulf %39, %23 : vector<8x256xf32>
    %42 = arith.mulf %38, %37 : vector<8x256xf32>
    %43 = arith.addf %41, %42 : vector<8x256xf32>
    %44 = math.tanh %43 : vector<8x256xf32>
    %45 = arith.mulf %40, %44 : vector<8x256xf32>
    %c0_12 = arith.constant 0 : index
    %c2048 = arith.constant 2048 : index
    %46 = vector.load %arg2[%c0_12, %c2048] : memref<8x8192xf32, #tpu.memory_space<vmem>>, vector<8x1024xf32>
    %47 = arith.truncf %45 : vector<8x256xf32> to vector<8x256xbf16>
    %cst_13 = arith.constant dense<0.000000e+00> : vector<8x1024xf32>
    %48 = tpu.matmul %47, %5, %cst_13 {dimension_numbers = #tpu.dot_dimension_numbers<[1], [0], [0], [1], [0, 0, 1, 1], [], []>} : vector<8x256xbf16>, vector<256x1024xbf16>, vector<8x1024xf32> -> vector<8x1024xf32>
    %49 = arith.addf %46, %48 : vector<8x1024xf32>
    %50 = vector.extract_strided_slice %49 {offsets = [0, 0], sizes = [8, 768], strides = [1, 1]} : vector<8x1024xf32> to vector<8x768xf32>
    %51 = arith.negf %50 : vector<8x768xf32>
    %52 = math.exp %51 : vector<8x768xf32>
    %cst_14 = arith.constant 1.000000e+00 : f32
    %53 = vector.broadcast %cst_14 : f32 to vector<8x768xf32>
    %54 = arith.addf %53, %52 : vector<8x768xf32>
    %55 = arith.divf %53, %54 : vector<8x768xf32>
    %56 = vector.extract_strided_slice %49 {offsets = [0, 768], sizes = [8, 256], strides = [1, 1]} : vector<8x1024xf32> to vector<8x256xf32>
    %57 = math.tanh %56 : vector<8x256xf32>
    %58 = vector.extract_strided_slice %55 {offsets = [0, 0], sizes = [8, 256], strides = [1, 1]} : vector<8x768xf32> to vector<8x256xf32>
    %59 = vector.extract_strided_slice %55 {offsets = [0, 256], sizes = [8, 256], strides = [1, 1]} : vector<8x768xf32> to vector<8x256xf32>
    %60 = vector.extract_strided_slice %55 {offsets = [0, 512], sizes = [8, 256], strides = [1, 1]} : vector<8x768xf32> to vector<8x256xf32>
    %61 = arith.mulf %59, %43 : vector<8x256xf32>
    %62 = arith.mulf %58, %57 : vector<8x256xf32>
    %63 = arith.addf %61, %62 : vector<8x256xf32>
    %64 = math.tanh %63 : vector<8x256xf32>
    %65 = arith.mulf %60, %64 : vector<8x256xf32>
    %c0_15 = arith.constant 0 : index
    %c3072 = arith.constant 3072 : index
    %66 = vector.load %arg2[%c0_15, %c3072] : memref<8x8192xf32, #tpu.memory_space<vmem>>, vector<8x1024xf32>
    %67 = arith.truncf %65 : vector<8x256xf32> to vector<8x256xbf16>
    %cst_16 = arith.constant dense<0.000000e+00> : vector<8x1024xf32>
    %68 = tpu.matmul %67, %5, %cst_16 {dimension_numbers = #tpu.dot_dimension_numbers<[1], [0], [0], [1], [0, 0, 1, 1], [], []>} : vector<8x256xbf16>, vector<256x1024xbf16>, vector<8x1024xf32> -> vector<8x1024xf32>
    %69 = arith.addf %66, %68 : vector<8x1024xf32>
    %70 = vector.extract_strided_slice %69 {offsets = [0, 0], sizes = [8, 768], strides = [1, 1]} : vector<8x1024xf32> to vector<8x768xf32>
    %71 = arith.negf %70 : vector<8x768xf32>
    %72 = math.exp %71 : vector<8x768xf32>
    %cst_17 = arith.constant 1.000000e+00 : f32
    %73 = vector.broadcast %cst_17 : f32 to vector<8x768xf32>
    %74 = arith.addf %73, %72 : vector<8x768xf32>
    %75 = arith.divf %73, %74 : vector<8x768xf32>
    %76 = vector.extract_strided_slice %69 {offsets = [0, 768], sizes = [8, 256], strides = [1, 1]} : vector<8x1024xf32> to vector<8x256xf32>
    %77 = math.tanh %76 : vector<8x256xf32>
    %78 = vector.extract_strided_slice %75 {offsets = [0, 0], sizes = [8, 256], strides = [1, 1]} : vector<8x768xf32> to vector<8x256xf32>
    %79 = vector.extract_strided_slice %75 {offsets = [0, 256], sizes = [8, 256], strides = [1, 1]} : vector<8x768xf32> to vector<8x256xf32>
    %80 = vector.extract_strided_slice %75 {offsets = [0, 512], sizes = [8, 256], strides = [1, 1]} : vector<8x768xf32> to vector<8x256xf32>
    %81 = arith.mulf %79, %63 : vector<8x256xf32>
    %82 = arith.mulf %78, %77 : vector<8x256xf32>
    %83 = arith.addf %81, %82 : vector<8x256xf32>
    %84 = math.tanh %83 : vector<8x256xf32>
    %85 = arith.mulf %80, %84 : vector<8x256xf32>
    %c0_18 = arith.constant 0 : index
    %c4096 = arith.constant 4096 : index
    %86 = vector.load %arg2[%c0_18, %c4096] : memref<8x8192xf32, #tpu.memory_space<vmem>>, vector<8x1024xf32>
    %87 = arith.truncf %85 : vector<8x256xf32> to vector<8x256xbf16>
    %cst_19 = arith.constant dense<0.000000e+00> : vector<8x1024xf32>
    %88 = tpu.matmul %87, %5, %cst_19 {dimension_numbers = #tpu.dot_dimension_numbers<[1], [0], [0], [1], [0, 0, 1, 1], [], []>} : vector<8x256xbf16>, vector<256x1024xbf16>, vector<8x1024xf32> -> vector<8x1024xf32>
    %89 = arith.addf %86, %88 : vector<8x1024xf32>
    %90 = vector.extract_strided_slice %89 {offsets = [0, 0], sizes = [8, 768], strides = [1, 1]} : vector<8x1024xf32> to vector<8x768xf32>
    %91 = arith.negf %90 : vector<8x768xf32>
    %92 = math.exp %91 : vector<8x768xf32>
    %cst_20 = arith.constant 1.000000e+00 : f32
    %93 = vector.broadcast %cst_20 : f32 to vector<8x768xf32>
    %94 = arith.addf %93, %92 : vector<8x768xf32>
    %95 = arith.divf %93, %94 : vector<8x768xf32>
    %96 = vector.extract_strided_slice %89 {offsets = [0, 768], sizes = [8, 256], strides = [1, 1]} : vector<8x1024xf32> to vector<8x256xf32>
    %97 = math.tanh %96 : vector<8x256xf32>
    %98 = vector.extract_strided_slice %95 {offsets = [0, 0], sizes = [8, 256], strides = [1, 1]} : vector<8x768xf32> to vector<8x256xf32>
    %99 = vector.extract_strided_slice %95 {offsets = [0, 256], sizes = [8, 256], strides = [1, 1]} : vector<8x768xf32> to vector<8x256xf32>
    %100 = vector.extract_strided_slice %95 {offsets = [0, 512], sizes = [8, 256], strides = [1, 1]} : vector<8x768xf32> to vector<8x256xf32>
    %101 = arith.mulf %99, %83 : vector<8x256xf32>
    %102 = arith.mulf %98, %97 : vector<8x256xf32>
    %103 = arith.addf %101, %102 : vector<8x256xf32>
    %104 = math.tanh %103 : vector<8x256xf32>
    %105 = arith.mulf %100, %104 : vector<8x256xf32>
    %c0_21 = arith.constant 0 : index
    %c5120 = arith.constant 5120 : index
    %106 = vector.load %arg2[%c0_21, %c5120] : memref<8x8192xf32, #tpu.memory_space<vmem>>, vector<8x1024xf32>
    %107 = arith.truncf %105 : vector<8x256xf32> to vector<8x256xbf16>
    %cst_22 = arith.constant dense<0.000000e+00> : vector<8x1024xf32>
    %108 = tpu.matmul %107, %5, %cst_22 {dimension_numbers = #tpu.dot_dimension_numbers<[1], [0], [0], [1], [0, 0, 1, 1], [], []>} : vector<8x256xbf16>, vector<256x1024xbf16>, vector<8x1024xf32> -> vector<8x1024xf32>
    %109 = arith.addf %106, %108 : vector<8x1024xf32>
    %110 = vector.extract_strided_slice %109 {offsets = [0, 0], sizes = [8, 768], strides = [1, 1]} : vector<8x1024xf32> to vector<8x768xf32>
    %111 = arith.negf %110 : vector<8x768xf32>
    %112 = math.exp %111 : vector<8x768xf32>
    %cst_23 = arith.constant 1.000000e+00 : f32
    %113 = vector.broadcast %cst_23 : f32 to vector<8x768xf32>
    %114 = arith.addf %113, %112 : vector<8x768xf32>
    %115 = arith.divf %113, %114 : vector<8x768xf32>
    %116 = vector.extract_strided_slice %109 {offsets = [0, 768], sizes = [8, 256], strides = [1, 1]} : vector<8x1024xf32> to vector<8x256xf32>
    %117 = math.tanh %116 : vector<8x256xf32>
    %118 = vector.extract_strided_slice %115 {offsets = [0, 0], sizes = [8, 256], strides = [1, 1]} : vector<8x768xf32> to vector<8x256xf32>
    %119 = vector.extract_strided_slice %115 {offsets = [0, 256], sizes = [8, 256], strides = [1, 1]} : vector<8x768xf32> to vector<8x256xf32>
    %120 = vector.extract_strided_slice %115 {offsets = [0, 512], sizes = [8, 256], strides = [1, 1]} : vector<8x768xf32> to vector<8x256xf32>
    %121 = arith.mulf %119, %103 : vector<8x256xf32>
    %122 = arith.mulf %118, %117 : vector<8x256xf32>
    %123 = arith.addf %121, %122 : vector<8x256xf32>
    %124 = math.tanh %123 : vector<8x256xf32>
    %125 = arith.mulf %120, %124 : vector<8x256xf32>
    %c0_24 = arith.constant 0 : index
    %c6144 = arith.constant 6144 : index
    %126 = vector.load %arg2[%c0_24, %c6144] : memref<8x8192xf32, #tpu.memory_space<vmem>>, vector<8x1024xf32>
    %127 = arith.truncf %125 : vector<8x256xf32> to vector<8x256xbf16>
    %cst_25 = arith.constant dense<0.000000e+00> : vector<8x1024xf32>
    %128 = tpu.matmul %127, %5, %cst_25 {dimension_numbers = #tpu.dot_dimension_numbers<[1], [0], [0], [1], [0, 0, 1, 1], [], []>} : vector<8x256xbf16>, vector<256x1024xbf16>, vector<8x1024xf32> -> vector<8x1024xf32>
    %129 = arith.addf %126, %128 : vector<8x1024xf32>
    %130 = vector.extract_strided_slice %129 {offsets = [0, 0], sizes = [8, 768], strides = [1, 1]} : vector<8x1024xf32> to vector<8x768xf32>
    %131 = arith.negf %130 : vector<8x768xf32>
    %132 = math.exp %131 : vector<8x768xf32>
    %cst_26 = arith.constant 1.000000e+00 : f32
    %133 = vector.broadcast %cst_26 : f32 to vector<8x768xf32>
    %134 = arith.addf %133, %132 : vector<8x768xf32>
    %135 = arith.divf %133, %134 : vector<8x768xf32>
    %136 = vector.extract_strided_slice %129 {offsets = [0, 768], sizes = [8, 256], strides = [1, 1]} : vector<8x1024xf32> to vector<8x256xf32>
    %137 = math.tanh %136 : vector<8x256xf32>
    %138 = vector.extract_strided_slice %135 {offsets = [0, 0], sizes = [8, 256], strides = [1, 1]} : vector<8x768xf32> to vector<8x256xf32>
    %139 = vector.extract_strided_slice %135 {offsets = [0, 256], sizes = [8, 256], strides = [1, 1]} : vector<8x768xf32> to vector<8x256xf32>
    %140 = vector.extract_strided_slice %135 {offsets = [0, 512], sizes = [8, 256], strides = [1, 1]} : vector<8x768xf32> to vector<8x256xf32>
    %141 = arith.mulf %139, %123 : vector<8x256xf32>
    %142 = arith.mulf %138, %137 : vector<8x256xf32>
    %143 = arith.addf %141, %142 : vector<8x256xf32>
    %144 = math.tanh %143 : vector<8x256xf32>
    %145 = arith.mulf %140, %144 : vector<8x256xf32>
    %c0_27 = arith.constant 0 : index
    %c7168 = arith.constant 7168 : index
    %146 = vector.load %arg2[%c0_27, %c7168] : memref<8x8192xf32, #tpu.memory_space<vmem>>, vector<8x1024xf32>
    %147 = arith.truncf %145 : vector<8x256xf32> to vector<8x256xbf16>
    %cst_28 = arith.constant dense<0.000000e+00> : vector<8x1024xf32>
    %148 = tpu.matmul %147, %5, %cst_28 {dimension_numbers = #tpu.dot_dimension_numbers<[1], [0], [0], [1], [0, 0, 1, 1], [], []>} : vector<8x256xbf16>, vector<256x1024xbf16>, vector<8x1024xf32> -> vector<8x1024xf32>
    %149 = arith.addf %146, %148 : vector<8x1024xf32>
    %150 = vector.extract_strided_slice %149 {offsets = [0, 0], sizes = [8, 768], strides = [1, 1]} : vector<8x1024xf32> to vector<8x768xf32>
    %151 = arith.negf %150 : vector<8x768xf32>
    %152 = math.exp %151 : vector<8x768xf32>
    %cst_29 = arith.constant 1.000000e+00 : f32
    %153 = vector.broadcast %cst_29 : f32 to vector<8x768xf32>
    %154 = arith.addf %153, %152 : vector<8x768xf32>
    %155 = arith.divf %153, %154 : vector<8x768xf32>
    %156 = vector.extract_strided_slice %149 {offsets = [0, 768], sizes = [8, 256], strides = [1, 1]} : vector<8x1024xf32> to vector<8x256xf32>
    %157 = math.tanh %156 : vector<8x256xf32>
    %158 = vector.extract_strided_slice %155 {offsets = [0, 0], sizes = [8, 256], strides = [1, 1]} : vector<8x768xf32> to vector<8x256xf32>
    %159 = vector.extract_strided_slice %155 {offsets = [0, 256], sizes = [8, 256], strides = [1, 1]} : vector<8x768xf32> to vector<8x256xf32>
    %160 = vector.extract_strided_slice %155 {offsets = [0, 512], sizes = [8, 256], strides = [1, 1]} : vector<8x768xf32> to vector<8x256xf32>
    %161 = arith.mulf %159, %143 : vector<8x256xf32>
    %162 = arith.mulf %158, %157 : vector<8x256xf32>
    %163 = arith.addf %161, %162 : vector<8x256xf32>
    %164 = math.tanh %163 : vector<8x256xf32>
    %165 = arith.mulf %160, %164 : vector<8x256xf32>
    %c0_30 = arith.constant 0 : index
    %c0_31 = arith.constant 0 : index
    %166 = vector.load %arg7[%c0_30, %c0_31] : memref<8x256xf32, #tpu.memory_space<vmem>>, vector<8x256xf32>
    tpu.vector_store %arg7[%c0_30, %c0_31], %165 {strides = array<i32>} : memref<8x256xf32, #tpu.memory_space<vmem>>, vector<8x256xf32>,
    %c0_32 = arith.constant 0 : index
    %c0_33 = arith.constant 0 : index
    %167 = vector.load %arg8[%c0_32, %c0_33] : memref<8x256xf32, #tpu.memory_space<vmem>>, vector<8x256xf32>
    tpu.vector_store %arg8[%c0_32, %c0_33], %163 {strides = array<i32>} : memref<8x256xf32, #tpu.memory_space<vmem>>, vector<8x256xf32>,
    %c0_i32_34 = arith.constant 0 : i32
    %168 = arith.cmpi eq, %arg1, %c0_i32_34 : i32
    %169 = arith.extui %168 : i1 to i32
    %c0_i32_35 = arith.constant 0 : i32
    %170 = arith.cmpi ne, %169, %c0_i32_35 : i32
    scf.if %170 {
      %171 = arith.truncf %165 : vector<8x256xf32> to vector<8x256xbf16>
      %c0_36 = arith.constant 0 : index
      %c0_37 = arith.constant 0 : index
      %172 = vector.load %arg4[%c0_36, %c0_37] : memref<256x128xbf16, #tpu.memory_space<vmem>>, vector<256x128xbf16>
      %cst_38 = arith.constant dense<0.000000e+00> : vector<8x128xf32>
      %173 = tpu.matmul %171, %172, %cst_38 {dimension_numbers = #tpu.dot_dimension_numbers<[1], [0], [0], [1], [0, 0, 1, 1], [], []>} : vector<8x256xbf16>, vector<256x128xbf16>, vector<8x128xf32> -> vector<8x128xf32>
      %c0_39 = arith.constant 0 : index
      %c0_40 = arith.constant 0 : index
      %174 = vector.load %arg5[%c0_39, %c0_40] : memref<1x128xf32, #tpu.memory_space<vmem>>, vector<1x128xf32>
      %175 = vector.broadcast %174 : vector<1x128xf32> to vector<8x128xf32>
      %176 = arith.addf %173, %175 : vector<8x128xf32>
      %c0_41 = arith.constant 0 : index
      %c0_42 = arith.constant 0 : index
      %177 = vector.load %arg6[%c0_41, %c0_42] : memref<8x128xf32, #tpu.memory_space<vmem>>, vector<8x128xf32>
      tpu.vector_store %arg6[%c0_41, %c0_42], %176 {strides = array<i32>} : memref<8x128xf32, #tpu.memory_space<vmem>>, vector<8x128xf32>,
    } else {
    }
    return
  }
  func.func @transform_0(%arg0: i32, %arg1: i32) -> (i32, i32) {
    %c0_i32 = arith.constant 0 : i32
    return %arg0, %arg1 : i32, i32
  }
  func.func @transform_1(%arg0: i32, %arg1: i32) -> (i32, i32) {
    %c0_i32 = arith.constant 0 : i32
    %c0_i32_0 = arith.constant 0 : i32
    %c0_i32_1 = arith.constant 0 : i32
    return %c0_i32, %c0_i32_0 : i32, i32
  }
  func.func @transform_2(%arg0: i32, %arg1: i32) -> (i32, i32) {
    %c0_i32 = arith.constant 0 : i32
    %c0_i32_0 = arith.constant 0 : i32
    %c0_i32_1 = arith.constant 0 : i32
    return %c0_i32, %c0_i32_0 : i32, i32
  }
  func.func @transform_3(%arg0: i32, %arg1: i32) -> (i32, i32) {
    %c0_i32 = arith.constant 0 : i32
    %c0_i32_0 = arith.constant 0 : i32
    %c0_i32_1 = arith.constant 0 : i32
    return %c0_i32, %c0_i32_0 : i32, i32
  }
  func.func @transform_4(%arg0: i32, %arg1: i32) -> (i32, i32) {
    %c0_i32 = arith.constant 0 : i32
    %c0_i32_0 = arith.constant 0 : i32
    return %arg0, %c0_i32 : i32, i32
  }
}

</mosaic_0001>

<bundles_post_ra>
// kernel: classification_text_forward.2
= control target key start
LH: loop header
LB: loop body
LE: loop exit
PB: predicated region body
PF: predicated region fallthrough
CT: control target
= control target key end

     0   :  { %s5739_s1 = inlined_call_operand.vmem [shape: bf16[768,1024], index: 1, kind: input, shape index: {}]   ;;  %s5740_s0 = inlined_call_operand.vmem [shape: f32[64,768], index: 0, kind: input, shape index: {}]   ;;  %s5741_s2 = inlined_call_operand.vmem [shape: f32[1,1024], index: 2, kind: input, shape index: {}]   ;;  %s5742_s3 = inlined_call_operand.vmem [shape: f32[64,1024], index: 3, kind: output, shape index: {}]  }
   0x1   :  { %v142_v0 = vld [vmem:[%s5739_s1 + $0x1c0] sm:$0xff]  ;;  %v15_v54 = vld [vmem:[%s5740_s0 + $0x8] sm:$0xff]  ;;  %v21_v55 = vld [vmem:[%s5740_s0 + $0x38] sm:$0xff] }
   0x2   :  { %v146_v1 = vld [vmem:[%s5739_s1 + $0x1e0] sm:$0xff]  ;;  %v3877_v58 = vpack.c.bf16 %v21_v55, %v15_v54  ;;  %v17_v59 = vld [vmem:[%s5740_s0 + $0x18] sm:$0xff]  ;;  %v23_v60 = vld [vmem:[%s5740_s0 + $0x48] sm:$0xff] }
   0x3   :  { %v270_v2 = vld [vmem:[%s5739_s1 + $0x5c0] sm:$0xff]  ;;  %v3433_v3 = vcombine.high %v142_v0, %v146_v1  ;;  %v3432_v5 = vcombine.low %v142_v0, %v146_v1  ;;  %v3891_v63 = vpack.c.bf16 %v23_v60, %v17_v59 }
   0x4   :  { %v274_v4 = vld [vmem:[%s5739_s1 + $0x5e0] sm:$0xff]  ;;  %2464 = vmatprep.mubr.bf16.mxu0 %v3877_v58 }
   0x5   :  { %v134_v6 = vld [vmem:[%s5739_s1 + $0x180] sm:$0xff]  ;;  %v3561_v8 = vcombine.high %v270_v2, %v274_v4  ;;  %v3560_v9 = vcombine.low %v270_v2, %v274_v4  ;;  %2432 = vmatprep.subr.bf16.mxu0 %v3433_v3  ;;  %5757 = vst [vmem:[#allocation2_spill] sm:$0xff] %v3891_v63  ;;  %2537 = vmatprep.mubr.bf16.mxu1 %v3891_v63 }
   0x6   :  { %v138_v7 = vld [vmem:[%s5739_s1 + $0x1a0] sm:$0xff]  ;;  %2433 = vmatpush1.bf16.msra.mxu0 %v3432_v5 }
   0x7   :  { %v3425_v10 = vcombine.high %v134_v6, %v138_v7  ;;  %v262_v11 = vld [vmem:[%s5739_s1 + $0x580] sm:$0xff]  ;;  %2505 = vmatprep.subr.bf16.mxu1 %v3561_v8  ;;  %v3424_v18 = vcombine.low %v134_v6, %v138_v7 }
   0x8   :  { %v266_v12 = vld [vmem:[%s5739_s1 + $0x5a0] sm:$0xff]  ;;  %2506 = vmatpush1.bf16.msra.mxu1 %v3560_v9 }
   0x9   :  { %v126_v13 = vld [vmem:[%s5739_s1 + $0x140] sm:$0xff]  ;;  %v3553_v14 = vcombine.high %v262_v11, %v266_v12  ;;  %2434 = vmatprep.subr.bf16.mxu0 %v3425_v10  ;;  %v3552_v19 = vcombine.low %v262_v11, %v266_v12 }
   0xa   :  { %v130_v15 = vld [vmem:[%s5739_s1 + $0x160] sm:$0xff]  ;;  %2435 = vmatpush1.bf16.msra.mxu0 %v3424_v18 }
   0xb   :  { %v254_v16 = vld [vmem:[%s5739_s1 + $0x540] sm:$0xff]  ;;  %v3417_v20 = vcombine.high %v126_v13, %v130_v15  ;;  %2507 = vmatprep.subr.bf16.mxu1 %v3553_v14  ;;  %v3416_v26 = vcombine.low %v126_v13, %v130_v15 }
   0xc   :  { %v258_v17 = vld [vmem:[%s5739_s1 + $0x560] sm:$0xff]  ;;  %2508 = vmatpush1.bf16.msra.mxu1 %v3552_v19 }
   0xd   :  { %v3545_v21 = vcombine.high %v254_v16, %v258_v17  ;;  %v118_v22 = vld [vmem:[%s5739_s1 + $0x100] sm:$0xff]  ;;  %2436 = vmatprep.subr.bf16.mxu0 %v3417_v20  ;;  %v3544_v27 = vcombine.low %v254_v16, %v258_v17 }
   0xe   :  { %v122_v23 = vld [vmem:[%s5739_s1 + $0x120] sm:$0xff]  ;;  %2437 = vmatpush1.bf16.msra.mxu0 %v3416_v26 }
   0xf   :  { %v246_v24 = vld [vmem:[%s5739_s1 + $0x500] sm:$0xff]  ;;  %v3409_v28 = vcombine.high %v118_v22, %v122_v23  ;;  %2509 = vmatprep.subr.bf16.mxu1 %v3545_v21  ;;  %v3408_v34 = vcombine.low %v118_v22, %v122_v23 }
  0x10   :  { %v250_v25 = vld [vmem:[%s5739_s1 + $0x520] sm:$0xff]  ;;  %2510 = vmatpush1.bf16.msra.mxu1 %v3544_v27 }
  0x11   :  { %v3537_v29 = vcombine.high %v246_v24, %v250_v25  ;;  %v110_v30 = vld [vmem:[%s5739_s1 + $0xc0] sm:$0xff]  ;;  %2438 = vmatprep.subr.bf16.mxu0 %v3409_v28  ;;  %v3536_v35 = vcombine.low %v246_v24, %v250_v25 }
  0x12   :  { %v114_v31 = vld [vmem:[%s5739_s1 + $0xe0] sm:$0xff]  ;;  %2439 = vmatpush1.bf16.msra.mxu0 %v3408_v34 }
  0x13   :  { %v238_v32 = vld [vmem:[%s5739_s1 + $0x4c0] sm:$0xff]  ;;  %v3401_v36 = vcombine.high %v110_v30, %v114_v31  ;;  %2511 = vmatprep.subr.bf16.mxu1 %v3537_v29  ;;  %v3400_v42 = vcombine.low %v110_v30, %v114_v31 }
  0x14   :  { %v242_v33 = vld [vmem:[%s5739_s1 + $0x4e0] sm:$0xff]  ;;  %2512 = vmatpush1.bf16.msra.mxu1 %v3536_v35 }
  0x15   :  { %v3529_v37 = vcombine.high %v238_v32, %v242_v33  ;;  %v102_v38 = vld [vmem:[%s5739_s1 + $0x80] sm:$0xff]  ;;  %2440 = vmatprep.subr.bf16.mxu0 %v3401_v36  ;;  %v3528_v43 = vcombine.low %v238_v32, %v242_v33 }
  0x16   :  { %v106_v39 = vld [vmem:[%s5739_s1 + $0xa0] sm:$0xff]  ;;  %2441 = vmatpush1.bf16.msra.mxu0 %v3400_v42 }
  0x17   :  { %v230_v40 = vld [vmem:[%s5739_s1 + $0x480] sm:$0xff]  ;;  %v3393_v44 = vcombine.high %v102_v38, %v106_v39  ;;  %2513 = vmatprep.subr.bf16.mxu1 %v3529_v37  ;;  %v3392_v50 = vcombine.low %v102_v38, %v106_v39 }
  0x18   :  { %v234_v41 = vld [vmem:[%s5739_s1 + $0x4a0] sm:$0xff]  ;;  %2514 = vmatpush1.bf16.msra.mxu1 %v3528_v43 }
  0x19   :  { %v3521_v45 = vcombine.high %v230_v40, %v234_v41  ;;  %v94_v46 = vld [vmem:[%s5739_s1 + $0x40] sm:$0xff]  ;;  %2442 = vmatprep.subr.bf16.mxu0 %v3393_v44  ;;  %v3520_v51 = vcombine.low %v230_v40, %v234_v41 }
  0x1a   :  { %v98_v47 = vld [vmem:[%s5739_s1 + $0x60] sm:$0xff]  ;;  %2443 = vmatpush1.bf16.msra.mxu0 %v3392_v50 }
  0x1b   :  { %v222_v48 = vld [vmem:[%s5739_s1 + $0x440] sm:$0xff]  ;;  %v3385_v52 = vcombine.high %v94_v46, %v98_v47  ;;  %2515 = vmatprep.subr.bf16.mxu1 %v3521_v45  ;;  %v3384_v0 = vcombine.low %v94_v46, %v98_v47 }
  0x1c   :  { %v226_v49 = vld [vmem:[%s5739_s1 + $0x460] sm:$0xff]  ;;  %2516 = vmatpush1.bf16.msra.mxu1 %v3520_v51 }
  0x1d   :  { %v86_v53 = vld [vmem:[%s5739_s1] sm:$0xff]  ;;  %v3513_v56 = vcombine.high %v222_v48, %v226_v49  ;;  %2444 = vmatprep.subr.bf16.mxu0 %v3385_v52  ;;  %v3512_v1 = vcombine.low %v222_v48, %v226_v49 }
  0x1e   :  { %v90_v57 = vld [vmem:[%s5739_s1 + $0x20] sm:$0xff]  ;;  %2445 = vmatpush1.bf16.msra.mxu0 %v3384_v0 }
  0x1f   :  { %v214_v61 = vld [vmem:[%s5739_s1 + $0x400] sm:$0xff]  ;;  %v3377_v2 = vcombine.high %v86_v53, %v90_v57  ;;  %2517 = vmatprep.subr.bf16.mxu1 %v3513_v56  ;;  %v3376_v8 = vcombine.low %v86_v53, %v90_v57 }
  0x20   :  { %v218_v62 = vld [vmem:[%s5739_s1 + $0x420] sm:$0xff]  ;;  %2518 = vmatpush1.bf16.msra.mxu1 %v3512_v1 }
  0x21   :  { %v3505_v3 = vcombine.high %v214_v61, %v218_v62  ;;  %v206_v4 = vld [vmem:[%s5739_s1 + $0x3c0] sm:$0xff]  ;;  %2446 = vmatprep.subr.bf16.mxu0 %v3377_v2  ;;  %v3504_v9 = vcombine.low %v214_v61, %v218_v62 }
  0x22   :  { %v210_v5 = vld [vmem:[%s5739_s1 + $0x3e0] sm:$0xff]  ;;  %2447 = vmatpush1.bf16.msra.mxu0 %v3376_v8  ;;  %v143_v8 = vld [vmem:[%s5739_s1 + $0x1c8] sm:$0xff] }
  0x23   :  { %v334_v6 = vld [vmem:[%s5739_s1 + $0x7c0] sm:$0xff]  ;;  %v3497_v10 = vcombine.high %v206_v4, %v210_v5  ;;  %2519 = vmatprep.subr.bf16.mxu1 %v3505_v3  ;;  %v3496_v16 = vcombine.low %v206_v4, %v210_v5 }
  0x24   :  { %v338_v7 = vld [vmem:[%s5739_s1 + $0x7e0] sm:$0xff]  ;;  %2520 = vmatpush1.bf16.msra.mxu1 %v3504_v9  ;;  %v147_v9 = vld [vmem:[%s5739_s1 + $0x1e8] sm:$0xff] }
  0x25   :  { %v3625_v11 = vcombine.high %v334_v6, %v338_v7  ;;  %v198_v12 = vld [vmem:[%s5739_s1 + $0x380] sm:$0xff]  ;;  %2448 = vmatprep.subr.bf16.mxu0 %v3497_v10  ;;  %v3624_v17 = vcombine.low %v334_v6, %v338_v7 }
  0x26   :  { %v202_v13 = vld [vmem:[%s5739_s1 + $0x3a0] sm:$0xff]  ;;  %2449 = vmatpush2.bf16.msra.mxu0 %v3496_v16 }
  0x27   :  { %v326_v14 = vld [vmem:[%s5739_s1 + $0x780] sm:$0xff]  ;;  %v3489_v18 = vcombine.high %v198_v12, %v202_v13  ;;  %2521 = vmatprep.subr.bf16.mxu1 %v3625_v11  ;;  %v3488_v24 = vcombine.low %v198_v12, %v202_v13  ;;  %v20_v12 = vld [vmem:[%s5740_s0 + $0x30] sm:$0xff] }
  0x28   :  { %v330_v15 = vld [vmem:[%s5739_s1 + $0x7a0] sm:$0xff]  ;;  %2522 = vmatpush2.bf16.msra.mxu1 %v3624_v17  ;;  %v3435_v17 = vcombine.high %v143_v8, %v147_v9 }
  0x29   :  { %v3617_v19 = vcombine.high %v326_v14, %v330_v15  ;;  %v190_v20 = vld [vmem:[%s5739_s1 + $0x340] sm:$0xff]  ;;  %2450 = vmatprep.subr.bf16.mxu0 %v3489_v18  ;;  %v3616_v25 = vcombine.low %v326_v14, %v330_v15  ;;  %v16_v14 = vld [vmem:[%s5740_s0 + $0x10] sm:$0xff] }
  0x2a   :  { %v194_v21 = vld [vmem:[%s5739_s1 + $0x360] sm:$0xff]  ;;  %2451 = vmatpush2.bf16.msra.mxu0 %v3488_v24  ;;  %v33_v24 = vld [vmem:[%s5740_s0 + $0x98] sm:$0xff] }
  0x2b   :  { %v318_v22 = vld [vmem:[%s5739_s1 + $0x740] sm:$0xff]  ;;  %v3481_v26 = vcombine.high %v190_v20, %v194_v21  ;;  %2523 = vmatprep.subr.bf16.mxu1 %v3617_v19  ;;  %v3480_v32 = vcombine.low %v190_v20, %v194_v21  ;;  %v135_v20 = vld [vmem:[%s5739_s1 + $0x188] sm:$0xff] }
  0x2c   :  { %v322_v23 = vld [vmem:[%s5739_s1 + $0x760] sm:$0xff]  ;;  %2524 = vmatpush2.bf16.msra.mxu1 %v3616_v25 }
  0x2d   :  { %v3609_v27 = vcombine.high %v318_v22, %v322_v23  ;;  %v182_v28 = vld [vmem:[%s5739_s1 + $0x300] sm:$0xff]  ;;  %2452 = vmatprep.subr.bf16.mxu0 %v3481_v26  ;;  %v3608_v33 = vcombine.low %v318_v22, %v322_v23  ;;  %v139_v22 = vld [vmem:[%s5739_s1 + $0x1a8] sm:$0xff] }
  0x2e   :  { %v186_v29 = vld [vmem:[%s5739_s1 + $0x320] sm:$0xff]  ;;  %2453 = vmatpush2.bf16.msra.mxu0 %v3480_v32  ;;  %v27_v23 = vld [vmem:[%s5740_s0 + $0x68] sm:$0xff] }
  0x2f   :  { %v310_v30 = vld [vmem:[%s5739_s1 + $0x700] sm:$0xff]  ;;  %v3473_v34 = vcombine.high %v182_v28, %v186_v29  ;;  %2525 = vmatprep.subr.bf16.mxu1 %v3609_v27  ;;  %v3472_v40 = vcombine.low %v182_v28, %v186_v29  ;;  %v29_v27 = vld [vmem:[%s5740_s0 + $0x78] sm:$0xff]  ;;  %v35_v28 = vld [vmem:[%s5740_s0 + $0xa8] sm:$0xff]  ;;  %v3434_v29 = vcombine.low %v143_v8, %v147_v9 }
  0x30   :  { %v314_v31 = vld [vmem:[%s5739_s1 + $0x720] sm:$0xff]  ;;  %2526 = vmatpush2.bf16.msra.mxu1 %v3608_v33  ;;  %v40_v9 = vld [vmem:[%s5740_s0 + $0xd0] sm:$0xff] }
  0x31   :  { %v3601_v35 = vcombine.high %v310_v30, %v314_v31  ;;  %v174_v36 = vld [vmem:[%s5739_s1 + $0x2c0] sm:$0xff]  ;;  %2454 = vmatprep.subr.bf16.mxu0 %v3473_v34  ;;  %v3600_v41 = vcombine.low %v310_v30, %v314_v31  ;;  %v3427_v31 = vcombine.high %v135_v20, %v139_v22  ;;  %v4049_v34 = vpack.c.bf16 %v33_v24, %v27_v23  ;;  %v59_v23 = vld [vmem:[%s5740_s0 + $0x168] sm:$0xff] }
  0x32   :  { %v178_v37 = vld [vmem:[%s5739_s1 + $0x2e0] sm:$0xff]  ;;  %2455 = vmatpush2.bf16.msra.mxu0 %v3472_v40  ;;  %v32_v40 = vld [vmem:[%s5740_s0 + $0x90] sm:$0xff] }
  0x33   :  { %v302_v38 = vld [vmem:[%s5739_s1 + $0x6c0] sm:$0xff]  ;;  %v3465_v42 = vcombine.high %v174_v36, %v178_v37  ;;  %2527 = vmatprep.subr.bf16.mxu1 %v3601_v35  ;;  %v3464_v48 = vcombine.low %v174_v36, %v178_v37  ;;  %v127_v35 = vld [vmem:[%s5739_s1 + $0x148] sm:$0xff]  ;;  %v4058_v37 = vpack.c.bf16 %v35_v28, %v29_v27 }
  0x34   :  { %v306_v39 = vld [vmem:[%s5739_s1 + $0x6e0] sm:$0xff]  ;;  %2528 = vmatpush2.bf16.msra.mxu1 %v3600_v41  ;;  %v131_v36 = vld [vmem:[%s5739_s1 + $0x168] sm:$0xff]  ;;  %v3426_v41 = vcombine.low %v135_v20, %v139_v22  ;;  %v53_v22 = vld [vmem:[%s5740_s0 + $0x138] sm:$0xff] }
  0x35   :  { %v3593_v43 = vcombine.high %v302_v38, %v306_v39  ;;  %v166_v44 = vld [vmem:[%s5739_s1 + $0x280] sm:$0xff]  ;;  %2456 = vmatprep.subr.bf16.mxu0 %v3465_v42  ;;  %v3592_v49 = vcombine.low %v302_v38, %v306_v39  ;;  %5759 = vst [vmem:[#allocation4_spill] sm:$0xff] %v4058_v37 }
  0x36   :  { %v170_v45 = vld [vmem:[%s5739_s1 + $0x2a0] sm:$0xff]  ;;  %2457 = vmatpush2.bf16.msra.mxu0 %v3464_v48  ;;  %v119_v48 = vld [vmem:[%s5739_s1 + $0x108] sm:$0xff] }
  0x37   :  { %v294_v46 = vld [vmem:[%s5739_s1 + $0x680] sm:$0xff]  ;;  %v3457_v50 = vcombine.high %v166_v44, %v170_v45  ;;  %2529 = vmatprep.subr.bf16.mxu1 %v3593_v43  ;;  %v3456_v56 = vcombine.low %v166_v44, %v170_v45  ;;  %v28_v43 = vld [vmem:[%s5740_s0 + $0x70] sm:$0xff]  ;;  %v3419_v45 = vcombine.high %v127_v35, %v131_v36 }
  0x38   :  { %v298_v47 = vld [vmem:[%s5739_s1 + $0x6a0] sm:$0xff]  ;;  %2530 = vmatpush2.bf16.msra.mxu1 %v3592_v49  ;;  %v123_v49 = vld [vmem:[%s5739_s1 + $0x128] sm:$0xff] }
  0x39   :  { %v3585_v51 = vcombine.high %v294_v46, %v298_v47  ;;  %v158_v52 = vld [vmem:[%s5739_s1 + $0x240] sm:$0xff]  ;;  %2458 = vmatprep.subr.bf16.mxu0 %v3457_v50  ;;  %v3584_v57 = vcombine.low %v294_v46, %v298_v47 }
  0x3a   :  { %v162_v53 = vld [vmem:[%s5739_s1 + $0x260] sm:$0xff]  ;;  %2459 = vmatpush2.bf16.msra.mxu0 %v3456_v56  ;;  %v47_v56 = vld [vmem:[%s5740_s0 + $0x108] sm:$0xff] }
  0x3b   :  { %v286_v54 = vld [vmem:[%s5739_s1 + $0x640] sm:$0xff]  ;;  %v3449_v59 = vcombine.high %v158_v52, %v162_v53  ;;  %2531 = vmatprep.subr.bf16.mxu1 %v3585_v51  ;;  %v3448_v2 = vcombine.low %v158_v52, %v162_v53  ;;  %v39_v51 = vld [vmem:[%s5740_s0 + $0xc8] sm:$0xff]  ;;  %v45_v52 = vld [vmem:[%s5740_s0 + $0xf8] sm:$0xff] }
  0x3c   :  { %v290_v55 = vld [vmem:[%s5739_s1 + $0x660] sm:$0xff]  ;;  %2532 = vmatpush2.bf16.msra.mxu1 %v3584_v57  ;;  %v3418_v57 = vcombine.low %v127_v35, %v131_v36 }
  0x3d   :  { %v3577_v60 = vcombine.high %v286_v54, %v290_v55  ;;  %v150_v61 = vld [vmem:[%s5739_s1 + $0x200] sm:$0xff]  ;;  %2460 = vmatprep.subr.bf16.mxu0 %v3449_v59  ;;  %v3576_v3 = vcombine.low %v286_v54, %v290_v55  ;;  %v41_v55 = vld [vmem:[%s5740_s0 + $0xd8] sm:$0xff] }
  0x3e   :  { %v154_v62 = vld [vmem:[%s5739_s1 + $0x220] sm:$0xff]  ;;  %2461 = vmatpush2.bf16.msra.mxu0 %v3448_v2  ;;  %v115_v2 = vld [vmem:[%s5739_s1 + $0xe8] sm:$0xff] }
  0x3f   :  { %v278_v0 = vld [vmem:[%s5739_s1 + $0x600] sm:$0xff]  ;;  %v3441_v4 = vcombine.high %v150_v61, %v154_v62  ;;  %2533 = vmatprep.subr.bf16.mxu1 %v3577_v60  ;;  %v3440_v10 = vcombine.low %v150_v61, %v154_v62  ;;  %v3411_v60 = vcombine.high %v119_v48, %v123_v49 }
  0x40   :  { %v282_v1 = vld [vmem:[%s5739_s1 + $0x620] sm:$0xff]  ;;  %2534 = vmatpush2.bf16.msra.mxu1 %v3576_v3  ;;  %v4118_v3 = vpack.c.bf16 %v47_v56, %v41_v55 }
  0x41   :  { %v3569_v5 = vcombine.high %v278_v0, %v282_v1  ;;  %v398_v6 = vld [vmem:[%s5739_s1 + $0x9c0] sm:$0xff]  ;;  %2462 = vmatprep.subr.bf16.mxu0 %v3441_v4  ;;  %v3568_v13 = vcombine.low %v278_v0, %v282_v1  ;;  %v4109_v0 = vpack.c.bf16 %v45_v52, %v39_v51  ;;  %v111_v1 = vld [vmem:[%s5739_s1 + $0xc8] sm:$0xff]  ;;  %v25_v51 = vld [vmem:[%s5740_s0 + $0x58] sm:$0xff] }
  0x42   :  { %v402_v7 = vld [vmem:[%s5739_s1 + $0x9e0] sm:$0xff]  ;;  %2463 = vmatpush2.bf16.msra.mxu0 %v3440_v10  ;;  %5761 = vst [vmem:[#allocation6_spill] sm:$0xff] %v4118_v3  ;;  %v3402_v24 = vcombine.low %v111_v1, %v115_v2 }
  0x43   :  { %v14_v11 = vld [vmem:[%s5740_s0] sm:$0xff]  ;;  %v3689_v16 = vcombine.high %v398_v6, %v402_v7  ;;  %2535 = vmatprep.subr.bf16.mxu1 %v3569_v5  ;;  %v3688_v26 = vcombine.low %v398_v6, %v402_v7  ;;  %v44_v6 = vld [vmem:[%s5740_s0 + $0xf0] sm:$0xff]  ;;  %v3410_v7 = vcombine.low %v119_v48, %v123_v49  ;;  %v19_v49 = vld [vmem:[%s5740_s0 + $0x28] sm:$0xff] }
  0x44   :  { %v22_v15 = vld [vmem:[%s5740_s0 + $0x40] sm:$0xff]  ;;  %v4024_v21 = vpack.c.bf16 %v20_v12, %v14_v11  ;;  %2536 = vmatpush2.bf16.msra.mxu1 %v3568_v13  ;;  %v3403_v11 = vcombine.high %v111_v1, %v115_v2  ;;  %v211_v1 = vld [vmem:[%s5739_s1 + $0x3e8] sm:$0xff] }
  0x45   :  { %v390_v18 = vld [vmem:[%s5739_s1 + $0x980] sm:$0xff]  ;;  %v4035_v25 = vpack.c.bf16 %v22_v15, %v16_v14  ;;  %2578 = vmatprep.subr.bf16.mxu0 %v3689_v16  ;;  %2651 = vmatprep.subr.bf16.mxu1 %v3435_v17  ;;  %v103_v14 = vld [vmem:[%s5739_s1 + $0x88] sm:$0xff] }
  0x46   :  { %v394_v19 = vld [vmem:[%s5739_s1 + $0x9a0] sm:$0xff]  ;;  %2465 = vmatmul.mubr.bf16.vlgmr.msra.gmra.mxu0 %v4024_v21  ;;  %v107_v15 = vld [vmem:[%s5739_s1 + $0xa8] sm:$0xff] }
  0x47   :  { %5758 = vst [vmem:[#allocation3_spill] sm:$0xff] %v4035_v25  ;;  %v3681_v30 = vcombine.high %v390_v18, %v394_v19  ;;  %v382_v32 = vld [vmem:[%s5739_s1 + $0x940] sm:$0xff]  ;;  %2538 = vmatmul.mubr.bf16.vlgmr.msra.gmra.mxu1 %v4035_v25  ;;  %2579 = vmatpush1.bf16.msra.mxu0 %v3688_v26  ;;  %v3680_v38 = vcombine.low %v390_v18, %v394_v19  ;;  %v51_v17 = vld [vmem:[%s5740_s0 + $0x128] sm:$0xff]  ;;  %v57_v18 = vld [vmem:[%s5740_s0 + $0x158] sm:$0xff] }
  0x48   :  { %v386_v33 = vld [vmem:[%s5739_s1 + $0x960] sm:$0xff]  ;;  %2652 = vmatpush1.bf16.msra.mxu1 %v3434_v29  ;;  %2474 = vmatprep.mubr.bf16.mxu0 %v4049_v34  ;;  %v3395_v27 = vcombine.high %v103_v14, %v107_v15 }
  0x49   :  { %v26_v39 = vld [vmem:[%s5740_s0 + $0x60] sm:$0xff]  ;;  %2580 = vmatprep.subr.bf16.mxu0 %v3681_v30  ;;  %v3673_v42 = vcombine.high %v382_v32, %v386_v33  ;;  %2653 = vmatprep.subr.bf16.mxu1 %v3427_v31  ;;  %v3672_v53 = vcombine.low %v382_v32, %v386_v33  ;;  %v4169_v30 = vpack.c.bf16 %v57_v18, %v51_v17  ;;  %v95_v31 = vld [vmem:[%s5739_s1 + $0x48] sm:$0xff] }
  0x4a   :  { %v34_v44 = vld [vmem:[%s5740_s0 + $0xa0] sm:$0xff]  ;;  %v4086_v50 = vpack.c.bf16 %v32_v40, %v26_v39  ;;  %2547 = vmatprep.mubr.bf16.mxu1 %v4058_v37  ;;  %v99_v32 = vld [vmem:[%s5739_s1 + $0x68] sm:$0xff]  ;;  %v4178_v33 = vpack.c.bf16 %v59_v23, %v53_v22  ;;  %v3394_v39 = vcombine.low %v103_v14, %v107_v15 }
  0x4b   :  { %v374_v46 = vld [vmem:[%s5739_s1 + $0x900] sm:$0xff]  ;;  %2581 = vmatpush1.bf16.msra.mxu0 %v3680_v38  ;;  %v4095_v54 = vpack.c.bf16 %v34_v44, %v28_v43  ;;  %v56_v38 = vld [vmem:[%s5740_s0 + $0x150] sm:$0xff]  ;;  %v3387_v43 = vcombine.high %v95_v31, %v99_v32  ;;  %v3386_v55 = vcombine.low %v95_v31, %v99_v32  ;;  %v191_v18 = vld [vmem:[%s5739_s1 + $0x348] sm:$0xff] }
  0x4c   :  { %v378_v47 = vld [vmem:[%s5739_s1 + $0x920] sm:$0xff]  ;;  %2654 = vmatpush1.bf16.msra.mxu1 %v3426_v41  ;;  %2582 = vmatprep.subr.bf16.mxu0 %v3673_v42  ;;  %5763 = vst [vmem:[#allocation8_spill] sm:$0xff] %v4178_v33  ;;  %v52_v41 = vld [vmem:[%s5740_s0 + $0x130] sm:$0xff]  ;;  %v187_v31 = vld [vmem:[%s5739_s1 + $0x328] sm:$0xff] }
  0x4d   :  { %5760 = vst [vmem:[#allocation5_spill] sm:$0xff] %v4095_v54  ;;  %v3665_v59 = vcombine.high %v374_v46, %v378_v47  ;;  %2655 = vmatprep.subr.bf16.mxu1 %v3419_v45  ;;  %v366_v61 = vld [vmem:[%s5739_s1 + $0x8c0] sm:$0xff]  ;;  %v3664_v4 = vcombine.low %v374_v46, %v378_v47  ;;  %v87_v46 = vld [vmem:[%s5739_s1 + $0x8] sm:$0xff] }
  0x4e   :  { %v370_v62 = vld [vmem:[%s5739_s1 + $0x8e0] sm:$0xff]  ;;  %2475 = vmatmul.mubr.bf16.gmra.mxu0 %v4086_v50  ;;  %v91_v47 = vld [vmem:[%s5739_s1 + $0x28] sm:$0xff] }
  0x4f   :  { %2583 = vmatpush1.bf16.msra.mxu0 %v3672_v53  ;;  %2548 = vmatmul.mubr.bf16.gmra.mxu1 %v4095_v54  ;;  %v38_v5 = vld [vmem:[%s5740_s0 + $0xc0] sm:$0xff]  ;;  %v3657_v8 = vcombine.high %v366_v61, %v370_v62  ;;  %v3656_v19 = vcombine.low %v366_v61, %v370_v62  ;;  %v4223_v61 = vpack.c.bf16 %v25_v51, %v19_v49  ;;  %v207_v62 = vld [vmem:[%s5739_s1 + $0x3c8] sm:$0xff] }
  0x50   :  { %2656 = vmatpush1.bf16.msra.mxu1 %v3418_v57  ;;  %2584 = vmatprep.subr.bf16.mxu0 %v3665_v59  ;;  %v46_v10 = vld [vmem:[%s5740_s0 + $0x100] sm:$0xff]  ;;  %v4146_v16 = vpack.c.bf16 %v44_v6, %v38_v5  ;;  %v3379_v57 = vcombine.high %v87_v46, %v91_v47  ;;  %v3499_v6 = vcombine.high %v207_v62, %v211_v1  ;;  %v167_v51 = vld [vmem:[%s5739_s1 + $0x288] sm:$0xff] }
  0x51   :  { %2657 = vmatprep.subr.bf16.mxu1 %v3411_v60  ;;  %v358_v12 = vld [vmem:[%s5739_s1 + $0x880] sm:$0xff]  ;;  %2484 = vmatprep.mubr.bf16.mxu0 %v4109_v0  ;;  %v4155_v20 = vpack.c.bf16 %v46_v10, %v40_v9  ;;  %5766 = vst [vmem:[#allocation11_spill] sm:$0xff] %v4223_v61  ;;  %v199_v9 = vld [vmem:[%s5739_s1 + $0x388] sm:$0xff] }
  0x52   :  { %v362_v13 = vld [vmem:[%s5739_s1 + $0x8a0] sm:$0xff]  ;;  %2557 = vmatprep.mubr.bf16.mxu1 %v4118_v3  ;;  %v203_v10 = vld [vmem:[%s5739_s1 + $0x3a8] sm:$0xff] }
  0x53   :  { %2585 = vmatpush1.bf16.msra.mxu0 %v3664_v4  ;;  %5762 = vst [vmem:[#allocation7_spill] sm:$0xff] %v4155_v20  ;;  %v3649_v26 = vcombine.high %v358_v12, %v362_v13  ;;  %v350_v28 = vld [vmem:[%s5739_s1 + $0x840] sm:$0xff]  ;;  %v3648_v35 = vcombine.low %v358_v12, %v362_v13  ;;  %v3378_v4 = vcombine.low %v87_v46, %v91_v47 }
  0x54   :  { %2658 = vmatpush1.bf16.msra.mxu1 %v3410_v7  ;;  %2586 = vmatprep.subr.bf16.mxu0 %v3657_v8  ;;  %v354_v29 = vld [vmem:[%s5739_s1 + $0x860] sm:$0xff]  ;;  %v3498_v12 = vcombine.low %v207_v62, %v211_v1  ;;  %v3491_v14 = vcombine.high %v199_v9, %v203_v10  ;;  %v3490_v23 = vcombine.low %v199_v9, %v203_v10  ;;  %v159_v1 = vld [vmem:[%s5739_s1 + $0x248] sm:$0xff] }
  0x55   :  { %2659 = vmatprep.subr.bf16.mxu1 %v3403_v11  ;;  %v50_v36 = vld [vmem:[%s5740_s0 + $0x120] sm:$0xff]  ;;  %v3641_v40 = vcombine.high %v350_v28, %v354_v29  ;;  %v3640_v52 = vcombine.low %v350_v28, %v354_v29  ;;  %v183_v29 = vld [vmem:[%s5739_s1 + $0x308] sm:$0xff] }
  0x56   :  { %2485 = vmatmul.mubr.bf16.gmra.mxu0 %v4146_v16  ;;  %v58_v42 = vld [vmem:[%s5740_s0 + $0x160] sm:$0xff]  ;;  %v4206_v48 = vpack.c.bf16 %v56_v38, %v50_v36  ;;  %v3475_v38 = vcombine.high %v183_v29, %v187_v31  ;;  %v151_v10 = vld [vmem:[%s5739_s1 + $0x208] sm:$0xff] }
  0x57   :  { %2587 = vmatpush1.bf16.msra.mxu0 %v3656_v19  ;;  %2558 = vmatmul.mubr.bf16.gmra.mxu1 %v4155_v20  ;;  %v342_v44 = vld [vmem:[%s5739_s1 + $0x800] sm:$0xff]  ;;  %v4215_v53 = vpack.c.bf16 %v58_v42, %v52_v41  ;;  %v195_v19 = vld [vmem:[%s5739_s1 + $0x368] sm:$0xff] }
  0x58   :  { %2660 = vmatpush1.bf16.msra.mxu1 %v3402_v24  ;;  %2588 = vmatprep.subr.bf16.mxu0 %v3649_v26  ;;  %v346_v45 = vld [vmem:[%s5739_s1 + $0x820] sm:$0xff]  ;;  %5764 = vst [vmem:[#allocation9_spill] sm:$0xff] %v4206_v48  ;;  %v3483_v26 = vcombine.high %v191_v18, %v195_v19  ;;  %v175_v41 = vld [vmem:[%s5739_s1 + $0x2c8] sm:$0xff] }
  0x59   :  { %2661 = vmatprep.subr.bf16.mxu1 %v3395_v27  ;;  %2494 = vmatprep.mubr.bf16.mxu0 %v4169_v30  ;;  %5765 = vst [vmem:[#allocation10_spill] sm:$0xff] %v4215_v53  ;;  %v3633_v56 = vcombine.high %v342_v44, %v346_v45  ;;  %v462_v59 = vld [vmem:[%s5739_s1 + $0xbc0] sm:$0xff]  ;;  %v3632_v2 = vcombine.low %v342_v44, %v346_v45  ;;  %v179_v42 = vld [vmem:[%s5739_s1 + $0x2e8] sm:$0xff] }
  0x5a   :  { %2567 = vmatprep.mubr.bf16.mxu1 %v4178_v33  ;;  %v466_v60 = vld [vmem:[%s5739_s1 + $0xbe0] sm:$0xff]  ;;  %v3474_v44 = vcombine.low %v183_v29, %v187_v31  ;;  %v3467_v46 = vcombine.high %v175_v41, %v179_v42  ;;  %v263_v31 = vld [vmem:[%s5739_s1 + $0x588] sm:$0xff] }
  0x5b   :  { %2589 = vmatpush1.bf16.msra.mxu0 %v3648_v35  ;;  %v3753_v5 = vcombine.high %v462_v59, %v466_v60  ;;  %v454_v7 = vld [vmem:[%s5739_s1 + $0xb80] sm:$0xff]  ;;  %v3752_v11 = vcombine.low %v462_v59, %v466_v60  ;;  %v3482_v35 = vcombine.low %v191_v18, %v195_v19  ;;  %v275_v18 = vld [vmem:[%s5739_s1 + $0x5e8] sm:$0xff] }
  0x5c   :  { %2662 = vmatpush1.bf16.msra.mxu1 %v3394_v39  ;;  %2590 = vmatprep.subr.bf16.mxu0 %v3641_v40  ;;  %v458_v8 = vld [vmem:[%s5739_s1 + $0xba0] sm:$0xff]  ;;  %v399_v19 = vld [vmem:[%s5739_s1 + $0x9c8] sm:$0xff] }
  0x5d   :  { %2663 = vmatprep.subr.bf16.mxu1 %v3387_v43  ;;  %v3745_v13 = vcombine.high %v454_v7, %v458_v8  ;;  %v446_v15 = vld [vmem:[%s5739_s1 + $0xb40] sm:$0xff]  ;;  %v3744_v22 = vcombine.low %v454_v7, %v458_v8 }
  0x5e   :  { %2495 = vmatmul.mubr.bf16.gmra.mxu0 %v4206_v48  ;;  %v450_v17 = vld [vmem:[%s5739_s1 + $0xb60] sm:$0xff] }
  0x5f   :  { %2591 = vmatpush1.bf16.msra.mxu0 %v3640_v52  ;;  %2568 = vmatmul.mubr.bf16.gmra.mxu1 %v4215_v53  ;;  %v3737_v24 = vcombine.high %v446_v15, %v450_v17  ;;  %v438_v27 = vld [vmem:[%s5739_s1 + $0xb00] sm:$0xff]  ;;  %v3736_v32 = vcombine.low %v446_v15, %v450_v17  ;;  %v171_v52 = vld [vmem:[%s5739_s1 + $0x2a8] sm:$0xff] }
  0x60   :  { %2664 = vmatpush1.bf16.msra.mxu1 %v3386_v55  ;;  %2592 = vmatprep.subr.bf16.mxu0 %v3633_v56  ;;  %v442_v28 = vld [vmem:[%s5739_s1 + $0xb20] sm:$0xff]  ;;  %v3466_v56 = vcombine.low %v175_v41, %v179_v42  ;;  %v3459_v59 = vcombine.high %v167_v51, %v171_v52  ;;  %v271_v17 = vld [vmem:[%s5739_s1 + $0x5c8] sm:$0xff] }
  0x61   :  { %2665 = vmatprep.subr.bf16.mxu1 %v3379_v57  ;;  %2610 = vmatprep.mubr.bf16.mxu0 %v4223_v61  ;;  %v3729_v36 = vcombine.high %v438_v27, %v442_v28  ;;  %v430_v39 = vld [vmem:[%s5739_s1 + $0xac0] sm:$0xff]  ;;  %v3728_v43 = vcombine.low %v438_v27, %v442_v28  ;;  %v3563_v28 = vcombine.high %v271_v17, %v275_v18 }
  0x62   :  { %2683 = vmatprep.mubr.bf16.mxu1 %v3877_v58  ;;  %v434_v40 = vld [vmem:[%s5739_s1 + $0xae0] sm:$0xff]  ;;  %v3562_v41 = vcombine.low %v271_v17, %v275_v18  ;;  %v371_v17 = vld [vmem:[%s5739_s1 + $0x8e8] sm:$0xff] }
  0x63   :  { %2593 = vmatpush1.bf16.msra.mxu0 %v3632_v2  ;;  %v3721_v45 = vcombine.high %v430_v39, %v434_v40  ;;  %v422_v47 = vld [vmem:[%s5739_s1 + $0xa80] sm:$0xff]  ;;  %v3720_v55 = vcombine.low %v430_v39, %v434_v40  ;;  %v163_v2 = vld [vmem:[%s5739_s1 + $0x268] sm:$0xff]  ;;  %v37_v40 = vld [vmem:[%s5740_s0 + $0xb8] sm:$0xff] }
  0x64   :  { %2666 = vmatpush1.bf16.msra.mxu1 %v3378_v4  ;;  %2594 = vmatprep.subr.bf16.mxu0 %v3753_v5  ;;  %v426_v49 = vld [vmem:[%s5739_s1 + $0xaa0] sm:$0xff]  ;;  %v3458_v5 = vcombine.low %v167_v51, %v171_v52  ;;  %v3451_v7 = vcombine.high %v159_v1, %v163_v2  ;;  %v31_v39 = vld [vmem:[%s5740_s0 + $0x88] sm:$0xff] }
  0x65   :  { %2667 = vmatprep.subr.bf16.mxu1 %v3499_v6  ;;  %v3713_v57 = vcombine.high %v422_v47, %v426_v49  ;;  %v414_v60 = vld [vmem:[%s5739_s1 + $0xa40] sm:$0xff]  ;;  %v3712_v4 = vcombine.low %v422_v47, %v426_v49  ;;  %v259_v47 = vld [vmem:[%s5739_s1 + $0x568] sm:$0xff] }
  0x66   :  { %v418_v62 = vld [vmem:[%s5739_s1 + $0xa60] sm:$0xff]  ;;  %v383_v49 = vld [vmem:[%s5739_s1 + $0x948] sm:$0xff] }
  0x67   :  { %2595 = vmatpush2.bf16.msra.mxu0 %v3752_v11  ;;  %v3705_v6 = vcombine.high %v414_v60, %v418_v62  ;;  %v406_v8 = vld [vmem:[%s5739_s1 + $0xa00] sm:$0xff]  ;;  %v155_v11 = vld [vmem:[%s5739_s1 + $0x228] sm:$0xff] }
  0x68   :  { %2668 = vmatpush2.bf16.msra.mxu1 %v3498_v12  ;;  %2596 = vmatprep.subr.bf16.mxu0 %v3745_v13  ;;  %v410_v9 = vld [vmem:[%s5739_s1 + $0xa20] sm:$0xff]  ;;  %v3704_v12 = vcombine.low %v414_v60, %v418_v62  ;;  %v3450_v13 = vcombine.low %v159_v1, %v163_v2  ;;  %v3443_v15 = vcombine.high %v151_v10, %v155_v11  ;;  %v387_v51 = vld [vmem:[%s5739_s1 + $0x968] sm:$0xff]  ;;  %v49_v62 = vld [vmem:[%s5740_s0 + $0x118] sm:$0xff] }
  0x69   :  { %2669 = vmatprep.subr.bf16.mxu1 %v3491_v14  ;;  %v3697_v14 = vcombine.high %v406_v8, %v410_v9  ;;  %v3442_v27 = vcombine.low %v151_v10, %v155_v11  ;;  %v43_v60 = vld [vmem:[%s5740_s0 + $0xe8] sm:$0xff]  ;;  %v3675_v1 = vcombine.high %v383_v49, %v387_v51  ;;  %v3674_v10 = vcombine.low %v383_v49, %v387_v51 }
  0x6a   :  { %v247_v2 = vld [vmem:[%s5739_s1 + $0x508] sm:$0xff] }
  0x6b   :  { %2597 = vmatpush2.bf16.msra.mxu0 %v3744_v22  ;;  %v403_v22 = vld [vmem:[%s5739_s1 + $0x9e8] sm:$0xff] }
  0x6c   :  { %2670 = vmatpush2.bf16.msra.mxu1 %v3490_v23  ;;  %2598 = vmatprep.subr.bf16.mxu0 %v3737_v24  ;;  %v3696_v23 = vcombine.low %v406_v8, %v410_v9  ;;  %v18_v24 = vld [vmem:[%s5740_s0 + $0x20] sm:$0xff]  ;;  %v3691_v29 = vcombine.high %v399_v19, %v403_v22  ;;  %v3690_v42 = vcombine.low %v399_v19, %v403_v22  ;;  %v48_v22 = vld [vmem:[%s5740_s0 + $0x110] sm:$0xff]  ;;  %v355_v49 = vld [vmem:[%s5739_s1 + $0x868] sm:$0xff] }
  0x6d   :  { %2671 = vmatprep.subr.bf16.mxu1 %v3483_v26  ;;  %v24_v26 = vld [vmem:[%s5740_s0 + $0x50] sm:$0xff]  ;;  %v4401_v9 = vpack.c.bf16 %v49_v62, %v43_v60  ;;  %v42_v19 = vld [vmem:[%s5740_s0 + $0xe0] sm:$0xff]  ;;  %v215_v60 = vld [vmem:[%s5739_s1 + $0x408] sm:$0xff] }
  0x6e   :  { %v219_v62 = vld [vmem:[%s5739_s1 + $0x428] sm:$0xff] }
  0x6f   :  { %2599 = vmatpush2.bf16.msra.mxu0 %v3736_v32  ;;  %v267_v32 = vld [vmem:[%s5739_s1 + $0x5a8] sm:$0xff] }
  0x70   :  { %2672 = vmatpush2.bf16.msra.mxu1 %v3482_v35  ;;  %2600 = vmatprep.subr.bf16.mxu0 %v3729_v36  ;;  %v391_v35 = vld [vmem:[%s5739_s1 + $0x988] sm:$0xff]  ;;  %v4346_v36 = vpack.c.bf16 %v24_v26, %v18_v24  ;;  %v3554_v52 = vcombine.low %v263_v31, %v267_v32 }
  0x71   :  { %2673 = vmatprep.subr.bf16.mxu1 %v3475_v38  ;;  %v395_v38 = vld [vmem:[%s5739_s1 + $0x9a8] sm:$0xff] }
  0x72   :  { %v55_v26 = vld [vmem:[%s5740_s0 + $0x148] sm:$0xff] }
  0x73   :  { %2601 = vmatpush2.bf16.msra.mxu0 %v3728_v43  ;;  %v3555_v43 = vcombine.high %v263_v31, %v267_v32  ;;  %v235_v31 = vld [vmem:[%s5739_s1 + $0x4a8] sm:$0xff]  ;;  %v4436_v32 = vpack.c.bf16 %v48_v22, %v42_v19 }
  0x74   :  { %2674 = vmatpush2.bf16.msra.mxu1 %v3474_v44  ;;  %2602 = vmatprep.subr.bf16.mxu0 %v3721_v45  ;;  %v3683_v44 = vcombine.high %v391_v35, %v395_v38  ;;  %v4357_v45 = vpack.c.bf16 %v37_v40, %v31_v39  ;;  %v327_v22 = vld [vmem:[%s5739_s1 + $0x788] sm:$0xff] }
  0x75   :  { %2675 = vmatprep.subr.bf16.mxu1 %v3467_v46  ;;  %v255_v46 = vld [vmem:[%s5739_s1 + $0x548] sm:$0xff] }
  0x76   :  { %v3546_v8 = vcombine.low %v255_v46, %v259_v47 }
  0x77   :  { %2603 = vmatpush2.bf16.msra.mxu0 %v3720_v55  ;;  %v30_v55 = vld [vmem:[%s5740_s0 + $0x80] sm:$0xff] }
  0x78   :  { %2676 = vmatpush2.bf16.msra.mxu1 %v3466_v56  ;;  %2604 = vmatprep.subr.bf16.mxu0 %v3713_v57  ;;  %v36_v56 = vld [vmem:[%s5740_s0 + $0xb0] sm:$0xff]  ;;  %v3682_v57 = vcombine.low %v391_v35, %v395_v38  ;;  %v359_v35 = vld [vmem:[%s5739_s1 + $0x888] sm:$0xff] }
  0x79   :  { %2677 = vmatprep.subr.bf16.mxu1 %v3459_v59  ;;  %v3547_v59 = vcombine.high %v255_v46, %v259_v47  ;;  %v363_v38 = vld [vmem:[%s5739_s1 + $0x8a8] sm:$0xff] }
  0x7a   :  { %v227_v46 = vld [vmem:[%s5739_s1 + $0x468] sm:$0xff] }
  0x7b   :  { %2605 = vmatpush2.bf16.msra.mxu0 %v3712_v4  ;;  %v251_v4 = vld [vmem:[%s5739_s1 + $0x528] sm:$0xff] }
  0x7c   :  { %2678 = vmatpush2.bf16.msra.mxu1 %v3458_v5  ;;  %2606 = vmatprep.subr.bf16.mxu0 %v3705_v6  ;;  %v4392_v5 = vpack.c.bf16 %v36_v56, %v30_v55  ;;  %v375_v6 = vld [vmem:[%s5739_s1 + $0x908] sm:$0xff]  ;;  %v3539_v11 = vcombine.high %v247_v2, %v251_v4  ;;  %v3538_v18 = vcombine.low %v247_v2, %v251_v4  ;;  %v60_v55 = vld [vmem:[%s5740_s0 + $0x170] sm:$0xff] }
  0x7d   :  { %2679 = vmatprep.subr.bf16.mxu1 %v3451_v7  ;;  %v379_v7 = vld [vmem:[%s5739_s1 + $0x928] sm:$0xff]  ;;  %v3650_v56 = vcombine.low %v359_v35, %v363_v38 }
  0x7e   :  { %v351_v47 = vld [vmem:[%s5739_s1 + $0x848] sm:$0xff] }
  0x7f   :  { %2607 = vmatpush2.bf16.msra.mxu0 %v3704_v12  ;;  %v3667_v12 = vcombine.high %v375_v6, %v379_v7  ;;  %v343_v2 = vld [vmem:[%s5739_s1 + $0x808] sm:$0xff] }
  0x80   :  { %2680 = vmatpush2.bf16.msra.mxu1 %v3450_v13  ;;  %2608 = vmatprep.subr.bf16.mxu0 %v3697_v14  ;;  %v239_v13 = vld [vmem:[%s5739_s1 + $0x4c8] sm:$0xff] }
  0x81   :  { %2681 = vmatprep.subr.bf16.mxu1 %v3443_v15  ;;  %v243_v14 = vld [vmem:[%s5739_s1 + $0x4e8] sm:$0xff] }
  0x82   :  { %v367_v15 = vld [vmem:[%s5739_s1 + $0x8c8] sm:$0xff]  ;;  %v3531_v24 = vcombine.high %v239_v13, %v243_v14  ;;  %v3530_v39 = vcombine.low %v239_v13, %v243_v14 }
  0x83   :  { %2609 = vmatpush2.bf16.msra.mxu0 %v3696_v23  ;;  %v3666_v23 = vcombine.low %v375_v6, %v379_v7  ;;  %v347_v4 = vld [vmem:[%s5739_s1 + $0x828] sm:$0xff]  ;;  %v3642_v7 = vcombine.low %v351_v47, %v355_v49 }
  0x84   :  { %2682 = vmatpush2.bf16.msra.mxu1 %v3442_v27  ;;  %2724 = vmatprep.subr.bf16.mxu0 %v3563_v28  ;;  %v61_v27 = vld [vmem:[%s5740_s0 + $0x178] sm:$0xff]  ;;  %v3659_v28 = vcombine.high %v367_v15, %v371_v17  ;;  %v463_v13 = vld [vmem:[%s5739_s1 + $0xbc8] sm:$0xff] }
  0x85   :  { %2797 = vmatprep.subr.bf16.mxu1 %v3691_v29  ;;  %v231_v29 = vld [vmem:[%s5739_s1 + $0x488] sm:$0xff]  ;;  %v4445_v40 = vpack.c.bf16 %v61_v27, %v55_v26 }
  0x86   :  { %2611 = vmatmul.mubr.bf16.vlgmr.msra.gmra.mxu0 %v4346_v36  ;;  %v3522_v51 = vcombine.low %v231_v29, %v235_v31  ;;  %v467_v14 = vld [vmem:[%s5739_s1 + $0xbe8] sm:$0xff] }
  0x87   :  { %2684 = vmatmul.mubr.bf16.vlgmr.msra.gmra.mxu1 %v4024_v21  ;;  %2725 = vmatpush1.bf16.msra.mxu0 %v3562_v41  ;;  %v3658_v41 = vcombine.low %v367_v15, %v371_v17  ;;  %v3506_v15 = vcombine.low %v215_v60, %v219_v62  ;;  %v3634_v17 = vcombine.low %v343_v2, %v347_v4  ;;  %v459_v26 = vld [vmem:[%s5739_s1 + $0xba8] sm:$0xff] }
  0x88   :  { %2798 = vmatpush1.bf16.msra.mxu1 %v3690_v42  ;;  %2726 = vmatprep.subr.bf16.mxu0 %v3555_v43  ;;  %v3523_v42 = vcombine.high %v231_v29, %v235_v31  ;;  %v3651_v43 = vcombine.high %v359_v35, %v363_v38  ;;  %v3755_v19 = vcombine.high %v463_v13, %v467_v14  ;;  %v319_v35 = vld [vmem:[%s5739_s1 + $0x748] sm:$0xff] }
  0x89   :  { %2799 = vmatprep.subr.bf16.mxu1 %v3683_v44  ;;  %2620 = vmatprep.mubr.bf16.mxu0 %v4357_v45  ;;  %v223_v44 = vld [vmem:[%s5739_s1 + $0x448] sm:$0xff] }
  0x8a   :  { %2693 = vmatprep.mubr.bf16.mxu1 %v4049_v34  ;;  %v3514_v6 = vcombine.low %v223_v44, %v227_v46  ;;  %v323_v38 = vld [vmem:[%s5739_s1 + $0x768] sm:$0xff] }
  0x8b   :  { %2727 = vmatpush1.bf16.msra.mxu0 %v3554_v52  ;;  %v54_v52 = vld [vmem:[%s5740_s0 + $0x140] sm:$0xff] }
  0x8c   :  { %2800 = vmatpush1.bf16.msra.mxu1 %v3682_v57  ;;  %2728 = vmatprep.subr.bf16.mxu0 %v3547_v59  ;;  %v3515_v57 = vcombine.high %v223_v44, %v227_v46  ;;  %v3643_v59 = vcombine.high %v351_v47, %v355_v49  ;;  %v3611_v44 = vcombine.high %v319_v35, %v323_v38  ;;  %v311_v47 = vld [vmem:[%s5739_s1 + $0x708] sm:$0xff] }
  0x8d   :  { %2801 = vmatprep.subr.bf16.mxu1 %v3675_v1  ;;  %v4474_v1 = vpack.c.bf16 %v60_v55, %v54_v52  ;;  %v315_v49 = vld [vmem:[%s5739_s1 + $0x728] sm:$0xff]  ;;  %v3610_v55 = vcombine.low %v319_v35, %v323_v38 }
  0x8e   :  { %2621 = vmatmul.mubr.bf16.gmra.mxu0 %v4392_v5  ;;  %v443_v52 = vld [vmem:[%s5739_s1 + $0xb28] sm:$0xff] }
  0x8f   :  { %2729 = vmatpush1.bf16.msra.mxu0 %v3546_v8  ;;  %2630 = vmatprep.mubr.bf16.mxu0 %v4401_v9  ;;  %v3507_v8 = vcombine.high %v215_v60, %v219_v62  ;;  %v303_v60 = vld [vmem:[%s5739_s1 + $0x6c8] sm:$0xff] }
  0x90   :  { %2802 = vmatpush1.bf16.msra.mxu1 %v3674_v10  ;;  %2730 = vmatprep.subr.bf16.mxu0 %v3539_v11  ;;  %v3635_v10 = vcombine.high %v343_v2, %v347_v4  ;;  %v335_v11 = vld [vmem:[%s5739_s1 + $0x7c8] sm:$0xff] }
  0x91   :  { %2803 = vmatprep.subr.bf16.mxu1 %v3667_v12  ;;  %2694 = vmatmul.mubr.bf16.gmra.mxu1 %v4086_v50  ;;  %v339_v12 = vld [vmem:[%s5739_s1 + $0x7e8] sm:$0xff] }
  0x92   :  { %2703 = vmatprep.mubr.bf16.mxu1 %v4109_v0  ;;  %v3626_v27 = vcombine.low %v335_v11, %v339_v12  ;;  %v307_v62 = vld [vmem:[%s5739_s1 + $0x6e8] sm:$0xff] }
  0x93   :  { %2731 = vmatpush1.bf16.msra.mxu0 %v3538_v18  ;;  %v3627_v18 = vcombine.high %v335_v11, %v339_v12  ;;  %v431_v2 = vld [vmem:[%s5739_s1 + $0xac8] sm:$0xff] }
  0x94   :  { %2804 = vmatpush1.bf16.msra.mxu1 %v3666_v23  ;;  %2732 = vmatprep.subr.bf16.mxu0 %v3531_v24  ;;  %v331_v23 = vld [vmem:[%s5739_s1 + $0x7a8] sm:$0xff] }
  0x95   :  { %2805 = vmatprep.subr.bf16.mxu1 %v3659_v28  ;;  %v455_v24 = vld [vmem:[%s5739_s1 + $0xb88] sm:$0xff]  ;;  %v3754_v28 = vcombine.low %v463_v13, %v467_v14  ;;  %v3619_v29 = vcombine.high %v327_v22, %v331_v23 }
  0x96   :  { %2631 = vmatmul.mubr.bf16.gmra.mxu0 %v4436_v32  ;;  %v3747_v31 = vcombine.high %v455_v24, %v459_v26  ;;  %v435_v4 = vld [vmem:[%s5739_s1 + $0xae8] sm:$0xff] }
  0x97   :  { %2733 = vmatpush1.bf16.msra.mxu0 %v3530_v39  ;;  %2640 = vmatprep.mubr.bf16.mxu0 %v4445_v40  ;;  %v447_v39 = vld [vmem:[%s5739_s1 + $0xb48] sm:$0xff] }
  0x98   :  { %2806 = vmatpush1.bf16.msra.mxu1 %v3658_v41  ;;  %2734 = vmatprep.subr.bf16.mxu0 %v3523_v42  ;;  %v451_v41 = vld [vmem:[%s5739_s1 + $0xb68] sm:$0xff]  ;;  %v3618_v42 = vcombine.low %v327_v22, %v331_v23 }
  0x99   :  { %2807 = vmatprep.subr.bf16.mxu1 %v3651_v43  ;;  %2704 = vmatmul.mubr.bf16.gmra.mxu1 %v4146_v16  ;;  %v3746_v43 = vcombine.low %v455_v24, %v459_v26  ;;  %v3739_v46 = vcombine.high %v447_v39, %v451_v41  ;;  %v295_v11 = vld [vmem:[%s5739_s1 + $0x688] sm:$0xff] }
  0x9a   :  { %2713 = vmatprep.mubr.bf16.mxu1 %v4169_v30  ;;  %v299_v12 = vld [vmem:[%s5739_s1 + $0x6a8] sm:$0xff] }
  0x9b   :  { %2735 = vmatpush1.bf16.msra.mxu0 %v3522_v51  ;;  %v439_v51 = vld [vmem:[%s5739_s1 + $0xb08] sm:$0xff] }
  0x9c   :  { %2808 = vmatpush1.bf16.msra.mxu1 %v3650_v56  ;;  %2736 = vmatprep.subr.bf16.mxu0 %v3515_v57  ;;  %v3738_v56 = vcombine.low %v447_v39, %v451_v41  ;;  %v3603_v57 = vcombine.high %v311_v47, %v315_v49  ;;  %v423_v13 = vld [vmem:[%s5739_s1 + $0xa88] sm:$0xff] }
  0x9d   :  { %2809 = vmatprep.subr.bf16.mxu1 %v3643_v59  ;;  %v3731_v59 = vcombine.high %v439_v51, %v443_v52  ;;  %v427_v14 = vld [vmem:[%s5739_s1 + $0xaa8] sm:$0xff] }
  0x9e   :  { %2641 = vmatmul.mubr.bf16.gmra.mxu0 %v4474_v1  ;;  %v287_v22 = vld [vmem:[%s5739_s1 + $0x648] sm:$0xff] }
  0x9f   :  { %2737 = vmatpush1.bf16.msra.mxu0 %v3514_v6  ;;  %2756 = vmatprep.mubr.bf16.mxu0 %v3891_v63  ;;  %v3602_v6 = vcombine.low %v311_v47, %v315_v49  ;;  %v291_v23 = vld [vmem:[%s5739_s1 + $0x668] sm:$0xff]  ;;  %v144_v47 = vld [vmem:[%s5739_s1 + $0x1d0] sm:$0xff] }
  0xa0   :  { %2810 = vmatpush1.bf16.msra.mxu1 %v3642_v7  ;;  %2738 = vmatprep.subr.bf16.mxu0 %v3507_v8  ;;  %v3730_v7 = vcombine.low %v439_v51, %v443_v52  ;;  %v3595_v8 = vcombine.high %v303_v60, %v307_v62  ;;  %v415_v24 = vld [vmem:[%s5739_s1 + $0xa48] sm:$0xff]  ;;  %v148_v49 = vld [vmem:[%s5739_s1 + $0x1f0] sm:$0xff] }
  0xa1   :  { %2811 = vmatprep.subr.bf16.mxu1 %v3635_v10  ;;  %2714 = vmatmul.mubr.bf16.gmra.mxu1 %v4206_v48  ;;  %v3723_v10 = vcombine.high %v431_v2, %v435_v4  ;;  %v419_v26 = vld [vmem:[%s5739_s1 + $0xa68] sm:$0xff]  ;;  %v272_v51 = vld [vmem:[%s5739_s1 + $0x5d0] sm:$0xff] }
  0xa2   :  { %2829 = vmatprep.mubr.bf16.mxu1 %v4223_v61  ;;  %v279_v35 = vld [vmem:[%s5739_s1 + $0x608] sm:$0xff]  ;;  %v276_v52 = vld [vmem:[%s5739_s1 + $0x5f0] sm:$0xff] }
  0xa3   :  { %2739 = vmatpush1.bf16.msra.mxu0 %v3506_v15  ;;  %v3594_v15 = vcombine.low %v303_v60, %v307_v62  ;;  %v283_v38 = vld [vmem:[%s5739_s1 + $0x628] sm:$0xff]  ;;  %v136_v60 = vld [vmem:[%s5739_s1 + $0x190] sm:$0xff] }
  0xa4   :  { %2812 = vmatpush1.bf16.msra.mxu1 %v3634_v17  ;;  %2740 = vmatprep.subr.bf16.mxu0 %v3627_v18  ;;  %v3722_v17 = vcombine.low %v431_v2, %v435_v4  ;;  %v3587_v18 = vcombine.high %v295_v11, %v299_v12  ;;  %v407_v39 = vld [vmem:[%s5739_s1 + $0xa08] sm:$0xff]  ;;  %v140_v62 = vld [vmem:[%s5739_s1 + $0x1b0] sm:$0xff] }
  0xa5   :  { %2813 = vmatprep.subr.bf16.mxu1 %v3755_v19  ;;  %v3715_v19 = vcombine.high %v423_v13, %v427_v14  ;;  %v411_v41 = vld [vmem:[%s5739_s1 + $0xa28] sm:$0xff]  ;;  %v264_v2 = vld [vmem:[%s5739_s1 + $0x590] sm:$0xff] }
  0xa6   :  { %v268_v4 = vld [vmem:[%s5739_s1 + $0x5b0] sm:$0xff] }
  0xa7   :  { %2741 = vmatpush2.bf16.msra.mxu0 %v3626_v27  ;;  %v3586_v27 = vcombine.low %v295_v11, %v299_v12  ;;  %v128_v11 = vld [vmem:[%s5739_s1 + $0x150] sm:$0xff] }
  0xa8   :  { %2814 = vmatpush2.bf16.msra.mxu1 %v3754_v28  ;;  %2742 = vmatprep.subr.bf16.mxu0 %v3619_v29  ;;  %v3714_v28 = vcombine.low %v423_v13, %v427_v14  ;;  %v3579_v29 = vcombine.high %v287_v22, %v291_v23  ;;  %v132_v12 = vld [vmem:[%s5739_s1 + $0x170] sm:$0xff] }
  0xa9   :  { %2815 = vmatprep.subr.bf16.mxu1 %v3747_v31  ;;  %v3707_v31 = vcombine.high %v415_v24, %v419_v26  ;;  %v256_v13 = vld [vmem:[%s5739_s1 + $0x550] sm:$0xff] }
  0xaa   :  { %v260_v14 = vld [vmem:[%s5739_s1 + $0x570] sm:$0xff] }
  0xab   :  { %2743 = vmatpush2.bf16.msra.mxu0 %v3618_v42  ;;  %v3578_v42 = vcombine.low %v287_v22, %v291_v23  ;;  %v120_v22 = vld [vmem:[%s5739_s1 + $0x110] sm:$0xff] }
  0xac   :  { %2816 = vmatpush2.bf16.msra.mxu1 %v3746_v43  ;;  %2744 = vmatprep.subr.bf16.mxu0 %v3611_v44  ;;  %v3706_v43 = vcombine.low %v415_v24, %v419_v26  ;;  %v3571_v44 = vcombine.high %v279_v35, %v283_v38  ;;  %v124_v23 = vld [vmem:[%s5739_s1 + $0x130] sm:$0xff] }
  0xad   :  { %2817 = vmatprep.subr.bf16.mxu1 %v3739_v46  ;;  %v3699_v46 = vcombine.high %v407_v39, %v411_v41  ;;  %v248_v24 = vld [vmem:[%s5739_s1 + $0x510] sm:$0xff] }
  0xae   :  { %v252_v26 = vld [vmem:[%s5739_s1 + $0x530] sm:$0xff] }
  0xaf   :  { %2745 = vmatpush2.bf16.msra.mxu0 %v3610_v55  ;;  %v3570_v55 = vcombine.low %v279_v35, %v283_v38  ;;  %v112_v35 = vld [vmem:[%s5739_s1 + $0xd0] sm:$0xff] }
  0xb0   :  { %2818 = vmatpush2.bf16.msra.mxu1 %v3738_v56  ;;  %2746 = vmatprep.subr.bf16.mxu0 %v3603_v57  ;;  %v3698_v56 = vcombine.low %v407_v39, %v411_v41  ;;  %v3437_v57 = vcombine.high %v144_v47, %v148_v49  ;;  %v116_v38 = vld [vmem:[%s5739_s1 + $0xf0] sm:$0xff] }
  0xb1   :  { %2819 = vmatprep.subr.bf16.mxu1 %v3731_v59  ;;  %v3565_v59 = vcombine.high %v272_v51, %v276_v52  ;;  %v240_v39 = vld [vmem:[%s5739_s1 + $0x4d0] sm:$0xff] }
  0xb2   :  { %v244_v41 = vld [vmem:[%s5739_s1 + $0x4f0] sm:$0xff] }
  0xb3   :  { %2747 = vmatpush2.bf16.msra.mxu0 %v3602_v6  ;;  %v3436_v6 = vcombine.low %v144_v47, %v148_v49  ;;  %v104_v47 = vld [vmem:[%s5739_s1 + $0x90] sm:$0xff] }
  0xb4   :  { %2820 = vmatpush2.bf16.msra.mxu1 %v3730_v7  ;;  %2748 = vmatprep.subr.bf16.mxu0 %v3595_v8  ;;  %v3564_v7 = vcombine.low %v272_v51, %v276_v52  ;;  %v3429_v8 = vcombine.high %v136_v60, %v140_v62  ;;  %v108_v49 = vld [vmem:[%s5739_s1 + $0xb0] sm:$0xff] }
  0xb5   :  { %2821 = vmatprep.subr.bf16.mxu1 %v3723_v10  ;;  %v3557_v10 = vcombine.high %v264_v2, %v268_v4  ;;  %v232_v51 = vld [vmem:[%s5739_s1 + $0x490] sm:$0xff] }
  0xb6   :  { %v236_v52 = vld [vmem:[%s5739_s1 + $0x4b0] sm:$0xff] }
  0xb7   :  { %2749 = vmatpush2.bf16.msra.mxu0 %v3594_v15  ;;  %v3428_v15 = vcombine.low %v136_v60, %v140_v62  ;;  %v96_v60 = vld [vmem:[%s5739_s1 + $0x50] sm:$0xff] }
  0xb8   :  { %2822 = vmatpush2.bf16.msra.mxu1 %v3722_v17  ;;  %2750 = vmatprep.subr.bf16.mxu0 %v3587_v18  ;;  %v3556_v17 = vcombine.low %v264_v2, %v268_v4  ;;  %v3421_v18 = vcombine.high %v128_v11, %v132_v12  ;;  %v100_v62 = vld [vmem:[%s5739_s1 + $0x70] sm:$0xff] }
  0xb9   :  { %2823 = vmatprep.subr.bf16.mxu1 %v3715_v19  ;;  %v3549_v19 = vcombine.high %v256_v13, %v260_v14  ;;  %v224_v2 = vld [vmem:[%s5739_s1 + $0x450] sm:$0xff] }
  0xba   :  { %v228_v4 = vld [vmem:[%s5739_s1 + $0x470] sm:$0xff] }
  0xbb   :  { %2751 = vmatpush2.bf16.msra.mxu0 %v3586_v27  ;;  %v3420_v27 = vcombine.low %v128_v11, %v132_v12  ;;  %v88_v11 = vld [vmem:[%s5739_s1 + $0x10] sm:$0xff] }
  0xbc   :  { %2824 = vmatpush2.bf16.msra.mxu1 %v3714_v28  ;;  %2752 = vmatprep.subr.bf16.mxu0 %v3579_v29  ;;  %v3548_v28 = vcombine.low %v256_v13, %v260_v14  ;;  %v3413_v29 = vcombine.high %v120_v22, %v124_v23  ;;  %v92_v12 = vld [vmem:[%s5739_s1 + $0x30] sm:$0xff] }
  0xbd   :  { %2825 = vmatprep.subr.bf16.mxu1 %v3707_v31  ;;  %v3541_v31 = vcombine.high %v248_v24, %v252_v26  ;;  %v216_v13 = vld [vmem:[%s5739_s1 + $0x410] sm:$0xff] }
  0xbe   :  { %v220_v14 = vld [vmem:[%s5739_s1 + $0x430] sm:$0xff] }
  0xbf   :  { %2753 = vmatpush2.bf16.msra.mxu0 %v3578_v42  ;;  %v3412_v42 = vcombine.low %v120_v22, %v124_v23  ;;  %v208_v22 = vld [vmem:[%s5739_s1 + $0x3d0] sm:$0xff] }
  0xc0   :  { %2826 = vmatpush2.bf16.msra.mxu1 %v3706_v43  ;;  %2754 = vmatprep.subr.bf16.mxu0 %v3571_v44  ;;  %v3540_v43 = vcombine.low %v248_v24, %v252_v26  ;;  %v3405_v44 = vcombine.high %v112_v35, %v116_v38  ;;  %v212_v23 = vld [vmem:[%s5739_s1 + $0x3f0] sm:$0xff] }
  0xc1   :  { %2827 = vmatprep.subr.bf16.mxu1 %v3699_v46  ;;  %v3533_v46 = vcombine.high %v240_v39, %v244_v41  ;;  %v336_v24 = vld [vmem:[%s5739_s1 + $0x7d0] sm:$0xff] }
  0xc2   :  { %v340_v26 = vld [vmem:[%s5739_s1 + $0x7f0] sm:$0xff] }
  0xc3   :  { %2755 = vmatpush2.bf16.msra.mxu0 %v3570_v55  ;;  %v3404_v55 = vcombine.low %v112_v35, %v116_v38  ;;  %v200_v35 = vld [vmem:[%s5739_s1 + $0x390] sm:$0xff] }
  0xc4   :  { %2828 = vmatpush2.bf16.msra.mxu1 %v3698_v56  ;;  %2870 = vmatprep.subr.bf16.mxu0 %v3437_v57  ;;  %v3532_v56 = vcombine.low %v240_v39, %v244_v41  ;;  %v3397_v57 = vcombine.high %v104_v47, %v108_v49  ;;  %v204_v38 = vld [vmem:[%s5739_s1 + $0x3b0] sm:$0xff] }
  0xc5   :  { %2943 = vmatprep.subr.bf16.mxu1 %v3565_v59  ;;  %v3525_v59 = vcombine.high %v232_v51, %v236_v52  ;;  %v328_v39 = vld [vmem:[%s5739_s1 + $0x790] sm:$0xff] }
  0xc6   :  { %2757 = vmatmul.mubr.bf16.vlgmr.msra.gmra.mxu0 %v4035_v25  ;;  %v332_v41 = vld [vmem:[%s5739_s1 + $0x7b0] sm:$0xff] }
  0xc7   :  { %2830 = vmatmul.mubr.bf16.vlgmr.msra.gmra.mxu1 %v4346_v36  ;;  %2871 = vmatpush1.bf16.msra.mxu0 %v3436_v6  ;;  %v3396_v6 = vcombine.low %v104_v47, %v108_v49  ;;  %v192_v47 = vld [vmem:[%s5739_s1 + $0x350] sm:$0xff] }
  0xc8   :  { %2944 = vmatpush1.bf16.msra.mxu1 %v3564_v7  ;;  %2872 = vmatprep.subr.bf16.mxu0 %v3429_v8  ;;  %v3524_v7 = vcombine.low %v232_v51, %v236_v52  ;;  %v3389_v8 = vcombine.high %v96_v60, %v100_v62  ;;  %v196_v49 = vld [vmem:[%s5739_s1 + $0x370] sm:$0xff] }
  0xc9   :  { %2945 = vmatprep.subr.bf16.mxu1 %v3557_v10  ;;  %2766 = vmatprep.mubr.bf16.mxu0 %v4058_v37  ;;  %v3517_v10 = vcombine.high %v224_v2, %v228_v4  ;;  %v320_v51 = vld [vmem:[%s5739_s1 + $0x750] sm:$0xff] }
  0xca   :  { %2839 = vmatprep.mubr.bf16.mxu1 %v4357_v45  ;;  %v324_v52 = vld [vmem:[%s5739_s1 + $0x770] sm:$0xff] }
  0xcb   :  { %2873 = vmatpush1.bf16.msra.mxu0 %v3428_v15  ;;  %v3388_v15 = vcombine.low %v96_v60, %v100_v62  ;;  %v184_v60 = vld [vmem:[%s5739_s1 + $0x310] sm:$0xff] }
  0xcc   :  { %2946 = vmatpush1.bf16.msra.mxu1 %v3556_v17  ;;  %2874 = vmatprep.subr.bf16.mxu0 %v3421_v18  ;;  %v3516_v17 = vcombine.low %v224_v2, %v228_v4  ;;  %v3381_v18 = vcombine.high %v88_v11, %v92_v12  ;;  %v188_v62 = vld [vmem:[%s5739_s1 + $0x330] sm:$0xff] }
  0xcd   :  { %2947 = vmatprep.subr.bf16.mxu1 %v3549_v19  ;;  %v3509_v19 = vcombine.high %v216_v13, %v220_v14  ;;  %v312_v2 = vld [vmem:[%s5739_s1 + $0x710] sm:$0xff] }
  0xce   :  { %2767 = vmatmul.mubr.bf16.gmra.mxu0 %v4095_v54  ;;  %v316_v4 = vld [vmem:[%s5739_s1 + $0x730] sm:$0xff] }
  0xcf   :  { %2875 = vmatpush1.bf16.msra.mxu0 %v3420_v27  ;;  %2840 = vmatmul.mubr.bf16.gmra.mxu1 %v4392_v5  ;;  %v3380_v27 = vcombine.low %v88_v11, %v92_v12  ;;  %v176_v11 = vld [vmem:[%s5739_s1 + $0x2d0] sm:$0xff] }
  0xd0   :  { %2948 = vmatpush1.bf16.msra.mxu1 %v3548_v28  ;;  %2876 = vmatprep.subr.bf16.mxu0 %v3413_v29  ;;  %v3508_v28 = vcombine.low %v216_v13, %v220_v14  ;;  %v3501_v29 = vcombine.high %v208_v22, %v212_v23  ;;  %v180_v12 = vld [vmem:[%s5739_s1 + $0x2f0] sm:$0xff] }
  0xd1   :  { %2949 = vmatprep.subr.bf16.mxu1 %v3541_v31  ;;  %2776 = vmatprep.mubr.bf16.mxu0 %v4118_v3  ;;  %v3629_v31 = vcombine.high %v336_v24, %v340_v26  ;;  %v304_v13 = vld [vmem:[%s5739_s1 + $0x6d0] sm:$0xff] }
  0xd2   :  { %2849 = vmatprep.mubr.bf16.mxu1 %v4401_v9  ;;  %v308_v14 = vld [vmem:[%s5739_s1 + $0x6f0] sm:$0xff] }
  0xd3   :  { %2877 = vmatpush1.bf16.msra.mxu0 %v3412_v42  ;;  %v3500_v42 = vcombine.low %v208_v22, %v212_v23  ;;  %v168_v22 = vld [vmem:[%s5739_s1 + $0x290] sm:$0xff] }
  0xd4   :  { %2950 = vmatpush1.bf16.msra.mxu1 %v3540_v43  ;;  %2878 = vmatprep.subr.bf16.mxu0 %v3405_v44  ;;  %v3628_v43 = vcombine.low %v336_v24, %v340_v26  ;;  %v3493_v44 = vcombine.high %v200_v35, %v204_v38  ;;  %v172_v23 = vld [vmem:[%s5739_s1 + $0x2b0] sm:$0xff] }
  0xd5   :  { %2951 = vmatprep.subr.bf16.mxu1 %v3533_v46  ;;  %v3621_v46 = vcombine.high %v328_v39, %v332_v41  ;;  %v296_v24 = vld [vmem:[%s5739_s1 + $0x690] sm:$0xff] }
  0xd6   :  { %2777 = vmatmul.mubr.bf16.gmra.mxu0 %v4155_v20  ;;  %v300_v26 = vld [vmem:[%s5739_s1 + $0x6b0] sm:$0xff] }
  0xd7   :  { %2879 = vmatpush1.bf16.msra.mxu0 %v3404_v55  ;;  %2850 = vmatmul.mubr.bf16.gmra.mxu1 %v4436_v32  ;;  %v3492_v55 = vcombine.low %v200_v35, %v204_v38  ;;  %v160_v35 = vld [vmem:[%s5739_s1 + $0x250] sm:$0xff] }
  0xd8   :  { %2952 = vmatpush1.bf16.msra.mxu1 %v3532_v56  ;;  %2880 = vmatprep.subr.bf16.mxu0 %v3397_v57  ;;  %v3620_v56 = vcombine.low %v328_v39, %v332_v41  ;;  %v3485_v57 = vcombine.high %v192_v47, %v196_v49  ;;  %v164_v38 = vld [vmem:[%s5739_s1 + $0x270] sm:$0xff] }
  0xd9   :  { %2953 = vmatprep.subr.bf16.mxu1 %v3525_v59  ;;  %2786 = vmatprep.mubr.bf16.mxu0 %v4178_v33  ;;  %v3613_v59 = vcombine.high %v320_v51, %v324_v52  ;;  %v288_v39 = vld [vmem:[%s5739_s1 + $0x650] sm:$0xff] }
  0xda   :  { %2859 = vmatprep.mubr.bf16.mxu1 %v4445_v40  ;;  %v292_v41 = vld [vmem:[%s5739_s1 + $0x670] sm:$0xff] }
  0xdb   :  { %2881 = vmatpush1.bf16.msra.mxu0 %v3396_v6  ;;  %v3484_v6 = vcombine.low %v192_v47, %v196_v49  ;;  %v152_v47 = vld [vmem:[%s5739_s1 + $0x210] sm:$0xff] }
  0xdc   :  { %2954 = vmatpush1.bf16.msra.mxu1 %v3524_v7  ;;  %2882 = vmatprep.subr.bf16.mxu0 %v3389_v8  ;;  %v3612_v7 = vcombine.low %v320_v51, %v324_v52  ;;  %v3477_v8 = vcombine.high %v184_v60, %v188_v62  ;;  %v156_v49 = vld [vmem:[%s5739_s1 + $0x230] sm:$0xff] }
  0xdd   :  { %2955 = vmatprep.subr.bf16.mxu1 %v3517_v10  ;;  %v3605_v10 = vcombine.high %v312_v2, %v316_v4  ;;  %v280_v51 = vld [vmem:[%s5739_s1 + $0x610] sm:$0xff] }
  0xde   :  { %2787 = vmatmul.mubr.bf16.gmra.mxu0 %v4215_v53  ;;  %v284_v52 = vld [vmem:[%s5739_s1 + $0x630] sm:$0xff] }
  0xdf   :  { %2883 = vmatpush1.bf16.msra.mxu0 %v3388_v15  ;;  %2860 = vmatmul.mubr.bf16.gmra.mxu1 %v4474_v1  ;;  %v3476_v15 = vcombine.low %v184_v60, %v188_v62  ;;  %v400_v60 = vld [vmem:[%s5739_s1 + $0x9d0] sm:$0xff] }
  0xe0   :  { %2956 = vmatpush1.bf16.msra.mxu1 %v3516_v17  ;;  %2884 = vmatprep.subr.bf16.mxu0 %v3381_v18  ;;  %v3604_v17 = vcombine.low %v312_v2, %v316_v4  ;;  %v3469_v18 = vcombine.high %v176_v11, %v180_v12  ;;  %v404_v62 = vld [vmem:[%s5739_s1 + $0x9f0] sm:$0xff]  ;;  %v145_v2 = vld [vmem:[%s5739_s1 + $0x1d8] sm:$0xff] }
  0xe1   :  { %2957 = vmatprep.subr.bf16.mxu1 %v3509_v19  ;;  %2902 = vmatprep.mubr.bf16.mxu0 %v3877_v58  ;;  %v3597_v19 = vcombine.high %v304_v13, %v308_v14  ;;  %v149_v4 = vld [vmem:[%s5739_s1 + $0x1f8] sm:$0xff] }
  0xe2   :  { %2975 = vmatprep.mubr.bf16.mxu1 %v3891_v63 }
  0xe3   :  { %2885 = vmatpush1.bf16.msra.mxu0 %v3380_v27  ;;  %v3468_v27 = vcombine.low %v176_v11, %v180_v12  ;;  %v392_v11 = vld [vmem:[%s5739_s1 + $0x990] sm:$0xff] }
  0xe4   :  { %2958 = vmatpush1.bf16.msra.mxu1 %v3508_v28  ;;  %2886 = vmatprep.subr.bf16.mxu0 %v3501_v29  ;;  %v3596_v28 = vcombine.low %v304_v13, %v308_v14  ;;  %v3461_v29 = vcombine.high %v168_v22, %v172_v23  ;;  %v396_v12 = vld [vmem:[%s5739_s1 + $0x9b0] sm:$0xff]  ;;  %v137_v13 = vld [vmem:[%s5739_s1 + $0x198] sm:$0xff] }
  0xe5   :  { %2959 = vmatprep.subr.bf16.mxu1 %v3629_v31  ;;  %v3589_v31 = vcombine.high %v296_v24, %v300_v26  ;;  %v141_v14 = vld [vmem:[%s5739_s1 + $0x1b8] sm:$0xff] }
  0xe7   :  { %2887 = vmatpush2.bf16.msra.mxu0 %v3500_v42  ;;  %v3460_v42 = vcombine.low %v168_v22, %v172_v23  ;;  %v384_v22 = vld [vmem:[%s5739_s1 + $0x950] sm:$0xff] }
  0xe8   :  { %2960 = vmatpush2.bf16.msra.mxu1 %v3628_v43  ;;  %2888 = vmatprep.subr.bf16.mxu0 %v3493_v44  ;;  %v3588_v43 = vcombine.low %v296_v24, %v300_v26  ;;  %v3453_v44 = vcombine.high %v160_v35, %v164_v38  ;;  %v388_v23 = vld [vmem:[%s5739_s1 + $0x970] sm:$0xff]  ;;  %v129_v24 = vld [vmem:[%s5739_s1 + $0x158] sm:$0xff] }
  0xe9   :  { %2961 = vmatprep.subr.bf16.mxu1 %v3621_v46  ;;  %v3581_v46 = vcombine.high %v288_v39, %v292_v41  ;;  %v133_v26 = vld [vmem:[%s5739_s1 + $0x178] sm:$0xff] }
  0xeb   :  { %2889 = vmatpush2.bf16.msra.mxu0 %v3492_v55  ;;  %v3452_v55 = vcombine.low %v160_v35, %v164_v38  ;;  %v376_v35 = vld [vmem:[%s5739_s1 + $0x910] sm:$0xff] }
  0xec   :  { %2962 = vmatpush2.bf16.msra.mxu1 %v3620_v56  ;;  %2890 = vmatprep.subr.bf16.mxu0 %v3485_v57  ;;  %v3580_v56 = vcombine.low %v288_v39, %v292_v41  ;;  %v3445_v57 = vcombine.high %v152_v47, %v156_v49  ;;  %v380_v38 = vld [vmem:[%s5739_s1 + $0x930] sm:$0xff]  ;;  %v121_v41 = vld [vmem:[%s5739_s1 + $0x118] sm:$0xff] }
  0xed   :  { %2963 = vmatprep.subr.bf16.mxu1 %v3613_v59  ;;  %v3573_v59 = vcombine.high %v280_v51, %v284_v52 }
  0xef   :  { %2891 = vmatpush2.bf16.msra.mxu0 %v3484_v6  ;;  %v3444_v6 = vcombine.low %v152_v47, %v156_v49  ;;  %v368_v49 = vld [vmem:[%s5739_s1 + $0x8d0] sm:$0xff] }
  0xf0   :  { %2964 = vmatpush2.bf16.msra.mxu1 %v3612_v7  ;;  %2892 = vmatprep.subr.bf16.mxu0 %v3477_v8  ;;  %v3572_v7 = vcombine.low %v280_v51, %v284_v52  ;;  %v3693_v8 = vcombine.high %v400_v60, %v404_v62  ;;  %v372_v51 = vld [vmem:[%s5739_s1 + $0x8f0] sm:$0xff] }
  0xf1   :  { %2965 = vmatprep.subr.bf16.mxu1 %v3605_v10  ;;  %v3439_v10 = vcombine.high %v145_v2, %v149_v4 }
  0xf3   :  { %2893 = vmatpush2.bf16.msra.mxu0 %v3476_v15  ;;  %v3692_v15 = vcombine.low %v400_v60, %v404_v62  ;;  %v3661_v62 = vcombine.high %v368_v49, %v372_v51 }
  0xf4   :  { %2966 = vmatpush2.bf16.msra.mxu1 %v3604_v17  ;;  %2894 = vmatprep.subr.bf16.mxu0 %v3469_v18  ;;  %v3438_v17 = vcombine.low %v145_v2, %v149_v4  ;;  %v3685_v18 = vcombine.high %v392_v11, %v396_v12  ;;  %v360_v4 = vld [vmem:[%s5739_s1 + $0x890] sm:$0xff] }
  0xf5   :  { %2967 = vmatprep.subr.bf16.mxu1 %v3597_v19  ;;  %v3431_v19 = vcombine.high %v137_v13, %v141_v14 }
  0xf7   :  { %2895 = vmatpush2.bf16.msra.mxu0 %v3468_v27  ;;  %v3684_v27 = vcombine.low %v392_v11, %v396_v12  ;;  %v3660_v12 = vcombine.low %v368_v49, %v372_v51 }
  0xf8   :  { %2968 = vmatpush2.bf16.msra.mxu1 %v3596_v28  ;;  %2896 = vmatprep.subr.bf16.mxu0 %v3461_v29  ;;  %v3430_v28 = vcombine.low %v137_v13, %v141_v14  ;;  %v3677_v29 = vcombine.high %v384_v22, %v388_v23 }
  0xf9   :  { %2969 = vmatprep.subr.bf16.mxu1 %v3589_v31  ;;  %v3423_v31 = vcombine.high %v129_v24, %v133_v26 }
  0xfb   :  { %2897 = vmatpush2.bf16.msra.mxu0 %v3460_v42  ;;  %v125_v42 = vld [vmem:[%s5739_s1 + $0x138] sm:$0xff] }
  0xfc   :  { %2970 = vmatpush2.bf16.msra.mxu1 %v3588_v43  ;;  %2898 = vmatprep.subr.bf16.mxu0 %v3453_v44  ;;  %v3676_v43 = vcombine.low %v384_v22, %v388_v23  ;;  %v3422_v44 = vcombine.low %v129_v24, %v133_v26  ;;  %v3415_v47 = vcombine.high %v121_v41, %v125_v42  ;;  %v97_v22 = vld [vmem:[%s5739_s1 + $0x58] sm:$0xff] }
  0xfd   :  { %2971 = vmatprep.subr.bf16.mxu1 %v3581_v46  ;;  %v3669_v46 = vcombine.high %v376_v35, %v380_v38  ;;  %v3414_v60 = vcombine.low %v121_v41, %v125_v42  ;;  %v101_v23 = vld [vmem:[%s5739_s1 + $0x78] sm:$0xff] }
  0xfe   :  { %v89_v41 = vld [vmem:[%s5739_s1 + $0x18] sm:$0xff] }
  0xff   :  { %2899 = vmatpush2.bf16.msra.mxu0 %v3452_v55  ;;  %v113_v55 = vld [vmem:[%s5739_s1 + $0xd8] sm:$0xff] }
 0x100   :  { %2972 = vmatpush2.bf16.msra.mxu1 %v3580_v56  ;;  %2900 = vmatprep.subr.bf16.mxu0 %v3445_v57  ;;  %v117_v56 = vld [vmem:[%s5739_s1 + $0xf8] sm:$0xff] }
 0x101   :  { %2973 = vmatprep.subr.bf16.mxu1 %v3573_v59  ;;  %v3668_v59 = vcombine.low %v376_v35, %v380_v38  ;;  %v3407_v2 = vcombine.high %v113_v55, %v117_v56  ;;  %v3406_v13 = vcombine.low %v113_v55, %v117_v56  ;;  %v344_v35 = vld [vmem:[%s5739_s1 + $0x810] sm:$0xff]  ;;  %v93_v42 = vld [vmem:[%s5739_s1 + $0x38] sm:$0xff] }
 0x102   :  { %v348_v38 = vld [vmem:[%s5739_s1 + $0x830] sm:$0xff]  ;;  %v3383_v51 = vcombine.high %v89_v41, %v93_v42 }
 0x103   :  { %2901 = vmatpush2.bf16.msra.mxu0 %v3444_v6  ;;  %v364_v6 = vld [vmem:[%s5739_s1 + $0x8b0] sm:$0xff] }
 0x104   :  { %2974 = vmatpush2.bf16.msra.mxu1 %v3572_v7  ;;  %3016 = vmatprep.subr.bf16.mxu0 %v3693_v8  ;;  %v105_v8 = vld [vmem:[%s5739_s1 + $0x98] sm:$0xff]  ;;  %v3653_v14 = vcombine.high %v360_v4, %v364_v6  ;;  %v3652_v26 = vcombine.low %v360_v4, %v364_v6  ;;  %v464_v55 = vld [vmem:[%s5739_s1 + $0xbd0] sm:$0xff]  ;;  %v3382_v4 = vcombine.low %v89_v41, %v93_v42 }
 0x105   :  { %3089 = vmatprep.subr.bf16.mxu1 %v3439_v10  ;;  %v109_v10 = vld [vmem:[%s5739_s1 + $0xb8] sm:$0xff]  ;;  %v468_v56 = vld [vmem:[%s5739_s1 + $0xbf0] sm:$0xff] }
 0x106   :  { %2903 = vmatmul.mubr.bf16.vlgmr.msra.gmra.mxu0 %v4024_v21  ;;  %v4836_v39 = vpop.f32.mrf.mxu0  ;;  %v3757_v6 = vcombine.high %v464_v55, %v468_v56 }
 0x107   :  { %2976 = vmatmul.mubr.bf16.vlgmr.msra.gmra.mxu1 %v4035_v25  ;;  %3017 = vmatpush1.bf16.msra.mxu0 %v3692_v15  ;;  %v4860_v57 = vpop.f32.mrf.mxu1  ;;  %v3399_v15 = vcombine.high %v105_v8, %v109_v10 }
 0x108   :  { %3090 = vmatpush1.bf16.msra.mxu1 %v3438_v17  ;;  %3018 = vmatprep.subr.bf16.mxu0 %v3685_v18  ;;  %v4851_v52 = vpop.f32.mrf.mxu0  ;;  %v352_v17 = vld [vmem:[%s5739_s1 + $0x850] sm:$0xff] }
 0x109   :  { %3091 = vmatprep.subr.bf16.mxu1 %v3431_v19  ;;  %2912 = vmatprep.mubr.bf16.mxu0 %v4049_v34  ;;  %v4879_v11 = vpop.f32.mrf.mxu1  ;;  %v356_v18 = vld [vmem:[%s5739_s1 + $0x870] sm:$0xff] }
 0x10a   :  { %2985 = vmatprep.mubr.bf16.mxu1 %v4058_v37  ;;  %v4870_v7 = vpop.f32.mrf.mxu0 }
 0x10b   :  { %3019 = vmatpush1.bf16.msra.mxu0 %v3684_v27  ;;  %v4896_v24 = vpop.f32.mrf.mxu1  ;;  %v3398_v27 = vcombine.low %v105_v8, %v109_v10 }
 0x10c   :  { %3092 = vmatpush1.bf16.msra.mxu1 %v3430_v28  ;;  %3020 = vmatprep.subr.bf16.mxu0 %v3677_v29  ;;  %v4887_v19 = vpop.f32.mrf.mxu0  ;;  %v3645_v28 = vcombine.high %v352_v17, %v356_v18 }
 0x10d   :  { %3093 = vmatprep.subr.bf16.mxu1 %v3423_v31  ;;  %v3391_v31 = vcombine.high %v97_v22, %v101_v23 }
 0x10e   :  { %2913 = vmatmul.mubr.bf16.gmra.mxu0 %v4086_v50  ;;  %v4899_v29 = vpop.f32.mrf.mxu0 }
 0x10f   :  { %3021 = vmatpush1.bf16.msra.mxu0 %v3676_v43  ;;  %2986 = vmatmul.mubr.bf16.gmra.mxu1 %v4095_v54  ;;  %v4915_v43 = vpop.f32.mrf.mxu1 }
 0x110   :  { %3094 = vmatpush1.bf16.msra.mxu1 %v3422_v44  ;;  %3022 = vmatprep.subr.bf16.mxu0 %v3669_v46  ;;  %v3644_v44 = vcombine.low %v352_v17, %v356_v18  ;;  %v3390_v46 = vcombine.low %v97_v22, %v101_v23  ;;  %v4917_v49 = vpop.f32.mrf.mxu0  ;;  %v205_v17 = vld [vmem:[%s5739_s1 + $0x3b8] sm:$0xff]  ;;  %v3756_v18 = vcombine.low %v464_v55, %v468_v56  ;;  %v440_v55 = vld [vmem:[%s5739_s1 + $0xb10] sm:$0xff] }
 0x111   :  { %3095 = vmatprep.subr.bf16.mxu1 %v3415_v47  ;;  %2922 = vmatprep.mubr.bf16.mxu0 %v4109_v0  ;;  %v3637_v47 = vcombine.high %v344_v35, %v348_v38  ;;  %v444_v56 = vld [vmem:[%s5739_s1 + $0xb30] sm:$0xff] }
 0x112   :  { %2995 = vmatprep.mubr.bf16.mxu1 %v4118_v3  ;;  %v4935_v8 = vpop.f32.mrf.mxu0 }
 0x113   :  { %3023 = vmatpush1.bf16.msra.mxu0 %v3668_v59  ;;  %v4925_v59 = vpop.f32.mrf.mxu1 }
 0x114   :  { %3096 = vmatpush1.bf16.msra.mxu1 %v3414_v60  ;;  %3024 = vmatprep.subr.bf16.mxu0 %v3661_v62  ;;  %v209_v60 = vld [vmem:[%s5739_s1 + $0x3d8] sm:$0xff] }
 0x115   :  { %3097 = vmatprep.subr.bf16.mxu1 %v3407_v2  ;;  %v213_v62 = vld [vmem:[%s5739_s1 + $0x3f8] sm:$0xff]  ;;  %v3636_v2 = vcombine.low %v344_v35, %v348_v38 }
 0x116   :  { %2923 = vmatmul.mubr.bf16.gmra.mxu0 %v4146_v16  ;;  %v3503_v10 = vcombine.high %v209_v60, %v213_v62  ;;  %v3502_v22 = vcombine.low %v209_v60, %v213_v62  ;;  %v197_v38 = vld [vmem:[%s5739_s1 + $0x378] sm:$0xff] }
 0x117   :  { %3025 = vmatpush1.bf16.msra.mxu0 %v3660_v12  ;;  %2996 = vmatmul.mubr.bf16.gmra.mxu1 %v4155_v20  ;;  %v456_v12 = vld [vmem:[%s5739_s1 + $0xb90] sm:$0xff]  ;;  %v185_v60 = vld [vmem:[%s5739_s1 + $0x318] sm:$0xff] }
 0x118   :  { %3098 = vmatpush1.bf16.msra.mxu1 %v3406_v13  ;;  %3026 = vmatprep.subr.bf16.mxu0 %v3653_v14  ;;  %v460_v13 = vld [vmem:[%s5739_s1 + $0xbb0] sm:$0xff]  ;;  %v4943_v14 = vpop.f32.mrf.mxu1  ;;  %v189_v62 = vld [vmem:[%s5739_s1 + $0x338] sm:$0xff] }
 0x119   :  { %3099 = vmatprep.subr.bf16.mxu1 %v3399_v15  ;;  %2932 = vmatprep.mubr.bf16.mxu0 %v4169_v30  ;;  %v201_v15 = vld [vmem:[%s5739_s1 + $0x398] sm:$0xff]  ;;  %v3749_v23 = vcombine.high %v456_v12, %v460_v13  ;;  %v3748_v41 = vcombine.low %v456_v12, %v460_v13  ;;  %v3479_v12 = vcombine.high %v185_v60, %v189_v62  ;;  %v408_v20 = vld [vmem:[%s5739_s1 + $0xa10] sm:$0xff] }
 0x11a   :  { %3005 = vmatprep.mubr.bf16.mxu1 %v4178_v33  ;;  %v4961_v35 = vpop.f32.mrf.mxu1  ;;  %v3494_v42 = vcombine.low %v201_v15, %v205_v17 }
 0x11b   :  { %3027 = vmatpush1.bf16.msra.mxu0 %v3652_v26  ;;  %v4953_v26 = vpop.f32.mrf.mxu0 }
 0x11c   :  { %3100 = vmatpush1.bf16.msra.mxu1 %v3398_v27  ;;  %3028 = vmatprep.subr.bf16.mxu0 %v3645_v28  ;;  %v3495_v27 = vcombine.high %v201_v15, %v205_v17  ;;  %v448_v28 = vld [vmem:[%s5739_s1 + $0xb50] sm:$0xff] }
 0x11d   :  { %3101 = vmatprep.subr.bf16.mxu1 %v3391_v31  ;;  %v452_v31 = vld [vmem:[%s5739_s1 + $0xb70] sm:$0xff] }
 0x11e   :  { %2933 = vmatmul.mubr.bf16.gmra.mxu0 %v4206_v48  ;;  %v432_v15 = vld [vmem:[%s5739_s1 + $0xad0] sm:$0xff] }
 0x11f   :  { %3029 = vmatpush1.bf16.msra.mxu0 %v3644_v44  ;;  %3006 = vmatmul.mubr.bf16.gmra.mxu1 %v4215_v53  ;;  %v3741_v44 = vcombine.high %v448_v28, %v452_v31  ;;  %v436_v17 = vld [vmem:[%s5739_s1 + $0xaf0] sm:$0xff] }
 0x120   :  { %3102 = vmatpush1.bf16.msra.mxu1 %v3390_v46  ;;  %3030 = vmatprep.subr.bf16.mxu0 %v3637_v47  ;;  %v4969_v46 = vpop.f32.mrf.mxu0  ;;  %v416_v53 = vld [vmem:[%s5739_s1 + $0xa50] sm:$0xff] }
 0x121   :  { %3103 = vmatprep.subr.bf16.mxu1 %v3383_v51  ;;  %3048 = vmatprep.mubr.bf16.mxu0 %v4223_v61  ;;  %v4971_v51 = vpop.f32.mrf.mxu1  ;;  %v273_v61 = vld [vmem:[%s5739_s1 + $0x5d8] sm:$0xff] }
 0x122   :  { %3121 = vmatprep.mubr.bf16.mxu1 %v3877_v58  ;;  %v193_v58 = vld [vmem:[%s5739_s1 + $0x358] sm:$0xff] }
 0x123   :  { %3031 = vmatpush1.bf16.msra.mxu0 %v3636_v2  ;;  %v3487_v47 = vcombine.high %v193_v58, %v197_v38  ;;  %v3740_v2 = vcombine.low %v448_v28, %v452_v31  ;;  %v4987_v13 = vpop.f32.mrf.mxu1  ;;  %v3725_v31 = vcombine.high %v432_v15, %v436_v17 }
 0x124   :  { %3104 = vmatpush1.bf16.msra.mxu1 %v3382_v4  ;;  %3032 = vmatprep.subr.bf16.mxu0 %v3757_v6  ;;  %v3486_v4 = vcombine.low %v193_v58, %v197_v38  ;;  %v3733_v6 = vcombine.high %v440_v55, %v444_v56  ;;  %v472_v58 = vlaneseq }
 0x125   :  { %3105 = vmatprep.subr.bf16.mxu1 %v3503_v10  ;;  %v4985_v10 = vpop.f32.mrf.mxu0  ;;  %v5003_v38 = vpop.f32.mrf.mxu1 }
 0x127   :  { %3033 = vmatpush2.bf16.msra.mxu0 %v3756_v18  ;;  %v177_v18 = vld [vmem:[%s5739_s1 + $0x2d8] sm:$0xff]  ;;  %v5001_v28 = vpop.f32.mrf.mxu0 }
 0x128   :  { %3106 = vmatpush2.bf16.msra.mxu1 %v3502_v22  ;;  %3034 = vmatprep.subr.bf16.mxu0 %v3749_v23  ;;  %v181_v22 = vld [vmem:[%s5739_s1 + $0x2f8] sm:$0xff]  ;;  %v3732_v23 = vcombine.low %v440_v55, %v444_v56  ;;  %v3724_v56 = vcombine.low %v432_v15, %v436_v17  ;;  %v420_v15 = vld [vmem:[%s5739_s1 + $0xa70] sm:$0xff] }
 0x129   :  { %3107 = vmatprep.subr.bf16.mxu1 %v3495_v27  ;;  %v3478_v27 = vcombine.low %v185_v60, %v189_v62  ;;  %v173_v55 = vld [vmem:[%s5739_s1 + $0x2b8] sm:$0xff]  ;;  %v3470_v60 = vcombine.low %v177_v18, %v181_v22  ;;  %v5017_v62 = vpop.f32.mrf.mxu0 }
 0x12a   :  { %v161_v17 = vld [vmem:[%s5739_s1 + $0x258] sm:$0xff] }
 0x12b   :  { %3035 = vmatpush2.bf16.msra.mxu0 %v3748_v41  ;;  %v3471_v41 = vcombine.high %v177_v18, %v181_v22  ;;  %v165_v18 = vld [vmem:[%s5739_s1 + $0x278] sm:$0xff] }
 0x12c   :  { %3108 = vmatpush2.bf16.msra.mxu1 %v3494_v42  ;;  %3036 = vmatprep.subr.bf16.mxu0 %v3741_v44  ;;  %v424_v42 = vld [vmem:[%s5739_s1 + $0xa90] sm:$0xff]  ;;  %v3455_v33 = vcombine.high %v161_v17, %v165_v18 }
 0x12d   :  { %3109 = vmatprep.subr.bf16.mxu1 %v3487_v47  ;;  %v428_v44 = vld [vmem:[%s5739_s1 + $0xab0] sm:$0xff]  ;;  %v169_v47 = vld [vmem:[%s5739_s1 + $0x298] sm:$0xff] }
 0x12e   :  { %v3716_v22 = vcombine.low %v424_v42, %v428_v44 }
 0x12f   :  { %3037 = vmatpush2.bf16.msra.mxu0 %v3740_v2  ;;  %v3717_v2 = vcombine.high %v424_v42, %v428_v44  ;;  %v412_v42 = vld [vmem:[%s5739_s1 + $0xa30] sm:$0xff]  ;;  %v5049_v44 = vld [vmem:[%s5741_s2] sm:$0xff] }
 0x130   :  { %3110 = vmatpush2.bf16.msra.mxu1 %v3486_v4  ;;  %3038 = vmatprep.subr.bf16.mxu0 %v3733_v6  ;;  %v5019_v4 = vshrl.u32 %v472_v58, 7  ;;  %v5021_v6 = vpop.f32.mrf.mxu1  ;;  %5768 = vst [vmem:[#allocation13_spill] sm:$0xff] %v5049_v44  ;;  %v3701_v3 = vcombine.high %v408_v20, %v412_v42 }
 0x131   :  { %3111 = vmatprep.subr.bf16.mxu1 %v3479_v12  ;;  %v3463_v12 = vcombine.high %v169_v47, %v173_v55 }
 0x132   :  { %5767 = vst [vmem:[#allocation12_spill] sm:$0xff] %v5019_v4  ;;  %v474_v58 = vsub.s32 0, %v5019_v4 }
 0x133   :  { %3039 = vmatpush2.bf16.msra.mxu0 %v3732_v23  ;;  %v5035_v23 = vpop.f32.mrf.mxu0 }
 0x134   :  { %3112 = vmatpush2.bf16.msra.mxu1 %v3478_v27  ;;  %3040 = vmatprep.subr.bf16.mxu0 %v3725_v31  ;;  %v3462_v27 = vcombine.low %v169_v47, %v173_v55  ;;  %v3709_v31 = vcombine.high %v416_v53, %v420_v15  ;;  %v153_v47 = vld [vmem:[%s5739_s1 + $0x218] sm:$0xff]  ;;  %v5061_v54 = vrot.slane %v5049_v44, %v474_v58 }
 0x135   :  { %3113 = vmatprep.subr.bf16.mxu1 %v3471_v41  ;;  %v5038_v41 = vpop.f32.mrf.mxu1  ;;  %v157_v55 = vld [vmem:[%s5739_s1 + $0x238] sm:$0xff] }
 0x136   :  { %v3447_v25 = vcombine.high %v153_v47, %v157_v55  ;;  %v2467_v58 = vadd.f32 %v4836_v39, %v5061_v54  ;;  %v397_v39 = vld [vmem:[%s5739_s1 + $0x9b8] sm:$0xff]  ;;  %v2471_v63 = vadd.f32 %v4870_v7, %v5061_v54 }
 0x137   :  { %3041 = vmatpush2.bf16.msra.mxu0 %v3724_v56  ;;  %v478_v56 = vsub.s32 1, %v5019_v4  ;;  %v5063_v37 = vpop.f32.mrf.mxu1 }
 0x138   :  { %3114 = vmatpush2.bf16.msra.mxu1 %v3470_v60  ;;  %3042 = vmatprep.subr.bf16.mxu0 %v3717_v2  ;;  %v3708_v60 = vcombine.low %v416_v53, %v420_v15  ;;  %v5058_v2 = vpop.f32.mrf.mxu0  ;;  %v277_v53 = vld [vmem:[%s5739_s1 + $0x5f8] sm:$0xff] }
 0x139   :  { %3115 = vmatprep.subr.bf16.mxu1 %v3463_v12  ;;  %v3454_v12 = vcombine.low %v161_v17, %v165_v18  ;;  %v401_v15 = vld [vmem:[%s5739_s1 + $0x9d8] sm:$0xff]  ;;  %v5078_v18 = vrot.slane %v5049_v44, %v478_v56  ;;  %v5084_v4 = vpop.f32.mrf.mxu1  ;;  %v2540_v44 = vadd.f32 %v4860_v57, %v2467_v58 }
 0x13a   :  { %v405_v17 = vld [vmem:[%s5739_s1 + $0x9f8] sm:$0xff]  ;;  %5769 = vst [vmem:[#allocation14_spill] sm:$0xff] %v5084_v4 }
 0x13b   :  { %3043 = vmatpush2.bf16.msra.mxu0 %v3716_v22  ;;  %v5080_v22 = vpop.f32.mrf.mxu0  ;;  %v3695_v48 = vcombine.high %v401_v15, %v405_v17  ;;  %v265_v56 = vld [vmem:[%s5739_s1 + $0x598] sm:$0xff]  ;;  %v5110_v4 = vpop.f32.mrf.mxu1 }
 0x13c   :  { %3116 = vmatpush2.bf16.msra.mxu1 %v3462_v27  ;;  %3044 = vmatprep.subr.bf16.mxu0 %v3709_v31  ;;  %v3446_v27 = vcombine.low %v153_v47, %v157_v55  ;;  %v3567_v31 = vcombine.high %v273_v61, %v277_v53  ;;  %v3694_v55 = vcombine.low %v401_v15, %v405_v17  ;;  %v389_v15 = vld [vmem:[%s5739_s1 + $0x978] sm:$0xff] }
 0x13d   :  { %3117 = vmatprep.subr.bf16.mxu1 %v3455_v33  ;;  %v3700_v33 = vcombine.low %v408_v20, %v412_v42  ;;  %v269_v20 = vld [vmem:[%s5739_s1 + $0x5b8] sm:$0xff]  ;;  %v3566_v42 = vcombine.low %v273_v61, %v277_v53  ;;  %v5100_v47 = vpop.f32.mrf.mxu0  ;;  %5771 = vst [vmem:[#allocation16_spill] sm:$0xff] %v5110_v4 }
 0x13e   :  { %5770 = vst [vmem:[#allocation15_spill] sm:$0xff] %v5100_v47  ;;  %v385_v53 = vld [vmem:[%s5739_s1 + $0x958] sm:$0xff]  ;;  %v3558_v7 = vcombine.low %v265_v56, %v269_v20  ;;  %v2544_v47 = vadd.f32 %v4896_v24, %v2471_v63 }
 0x13f   :  { %3045 = vmatpush2.bf16.msra.mxu0 %v3708_v60  ;;  %v3559_v60 = vcombine.high %v265_v56, %v269_v20  ;;  %v3679_v4 = vcombine.high %v385_v53, %v389_v15  ;;  %v2477_v56 = vadd.f32 %v4899_v29, %v5061_v54  ;;  %v253_v63 = vld [vmem:[%s5739_s1 + $0x538] sm:$0xff] }
 0x140   :  { %3118 = vmatpush2.bf16.msra.mxu1 %v3454_v12  ;;  %3046 = vmatprep.subr.bf16.mxu0 %v3701_v3  ;;  %v393_v3 = vld [vmem:[%s5739_s1 + $0x998] sm:$0xff] }
 0x141   :  { %3119 = vmatprep.subr.bf16.mxu1 %v3447_v25  ;;  %v2469_v25 = vadd.f32 %v4851_v52, %v5078_v18  ;;  %v5105_v12 = vld [vmem:[%s5739_s1 + $0x558] sm:$0xff]  ;;  %v3687_v61 = vcombine.high %v393_v3, %v397_v39 }
 0x142   :  { %v261_v52 = vld [vmem:[%s5739_s1 + $0x578] sm:$0xff] }
 0x143   :  { %3047 = vmatpush2.bf16.msra.mxu0 %v3700_v33  ;;  %v2542_v17 = vadd.f32 %v4879_v11, %v2469_v25  ;;  %v3551_v58 = vcombine.high %v5105_v12, %v261_v52  ;;  %v5130_v11 = vpop.f32.mrf.mxu1  ;;  %v377_v29 = vld [vmem:[%s5739_s1 + $0x918] sm:$0xff] }
 0x144   :  { %3120 = vmatpush2.bf16.msra.mxu1 %v3446_v27  ;;  %3162 = vmatprep.subr.bf16.mxu0 %v3567_v31  ;;  %v3686_v31 = vcombine.low %v393_v3, %v397_v39  ;;  %v2479_v3 = vadd.f32 %v4917_v49, %v5078_v18  ;;  %v2550_v49 = vadd.f32 %v4925_v59, %v2477_v56  ;;  %v373_v59 = vld [vmem:[%s5739_s1 + $0x8f8] sm:$0xff] }
 0x145   :  { %3235 = vmatprep.subr.bf16.mxu1 %v3695_v48  ;;  %v2473_v48 = vadd.f32 %v4887_v19, %v5078_v18  ;;  %v249_v19 = vld [vmem:[%s5739_s1 + $0x518] sm:$0xff] }
 0x146   :  { %v2612_v57 = vpop.f32.mrf.mxu0  ;;  %3049 = vmatmul.mubr.bf16.vlgmr.msra.gmra.mxu0 %v4346_v36  ;;  %v233_v56 = vld [vmem:[%s5739_s1 + $0x498] sm:$0xff] }
 0x147   :  { %v2613_v33 = vadd.f32 %v2612_v57, %v2540_v44  ;;  %3122 = vmatmul.mubr.bf16.vlgmr.msra.gmra.mxu1 %v4024_v21  ;;  %3163 = vmatpush1.bf16.msra.mxu0 %v3566_v42  ;;  %v381_v44 = vld [vmem:[%s5739_s1 + $0x938] sm:$0xff]  ;;  %v2546_v20 = vadd.f32 %v4915_v43, %v2473_v48  ;;  %v5152_v39 = vpop.f32.mrf.mxu1  ;;  %v3550_v42 = vcombine.low %v5105_v12, %v261_v52 }
 0x148   :  { %3236 = vmatpush1.bf16.msra.mxu1 %v3694_v55  ;;  %v2614_v27 = vpop.f32.mrf.mxu0  ;;  %3164 = vmatprep.subr.bf16.mxu0 %v3559_v60  ;;  %v3678_v60 = vcombine.low %v385_v53, %v389_v15  ;;  %v5161_v43 = vld [vmem:[%s5739_s1 + $0x4d8] sm:$0xff]  ;;  %v3671_v12 = vcombine.high %v377_v29, %v381_v44  ;;  %v3542_v15 = vcombine.low %v249_v19, %v253_v63 }
 0x149   :  { %3308 = vst [vmem:[%s5742_s3] sm:$0xff] %v2613_v33  ;;  %v2615_v21 = vadd.f32 %v2614_v27, %v2542_v17  ;;  %3237 = vmatprep.subr.bf16.mxu1 %v3687_v61  ;;  %3058 = vmatprep.mubr.bf16.mxu0 %v4357_v45  ;;  %v2481_v61 = vadd.f32 %v4935_v8, %v5061_v54  ;;  %v245_v52 = vld [vmem:[%s5739_s1 + $0x4f8] sm:$0xff] }
 0x14a   :  { %v2616_v24 = vpop.f32.mrf.mxu0  ;;  %3131 = vmatprep.mubr.bf16.mxu1 %v4049_v34  ;;  %v3543_v34 = vcombine.high %v249_v19, %v253_v63  ;;  %v369_v53 = vld [vmem:[%s5739_s1 + $0x8d8] sm:$0xff]  ;;  %v2552_v57 = vadd.f32 %v4943_v14, %v2479_v3  ;;  %v3670_v33 = vcombine.low %v377_v29, %v381_v44  ;;  %v3535_v27 = vcombine.high %v5161_v43, %v245_v52 }
 0x14b   :  { %3309 = vst [vmem:[%s5742_s3 + $0x8] sm:$0xff] %v2615_v21  ;;  %v2617_v25 = vadd.f32 %v2616_v24, %v2544_v47  ;;  %3165 = vmatpush1.bf16.msra.mxu0 %v3558_v7  ;;  %v5182_v7 = vpop.f32.mrf.mxu1  ;;  %v3663_v14 = vcombine.high %v369_v53, %v373_v59  ;;  %v237_v21 = vld [vmem:[%s5739_s1 + $0x4b8] sm:$0xff]  ;;  %v2489_v24 = vadd.f32 %v4985_v10, %v5078_v18 }
 0x14c   :  { %3238 = vmatpush1.bf16.msra.mxu1 %v3686_v31  ;;  %v2618_v55 = vpop.f32.mrf.mxu0  ;;  %3166 = vmatprep.subr.bf16.mxu0 %v3551_v58  ;;  %v2554_v31 = vadd.f32 %v4961_v35, %v2481_v61  ;;  %v365_v19 = vld [vmem:[%s5739_s1 + $0x8b8] sm:$0xff]  ;;  %v3534_v44 = vcombine.low %v5161_v43, %v245_v52  ;;  %v3662_v3 = vcombine.low %v369_v53, %v373_v59 }
 0x14d   :  { %3316 = vst [vmem:[%s5742_s3 + $0x40] sm:$0xff] %v2617_v25  ;;  %v2619_v47 = vadd.f32 %v2618_v55, %v2546_v20  ;;  %3239 = vmatprep.subr.bf16.mxu1 %v3679_v4  ;;  %v2483_v4 = vadd.f32 %v4953_v26, %v5078_v18  ;;  %v2487_v26 = vadd.f32 %v4969_v46, %v5061_v54  ;;  %v361_v46 = vld [vmem:[%s5739_s1 + $0x898] sm:$0xff]  ;;  %v5212_v29 = vpop.f32.mrf.mxu1 }
 0x14e   :  { %v2622_v8 = vpop.f32.mrf.mxu0  ;;  %3059 = vmatmul.mubr.bf16.gmra.mxu0 %v4392_v5  ;;  %v2491_v25 = vadd.f32 %v5001_v28, %v5061_v54  ;;  %v3655_v55 = vcombine.high %v361_v46, %v365_v19  ;;  %v3526_v43 = vcombine.low %v233_v56, %v237_v21  ;;  %v2493_v61 = vadd.f32 %v5017_v62, %v5078_v18 }
 0x14f   :  { %3317 = vst [vmem:[%s5742_s3 + $0x48] sm:$0xff] %v2619_v47  ;;  %v2623_v17 = vadd.f32 %v2622_v8, %v2550_v49  ;;  %3167 = vmatpush1.bf16.msra.mxu0 %v3550_v42  ;;  %3068 = vmatprep.mubr.bf16.mxu0 %v4401_v9  ;;  %v2556_v63 = vadd.f32 %v4971_v51, %v2483_v4  ;;  %v5221_v51 = vld [vmem:[%s5739_s1 + $0x458] sm:$0xff]  ;;  %v5242_v47 = vpop.f32.mrf.mxu1 }
 0x150   :  { %3240 = vmatpush1.bf16.msra.mxu1 %v3678_v60  ;;  %v2624_v48 = vpop.f32.mrf.mxu0  ;;  %3168 = vmatprep.subr.bf16.mxu0 %v3543_v34  ;;  %v2560_v10 = vadd.f32 %v4987_v13, %v2487_v26  ;;  %v229_v60 = vld [vmem:[%s5739_s1 + $0x478] sm:$0xff]  ;;  %v2562_v49 = vadd.f32 %v5003_v38, %v2489_v24  ;;  %v3654_v53 = vcombine.low %v361_v46, %v365_v19 }
 0x151   :  { %3324 = vst [vmem:[%s5742_s3 + $0x80] sm:$0xff] %v2623_v17  ;;  %v2625_v58 = vadd.f32 %v2624_v48, %v2552_v57  ;;  %3241 = vmatprep.subr.bf16.mxu1 %v3671_v12  ;;  %3132 = vmatmul.mubr.bf16.gmra.mxu1 %v4086_v50  ;;  %v353_v34 = vld [vmem:[%s5739_s1 + $0x858] sm:$0xff]  ;;  %v3519_v59 = vcombine.high %v5221_v51, %v229_v60  ;;  %v5261_v17 = vpop.f32.mrf.mxu1 }
 0x152   :  { %v2626_v35 = vpop.f32.mrf.mxu0  ;;  %3141 = vmatprep.mubr.bf16.mxu1 %v4109_v0  ;;  %v3527_v0 = vcombine.high %v233_v56, %v237_v21  ;;  %v357_v13 = vld [vmem:[%s5739_s1 + $0x878] sm:$0xff]  ;;  %v2564_v8 = vadd.f32 %v5021_v6, %v2491_v25  ;;  %v2497_v62 = vadd.f32 %v5035_v23, %v5061_v54  ;;  %v5775_v25 = vld [vmem:[#allocation16_spill] sm:$0xff] }
 0x153   :  { %3325 = vst [vmem:[%s5742_s3 + $0x88] sm:$0xff] %v2625_v58  ;;  %v2627_v50 = vadd.f32 %v2626_v35, %v2554_v31  ;;  %3169 = vmatpush1.bf16.msra.mxu0 %v3542_v15  ;;  %v3647_v38 = vcombine.high %v353_v34, %v357_v13  ;;  %v217_v57 = vld [vmem:[%s5739_s1 + $0x418] sm:$0xff]  ;;  %v3646_v26 = vcombine.low %v353_v34, %v357_v13  ;;  %v5290_v46 = vpop.f32.mrf.mxu1 }
 0x154   :  { %3242 = vmatpush1.bf16.msra.mxu1 %v3670_v33  ;;  %v2628_v20 = vpop.f32.mrf.mxu0  ;;  %3170 = vmatprep.subr.bf16.mxu0 %v3535_v27  ;;  %v221_v4 = vld [vmem:[%s5739_s1 + $0x438] sm:$0xff]  ;;  %v2566_v33 = vadd.f32 %v5038_v41, %v2493_v61  ;;  %v2499_v27 = vadd.f32 %v5058_v2, %v5078_v18  ;;  %v2501_v41 = vadd.f32 %v5080_v22, %v5061_v54 }
 0x155   :  { %3332 = vst [vmem:[%s5742_s3 + $0xc0] sm:$0xff] %v2627_v50  ;;  %v2629_v42 = vadd.f32 %v2628_v20, %v2556_v63  ;;  %3243 = vmatprep.subr.bf16.mxu1 %v3663_v14  ;;  %v345_v23 = vld [vmem:[%s5739_s1 + $0x818] sm:$0xff]  ;;  %v3518_v14 = vcombine.low %v5221_v51, %v229_v60  ;;  %v3511_v58 = vcombine.high %v217_v57, %v221_v4  ;;  %v5772_v63 = vld [vmem:[#allocation14_spill] sm:$0xff]  ;;  %v5773_v50 = vld [vmem:[#allocation15_spill] sm:$0xff]  ;;  %v5316_v13 = vpop.f32.mrf.mxu1 }
 0x156   :  { %v2632_v28 = vpop.f32.mrf.mxu0  ;;  %3069 = vmatmul.mubr.bf16.gmra.mxu0 %v4436_v32  ;;  %v349_v48 = vld [vmem:[%s5739_s1 + $0x838] sm:$0xff]  ;;  %v3510_v54 = vcombine.low %v217_v57, %v221_v4  ;;  %v2572_v24 = vadd.f32 %v5772_v63, %v2499_v27 }
 0x157   :  { %3333 = vst [vmem:[%s5742_s3 + $0xc8] sm:$0xff] %v2629_v42  ;;  %v2633_v12 = vadd.f32 %v2632_v28, %v2560_v10  ;;  %3171 = vmatpush1.bf16.msra.mxu0 %v3534_v44  ;;  %3078 = vmatprep.mubr.bf16.mxu0 %v4445_v40  ;;  %v3639_v56 = vcombine.high %v345_v23, %v349_v48  ;;  %v337_v21 = vld [vmem:[%s5739_s1 + $0x7d8] sm:$0xff] }
 0x158   :  { %3244 = vmatpush1.bf16.msra.mxu1 %v3662_v3  ;;  %v2634_v52 = vpop.f32.mrf.mxu0  ;;  %3172 = vmatprep.subr.bf16.mxu0 %v3527_v0  ;;  %v341_v35 = vld [vmem:[%s5739_s1 + $0x7f8] sm:$0xff]  ;;  %v2503_v44 = vadd.f32 %v5773_v50, %v5078_v18  ;;  %v5774_v3 = vld [vmem:[#allocation2_spill] sm:$0xff]  ;;  %v3638_v51 = vcombine.low %v345_v23, %v349_v48  ;;  %v2574_v42 = vadd.f32 %v5775_v25, %v2501_v41 }
 0x159   :  { %3340 = vst [vmem:[%s5742_s3 + $0x100] sm:$0xff] %v2633_v12  ;;  %v2635_v15 = vadd.f32 %v2634_v52, %v2562_v49  ;;  %3245 = vmatprep.subr.bf16.mxu1 %v3655_v55  ;;  %3142 = vmatmul.mubr.bf16.gmra.mxu1 %v4146_v16  ;;  %v465_v22 = vld [vmem:[%s5739_s1 + $0xbd8] sm:$0xff]  ;;  %v3631_v10 = vcombine.high %v337_v21, %v341_v35  ;;  %v5777_v12 = vld [vmem:[#allocation11_spill] sm:$0xff] }
 0x15a   :  { %v2636_v6 = vpop.f32.mrf.mxu0  ;;  %3151 = vmatprep.mubr.bf16.mxu1 %v4169_v30  ;;  %v2570_v30 = vadd.f32 %v5063_v37, %v2497_v62  ;;  %v469_v19 = vld [vmem:[%s5739_s1 + $0xbf8] sm:$0xff]  ;;  %v2576_v52 = vadd.f32 %v5130_v11, %v2503_v44 }
 0x15b   :  { %3341 = vst [vmem:[%s5742_s3 + $0x108] sm:$0xff] %v2635_v15  ;;  %v2637_v16 = vadd.f32 %v2636_v6, %v2564_v8  ;;  %3173 = vmatpush1.bf16.msra.mxu0 %v3526_v43  ;;  %v3759_v55 = vcombine.high %v465_v22, %v469_v19  ;;  %v329_v60 = vld [vmem:[%s5739_s1 + $0x798] sm:$0xff]  ;;  %v3758_v8 = vcombine.low %v465_v22, %v469_v19  ;;  %v5339_v6 = vpop.f32.mrf.mxu1 }
 0x15c   :  { %3246 = vmatpush1.bf16.msra.mxu1 %v3654_v53  ;;  %v2638_v31 = vpop.f32.mrf.mxu0  ;;  %3174 = vmatprep.subr.bf16.mxu0 %v3519_v59  ;;  %v333_v34 = vld [vmem:[%s5739_s1 + $0x7b8] sm:$0xff]  ;;  %v3630_v59 = vcombine.low %v337_v21, %v341_v35 }
 0x15d   :  { %3348 = vst [vmem:[%s5742_s3 + $0x140] sm:$0xff] %v2637_v16  ;;  %v2639_v2 = vadd.f32 %v2638_v31, %v2566_v33  ;;  %3247 = vmatprep.subr.bf16.mxu1 %v3647_v38  ;;  %v5776_v28 = vld [vmem:[#allocation9_spill] sm:$0xff]  ;;  %v3623_v62 = vcombine.high %v329_v60, %v333_v34  ;;  %v3622_v33 = vcombine.low %v329_v60, %v333_v34 }
 0x15e   :  { %v2642_v37 = vpop.f32.mrf.mxu0  ;;  %3079 = vmatmul.mubr.bf16.gmra.mxu0 %v4474_v1  ;;  %v457_v49 = vld [vmem:[%s5739_s1 + $0xb98] sm:$0xff] }
 0x15f   :  { %3349 = vst [vmem:[%s5742_s3 + $0x148] sm:$0xff] %v2639_v2  ;;  %v2643_v20 = vadd.f32 %v2642_v37, %v2570_v30  ;;  %3175 = vmatpush1.bf16.msra.mxu0 %v3518_v14  ;;  %3194 = vmatprep.mubr.bf16.mxu0 %v5774_v3  ;;  %v461_v61 = vld [vmem:[%s5739_s1 + $0xbb8] sm:$0xff] }
 0x160   :  { %3248 = vmatpush1.bf16.msra.mxu1 %v3646_v26  ;;  %v2644_v0 = vpop.f32.mrf.mxu0  ;;  %3176 = vmatprep.subr.bf16.mxu0 %v3511_v58  ;;  %v3751_v57 = vcombine.high %v457_v49, %v461_v61  ;;  %v321_v11 = vld [vmem:[%s5739_s1 + $0x758] sm:$0xff]  ;;  %v3750_v27 = vcombine.low %v457_v49, %v461_v61  ;;  %v5356_v58 = vpop.f32.mrf.mxu1 }
 0x161   :  { %3356 = vst [vmem:[%s5742_s3 + $0x180] sm:$0xff] %v2643_v20  ;;  %v2645_v18 = vadd.f32 %v2644_v0, %v2572_v24  ;;  %3249 = vmatprep.subr.bf16.mxu1 %v3639_v56  ;;  %3152 = vmatmul.mubr.bf16.gmra.mxu1 %v5776_v28  ;;  %v325_v4 = vld [vmem:[%s5739_s1 + $0x778] sm:$0xff] }
 0x162   :  { %v2646_v43 = vpop.f32.mrf.mxu0  ;;  %3267 = vmatprep.mubr.bf16.mxu1 %v5777_v12  ;;  %v449_v23 = vld [vmem:[%s5739_s1 + $0xb58] sm:$0xff]  ;;  %v3615_v16 = vcombine.high %v321_v11, %v325_v4  ;;  %v3614_v2 = vcombine.low %v321_v11, %v325_v4  ;;  %v5364_v37 = vpop.f32.mrf.mxu1 }
 0x163   :  { %3357 = vst [vmem:[%s5742_s3 + $0x188] sm:$0xff] %v2645_v18  ;;  %v2647_v53 = vadd.f32 %v2646_v43, %v2574_v42  ;;  %3177 = vmatpush1.bf16.msra.mxu0 %v3510_v54  ;;  %v453_v48 = vld [vmem:[%s5739_s1 + $0xb78] sm:$0xff] }
 0x164   :  { %3250 = vmatpush1.bf16.msra.mxu1 %v3638_v51  ;;  %v2648_v38 = vpop.f32.mrf.mxu0  ;;  %3178 = vmatprep.subr.bf16.mxu0 %v3631_v10  ;;  %v3743_v14 = vcombine.high %v449_v23, %v453_v48  ;;  %v313_v31 = vld [vmem:[%s5739_s1 + $0x718] sm:$0xff]  ;;  %v3742_v56 = vcombine.low %v449_v23, %v453_v48  ;;  %v5378_v3 = vpop.f32.mrf.mxu1  ;;  %v5778_v48 = vld [vmem:[#allocation12_spill] sm:$0xff] }
 0x165   :  { %3364 = vst [vmem:[%s5742_s3 + $0x1c0] sm:$0xff] %v2647_v53  ;;  %v2649_v15 = vadd.f32 %v2648_v38, %v2576_v52  ;;  %3251 = vmatprep.subr.bf16.mxu1 %v3759_v55  ;;  %v317_v26 = vld [vmem:[%s5739_s1 + $0x738] sm:$0xff] }
 0x166   :  { %v441_v30 = vld [vmem:[%s5739_s1 + $0xb18] sm:$0xff]  ;;  %v3607_v21 = vcombine.high %v313_v31, %v317_v26  ;;  %v3606_v24 = vcombine.low %v313_v31, %v317_v26  ;;  %v5392_v60 = vpop.f32.mrf.mxu1 }
 0x167   :  { %3365 = vst [vmem:[%s5742_s3 + $0x1c8] sm:$0xff] %v2649_v15  ;;  %3179 = vmatpush2.bf16.msra.mxu0 %v3630_v59  ;;  %v445_v41 = vld [vmem:[%s5739_s1 + $0xb38] sm:$0xff] }
 0x168   :  { %3252 = vmatpush2.bf16.msra.mxu1 %v3758_v8  ;;  %3180 = vmatprep.subr.bf16.mxu0 %v3623_v62  ;;  %v3735_v35 = vcombine.high %v441_v30, %v445_v41  ;;  %v305_v54 = vld [vmem:[%s5739_s1 + $0x6d8] sm:$0xff]  ;;  %v3734_v50 = vcombine.low %v441_v30, %v445_v41  ;;  %v5406_v59 = vpop.f32.mrf.mxu1 }
 0x169   :  { %3253 = vmatprep.subr.bf16.mxu1 %v3751_v57  ;;  %v309_v22 = vld [vmem:[%s5739_s1 + $0x6f8] sm:$0xff] }
 0x16a   :  { %v433_v19 = vld [vmem:[%s5739_s1 + $0xad8] sm:$0xff]  ;;  %v3599_v44 = vcombine.high %v305_v54, %v309_v22  ;;  %v3598_v42 = vcombine.low %v305_v54, %v309_v22  ;;  %v5780_v22 = vld [vmem:[#allocation3_spill] sm:$0xff] }
 0x16b   :  { %3181 = vmatpush2.bf16.msra.mxu0 %v3622_v33  ;;  %v437_v63 = vld [vmem:[%s5739_s1 + $0xaf8] sm:$0xff]  ;;  %v482_v33 = vsub.s32 2, %v5778_v48 }
 0x16c   :  { %3254 = vmatpush2.bf16.msra.mxu1 %v3750_v27  ;;  %3182 = vmatprep.subr.bf16.mxu0 %v3615_v16  ;;  %v3727_v20 = vcombine.high %v433_v19, %v437_v63  ;;  %v297_v0 = vld [vmem:[%s5739_s1 + $0x698] sm:$0xff]  ;;  %v3726_v18 = vcombine.low %v433_v19, %v437_v63  ;;  %v5421_v27 = vpop.f32.mrf.mxu1 }
 0x16d   :  { %3255 = vmatprep.subr.bf16.mxu1 %v3743_v14  ;;  %v301_v51 = vld [vmem:[%s5739_s1 + $0x6b8] sm:$0xff]  ;;  %v486_v14 = vsub.s32 3, %v5778_v48 }
 0x16e   :  { %v425_v10 = vld [vmem:[%s5739_s1 + $0xa98] sm:$0xff]  ;;  %v3591_v55 = vcombine.high %v297_v0, %v301_v51  ;;  %v3590_v12 = vcombine.low %v297_v0, %v301_v51 }
 0x16f   :  { %3183 = vmatpush2.bf16.msra.mxu0 %v3614_v2  ;;  %v429_v25 = vld [vmem:[%s5739_s1 + $0xab8] sm:$0xff]  ;;  %v5427_v2 = vpop.f32.mrf.mxu1 }
 0x170   :  { %3256 = vmatpush2.bf16.msra.mxu1 %v3742_v56  ;;  %3184 = vmatprep.subr.bf16.mxu0 %v3607_v21  ;;  %v3719_v34 = vcombine.high %v425_v10, %v429_v25  ;;  %v289_v28 = vld [vmem:[%s5739_s1 + $0x658] sm:$0xff]  ;;  %v3718_v52 = vcombine.low %v425_v10, %v429_v25 }
 0x171   :  { %3257 = vmatprep.subr.bf16.mxu1 %v3735_v35  ;;  %v293_v43 = vld [vmem:[%s5739_s1 + $0x678] sm:$0xff]  ;;  %v5434_v35 = vpop.f32.mrf.mxu1 }
 0x172   :  { %v417_v49 = vld [vmem:[%s5739_s1 + $0xa58] sm:$0xff]  ;;  %v3583_v53 = vcombine.high %v289_v28, %v293_v43  ;;  %v3582_v11 = vcombine.low %v289_v28, %v293_v43 }
 0x173   :  { %3185 = vmatpush2.bf16.msra.mxu0 %v3606_v24  ;;  %v421_v61 = vld [vmem:[%s5739_s1 + $0xa78] sm:$0xff] }
 0x174   :  { %3258 = vmatpush2.bf16.msra.mxu1 %v3734_v50  ;;  %3186 = vmatprep.subr.bf16.mxu0 %v3599_v44  ;;  %v3711_v38 = vcombine.high %v417_v49, %v421_v61  ;;  %v281_v8 = vld [vmem:[%s5739_s1 + $0x618] sm:$0xff]  ;;  %v3710_v4 = vcombine.low %v417_v49, %v421_v61  ;;  %v5781_v50 = vld [vmem:[#allocation4_spill] sm:$0xff] }
 0x175   :  { %3259 = vmatprep.subr.bf16.mxu1 %v3727_v20  ;;  %v285_v62 = vld [vmem:[%s5739_s1 + $0x638] sm:$0xff] }
 0x176   :  { %v409_v15 = vld [vmem:[%s5739_s1 + $0xa18] sm:$0xff]  ;;  %v3575_v23 = vcombine.high %v281_v8, %v285_v62  ;;  %v3574_v31 = vcombine.low %v281_v8, %v285_v62 }
 0x177   :  { %3187 = vmatpush2.bf16.msra.mxu0 %v3598_v42  ;;  %v413_v57 = vld [vmem:[%s5739_s1 + $0xa38] sm:$0xff] }
 0x178   :  { %3260 = vmatpush2.bf16.msra.mxu1 %v3726_v18  ;;  %3188 = vmatprep.subr.bf16.mxu0 %v3591_v55  ;;  %v3703_v16 = vcombine.high %v409_v15, %v413_v57  ;;  %v3702_v26 = vcombine.low %v409_v15, %v413_v57  ;;  %v5779_v30 = vld [vmem:[#allocation13_spill] sm:$0xff] }
 0x179   :  { %3261 = vmatprep.subr.bf16.mxu1 %v3719_v34  ;;  %v5425_v41 = vrot.slane %v5779_v30, %v482_v33  ;;  %v5430_v56 = vrot.slane %v5779_v30, %v486_v14 }
 0x17b   :  { %3189 = vmatpush2.bf16.msra.mxu0 %v3590_v12  ;;  %v2686_v21 = vadd.f32 %v5152_v39, %v5425_v41  ;;  %v2688_v19 = vadd.f32 %v5182_v7, %v5430_v56  ;;  %v2690_v39 = vadd.f32 %v5212_v29, %v5425_v41  ;;  %v2692_v25 = vadd.f32 %v5242_v47, %v5430_v56  ;;  %v5782_v47 = vld [vmem:[#allocation5_spill] sm:$0xff]  ;;  %v5783_v12 = vld [vmem:[#allocation6_spill] sm:$0xff] }
 0x17c   :  { %3262 = vmatpush2.bf16.msra.mxu1 %v3718_v52  ;;  %3190 = vmatprep.subr.bf16.mxu0 %v3583_v53  ;;  %v2698_v43 = vadd.f32 %v5290_v46, %v5430_v56  ;;  %v2700_v53 = vadd.f32 %v5316_v13, %v5425_v41  ;;  %v2706_v13 = vadd.f32 %v5356_v58, %v5425_v41 }
 0x17d   :  { %3263 = vmatprep.subr.bf16.mxu1 %v3711_v38  ;;  %v2708_v14 = vadd.f32 %v5364_v37, %v5430_v56 }
 0x17f   :  { %3191 = vmatpush2.bf16.msra.mxu0 %v3582_v11 }
 0x180   :  { %3264 = vmatpush2.bf16.msra.mxu1 %v3710_v4  ;;  %3192 = vmatprep.subr.bf16.mxu0 %v3575_v23 }
 0x181   :  { %3265 = vmatprep.subr.bf16.mxu1 %v3703_v16 }
 0x183   :  { %3193 = vmatpush2.bf16.msra.mxu0 %v3574_v31 }
 0x184   :  { %3266 = vmatpush2.bf16.msra.mxu1 %v3702_v26 }
 0x186   :  { %v2758_v54 = vpop.f32.mrf.mxu0  ;;  %3195 = vmatmul.mubr.bf16.vlgmr.msra.gmra.mxu0 %v5780_v22  ;;  %v2710_v22 = vadd.f32 %v5378_v3, %v5425_v41  ;;  %v2716_v3 = vadd.f32 %v5406_v59, %v5425_v41 }
 0x187   :  { %v2759_v63 = vadd.f32 %v2758_v54, %v2686_v21  ;;  %v2831_v24 = vpop.f32.mrf.mxu1  ;;  %3268 = vmatmul.mubr.bf16.vlgmr.msra.gmra.mxu1 %v4346_v36  ;;  %3204 = vmatprep.mubr.bf16.mxu0 %v5781_v50  ;;  %v5785_v21 = vld [vmem:[#allocation8_spill] sm:$0xff] }
 0x188   :  { %v2760_v44 = vpop.f32.mrf.mxu0  ;;  %3277 = vmatprep.mubr.bf16.mxu1 %v4357_v45  ;;  %v2696_v45 = vadd.f32 %v5261_v17, %v5425_v41 }
 0x189   :  { %v2832_v20 = vadd.f32 %v2831_v24, %v2759_v63  ;;  %v2761_v0 = vadd.f32 %v2760_v44, %v2688_v19  ;;  %v2833_v51 = vpop.f32.mrf.mxu1 }
 0x18a   :  { %v2762_v10 = vpop.f32.mrf.mxu0 }
 0x18b   :  { %3310 = vst [vmem:[%s5742_s3 + $0x10] sm:$0xff] %v2832_v20  ;;  %v2834_v36 = vadd.f32 %v2833_v51, %v2761_v0  ;;  %v2763_v7 = vadd.f32 %v2762_v10, %v2690_v39  ;;  %v2835_v42 = vpop.f32.mrf.mxu1 }
 0x18c   :  { %v2764_v18 = vpop.f32.mrf.mxu0 }
 0x18d   :  { %3311 = vst [vmem:[%s5742_s3 + $0x18] sm:$0xff] %v2834_v36  ;;  %v2836_v29 = vadd.f32 %v2835_v42, %v2763_v7  ;;  %v2765_v55 = vadd.f32 %v2764_v18, %v2692_v25  ;;  %v2837_v34 = vpop.f32.mrf.mxu1  ;;  %v2718_v25 = vadd.f32 %v5421_v27, %v5430_v56  ;;  %v2720_v18 = vadd.f32 %v5427_v2, %v5425_v41 }
 0x18e   :  { %v2768_v28 = vpop.f32.mrf.mxu0  ;;  %3205 = vmatmul.mubr.bf16.gmra.mxu0 %v5782_v47 }
 0x18f   :  { %3318 = vst [vmem:[%s5742_s3 + $0x50] sm:$0xff] %v2836_v29  ;;  %v2838_v49 = vadd.f32 %v2837_v34, %v2765_v55  ;;  %v2769_v61 = vadd.f32 %v2768_v28, %v2696_v45  ;;  %3278 = vmatmul.mubr.bf16.gmra.mxu1 %v4392_v5  ;;  %v2841_v17 = vpop.f32.mrf.mxu1  ;;  %3214 = vmatprep.mubr.bf16.mxu0 %v5783_v12 }
 0x190   :  { %v2770_v52 = vpop.f32.mrf.mxu0  ;;  %3287 = vmatprep.mubr.bf16.mxu1 %v4401_v9  ;;  %v2702_v5 = vadd.f32 %v5339_v6, %v5430_v56  ;;  %v5784_v6 = vld [vmem:[#allocation7_spill] sm:$0xff]  ;;  %v2722_v34 = vadd.f32 %v5434_v35, %v5430_v56 }
 0x191   :  { %3319 = vst [vmem:[%s5742_s3 + $0x58] sm:$0xff] %v2838_v49  ;;  %v2771_v46 = vadd.f32 %v2770_v52, %v2698_v43  ;;  %v2842_v38 = vadd.f32 %v2841_v17, %v2769_v61  ;;  %v2843_v8 = vpop.f32.mrf.mxu1 }
 0x192   :  { %v2772_v62 = vpop.f32.mrf.mxu0 }
 0x193   :  { %3326 = vst [vmem:[%s5742_s3 + $0x90] sm:$0xff] %v2842_v38  ;;  %v2773_v15 = vadd.f32 %v2772_v62, %v2700_v53  ;;  %v2844_v9 = vadd.f32 %v2843_v8, %v2771_v46  ;;  %v2845_v57 = vpop.f32.mrf.mxu1 }
 0x194   :  { %v2774_v11 = vpop.f32.mrf.mxu0 }
 0x195   :  { %3327 = vst [vmem:[%s5742_s3 + $0x98] sm:$0xff] %v2844_v9  ;;  %v2775_v4 = vadd.f32 %v2774_v11, %v2702_v5  ;;  %v2846_v23 = vadd.f32 %v2845_v57, %v2773_v15  ;;  %v2847_v33 = vpop.f32.mrf.mxu1 }
 0x196   :  { %v2778_v16 = vpop.f32.mrf.mxu0  ;;  %3215 = vmatmul.mubr.bf16.gmra.mxu0 %v5784_v6 }
 0x197   :  { %3334 = vst [vmem:[%s5742_s3 + $0xd0] sm:$0xff] %v2846_v23  ;;  %v2779_v31 = vadd.f32 %v2778_v16, %v2706_v13  ;;  %v2848_v26 = vadd.f32 %v2847_v33, %v2775_v4  ;;  %3288 = vmatmul.mubr.bf16.gmra.mxu1 %v4436_v32  ;;  %v2851_v58 = vpop.f32.mrf.mxu1  ;;  %3224 = vmatprep.mubr.bf16.mxu0 %v5785_v21 }
 0x198   :  { %v2780_v54 = vpop.f32.mrf.mxu0  ;;  %3297 = vmatprep.mubr.bf16.mxu1 %v4445_v40  ;;  %v2712_v32 = vadd.f32 %v5392_v60, %v5430_v56  ;;  %v5786_v60 = vld [vmem:[#allocation10_spill] sm:$0xff] }
 0x199   :  { %3335 = vst [vmem:[%s5742_s3 + $0xd8] sm:$0xff] %v2848_v26  ;;  %v2781_v37 = vadd.f32 %v2780_v54, %v2708_v14  ;;  %v2852_v19 = vadd.f32 %v2851_v58, %v2779_v31  ;;  %v2853_v63 = vpop.f32.mrf.mxu1  ;;  %v490_v58 = vsub.s32 4, %v5778_v48  ;;  %v494_v54 = vsub.s32 5, %v5778_v48 }
 0x19a   :  { %v2782_v24 = vpop.f32.mrf.mxu0 }
 0x19b   :  { %3342 = vst [vmem:[%s5742_s3 + $0x110] sm:$0xff] %v2852_v19  ;;  %v2783_v50 = vadd.f32 %v2782_v24, %v2710_v22  ;;  %v2854_v40 = vadd.f32 %v2853_v63, %v2781_v37  ;;  %v2855_v44 = vpop.f32.mrf.mxu1  ;;  %v5543_v37 = vrot.slane %v5779_v30, %v490_v58  ;;  %v5548_v63 = vrot.slane %v5779_v30, %v494_v54 }
 0x19c   :  { %v2784_v39 = vpop.f32.mrf.mxu0 }
 0x19d   :  { %3343 = vst [vmem:[%s5742_s3 + $0x118] sm:$0xff] %v2854_v40  ;;  %v2785_v20 = vadd.f32 %v2784_v39, %v2712_v32  ;;  %v2856_v0 = vadd.f32 %v2855_v44, %v2783_v50  ;;  %v2857_v51 = vpop.f32.mrf.mxu1 }
 0x19e   :  { %v2788_v10 = vpop.f32.mrf.mxu0  ;;  %3225 = vmatmul.mubr.bf16.gmra.mxu0 %v5786_v60 }
 0x19f   :  { %3350 = vst [vmem:[%s5742_s3 + $0x150] sm:$0xff] %v2856_v0  ;;  %v2789_v36 = vadd.f32 %v2788_v10, %v2716_v3  ;;  %v2858_v7 = vadd.f32 %v2857_v51, %v2785_v20  ;;  %3298 = vmatmul.mubr.bf16.gmra.mxu1 %v4474_v1  ;;  %v2861_v59 = vpop.f32.mrf.mxu1 }
 0x1a0   :  { %v2790_v42 = vpop.f32.mrf.mxu0 }
 0x1a1   :  { %3351 = vst [vmem:[%s5742_s3 + $0x158] sm:$0xff] %v2858_v7  ;;  %v2791_v45 = vadd.f32 %v2790_v42, %v2718_v25  ;;  %v2862_v29 = vadd.f32 %v2861_v59, %v2789_v36  ;;  %v2863_v27 = vpop.f32.mrf.mxu1 }
 0x1a2   :  { %v2792_v55 = vpop.f32.mrf.mxu0 }
 0x1a3   :  { %3358 = vst [vmem:[%s5742_s3 + $0x190] sm:$0xff] %v2862_v29  ;;  %v2793_v1 = vadd.f32 %v2792_v55, %v2720_v18  ;;  %v2864_v28 = vadd.f32 %v2863_v27, %v2791_v45  ;;  %v2865_v47 = vpop.f32.mrf.mxu1 }
 0x1a4   :  { %v2794_v43 = vpop.f32.mrf.mxu0 }
 0x1a5   :  { %3359 = vst [vmem:[%s5742_s3 + $0x198] sm:$0xff] %v2864_v28  ;;  %v2795_v41 = vadd.f32 %v2794_v43, %v2722_v34  ;;  %v2866_v2 = vadd.f32 %v2865_v47, %v2793_v1  ;;  %v2867_v49 = vpop.f32.mrf.mxu1 }
 0x1a7   :  { %3366 = vst [vmem:[%s5742_s3 + $0x1d0] sm:$0xff] %v2866_v2  ;;  %v2868_v56 = vadd.f32 %v2867_v49, %v2795_v41 }
 0x1a9   :  { %3367 = vst [vmem:[%s5742_s3 + $0x1d8] sm:$0xff] %v2868_v56 }
 0x1c6   :  { %v2904_v35 = vpop.f32.mrf.mxu0 }
 0x1c7   :  { %v2977_v17 = vpop.f32.mrf.mxu1  ;;  %v2905_v32 = vadd.f32 %v2904_v35, %v5543_v37 }
 0x1c8   :  { %v2906_v61 = vpop.f32.mrf.mxu0 }
 0x1c9   :  { %v2979_v52 = vpop.f32.mrf.mxu1  ;;  %v2907_v40 = vadd.f32 %v2906_v61, %v5548_v63  ;;  %v2978_v39 = vadd.f32 %v2977_v17, %v2905_v32 }
 0x1ca   :  { %v2908_v12 = vpop.f32.mrf.mxu0 }
 0x1cb   :  { %v2981_v46 = vpop.f32.mrf.mxu1  ;;  %v2909_v3 = vadd.f32 %v2908_v12, %v5543_v37  ;;  %v2980_v51 = vadd.f32 %v2979_v52, %v2907_v40 }
 0x1cc   :  { %v2910_v53 = vpop.f32.mrf.mxu0 }
 0x1cd   :  { %v2983_v8 = vpop.f32.mrf.mxu1  ;;  %v2911_v30 = vadd.f32 %v2910_v53, %v5548_v63  ;;  %v2982_v25 = vadd.f32 %v2981_v46, %v2909_v3 }
 0x1ce   :  { %v2914_v38 = vpop.f32.mrf.mxu0 }
 0x1cf   :  { %v2987_v5 = vpop.f32.mrf.mxu1  ;;  %v2915_v36 = vadd.f32 %v2914_v38, %v5543_v37  ;;  %v2984_v18 = vadd.f32 %v2983_v8, %v2911_v30 }
 0x1d0   :  { %v2916_v62 = vpop.f32.mrf.mxu0 }
 0x1d1   :  { %v2989_v9 = vpop.f32.mrf.mxu1  ;;  %v2917_v45 = vadd.f32 %v2916_v62, %v5548_v63  ;;  %v2988_v34 = vadd.f32 %v2987_v5, %v2915_v36 }
 0x1d2   :  { %v2918_v15 = vpop.f32.mrf.mxu0 }
 0x1d3   :  { %v2991_v11 = vpop.f32.mrf.mxu1  ;;  %v2919_v1 = vadd.f32 %v2918_v15, %v5543_v37  ;;  %v2990_v43 = vadd.f32 %v2989_v9, %v2917_v45  ;;  %v498_v45 = vsub.s32 6, %v5778_v48 }
 0x1d4   :  { %v2920_v57 = vpop.f32.mrf.mxu0 }
 0x1d5   :  { %v2993_v4 = vpop.f32.mrf.mxu1  ;;  %v2921_v41 = vadd.f32 %v2920_v57, %v5548_v63  ;;  %v2992_v35 = vadd.f32 %v2991_v11, %v2919_v1 }
 0x1d6   :  { %v2924_v13 = vpop.f32.mrf.mxu0 }
 0x1d7   :  { %v2997_v33 = vpop.f32.mrf.mxu1  ;;  %v2925_v61 = vadd.f32 %v2924_v13, %v5543_v37  ;;  %v2994_v52 = vadd.f32 %v2993_v4, %v2921_v41 }
 0x1d8   :  { %v2926_v23 = vpop.f32.mrf.mxu0 }
 0x1d9   :  { %v5528_v6 = vpop.f32.mrf.mxu1  ;;  %v2927_v53 = vadd.f32 %v2926_v23, %v5548_v63  ;;  %v2998_v62 = vadd.f32 %v2997_v33, %v2925_v61 }
 0x1da   :  { %v2928_v16 = vpop.f32.mrf.mxu0 }
 0x1db   :  { %v5532_v31 = vpop.f32.mrf.mxu1  ;;  %v2929_v5 = vadd.f32 %v2928_v16, %v5543_v37  ;;  %v3000_v57 = vadd.f32 %v5528_v6, %v2927_v53 }
 0x1dc   :  { %v5530_v14 = vpop.f32.mrf.mxu0 }
 0x1dd   :  { %v5537_v21 = vpop.f32.mrf.mxu1  ;;  %v2931_v11 = vadd.f32 %v5530_v14, %v5548_v63  ;;  %v3002_v33 = vadd.f32 %v5532_v31, %v2929_v5 }
 0x1de   :  { %v5534_v26 = vpop.f32.mrf.mxu0 }
 0x1df   :  { %v5545_v19 = vpop.f32.mrf.mxu1  ;;  %v2935_v16 = vadd.f32 %v5534_v26, %v5543_v37  ;;  %v3004_v54 = vadd.f32 %v5537_v21, %v2931_v11 }
 0x1e0   :  { %v5540_v22 = vpop.f32.mrf.mxu0 }
 0x1e1   :  { %v5553_v50 = vpop.f32.mrf.mxu1  ;;  %v2937_v32 = vadd.f32 %v5540_v22, %v5548_v63  ;;  %v3008_v26 = vadd.f32 %v5545_v19, %v2935_v16 }
 0x1e2   :  { %v5550_v24 = vpop.f32.mrf.mxu0 }
 0x1e3   :  { %v5559_v20 = vpop.f32.mrf.mxu1  ;;  %v3010_v22 = vadd.f32 %v5553_v50, %v2937_v32 }
 0x1e4   :  { %v5556_v44 = vpop.f32.mrf.mxu0 }
 0x1e5   :  { %v5563_v7 = vpop.f32.mrf.mxu1 }
 0x206   :  { %v3050_v0 = vpop.f32.mrf.mxu0 }
 0x207   :  { %v3051_v10 = vadd.f32 %v3050_v0, %v2978_v39  ;;  %v5569_v29 = vpop.f32.mrf.mxu1  ;;  %v2939_v39 = vadd.f32 %v5550_v24, %v5543_v37 }
 0x208   :  { %v3052_v60 = vpop.f32.mrf.mxu0 }
 0x209   :  { %3312 = vst [vmem:[%s5742_s3 + $0x20] sm:$0xff] %v3051_v10  ;;  %v3053_v59 = vadd.f32 %v3052_v60, %v2980_v51  ;;  %v5579_v2 = vpop.f32.mrf.mxu1  ;;  %v2941_v51 = vadd.f32 %v5556_v44, %v5548_v63  ;;  %v3012_v37 = vadd.f32 %v5559_v20, %v2939_v39 }
 0x20a   :  { %v3054_v42 = vpop.f32.mrf.mxu0 }
 0x20b   :  { %3313 = vst [vmem:[%s5742_s3 + $0x28] sm:$0xff] %v3053_v59  ;;  %v3055_v27 = vadd.f32 %v3054_v42, %v2982_v25  ;;  %v5589_v46 = vpop.f32.mrf.mxu1  ;;  %v3014_v50 = vadd.f32 %v5563_v7, %v2941_v51 }
 0x20c   :  { %v3056_v55 = vpop.f32.mrf.mxu0 }
 0x20d   :  { %3320 = vst [vmem:[%s5742_s3 + $0x60] sm:$0xff] %v3055_v27  ;;  %v3057_v28 = vadd.f32 %v3056_v55, %v2984_v18  ;;  %v5601_v13 = vpop.f32.mrf.mxu1  ;;  %v502_v55 = vsub.s32 7, %v5778_v48 }
 0x20e   :  { %v3060_v47 = vpop.f32.mrf.mxu0 }
 0x20f   :  { %3321 = vst [vmem:[%s5742_s3 + $0x68] sm:$0xff] %v3057_v28  ;;  %v3061_v49 = vadd.f32 %v3060_v47, %v2988_v34  ;;  %v3760_v34 = vld [vmem:[%s5741_s2] sm:$0xff] }
 0x210   :  { %v3062_v56 = vpop.f32.mrf.mxu0  ;;  %v5657_v1 = vrot.slane %v3760_v34, %v498_v45  ;;  %v5661_v47 = vrot.slane %v3760_v34, %v502_v55 }
 0x211   :  { %3328 = vst [vmem:[%s5742_s3 + $0xa0] sm:$0xff] %v3061_v49  ;;  %v3063_v17 = vadd.f32 %v3062_v56, %v2990_v43  ;;  %v3133_v58 = vpop.f32.mrf.mxu1 }
 0x212   :  { %v3064_v12 = vpop.f32.mrf.mxu0  ;;  %v3124_v43 = vadd.f32 %v5569_v29, %v5657_v1  ;;  %v3126_v56 = vadd.f32 %v5579_v2, %v5661_v47 }
 0x213   :  { %3329 = vst [vmem:[%s5742_s3 + $0xa8] sm:$0xff] %v3063_v17  ;;  %v3065_v38 = vadd.f32 %v3064_v12, %v2992_v35  ;;  %v3135_v21 = vpop.f32.mrf.mxu1  ;;  %v3128_v17 = vadd.f32 %v5589_v46, %v5657_v1 }
 0x214   :  { %v3066_v8 = vpop.f32.mrf.mxu0 }
 0x215   :  { %3336 = vst [vmem:[%s5742_s3 + $0xe0] sm:$0xff] %v3065_v38  ;;  %v3067_v15 = vadd.f32 %v3066_v8, %v2994_v52  ;;  %v3137_v10 = vpop.f32.mrf.mxu1  ;;  %v3130_v8 = vadd.f32 %v5601_v13, %v5661_v47  ;;  %v3136_v13 = vadd.f32 %v3135_v21, %v5661_v47 }
 0x216   :  { %v3070_v9 = vpop.f32.mrf.mxu0 }
 0x217   :  { %3337 = vst [vmem:[%s5742_s3 + $0xe8] sm:$0xff] %v3067_v15  ;;  %v3071_v4 = vadd.f32 %v3070_v9, %v2998_v62  ;;  %v3139_v25 = vpop.f32.mrf.mxu1  ;;  %v3134_v15 = vadd.f32 %v3133_v58, %v5657_v1 }
 0x218   :  { %v3072_v23 = vpop.f32.mrf.mxu0 }
 0x219   :  { %3344 = vst [vmem:[%s5742_s3 + $0x120] sm:$0xff] %v3071_v4  ;;  %v3073_v6 = vadd.f32 %v3072_v23, %v3000_v57  ;;  %v3143_v36 = vpop.f32.mrf.mxu1 }
 0x21a   :  { %v3074_v14 = vpop.f32.mrf.mxu0  ;;  %v3144_v21 = vadd.f32 %v3143_v36, %v5657_v1 }
 0x21b   :  { %3345 = vst [vmem:[%s5742_s3 + $0x128] sm:$0xff] %v3073_v6  ;;  %v3075_v31 = vadd.f32 %v3074_v14, %v3002_v33  ;;  %v3145_v59 = vpop.f32.mrf.mxu1  ;;  %v3138_v6 = vadd.f32 %v3137_v10, %v5657_v1 }
 0x21c   :  { %v3076_v40 = vpop.f32.mrf.mxu0 }
 0x21d   :  { %3352 = vst [vmem:[%s5742_s3 + $0x160] sm:$0xff] %v3075_v31  ;;  %v3077_v3 = vadd.f32 %v3076_v40, %v3004_v54  ;;  %v5644_v42 = vpop.f32.mrf.mxu1  ;;  %v3140_v31 = vadd.f32 %v3139_v25, %v5661_v47 }
 0x21e   :  { %v3080_v0 = vpop.f32.mrf.mxu0 }
 0x21f   :  { %3353 = vst [vmem:[%s5742_s3 + $0x168] sm:$0xff] %v3077_v3  ;;  %v3081_v19 = vadd.f32 %v3080_v0, %v3008_v26  ;;  %v5646_v7 = vpop.f32.mrf.mxu1 }
 0x220   :  { %v3082_v30 = vpop.f32.mrf.mxu0  ;;  %v3150_v36 = vadd.f32 %v5646_v7, %v5661_v47 }
 0x221   :  { %3360 = vst [vmem:[%s5742_s3 + $0x1a0] sm:$0xff] %v3081_v19  ;;  %v3083_v24 = vadd.f32 %v3082_v30, %v3010_v22  ;;  %v5648_v18 = vpop.f32.mrf.mxu1  ;;  %v3146_v30 = vadd.f32 %v3145_v59, %v5661_v47 }
 0x222   :  { %v3084_v60 = vpop.f32.mrf.mxu0 }
 0x223   :  { %3361 = vst [vmem:[%s5742_s3 + $0x1a8] sm:$0xff] %v3083_v24  ;;  %v3085_v63 = vadd.f32 %v3084_v60, %v3012_v37  ;;  %v5651_v27 = vpop.f32.mrf.mxu1 }
 0x224   :  { %v3086_v44 = vpop.f32.mrf.mxu0  ;;  %v3156_v7 = vadd.f32 %v5651_v27, %v5661_v47 }
 0x225   :  { %3368 = vst [vmem:[%s5742_s3 + $0x1e0] sm:$0xff] %v3085_v63  ;;  %v3087_v20 = vadd.f32 %v3086_v44, %v3014_v50  ;;  %v5659_v28 = vpop.f32.mrf.mxu1  ;;  %v3148_v50 = vadd.f32 %v5644_v42, %v5657_v1  ;;  %v3154_v42 = vadd.f32 %v5648_v18, %v5657_v1 }
 0x226   :  { %v3158_v18 = vadd.f32 %v5659_v28, %v5657_v1 }
 0x227   :  { %3369 = vst [vmem:[%s5742_s3 + $0x1e8] sm:$0xff] %v3087_v20  ;;  %v5665_v41 = vpop.f32.mrf.mxu1 }
 0x228   :  { %v3160_v27 = vadd.f32 %v5665_v41, %v5661_v47 }
 0x246   :  { %v3196_v49 = vpop.f32.mrf.mxu0 }
 0x247   :  { %v3197_v48 = vadd.f32 %v3196_v49, %v3124_v43  ;;  %v3269_v35 = vpop.f32.mrf.mxu1 }
 0x248   :  { %v3198_v61 = vpop.f32.mrf.mxu0 }
 0x249   :  { %v3270_v12 = vadd.f32 %v3269_v35, %v3197_v48  ;;  %v3199_v52 = vadd.f32 %v3198_v61, %v3126_v56  ;;  %v3271_v53 = vpop.f32.mrf.mxu1 }
 0x24a   :  { %v3200_v38 = vpop.f32.mrf.mxu0 }
 0x24b   :  { %3314 = vst [vmem:[%s5742_s3 + $0x30] sm:$0xff] %v3270_v12  ;;  %v3272_v29 = vadd.f32 %v3271_v53, %v3199_v52  ;;  %v3201_v62 = vadd.f32 %v3200_v38, %v3128_v17  ;;  %v3273_v2 = vpop.f32.mrf.mxu1 }
 0x24c   :  { %v3202_v5 = vpop.f32.mrf.mxu0 }
 0x24d   :  { %3315 = vst [vmem:[%s5742_s3 + $0x38] sm:$0xff] %v3272_v29  ;;  %v3274_v46 = vadd.f32 %v3273_v2, %v3201_v62  ;;  %v3203_v9 = vadd.f32 %v3202_v5, %v3130_v8  ;;  %v3275_v57 = vpop.f32.mrf.mxu1 }
 0x24e   :  { %v3206_v11 = vpop.f32.mrf.mxu0 }
 0x24f   :  { %3322 = vst [vmem:[%s5742_s3 + $0x70] sm:$0xff] %v3274_v46  ;;  %v3276_v4 = vadd.f32 %v3275_v57, %v3203_v9  ;;  %v3207_v23 = vadd.f32 %v3206_v11, %v3134_v15  ;;  %v3279_v33 = vpop.f32.mrf.mxu1 }
 0x250   :  { %v3208_v16 = vpop.f32.mrf.mxu0 }
 0x251   :  { %3323 = vst [vmem:[%s5742_s3 + $0x78] sm:$0xff] %v3276_v4  ;;  %v3280_v58 = vadd.f32 %v3279_v33, %v3207_v23  ;;  %v3209_v14 = vadd.f32 %v3208_v16, %v3136_v13  ;;  %v3281_v54 = vpop.f32.mrf.mxu1 }
 0x252   :  { %v3210_v32 = vpop.f32.mrf.mxu0 }
 0x253   :  { %3330 = vst [vmem:[%s5742_s3 + $0xb0] sm:$0xff] %v3280_v58  ;;  %v3282_v40 = vadd.f32 %v3281_v54, %v3209_v14  ;;  %v3211_v26 = vadd.f32 %v3210_v32, %v3138_v6  ;;  %v3283_v39 = vpop.f32.mrf.mxu1 }
 0x254   :  { %v3212_v3 = vpop.f32.mrf.mxu0 }
 0x255   :  { %3331 = vst [vmem:[%s5742_s3 + $0xb8] sm:$0xff] %v3282_v40  ;;  %v3284_v0 = vadd.f32 %v3283_v39, %v3211_v26  ;;  %v3213_v22 = vadd.f32 %v3212_v3, %v3140_v31  ;;  %v3285_v51 = vpop.f32.mrf.mxu1 }
 0x256   :  { %v3216_v19 = vpop.f32.mrf.mxu0 }
 0x257   :  { %3338 = vst [vmem:[%s5742_s3 + $0xf0] sm:$0xff] %v3284_v0  ;;  %v3286_v37 = vadd.f32 %v3285_v51, %v3213_v22  ;;  %v3217_v24 = vadd.f32 %v3216_v19, %v3144_v21  ;;  %v3289_v10 = vpop.f32.mrf.mxu1 }
 0x258   :  { %v3218_v60 = vpop.f32.mrf.mxu0 }
 0x259   :  { %3339 = vst [vmem:[%s5742_s3 + $0xf8] sm:$0xff] %v3286_v37  ;;  %v3290_v63 = vadd.f32 %v3289_v10, %v3217_v24  ;;  %v3219_v44 = vadd.f32 %v3218_v60, %v3146_v30  ;;  %v3291_v20 = vpop.f32.mrf.mxu1 }
 0x25a   :  { %v3220_v25 = vpop.f32.mrf.mxu0 }
 0x25b   :  { %3346 = vst [vmem:[%s5742_s3 + $0x130] sm:$0xff] %v3290_v63  ;;  %v3292_v59 = vadd.f32 %v3291_v20, %v3219_v44  ;;  %v3221_v45 = vadd.f32 %v3220_v25, %v3148_v50  ;;  %v3293_v55 = vpop.f32.mrf.mxu1 }
 0x25c   :  { %v3222_v34 = vpop.f32.mrf.mxu0 }
 0x25d   :  { %3347 = vst [vmem:[%s5742_s3 + $0x138] sm:$0xff] %v3292_v59  ;;  %v3294_v43 = vadd.f32 %v3293_v55, %v3221_v45  ;;  %v3223_v49 = vadd.f32 %v3222_v34, %v3150_v36  ;;  %v3295_v56 = vpop.f32.mrf.mxu1 }
 0x25e   :  { %v3226_v48 = vpop.f32.mrf.mxu0 }
 0x25f   :  { %3354 = vst [vmem:[%s5742_s3 + $0x170] sm:$0xff] %v3294_v43  ;;  %v3296_v35 = vadd.f32 %v3295_v56, %v3223_v49  ;;  %v3227_v61 = vadd.f32 %v3226_v48, %v3154_v42  ;;  %v3299_v17 = vpop.f32.mrf.mxu1 }
 0x260   :  { %v3228_v12 = vpop.f32.mrf.mxu0 }
 0x261   :  { %3355 = vst [vmem:[%s5742_s3 + $0x178] sm:$0xff] %v3296_v35  ;;  %v3300_v52 = vadd.f32 %v3299_v17, %v3227_v61  ;;  %v3229_v53 = vadd.f32 %v3228_v12, %v3156_v7  ;;  %v3301_v38 = vpop.f32.mrf.mxu1 }
 0x262   :  { %v3230_v8 = vpop.f32.mrf.mxu0 }
 0x263   :  { %3362 = vst [vmem:[%s5742_s3 + $0x1b0] sm:$0xff] %v3300_v52  ;;  %v3302_v29 = vadd.f32 %v3301_v38, %v3229_v53  ;;  %v3231_v62 = vadd.f32 %v3230_v8, %v3158_v18  ;;  %v3303_v2 = vpop.f32.mrf.mxu1 }
 0x264   :  { %v3232_v5 = vpop.f32.mrf.mxu0 }
 0x265   :  { %3363 = vst [vmem:[%s5742_s3 + $0x1b8] sm:$0xff] %v3302_v29  ;;  %v3304_v1 = vadd.f32 %v3303_v2, %v3231_v62  ;;  %v3233_v28 = vadd.f32 %v3232_v5, %v3160_v27  ;;  %v3305_v15 = vpop.f32.mrf.mxu1 }
 0x267   :  { %3370 = vst [vmem:[%s5742_s3 + $0x1f0] sm:$0xff] %v3304_v1  ;;  %v3306_v47 = vadd.f32 %v3305_v15, %v3233_v28 }
 0x269   :  { %3371 = vst [vmem:[%s5742_s3 + $0x1f8] sm:$0xff] %v3306_v47 }

// kernel: classification_text_forward.3
= control target key start
LH: loop header
LB: loop body
LE: loop exit
PB: predicated region body
PF: predicated region fallthrough
CT: control target
= control target key end

     0   :  { %v5362_v3 = vmov 0.0|0.0   ;;  %s5357_s1 = inlined_call_operand.vmem [shape: bf16[256,1024], index: 1, kind: input, shape index: {}]   ;;  %s5358_s0 = inlined_call_operand.vmem [shape: f32[8,8192], index: 0, kind: input, shape index: {}]   ;;  %s5359_s2 = inlined_call_operand.vmem [shape: bf16[256,128], index: 2, kind: input, shape index: {}]   ;;  %s5360_s3 = inlined_call_operand.vmem [shape: f32[1,128], index: 3, kind: input, shape index: {}]   ;;  %s5361_s4 = inlined_call_operand.vmem [shape: f32[8,128], index: 4, kind: output, shape index: {}]  }
   0x1   :  { %v86_v0 = vld [vmem:[%s5357_s1 + $0x1c0] sm:$0xff]  ;;  %v87_v2 = vld [vmem:[%s5357_s1 + $0x1c8] sm:$0xff]  ;;  %840 = vmatprep.mubr.bf16.mxu0 %v5362_v3  ;;  %881 = vmatprep.mubr.bf16.mxu1 %v5362_v3 }
   0x2   :  { %v90_v1 = vld [vmem:[%s5357_s1 + $0x1e0] sm:$0xff]  ;;  %v91_v5 = vld [vmem:[%s5357_s1 + $0x1e8] sm:$0xff] }
   0x3   :  { %v3352_v4 = vcombine.high %v86_v0, %v90_v1  ;;  %v3357_v6 = vcombine.low %v86_v0, %v90_v1  ;;  %v78_v7 = vld [vmem:[%s5357_s1 + $0x180] sm:$0xff]  ;;  %v3365_v9 = vcombine.high %v87_v2, %v91_v5  ;;  %v3367_v10 = vcombine.low %v87_v2, %v91_v5  ;;  %v79_v12 = vld [vmem:[%s5357_s1 + $0x188] sm:$0xff] }
   0x4   :  { %v82_v8 = vld [vmem:[%s5357_s1 + $0x1a0] sm:$0xff]  ;;  %v83_v13 = vld [vmem:[%s5357_s1 + $0x1a8] sm:$0xff] }
   0x5   :  { %5632 = vst [vmem:[#allocation4_spill] sm:$0xff] %v3352_v4  ;;  %5633 = vst [vmem:[#allocation5_spill] sm:$0xff] %v3357_v6  ;;  %v3369_v11 = vcombine.high %v78_v7, %v82_v8  ;;  %v70_v14 = vld [vmem:[%s5357_s1 + $0x140] sm:$0xff]  ;;  %808 = vmatprep.subr.bf16.mxu0 %v3352_v4  ;;  %v3381_v15 = vcombine.high %v79_v12, %v83_v13  ;;  %v71_v17 = vld [vmem:[%s5357_s1 + $0x148] sm:$0xff]  ;;  %849 = vmatprep.subr.bf16.mxu1 %v3365_v9 }
   0x6   :  { %5634 = vst [vmem:[#allocation6_spill] sm:$0xff] %v3365_v9  ;;  %5635 = vst [vmem:[#allocation7_spill] sm:$0xff] %v3367_v10  ;;  %v74_v16 = vld [vmem:[%s5357_s1 + $0x160] sm:$0xff]  ;;  %v75_v18 = vld [vmem:[%s5357_s1 + $0x168] sm:$0xff]  ;;  %809 = vmatpush1.bf16.msra.mxu0 %v3357_v6  ;;  %v3394_v19 = vcombine.low %v78_v7, %v82_v8  ;;  %850 = vmatpush1.bf16.msra.mxu1 %v3367_v10  ;;  %v3398_v20 = vcombine.low %v79_v12, %v83_v13 }
   0x7   :  { %5636 = vst [vmem:[#allocation8_spill] sm:$0xff] %v3369_v11  ;;  %5637 = vst [vmem:[#allocation9_spill] sm:$0xff] %v3381_v15  ;;  %810 = vmatprep.subr.bf16.mxu0 %v3369_v11  ;;  %v3400_v21 = vcombine.high %v70_v14, %v74_v16  ;;  %851 = vmatprep.subr.bf16.mxu1 %v3381_v15  ;;  %v3403_v22 = vcombine.high %v71_v17, %v75_v18  ;;  %v62_v23 = vld [vmem:[%s5357_s1 + $0x100] sm:$0xff]  ;;  %v63_v25 = vld [vmem:[%s5357_s1 + $0x108] sm:$0xff] }
   0x8   :  { %5638 = vst [vmem:[#allocation10_spill] sm:$0xff] %v3394_v19  ;;  %5639 = vst [vmem:[#allocation11_spill] sm:$0xff] %v3398_v20  ;;  %v66_v24 = vld [vmem:[%s5357_s1 + $0x120] sm:$0xff]  ;;  %v67_v26 = vld [vmem:[%s5357_s1 + $0x128] sm:$0xff]  ;;  %v3418_v27 = vcombine.low %v70_v14, %v74_v16  ;;  %v3422_v28 = vcombine.low %v71_v17, %v75_v18 }
   0x9   :  { %5640 = vst [vmem:[#allocation12_spill] sm:$0xff] %v3400_v21  ;;  %5641 = vst [vmem:[#allocation13_spill] sm:$0xff] %v3403_v22  ;;  %v3424_v29 = vcombine.high %v62_v23, %v66_v24  ;;  %v3427_v30 = vcombine.high %v63_v25, %v67_v26  ;;  %v54_v31 = vld [vmem:[%s5357_s1 + $0xc0] sm:$0xff]  ;;  %v55_v33 = vld [vmem:[%s5357_s1 + $0xc8] sm:$0xff]  ;;  %v3442_v35 = vcombine.low %v62_v23, %v66_v24 }
   0xa   :  { %811 = vmatpush1.bf16.msra.mxu0 %v3394_v19  ;;  %5642 = vst [vmem:[#allocation14_spill] sm:$0xff] %v3418_v27  ;;  %852 = vmatpush1.bf16.msra.mxu1 %v3398_v20  ;;  %5643 = vst [vmem:[#allocation15_spill] sm:$0xff] %v3422_v28  ;;  %v58_v32 = vld [vmem:[%s5357_s1 + $0xe0] sm:$0xff]  ;;  %v59_v34 = vld [vmem:[%s5357_s1 + $0xe8] sm:$0xff]  ;;  %v3446_v36 = vcombine.low %v63_v25, %v67_v26 }
   0xb   :  { %812 = vmatprep.subr.bf16.mxu0 %v3400_v21  ;;  %5644 = vst [vmem:[#allocation16_spill] sm:$0xff] %v3424_v29  ;;  %853 = vmatprep.subr.bf16.mxu1 %v3403_v22  ;;  %5645 = vst [vmem:[#allocation17_spill] sm:$0xff] %v3427_v30  ;;  %v3448_v37 = vcombine.high %v54_v31, %v58_v32  ;;  %v3451_v38 = vcombine.high %v55_v33, %v59_v34  ;;  %v46_v39 = vld [vmem:[%s5357_s1 + $0x80] sm:$0xff]  ;;  %v47_v41 = vld [vmem:[%s5357_s1 + $0x88] sm:$0xff] }
   0xc   :  { %5646 = vst [vmem:[#allocation18_spill] sm:$0xff] %v3442_v35  ;;  %5647 = vst [vmem:[#allocation19_spill] sm:$0xff] %v3446_v36  ;;  %v50_v40 = vld [vmem:[%s5357_s1 + $0xa0] sm:$0xff]  ;;  %v51_v42 = vld [vmem:[%s5357_s1 + $0xa8] sm:$0xff]  ;;  %v3466_v43 = vcombine.low %v54_v31, %v58_v32  ;;  %v3470_v44 = vcombine.low %v55_v33, %v59_v34 }
   0xd   :  { %5648 = vst [vmem:[#allocation20_spill] sm:$0xff] %v3448_v37  ;;  %5649 = vst [vmem:[#allocation21_spill] sm:$0xff] %v3451_v38  ;;  %v3472_v45 = vcombine.high %v46_v39, %v50_v40  ;;  %v3475_v46 = vcombine.high %v47_v41, %v51_v42  ;;  %v38_v47 = vld [vmem:[%s5357_s1 + $0x40] sm:$0xff]  ;;  %v39_v49 = vld [vmem:[%s5357_s1 + $0x48] sm:$0xff]  ;;  %v3490_v51 = vcombine.low %v46_v39, %v50_v40 }
   0xe   :  { %813 = vmatpush1.bf16.msra.mxu0 %v3418_v27  ;;  %854 = vmatpush1.bf16.msra.mxu1 %v3422_v28  ;;  %5650 = vst [vmem:[#allocation22_spill] sm:$0xff] %v3466_v43  ;;  %5651 = vst [vmem:[#allocation23_spill] sm:$0xff] %v3470_v44  ;;  %v42_v48 = vld [vmem:[%s5357_s1 + $0x60] sm:$0xff]  ;;  %v43_v50 = vld [vmem:[%s5357_s1 + $0x68] sm:$0xff]  ;;  %v3494_v52 = vcombine.low %v47_v41, %v51_v42 }
   0xf   :  { %814 = vmatprep.subr.bf16.mxu0 %v3424_v29  ;;  %855 = vmatprep.subr.bf16.mxu1 %v3427_v30  ;;  %5652 = vst [vmem:[#allocation24_spill] sm:$0xff] %v3472_v45  ;;  %5653 = vst [vmem:[#allocation25_spill] sm:$0xff] %v3475_v46  ;;  %v3496_v53 = vcombine.high %v38_v47, %v42_v48  ;;  %v3499_v54 = vcombine.high %v39_v49, %v43_v50  ;;  %v30_v55 = vld [vmem:[%s5357_s1] sm:$0xff]  ;;  %v31_v57 = vld [vmem:[%s5357_s1 + $0x8] sm:$0xff] }
  0x10   :  { %5654 = vst [vmem:[#allocation26_spill] sm:$0xff] %v3490_v51  ;;  %5655 = vst [vmem:[#allocation27_spill] sm:$0xff] %v3494_v52  ;;  %v34_v56 = vld [vmem:[%s5357_s1 + $0x20] sm:$0xff]  ;;  %v35_v58 = vld [vmem:[%s5357_s1 + $0x28] sm:$0xff]  ;;  %v3514_v59 = vcombine.low %v38_v47, %v42_v48  ;;  %v3518_v60 = vcombine.low %v39_v49, %v43_v50 }
  0x11   :  { %5656 = vst [vmem:[#allocation28_spill] sm:$0xff] %v3496_v53  ;;  %5657 = vst [vmem:[#allocation29_spill] sm:$0xff] %v3499_v54  ;;  %v3520_v61 = vcombine.high %v30_v55, %v34_v56  ;;  %v3523_v62 = vcombine.high %v31_v57, %v35_v58  ;;  %v150_v63 = vld [vmem:[%s5357_s1 + $0x3c0] sm:$0xff]  ;;  %v151_v1 = vld [vmem:[%s5357_s1 + $0x3c8] sm:$0xff]  ;;  %v3538_v5 = vcombine.low %v30_v55, %v34_v56 }
  0x12   :  { %815 = vmatpush1.bf16.msra.mxu0 %v3442_v35  ;;  %856 = vmatpush1.bf16.msra.mxu1 %v3446_v36  ;;  %5658 = vst [vmem:[#allocation30_spill] sm:$0xff] %v3514_v59  ;;  %5659 = vst [vmem:[#allocation31_spill] sm:$0xff] %v3518_v60  ;;  %v154_v0 = vld [vmem:[%s5357_s1 + $0x3e0] sm:$0xff]  ;;  %v155_v2 = vld [vmem:[%s5357_s1 + $0x3e8] sm:$0xff]  ;;  %v3542_v7 = vcombine.low %v31_v57, %v35_v58 }
  0x13   :  { %816 = vmatprep.subr.bf16.mxu0 %v3448_v37  ;;  %857 = vmatprep.subr.bf16.mxu1 %v3451_v38  ;;  %5660 = vst [vmem:[#allocation32_spill] sm:$0xff] %v3520_v61  ;;  %5661 = vst [vmem:[#allocation33_spill] sm:$0xff] %v3523_v62  ;;  %v3544_v8 = vcombine.high %v150_v63, %v154_v0  ;;  %v3547_v12 = vcombine.high %v151_v1, %v155_v2  ;;  %v142_v13 = vld [vmem:[%s5357_s1 + $0x380] sm:$0xff]  ;;  %v143_v16 = vld [vmem:[%s5357_s1 + $0x388] sm:$0xff] }
  0x14   :  { %5662 = vst [vmem:[#allocation34_spill] sm:$0xff] %v3538_v5  ;;  %5663 = vst [vmem:[#allocation35_spill] sm:$0xff] %v3542_v7  ;;  %v146_v14 = vld [vmem:[%s5357_s1 + $0x3a0] sm:$0xff]  ;;  %v147_v17 = vld [vmem:[%s5357_s1 + $0x3a8] sm:$0xff]  ;;  %v3562_v18 = vcombine.low %v150_v63, %v154_v0  ;;  %v3566_v23 = vcombine.low %v151_v1, %v155_v2 }
  0x15   :  { %5664 = vst [vmem:[#allocation36_spill] sm:$0xff] %v3544_v8  ;;  %5665 = vst [vmem:[#allocation37_spill] sm:$0xff] %v3547_v12  ;;  %v3568_v24 = vcombine.high %v142_v13, %v146_v14  ;;  %v3571_v25 = vcombine.high %v143_v16, %v147_v17  ;;  %v134_v26 = vld [vmem:[%s5357_s1 + $0x340] sm:$0xff]  ;;  %v135_v32 = vld [vmem:[%s5357_s1 + $0x348] sm:$0xff]  ;;  %v3586_v34 = vcombine.low %v142_v13, %v146_v14 }
  0x16   :  { %817 = vmatpush1.bf16.msra.mxu0 %v3466_v43  ;;  %858 = vmatpush1.bf16.msra.mxu1 %v3470_v44  ;;  %5666 = vst [vmem:[#allocation38_spill] sm:$0xff] %v3562_v18  ;;  %5667 = vst [vmem:[#allocation39_spill] sm:$0xff] %v3566_v23  ;;  %v138_v31 = vld [vmem:[%s5357_s1 + $0x360] sm:$0xff]  ;;  %v139_v33 = vld [vmem:[%s5357_s1 + $0x368] sm:$0xff]  ;;  %v3590_v39 = vcombine.low %v143_v16, %v147_v17 }
  0x17   :  { %818 = vmatprep.subr.bf16.mxu0 %v3472_v45  ;;  %859 = vmatprep.subr.bf16.mxu1 %v3475_v46  ;;  %5668 = vst [vmem:[#allocation40_spill] sm:$0xff] %v3568_v24  ;;  %5669 = vst [vmem:[#allocation41_spill] sm:$0xff] %v3571_v25  ;;  %v3592_v40 = vcombine.high %v134_v26, %v138_v31  ;;  %v3595_v41 = vcombine.high %v135_v32, %v139_v33  ;;  %v126_v42 = vld [vmem:[%s5357_s1 + $0x300] sm:$0xff]  ;;  %v127_v48 = vld [vmem:[%s5357_s1 + $0x308] sm:$0xff] }
  0x18   :  { %5670 = vst [vmem:[#allocation42_spill] sm:$0xff] %v3586_v34  ;;  %5671 = vst [vmem:[#allocation43_spill] sm:$0xff] %v3590_v39  ;;  %v130_v47 = vld [vmem:[%s5357_s1 + $0x320] sm:$0xff]  ;;  %v131_v49 = vld [vmem:[%s5357_s1 + $0x328] sm:$0xff]  ;;  %v3610_v50 = vcombine.low %v134_v26, %v138_v31  ;;  %v3614_v55 = vcombine.low %v135_v32, %v139_v33 }
  0x19   :  { %5672 = vst [vmem:[#allocation44_spill] sm:$0xff] %v3592_v40  ;;  %5673 = vst [vmem:[#allocation45_spill] sm:$0xff] %v3595_v41  ;;  %v3616_v56 = vcombine.high %v126_v42, %v130_v47  ;;  %v3619_v57 = vcombine.high %v127_v48, %v131_v49  ;;  %v118_v58 = vld [vmem:[%s5357_s1 + $0x2c0] sm:$0xff]  ;;  %v119_v0 = vld [vmem:[%s5357_s1 + $0x2c8] sm:$0xff]  ;;  %v3634_v2 = vcombine.low %v126_v42, %v130_v47 }
  0x1a   :  { %819 = vmatpush1.bf16.msra.mxu0 %v3490_v51  ;;  %860 = vmatpush1.bf16.msra.mxu1 %v3494_v52  ;;  %5674 = vst [vmem:[#allocation46_spill] sm:$0xff] %v3610_v50  ;;  %5675 = vst [vmem:[#allocation47_spill] sm:$0xff] %v3614_v55  ;;  %v122_v63 = vld [vmem:[%s5357_s1 + $0x2e0] sm:$0xff]  ;;  %v123_v1 = vld [vmem:[%s5357_s1 + $0x2e8] sm:$0xff]  ;;  %v3638_v13 = vcombine.low %v127_v48, %v131_v49 }
  0x1b   :  { %820 = vmatprep.subr.bf16.mxu0 %v3496_v53  ;;  %861 = vmatprep.subr.bf16.mxu1 %v3499_v54  ;;  %5676 = vst [vmem:[#allocation48_spill] sm:$0xff] %v3616_v56  ;;  %5677 = vst [vmem:[#allocation49_spill] sm:$0xff] %v3619_v57  ;;  %v3640_v14 = vcombine.high %v118_v58, %v122_v63  ;;  %v3643_v16 = vcombine.high %v119_v0, %v123_v1  ;;  %v110_v17 = vld [vmem:[%s5357_s1 + $0x280] sm:$0xff]  ;;  %v111_v31 = vld [vmem:[%s5357_s1 + $0x288] sm:$0xff] }
  0x1c   :  { %5678 = vst [vmem:[#allocation50_spill] sm:$0xff] %v3634_v2  ;;  %5679 = vst [vmem:[#allocation51_spill] sm:$0xff] %v3638_v13  ;;  %v114_v26 = vld [vmem:[%s5357_s1 + $0x2a0] sm:$0xff]  ;;  %v115_v32 = vld [vmem:[%s5357_s1 + $0x2a8] sm:$0xff]  ;;  %v3658_v33 = vcombine.low %v118_v58, %v122_v63  ;;  %v3662_v42 = vcombine.low %v119_v0, %v123_v1 }
  0x1d   :  { %5680 = vst [vmem:[#allocation52_spill] sm:$0xff] %v3640_v14  ;;  %5681 = vst [vmem:[#allocation53_spill] sm:$0xff] %v3643_v16  ;;  %v3664_v47 = vcombine.high %v110_v17, %v114_v26  ;;  %v3667_v48 = vcombine.high %v111_v31, %v115_v32  ;;  %v102_v49 = vld [vmem:[%s5357_s1 + $0x240] sm:$0xff]  ;;  %v103_v63 = vld [vmem:[%s5357_s1 + $0x248] sm:$0xff]  ;;  %v3682_v1 = vcombine.low %v110_v17, %v114_v26 }
  0x1e   :  { %821 = vmatpush1.bf16.msra.mxu0 %v3514_v59  ;;  %862 = vmatpush1.bf16.msra.mxu1 %v3518_v60  ;;  %5682 = vst [vmem:[#allocation54_spill] sm:$0xff] %v3658_v33  ;;  %5683 = vst [vmem:[#allocation55_spill] sm:$0xff] %v3662_v42  ;;  %v106_v58 = vld [vmem:[%s5357_s1 + $0x260] sm:$0xff]  ;;  %v107_v0 = vld [vmem:[%s5357_s1 + $0x268] sm:$0xff]  ;;  %v3686_v3 = vcombine.low %v111_v31, %v115_v32 }
  0x1f   :  { %822 = vmatprep.subr.bf16.mxu0 %v3520_v61  ;;  %863 = vmatprep.subr.bf16.mxu1 %v3523_v62  ;;  %5684 = vst [vmem:[#allocation56_spill] sm:$0xff] %v3664_v47  ;;  %5685 = vst [vmem:[#allocation57_spill] sm:$0xff] %v3667_v48  ;;  %v98_v17 = vld [vmem:[%s5357_s1 + $0x220] sm:$0xff]  ;;  %v95_v26 = vld [vmem:[%s5357_s1 + $0x208] sm:$0xff]  ;;  %v3706_v32 = vcombine.low %v102_v49, %v106_v58 }
  0x20   :  { %5686 = vst [vmem:[#allocation58_spill] sm:$0xff] %v3682_v1  ;;  %5687 = vst [vmem:[#allocation59_spill] sm:$0xff] %v3686_v3  ;;  %v99_v31 = vld [vmem:[%s5357_s1 + $0x228] sm:$0xff] }
  0x21   :  { %5690 = vst [vmem:[#allocation62_spill] sm:$0xff] %v3706_v32 }
  0x22   :  { %823 = vmatpush1.bf16.msra.mxu0 %v3538_v5  ;;  %864 = vmatpush1.bf16.msra.mxu1 %v3542_v7 }
  0x23   :  { %824 = vmatprep.subr.bf16.mxu0 %v3544_v8  ;;  %865 = vmatprep.subr.bf16.mxu1 %v3547_v12 }
  0x26   :  { %825 = vmatpush2.bf16.msra.mxu0 %v3562_v18  ;;  %866 = vmatpush2.bf16.msra.mxu1 %v3566_v23 }
  0x27   :  { %826 = vmatprep.subr.bf16.mxu0 %v3568_v24  ;;  %867 = vmatprep.subr.bf16.mxu1 %v3571_v25 }
  0x2a   :  { %827 = vmatpush2.bf16.msra.mxu0 %v3586_v34  ;;  %868 = vmatpush2.bf16.msra.mxu1 %v3590_v39 }
  0x2b   :  { %828 = vmatprep.subr.bf16.mxu0 %v3592_v40  ;;  %869 = vmatprep.subr.bf16.mxu1 %v3595_v41 }
  0x2e   :  { %829 = vmatpush2.bf16.msra.mxu0 %v3610_v50  ;;  %870 = vmatpush2.bf16.msra.mxu1 %v3614_v55 }
  0x2f   :  { %830 = vmatprep.subr.bf16.mxu0 %v3616_v56  ;;  %871 = vmatprep.subr.bf16.mxu1 %v3619_v57 }
  0x32   :  { %831 = vmatpush2.bf16.msra.mxu0 %v3634_v2  ;;  %872 = vmatpush2.bf16.msra.mxu1 %v3638_v13  ;;  %v94_v13 = vld [vmem:[%s5357_s1 + $0x200] sm:$0xff]  ;;  %v64_v2 = vld [vmem:[%s5357_s1 + $0x110] sm:$0xff] }
  0x33   :  { %832 = vmatprep.subr.bf16.mxu0 %v3640_v14  ;;  %873 = vmatprep.subr.bf16.mxu1 %v3643_v16  ;;  %v3688_v16 = vcombine.high %v102_v49, %v106_v58  ;;  %v3691_v14 = vcombine.high %v103_v63, %v107_v0  ;;  %v92_v49 = vld [vmem:[%s5357_s1 + $0x1f0] sm:$0xff]  ;;  %v89_v58 = vld [vmem:[%s5357_s1 + $0x1d8] sm:$0xff] }
  0x35   :  { %5688 = vst [vmem:[#allocation60_spill] sm:$0xff] %v3688_v16  ;;  %5689 = vst [vmem:[#allocation61_spill] sm:$0xff] %v3691_v14 }
  0x36   :  { %833 = vmatpush2.bf16.msra.mxu0 %v3658_v33  ;;  %874 = vmatpush2.bf16.msra.mxu1 %v3662_v42  ;;  %v3715_v42 = vcombine.high %v95_v26, %v99_v31  ;;  %v88_v33 = vld [vmem:[%s5357_s1 + $0x1d0] sm:$0xff] }
  0x37   :  { %834 = vmatprep.subr.bf16.mxu0 %v3664_v47  ;;  %875 = vmatprep.subr.bf16.mxu1 %v3667_v48  ;;  %v3710_v48 = vcombine.low %v103_v63, %v107_v0  ;;  %v3712_v47 = vcombine.high %v94_v13, %v98_v17  ;;  %v93_v63 = vld [vmem:[%s5357_s1 + $0x1f8] sm:$0xff]  ;;  %v3730_v0 = vcombine.low %v94_v13, %v98_v17  ;;  %v84_v13 = vld [vmem:[%s5357_s1 + $0x1b0] sm:$0xff] }
  0x38   :  { %5693 = vst [vmem:[#allocation65_spill] sm:$0xff] %v3715_v42  ;;  %v81_v17 = vld [vmem:[%s5357_s1 + $0x198] sm:$0xff] }
  0x39   :  { %5691 = vst [vmem:[#allocation63_spill] sm:$0xff] %v3710_v48  ;;  %5692 = vst [vmem:[#allocation64_spill] sm:$0xff] %v3712_v47 }
  0x3a   :  { %835 = vmatpush2.bf16.msra.mxu0 %v3682_v1  ;;  %876 = vmatpush2.bf16.msra.mxu1 %v3686_v3  ;;  %5694 = vst [vmem:[#allocation66_spill] sm:$0xff] %v3730_v0  ;;  %v3739_v3 = vcombine.high %v89_v58, %v93_v63  ;;  %v80_v1 = vld [vmem:[%s5357_s1 + $0x190] sm:$0xff] }
  0x3b   :  { %836 = vmatprep.subr.bf16.mxu0 %v3688_v16  ;;  %877 = vmatprep.subr.bf16.mxu1 %v3691_v14  ;;  %v3734_v14 = vcombine.low %v95_v26, %v99_v31  ;;  %v3736_v16 = vcombine.high %v88_v33, %v92_v49  ;;  %v85_v26 = vld [vmem:[%s5357_s1 + $0x1b8] sm:$0xff]  ;;  %v3754_v31 = vcombine.low %v88_v33, %v92_v49  ;;  %v76_v33 = vld [vmem:[%s5357_s1 + $0x170] sm:$0xff]  ;;  %v5702_v49 = vmov 0.0|0.0  }
  0x3c   :  { %5697 = vst [vmem:[#allocation69_spill] sm:$0xff] %v3739_v3 }
  0x3d   :  { %5695 = vst [vmem:[#allocation67_spill] sm:$0xff] %v3734_v14  ;;  %5696 = vst [vmem:[#allocation68_spill] sm:$0xff] %v3736_v16 }
  0x3e   :  { %837 = vmatpush2.bf16.msra.mxu0 %v3706_v32  ;;  %878 = vmatpush2.bf16.msra.mxu1 %v3710_v48  ;;  %5698 = vst [vmem:[#allocation70_spill] sm:$0xff] %v3754_v31  ;;  %v3763_v48 = vcombine.high %v81_v17, %v85_v26  ;;  %v72_v32 = vld [vmem:[%s5357_s1 + $0x150] sm:$0xff] }
  0x3f   :  { %838 = vmatprep.subr.bf16.mxu0 %v3712_v47  ;;  %879 = vmatprep.subr.bf16.mxu1 %v3715_v42  ;;  %v3758_v42 = vcombine.low %v89_v58, %v93_v63  ;;  %v3760_v47 = vcombine.high %v80_v1, %v84_v13  ;;  %v73_v58 = vld [vmem:[%s5357_s1 + $0x158] sm:$0xff] }
  0x40   :  { %5701 = vst [vmem:[#allocation73_spill] sm:$0xff] %v3763_v48  ;;  %v77_v63 = vld [vmem:[%s5357_s1 + $0x178] sm:$0xff] }
  0x41   :  { %5699 = vst [vmem:[#allocation71_spill] sm:$0xff] %v3758_v42  ;;  %5700 = vst [vmem:[#allocation72_spill] sm:$0xff] %v3760_v47 }
  0x42   :  { %839 = vmatpush2.bf16.msra.mxu0 %v3730_v0  ;;  %880 = vmatpush2.bf16.msra.mxu1 %v3734_v14  ;;  %v3786_v14 = vcombine.high %v72_v32, %v76_v33  ;;  %v3789_v0 = vcombine.high %v73_v58, %v77_v63 }
  0x43   :  { %890 = vmatprep.subr.bf16.mxu0 %v3736_v16  ;;  %931 = vmatprep.subr.bf16.mxu1 %v3739_v3  ;;  %v3780_v3 = vcombine.low %v80_v1, %v84_v13  ;;  %v3784_v16 = vcombine.low %v81_v17, %v85_v26  ;;  %v68_v1 = vld [vmem:[%s5357_s1 + $0x130] sm:$0xff]  ;;  %v65_v13 = vld [vmem:[%s5357_s1 + $0x118] sm:$0xff]  ;;  %v3806_v26 = vcombine.low %v72_v32, %v76_v33 }
  0x44   :  { %5705 = vst [vmem:[#allocation76_spill] sm:$0xff] %v3786_v14  ;;  %5706 = vst [vmem:[#allocation77_spill] sm:$0xff] %v3789_v0  ;;  %v69_v17 = vld [vmem:[%s5357_s1 + $0x138] sm:$0xff]  ;;  %v60_v32 = vld [vmem:[%s5357_s1 + $0xf0] sm:$0xff] }
  0x45   :  { %841 = vmatmul.mubr.bf16.vlgmr.msra.gmra.mxu0 %v5702_v49  ;;  %882 = vmatmul.mubr.bf16.vlgmr.msra.gmra.mxu1 %v5702_v49  ;;  %5703 = vst [vmem:[#allocation74_spill] sm:$0xff] %v3780_v3  ;;  %5704 = vst [vmem:[#allocation75_spill] sm:$0xff] %v3784_v16  ;;  %v57_v33 = vld [vmem:[%s5357_s1 + $0xd8] sm:$0xff] }
  0x46   :  { %891 = vmatpush1.bf16.msra.mxu0 %v3754_v31  ;;  %932 = vmatpush1.bf16.msra.mxu1 %v3758_v42  ;;  %5707 = vst [vmem:[#allocation78_spill] sm:$0xff] %v3806_v26  ;;  %v3815_v42 = vcombine.high %v65_v13, %v69_v17  ;;  %v56_v31 = vld [vmem:[%s5357_s1 + $0xd0] sm:$0xff] }
  0x47   :  { %892 = vmatprep.subr.bf16.mxu0 %v3760_v47  ;;  %933 = vmatprep.subr.bf16.mxu1 %v3763_v48  ;;  %v3810_v48 = vcombine.low %v73_v58, %v77_v63  ;;  %v3812_v47 = vcombine.high %v64_v2, %v68_v1  ;;  %v61_v58 = vld [vmem:[%s5357_s1 + $0xf8] sm:$0xff]  ;;  %v3830_v63 = vcombine.low %v64_v2, %v68_v1  ;;  %v52_v2 = vld [vmem:[%s5357_s1 + $0xb0] sm:$0xff] }
  0x48   :  { %922 = vmatprep.mubr.bf16.mxu0 %v5702_v49  ;;  %963 = vmatprep.mubr.bf16.mxu1 %v5702_v49  ;;  %5710 = vst [vmem:[#allocation81_spill] sm:$0xff] %v3815_v42  ;;  %v49_v1 = vld [vmem:[%s5357_s1 + $0x98] sm:$0xff] }
  0x49   :  { %5708 = vst [vmem:[#allocation79_spill] sm:$0xff] %v3810_v48  ;;  %5709 = vst [vmem:[#allocation80_spill] sm:$0xff] %v3812_v47 }
  0x4a   :  { %893 = vmatpush1.bf16.msra.mxu0 %v3780_v3  ;;  %934 = vmatpush1.bf16.msra.mxu1 %v3784_v16  ;;  %5711 = vst [vmem:[#allocation82_spill] sm:$0xff] %v3830_v63  ;;  %v3839_v16 = vcombine.high %v57_v33, %v61_v58  ;;  %v48_v3 = vld [vmem:[%s5357_s1 + $0x90] sm:$0xff] }
  0x4b   :  { %894 = vmatprep.subr.bf16.mxu0 %v3786_v14  ;;  %935 = vmatprep.subr.bf16.mxu1 %v3789_v0  ;;  %v3834_v0 = vcombine.low %v65_v13, %v69_v17  ;;  %v3836_v14 = vcombine.high %v56_v31, %v60_v32  ;;  %v53_v13 = vld [vmem:[%s5357_s1 + $0xb8] sm:$0xff]  ;;  %v3854_v17 = vcombine.low %v56_v31, %v60_v32  ;;  %v44_v31 = vld [vmem:[%s5357_s1 + $0x70] sm:$0xff] }
  0x4c   :  { %5714 = vst [vmem:[#allocation85_spill] sm:$0xff] %v3839_v16  ;;  %v41_v32 = vld [vmem:[%s5357_s1 + $0x58] sm:$0xff] }
  0x4d   :  { %5712 = vst [vmem:[#allocation83_spill] sm:$0xff] %v3834_v0  ;;  %5713 = vst [vmem:[#allocation84_spill] sm:$0xff] %v3836_v14 }
  0x4e   :  { %895 = vmatpush1.bf16.msra.mxu0 %v3806_v26  ;;  %936 = vmatpush1.bf16.msra.mxu1 %v3810_v48  ;;  %5715 = vst [vmem:[#allocation86_spill] sm:$0xff] %v3854_v17  ;;  %v3863_v48 = vcombine.high %v49_v1, %v53_v13  ;;  %v40_v26 = vld [vmem:[%s5357_s1 + $0x50] sm:$0xff] }
  0x4f   :  { %896 = vmatprep.subr.bf16.mxu0 %v3812_v47  ;;  %937 = vmatprep.subr.bf16.mxu1 %v3815_v42  ;;  %v3858_v42 = vcombine.low %v57_v33, %v61_v58  ;;  %v3860_v47 = vcombine.high %v48_v3, %v52_v2  ;;  %v45_v33 = vld [vmem:[%s5357_s1 + $0x78] sm:$0xff]  ;;  %v3878_v58 = vcombine.low %v48_v3, %v52_v2  ;;  %v36_v3 = vld [vmem:[%s5357_s1 + $0x30] sm:$0xff] }
  0x50   :  { %5718 = vst [vmem:[#allocation89_spill] sm:$0xff] %v3863_v48  ;;  %v33_v2 = vld [vmem:[%s5357_s1 + $0x18] sm:$0xff] }
  0x51   :  { %5716 = vst [vmem:[#allocation87_spill] sm:$0xff] %v3858_v42  ;;  %5717 = vst [vmem:[#allocation88_spill] sm:$0xff] %v3860_v47 }
  0x52   :  { %897 = vmatpush1.bf16.msra.mxu0 %v3830_v63  ;;  %938 = vmatpush1.bf16.msra.mxu1 %v3834_v0  ;;  %5719 = vst [vmem:[#allocation90_spill] sm:$0xff] %v3878_v58  ;;  %v3887_v0 = vcombine.high %v41_v32, %v45_v33  ;;  %v32_v63 = vld [vmem:[%s5357_s1 + $0x10] sm:$0xff] }
  0x53   :  { %898 = vmatprep.subr.bf16.mxu0 %v3836_v14  ;;  %939 = vmatprep.subr.bf16.mxu1 %v3839_v16  ;;  %v3882_v16 = vcombine.low %v49_v1, %v53_v13  ;;  %v3884_v14 = vcombine.high %v40_v26, %v44_v31  ;;  %v37_v1 = vld [vmem:[%s5357_s1 + $0x38] sm:$0xff]  ;;  %v3902_v13 = vcombine.low %v40_v26, %v44_v31  ;;  %v156_v26 = vld [vmem:[%s5357_s1 + $0x3f0] sm:$0xff] }
  0x54   :  { %5722 = vst [vmem:[#allocation93_spill] sm:$0xff] %v3887_v0  ;;  %v153_v31 = vld [vmem:[%s5357_s1 + $0x3d8] sm:$0xff] }
  0x55   :  { %5720 = vst [vmem:[#allocation91_spill] sm:$0xff] %v3882_v16  ;;  %5721 = vst [vmem:[#allocation92_spill] sm:$0xff] %v3884_v14 }
  0x56   :  { %899 = vmatpush1.bf16.msra.mxu0 %v3854_v17  ;;  %940 = vmatpush1.bf16.msra.mxu1 %v3858_v42  ;;  %5723 = vst [vmem:[#allocation94_spill] sm:$0xff] %v3902_v13  ;;  %v3911_v42 = vcombine.high %v33_v2, %v37_v1  ;;  %v152_v17 = vld [vmem:[%s5357_s1 + $0x3d0] sm:$0xff] }
  0x57   :  { %900 = vmatprep.subr.bf16.mxu0 %v3860_v47  ;;  %941 = vmatprep.subr.bf16.mxu1 %v3863_v48  ;;  %v3906_v48 = vcombine.low %v41_v32, %v45_v33  ;;  %v3908_v47 = vcombine.high %v32_v63, %v36_v3  ;;  %v157_v32 = vld [vmem:[%s5357_s1 + $0x3f8] sm:$0xff]  ;;  %v3926_v33 = vcombine.low %v32_v63, %v36_v3  ;;  %v148_v63 = vld [vmem:[%s5357_s1 + $0x3b0] sm:$0xff] }
  0x58   :  { %5726 = vst [vmem:[#allocation97_spill] sm:$0xff] %v3911_v42  ;;  %v145_v3 = vld [vmem:[%s5357_s1 + $0x398] sm:$0xff] }
  0x59   :  { %5724 = vst [vmem:[#allocation95_spill] sm:$0xff] %v3906_v48  ;;  %5725 = vst [vmem:[#allocation96_spill] sm:$0xff] %v3908_v47 }
  0x5a   :  { %901 = vmatpush1.bf16.msra.mxu0 %v3878_v58  ;;  %942 = vmatpush1.bf16.msra.mxu1 %v3882_v16  ;;  %5727 = vst [vmem:[#allocation98_spill] sm:$0xff] %v3926_v33  ;;  %v3935_v16 = vcombine.high %v153_v31, %v157_v32  ;;  %v144_v58 = vld [vmem:[%s5357_s1 + $0x390] sm:$0xff] }
  0x5b   :  { %902 = vmatprep.subr.bf16.mxu0 %v3884_v14  ;;  %943 = vmatprep.subr.bf16.mxu1 %v3887_v0  ;;  %v3930_v0 = vcombine.low %v33_v2, %v37_v1  ;;  %v3932_v14 = vcombine.high %v152_v17, %v156_v26  ;;  %v149_v2 = vld [vmem:[%s5357_s1 + $0x3b8] sm:$0xff]  ;;  %v3950_v1 = vcombine.low %v152_v17, %v156_v26  ;;  %v140_v17 = vld [vmem:[%s5357_s1 + $0x370] sm:$0xff] }
  0x5c   :  { %5730 = vst [vmem:[#allocation101_spill] sm:$0xff] %v3935_v16  ;;  %v137_v26 = vld [vmem:[%s5357_s1 + $0x358] sm:$0xff] }
  0x5d   :  { %5728 = vst [vmem:[#allocation99_spill] sm:$0xff] %v3930_v0  ;;  %5729 = vst [vmem:[#allocation100_spill] sm:$0xff] %v3932_v14 }
  0x5e   :  { %903 = vmatpush1.bf16.msra.mxu0 %v3902_v13  ;;  %944 = vmatpush1.bf16.msra.mxu1 %v3906_v48  ;;  %5731 = vst [vmem:[#allocation102_spill] sm:$0xff] %v3950_v1  ;;  %v3959_v48 = vcombine.high %v145_v3, %v149_v2  ;;  %v136_v13 = vld [vmem:[%s5357_s1 + $0x350] sm:$0xff] }
  0x5f   :  { %904 = vmatprep.subr.bf16.mxu0 %v3908_v47  ;;  %945 = vmatprep.subr.bf16.mxu1 %v3911_v42  ;;  %v3954_v42 = vcombine.low %v153_v31, %v157_v32  ;;  %v3956_v47 = vcombine.high %v144_v58, %v148_v63  ;;  %v141_v31 = vld [vmem:[%s5357_s1 + $0x378] sm:$0xff]  ;;  %v3974_v32 = vcombine.low %v144_v58, %v148_v63  ;;  %v132_v58 = vld [vmem:[%s5357_s1 + $0x330] sm:$0xff] }
  0x60   :  { %5734 = vst [vmem:[#allocation105_spill] sm:$0xff] %v3959_v48  ;;  %v129_v63 = vld [vmem:[%s5357_s1 + $0x318] sm:$0xff] }
  0x61   :  { %5732 = vst [vmem:[#allocation103_spill] sm:$0xff] %v3954_v42  ;;  %5733 = vst [vmem:[#allocation104_spill] sm:$0xff] %v3956_v47 }
  0x62   :  { %905 = vmatpush1.bf16.msra.mxu0 %v3926_v33  ;;  %946 = vmatpush1.bf16.msra.mxu1 %v3930_v0  ;;  %5735 = vst [vmem:[#allocation106_spill] sm:$0xff] %v3974_v32  ;;  %v3983_v0 = vcombine.high %v137_v26, %v141_v31  ;;  %v128_v33 = vld [vmem:[%s5357_s1 + $0x310] sm:$0xff] }
  0x63   :  { %906 = vmatprep.subr.bf16.mxu0 %v3932_v14  ;;  %947 = vmatprep.subr.bf16.mxu1 %v3935_v16  ;;  %v3978_v16 = vcombine.low %v145_v3, %v149_v2  ;;  %v3980_v14 = vcombine.high %v136_v13, %v140_v17  ;;  %v133_v3 = vld [vmem:[%s5357_s1 + $0x338] sm:$0xff]  ;;  %v3998_v2 = vcombine.low %v136_v13, %v140_v17  ;;  %v124_v13 = vld [vmem:[%s5357_s1 + $0x2f0] sm:$0xff] }
  0x64   :  { %5738 = vst [vmem:[#allocation109_spill] sm:$0xff] %v3983_v0  ;;  %v121_v17 = vld [vmem:[%s5357_s1 + $0x2d8] sm:$0xff] }
  0x65   :  { %5736 = vst [vmem:[#allocation107_spill] sm:$0xff] %v3978_v16  ;;  %5737 = vst [vmem:[#allocation108_spill] sm:$0xff] %v3980_v14 }
  0x66   :  { %907 = vmatpush2.bf16.msra.mxu0 %v3950_v1  ;;  %948 = vmatpush2.bf16.msra.mxu1 %v3954_v42  ;;  %5739 = vst [vmem:[#allocation110_spill] sm:$0xff] %v3998_v2  ;;  %v4007_v42 = vcombine.high %v129_v63, %v133_v3  ;;  %v120_v1 = vld [vmem:[%s5357_s1 + $0x2d0] sm:$0xff] }
  0x67   :  { %908 = vmatprep.subr.bf16.mxu0 %v3956_v47  ;;  %949 = vmatprep.subr.bf16.mxu1 %v3959_v48  ;;  %v4002_v48 = vcombine.low %v137_v26, %v141_v31  ;;  %v4004_v47 = vcombine.high %v128_v33, %v132_v58  ;;  %v125_v26 = vld [vmem:[%s5357_s1 + $0x2f8] sm:$0xff]  ;;  %v4022_v31 = vcombine.low %v128_v33, %v132_v58  ;;  %v116_v33 = vld [vmem:[%s5357_s1 + $0x2b0] sm:$0xff] }
  0x68   :  { %5742 = vst [vmem:[#allocation113_spill] sm:$0xff] %v4007_v42  ;;  %v113_v58 = vld [vmem:[%s5357_s1 + $0x298] sm:$0xff] }
  0x69   :  { %5740 = vst [vmem:[#allocation111_spill] sm:$0xff] %v4002_v48  ;;  %5741 = vst [vmem:[#allocation112_spill] sm:$0xff] %v4004_v47 }
  0x6a   :  { %909 = vmatpush2.bf16.msra.mxu0 %v3974_v32  ;;  %950 = vmatpush2.bf16.msra.mxu1 %v3978_v16  ;;  %5743 = vst [vmem:[#allocation114_spill] sm:$0xff] %v4022_v31  ;;  %v4031_v16 = vcombine.high %v121_v17, %v125_v26  ;;  %v112_v32 = vld [vmem:[%s5357_s1 + $0x290] sm:$0xff] }
  0x6b   :  { %910 = vmatprep.subr.bf16.mxu0 %v3980_v14  ;;  %951 = vmatprep.subr.bf16.mxu1 %v3983_v0  ;;  %v4026_v0 = vcombine.low %v129_v63, %v133_v3  ;;  %v4028_v14 = vcombine.high %v120_v1, %v124_v13  ;;  %v117_v63 = vld [vmem:[%s5357_s1 + $0x2b8] sm:$0xff]  ;;  %v4046_v3 = vcombine.low %v120_v1, %v124_v13  ;;  %v108_v1 = vld [vmem:[%s5357_s1 + $0x270] sm:$0xff] }
  0x6c   :  { %5746 = vst [vmem:[#allocation117_spill] sm:$0xff] %v4031_v16  ;;  %v105_v13 = vld [vmem:[%s5357_s1 + $0x258] sm:$0xff] }
  0x6d   :  { %5744 = vst [vmem:[#allocation115_spill] sm:$0xff] %v4026_v0  ;;  %5745 = vst [vmem:[#allocation116_spill] sm:$0xff] %v4028_v14 }
  0x6e   :  { %911 = vmatpush2.bf16.msra.mxu0 %v3998_v2  ;;  %952 = vmatpush2.bf16.msra.mxu1 %v4002_v48  ;;  %5747 = vst [vmem:[#allocation118_spill] sm:$0xff] %v4046_v3  ;;  %v4055_v48 = vcombine.high %v113_v58, %v117_v63  ;;  %v104_v2 = vld [vmem:[%s5357_s1 + $0x250] sm:$0xff] }
  0x6f   :  { %912 = vmatprep.subr.bf16.mxu0 %v4004_v47  ;;  %953 = vmatprep.subr.bf16.mxu1 %v4007_v42  ;;  %v4050_v42 = vcombine.low %v121_v17, %v125_v26  ;;  %v4052_v47 = vcombine.high %v112_v32, %v116_v33  ;;  %v109_v17 = vld [vmem:[%s5357_s1 + $0x278] sm:$0xff]  ;;  %v4070_v26 = vcombine.low %v112_v32, %v116_v33  ;;  %v100_v32 = vld [vmem:[%s5357_s1 + $0x230] sm:$0xff] }
  0x70   :  { %5750 = vst [vmem:[#allocation121_spill] sm:$0xff] %v4055_v48  ;;  %v97_v33 = vld [vmem:[%s5357_s1 + $0x218] sm:$0xff] }
  0x71   :  { %5748 = vst [vmem:[#allocation119_spill] sm:$0xff] %v4050_v42  ;;  %5749 = vst [vmem:[#allocation120_spill] sm:$0xff] %v4052_v47 }
  0x72   :  { %913 = vmatpush2.bf16.msra.mxu0 %v4022_v31  ;;  %954 = vmatpush2.bf16.msra.mxu1 %v4026_v0  ;;  %5751 = vst [vmem:[#allocation122_spill] sm:$0xff] %v4070_v26  ;;  %v4079_v0 = vcombine.high %v105_v13, %v109_v17  ;;  %v96_v31 = vld [vmem:[%s5357_s1 + $0x210] sm:$0xff] }
  0x73   :  { %914 = vmatprep.subr.bf16.mxu0 %v4028_v14  ;;  %955 = vmatprep.subr.bf16.mxu1 %v4031_v16  ;;  %v4074_v16 = vcombine.low %v113_v58, %v117_v63  ;;  %v4076_v14 = vcombine.high %v104_v2, %v108_v1  ;;  %v101_v58 = vld [vmem:[%s5357_s1 + $0x238] sm:$0xff]  ;;  %v4094_v63 = vcombine.low %v104_v2, %v108_v1  ;;  %v5763_v1 = vld [vmem:[#allocation52_spill] sm:$0xff] }
  0x74   :  { %5754 = vst [vmem:[#allocation125_spill] sm:$0xff] %v4079_v0  ;;  %v4110_v2 = vcombine.low %v97_v33, %v101_v58 }
  0x75   :  { %5752 = vst [vmem:[#allocation123_spill] sm:$0xff] %v4074_v16  ;;  %5753 = vst [vmem:[#allocation124_spill] sm:$0xff] %v4076_v14 }
  0x76   :  { %915 = vmatpush2.bf16.msra.mxu0 %v4046_v3  ;;  %956 = vmatpush2.bf16.msra.mxu1 %v4050_v42  ;;  %5755 = vst [vmem:[#allocation126_spill] sm:$0xff] %v4094_v63  ;;  %v4103_v42 = vcombine.high %v97_v33, %v101_v58  ;;  %v4106_v3 = vcombine.low %v96_v31, %v100_v32  ;;  %5760 = vst [vmem:[#allocation131_spill] sm:$0xff] %v4110_v2  ;;  %v5767_v33 = vld [vmem:[#allocation56_spill] sm:$0xff]  ;;  %v5768_v58 = vld [vmem:[#allocation57_spill] sm:$0xff] }
  0x77   :  { %916 = vmatprep.subr.bf16.mxu0 %v4052_v47  ;;  %957 = vmatprep.subr.bf16.mxu1 %v4055_v48  ;;  %v4098_v48 = vcombine.low %v105_v13, %v109_v17  ;;  %v4100_v47 = vcombine.high %v96_v31, %v100_v32  ;;  %v5762_v31 = vld [vmem:[#allocation51_spill] sm:$0xff]  ;;  %v5764_v13 = vld [vmem:[#allocation53_spill] sm:$0xff]  ;;  %v5765_v17 = vld [vmem:[#allocation54_spill] sm:$0xff] }
  0x78   :  { %5758 = vst [vmem:[#allocation129_spill] sm:$0xff] %v4103_v42  ;;  %5759 = vst [vmem:[#allocation130_spill] sm:$0xff] %v4106_v3  ;;  %v5766_v32 = vld [vmem:[#allocation55_spill] sm:$0xff] }
  0x79   :  { %5756 = vst [vmem:[#allocation127_spill] sm:$0xff] %v4098_v48  ;;  %5757 = vst [vmem:[#allocation128_spill] sm:$0xff] %v4100_v47 }
  0x7a   :  { %917 = vmatpush2.bf16.msra.mxu0 %v4070_v26  ;;  %958 = vmatpush2.bf16.msra.mxu1 %v4074_v16 }
  0x7b   :  { %918 = vmatprep.subr.bf16.mxu0 %v4076_v14  ;;  %959 = vmatprep.subr.bf16.mxu1 %v4079_v0 }
  0x7e   :  { %919 = vmatpush2.bf16.msra.mxu0 %v4094_v63  ;;  %960 = vmatpush2.bf16.msra.mxu1 %v4098_v48 }
  0x7f   :  { %920 = vmatprep.subr.bf16.mxu0 %v4100_v47  ;;  %961 = vmatprep.subr.bf16.mxu1 %v4103_v42 }
  0x82   :  { %921 = vmatpush2.bf16.msra.mxu0 %v4106_v3  ;;  %962 = vmatpush2.bf16.msra.mxu1 %v4110_v2 }
  0x83   :  { %1038 = vmatprep.subr.bf16.mxu0 %v3352_v4  ;;  %1079 = vmatprep.subr.bf16.mxu1 %v3365_v9 }
  0x85   :  { %923 = vmatmul.mubr.bf16.vlgmr.msra.gmra.mxu0 %v5702_v49  ;;  %964 = vmatmul.mubr.bf16.vlgmr.msra.gmra.mxu1 %v5702_v49  ;;  %v5761_v49 = vld [vmem:[#allocation50_spill] sm:$0xff] }
  0x86   :  { %1039 = vmatpush1.bf16.msra.mxu0 %v3357_v6  ;;  %1080 = vmatpush1.bf16.msra.mxu1 %v3367_v10 }
  0x87   :  { %1040 = vmatprep.subr.bf16.mxu0 %v3369_v11  ;;  %1081 = vmatprep.subr.bf16.mxu1 %v3381_v15 }
  0x8a   :  { %1041 = vmatpush1.bf16.msra.mxu0 %v3394_v19  ;;  %1082 = vmatpush1.bf16.msra.mxu1 %v3398_v20 }
  0x8b   :  { %1042 = vmatprep.subr.bf16.mxu0 %v3400_v21  ;;  %1083 = vmatprep.subr.bf16.mxu1 %v3403_v22 }
  0x8e   :  { %1043 = vmatpush1.bf16.msra.mxu0 %v3418_v27  ;;  %1084 = vmatpush1.bf16.msra.mxu1 %v3422_v28 }
  0x8f   :  { %1044 = vmatprep.subr.bf16.mxu0 %v3424_v29  ;;  %1085 = vmatprep.subr.bf16.mxu1 %v3427_v30 }
  0x92   :  { %1045 = vmatpush1.bf16.msra.mxu0 %v3442_v35  ;;  %1086 = vmatpush1.bf16.msra.mxu1 %v3446_v36 }
  0x93   :  { %1046 = vmatprep.subr.bf16.mxu0 %v3448_v37  ;;  %1087 = vmatprep.subr.bf16.mxu1 %v3451_v38 }
  0x96   :  { %1047 = vmatpush1.bf16.msra.mxu0 %v3466_v43  ;;  %1088 = vmatpush1.bf16.msra.mxu1 %v3470_v44 }
  0x97   :  { %1048 = vmatprep.subr.bf16.mxu0 %v3472_v45  ;;  %1089 = vmatprep.subr.bf16.mxu1 %v3475_v46 }
  0x9a   :  { %1049 = vmatpush1.bf16.msra.mxu0 %v3490_v51  ;;  %1090 = vmatpush1.bf16.msra.mxu1 %v3494_v52 }
  0x9b   :  { %1050 = vmatprep.subr.bf16.mxu0 %v3496_v53  ;;  %1091 = vmatprep.subr.bf16.mxu1 %v3499_v54 }
  0x9e   :  { %1051 = vmatpush1.bf16.msra.mxu0 %v3514_v59  ;;  %1092 = vmatpush1.bf16.msra.mxu1 %v3518_v60 }
  0x9f   :  { %1052 = vmatprep.subr.bf16.mxu0 %v3520_v61  ;;  %1093 = vmatprep.subr.bf16.mxu1 %v3523_v62 }
  0xa2   :  { %1053 = vmatpush1.bf16.msra.mxu0 %v3538_v5  ;;  %1094 = vmatpush1.bf16.msra.mxu1 %v3542_v7 }
  0xa3   :  { %1054 = vmatprep.subr.bf16.mxu0 %v3544_v8  ;;  %1095 = vmatprep.subr.bf16.mxu1 %v3547_v12 }
  0xa6   :  { %1055 = vmatpush2.bf16.msra.mxu0 %v3562_v18  ;;  %1096 = vmatpush2.bf16.msra.mxu1 %v3566_v23 }
  0xa7   :  { %1056 = vmatprep.subr.bf16.mxu0 %v3568_v24  ;;  %1097 = vmatprep.subr.bf16.mxu1 %v3571_v25 }
  0xaa   :  { %1057 = vmatpush2.bf16.msra.mxu0 %v3586_v34  ;;  %1098 = vmatpush2.bf16.msra.mxu1 %v3590_v39 }
  0xab   :  { %1058 = vmatprep.subr.bf16.mxu0 %v3592_v40  ;;  %1099 = vmatprep.subr.bf16.mxu1 %v3595_v41 }
  0xae   :  { %1059 = vmatpush2.bf16.msra.mxu0 %v3610_v50  ;;  %1100 = vmatpush2.bf16.msra.mxu1 %v3614_v55  ;;  %v5769_v55 = vld [vmem:[#allocation58_spill] sm:$0xff] }
  0xaf   :  { %1060 = vmatprep.subr.bf16.mxu0 %v3616_v56  ;;  %1101 = vmatprep.subr.bf16.mxu1 %v3619_v57  ;;  %v5770_v56 = vld [vmem:[#allocation59_spill] sm:$0xff]  ;;  %v5771_v57 = vld [vmem:[#allocation60_spill] sm:$0xff] }
  0xb2   :  { %1061 = vmatpush2.bf16.msra.mxu0 %v5761_v49  ;;  %1102 = vmatpush2.bf16.msra.mxu1 %v5762_v31  ;;  %v5772_v49 = vld [vmem:[#allocation61_spill] sm:$0xff]  ;;  %v5773_v31 = vld [vmem:[#allocation62_spill] sm:$0xff] }
  0xb3   :  { %1062 = vmatprep.subr.bf16.mxu0 %v5763_v1  ;;  %1103 = vmatprep.subr.bf16.mxu1 %v5764_v13  ;;  %v5774_v1 = vld [vmem:[#allocation63_spill] sm:$0xff]  ;;  %v5775_v13 = vld [vmem:[#allocation64_spill] sm:$0xff] }
  0xb6   :  { %1063 = vmatpush2.bf16.msra.mxu0 %v5765_v17  ;;  %1104 = vmatpush2.bf16.msra.mxu1 %v5766_v32  ;;  %v5776_v17 = vld [vmem:[#allocation65_spill] sm:$0xff]  ;;  %v5777_v32 = vld [vmem:[#allocation66_spill] sm:$0xff] }
  0xb7   :  { %1064 = vmatprep.subr.bf16.mxu0 %v5767_v33  ;;  %1105 = vmatprep.subr.bf16.mxu1 %v5768_v58  ;;  %v5778_v33 = vld [vmem:[#allocation67_spill] sm:$0xff]  ;;  %v5779_v58 = vld [vmem:[#allocation68_spill] sm:$0xff] }
  0xba   :  { %1065 = vmatpush2.bf16.msra.mxu0 %v5769_v55  ;;  %1106 = vmatpush2.bf16.msra.mxu1 %v5770_v56  ;;  %v5780_v55 = vld [vmem:[#allocation69_spill] sm:$0xff] }
  0xbb   :  { %1066 = vmatprep.subr.bf16.mxu0 %v5771_v57  ;;  %1107 = vmatprep.subr.bf16.mxu1 %v5772_v49 }
  0xbe   :  { %1067 = vmatpush2.bf16.msra.mxu0 %v5773_v31  ;;  %1108 = vmatpush2.bf16.msra.mxu1 %v5774_v1 }
  0xbf   :  { %1068 = vmatprep.subr.bf16.mxu0 %v5775_v13  ;;  %1109 = vmatprep.subr.bf16.mxu1 %v5776_v17  ;;  %v158_v17 = vld [vmem:[%s5358_s0] sm:$0xff] }
  0xc2   :  { %1069 = vmatpush2.bf16.msra.mxu0 %v5777_v32  ;;  %1110 = vmatpush2.bf16.msra.mxu1 %v5778_v33  ;;  %v160_v33 = vld [vmem:[%s5358_s0 + $0x10] sm:$0xff] }
  0xc3   :  { %1120 = vmatprep.subr.bf16.mxu0 %v5779_v58  ;;  %1161 = vmatprep.subr.bf16.mxu1 %v5780_v55  ;;  %v159_v55 = vld [vmem:[%s5358_s0 + $0x8] sm:$0xff] }
 0x105   :  { %v842_v56 = vpop.f32.mrf.mxu0  ;;  %v883_v57 = vpop.f32.mrf.mxu1 }
 0x106   :  { %v972_v58 = vadd.f32 %v842_v56, %v158_v17 }
 0x107   :  { %v844_v50 = vpop.f32.mrf.mxu0  ;;  %v885_v49 = vpop.f32.mrf.mxu1 }
 0x108   :  { %v2955_v32 = vmul.f32 -1.442695, %v972_v58 }
 0x109   :  { %v846_v41 = vpop.f32.mrf.mxu0  ;;  %v887_v31 = vpop.f32.mrf.mxu1 }
 0x10a   :  { %v161_v41 = vld [vmem:[%s5358_s0 + $0x18] sm:$0xff]  ;;  %v974_v31 = vadd.f32 %v883_v57, %v160_v33  ;;  %3059 = vpow2.f32 %v2955_v32  ;;  %v164_v57 = vld [vmem:[%s5358_s0 + $0x30] sm:$0xff] }
 0x10b   :  { %v847_v40 = vpop.f32.mrf.mxu0  ;;  %v888_v1 = vpop.f32.mrf.mxu1 }
 0x10c   :  { %v973_v40 = vadd.f32 %v844_v50, %v159_v55  ;;  %v975_v1 = vadd.f32 %v885_v49, %v161_v41  ;;  %v2957_v13 = vmul.f32 -1.442695, %v974_v31  ;;  %v162_v50 = vld [vmem:[%s5358_s0 + $0x20] sm:$0xff] }
 0x10e   :  { %v2956_v39 = vmul.f32 -1.442695, %v973_v40  ;;  %v2958_v34 = vmul.f32 -1.442695, %v975_v1  ;;  %3061 = vpow2.f32 %v2957_v13 }
 0x110   :  { %3063 = vpow2.f32 %v2956_v39 }
 0x111   :  { %3065 = vpow2.f32 %v2958_v34  ;;  %v163_v34 = vld [vmem:[%s5358_s0 + $0x28] sm:$0xff] }
 0x117   :  { %v3060_v25 = vpop.eup %3059 }
 0x118   :  { %v998_v56 = vadd.f32 1.0, %v3060_v25 }
 0x11a   :  { %3067 = vrcp.f32 %v998_v56 }
 0x11b   :  { %v3062_v24 = vpop.eup %3061 }
 0x11c   :  { %v1000_v17 = vadd.f32 1.0, %v3062_v24 }
 0x11d   :  { %v3064_v23 = vpop.eup %3063 }
 0x11e   :  { %v3066_v18 = vpop.eup %3065  ;;  %v999_v12 = vadd.f32 1.0, %v3064_v23  ;;  %3069 = vrcp.f32 %v1000_v17  ;;  %v165_v23 = vld [vmem:[%s5358_s0 + $0x38] sm:$0xff] }
 0x11f   :  { %v1001_v55 = vadd.f32 1.0, %v3066_v18 }
 0x120   :  { %3071 = vrcp.f32 %v999_v12 }
 0x121   :  { %3073 = vrcp.f32 %v1001_v55 }
 0x127   :  { %v3068_v17 = vpop.eup %3067 }
 0x145   :  { %v924_v49 = vpop.f32.mrf.mxu0  ;;  %v965_v25 = vpop.f32.mrf.mxu1 }
 0x146   :  { %v976_v39 = vadd.f32 %v924_v49, %v162_v50  ;;  %v978_v24 = vadd.f32 %v965_v25, %v164_v57  ;;  %v3070_v50 = vpop.eup %3069 }
 0x147   :  { %v926_v18 = vpop.f32.mrf.mxu0  ;;  %v967_v33 = vpop.f32.mrf.mxu1  ;;  %v1018_v55 = vmul.f32 0.0, %v3070_v50 }
 0x148   :  { %v2959_v13 = vmul.f32 -1.442695, %v976_v39  ;;  %v977_v32 = vadd.f32 %v926_v18, %v163_v34  ;;  %3075 = vtanh.f32 %v978_v24  ;;  %v979_v58 = vadd.f32 %v967_v33, %v165_v23  ;;  %v3072_v49 = vpop.eup %3071 }
 0x149   :  { %v928_v41 = vpop.f32.mrf.mxu0  ;;  %v969_v40 = vpop.f32.mrf.mxu1 }
 0x14a   :  { %3077 = vpow2.f32 %v2959_v13  ;;  %v2960_v31 = vmul.f32 -1.442695, %v977_v32  ;;  %v3074_v12 = vpop.eup %3073 }
 0x14b   :  { %3079 = vtanh.f32 %v979_v58  ;;  %v929_v1 = vpop.f32.mrf.mxu0  ;;  %v970_v56 = vpop.f32.mrf.mxu1  ;;  %v1019_v23 = vmul.f32 0.0, %v3074_v12 }
 0x14c   :  { %3081 = vpow2.f32 %v2960_v31 }
 0x155   :  { %v3076_v57 = vpop.eup %3075 }
 0x156   :  { %v1020_v39 = vmul.f32 %v3076_v57, %v3068_v17  ;;  %v5782_v57 = vld [vmem:[#allocation71_spill] sm:$0xff] }
 0x157   :  { %v3078_v25 = vpop.eup %3077 }
 0x158   :  { %v3080_v34 = vpop.eup %3079  ;;  %v1002_v18 = vadd.f32 1.0, %v3078_v25  ;;  %v4207_v33 = vadd.f32 %v1020_v39, %v1018_v55  ;;  %v5783_v25 = vld [vmem:[#allocation72_spill] sm:$0xff]  ;;  %v5784_v55 = vld [vmem:[#allocation73_spill] sm:$0xff]  ;;  %v5785_v39 = vld [vmem:[#allocation74_spill] sm:$0xff] }
 0x159   :  { %v3082_v24 = vpop.eup %3081  ;;  %v1021_v13 = vmul.f32 %v3080_v34, %v3072_v49  ;;  %v5781_v49 = vld [vmem:[#allocation70_spill] sm:$0xff]  ;;  %v5786_v34 = vld [vmem:[#allocation75_spill] sm:$0xff] }
 0x15a   :  { %3083 = vrcp.f32 %v1002_v18  ;;  %v1003_v32 = vadd.f32 1.0, %v3082_v24  ;;  %v5787_v18 = vld [vmem:[#allocation76_spill] sm:$0xff]  ;;  %v5788_v24 = vld [vmem:[#allocation77_spill] sm:$0xff] }
 0x15b   :  { %3085 = vtanh.f32 %v4207_v33  ;;  %v4210_v58 = vadd.f32 %v1021_v13, %v1019_v23  ;;  %v5789_v23 = vld [vmem:[#allocation78_spill] sm:$0xff]  ;;  %v5790_v13 = vld [vmem:[#allocation79_spill] sm:$0xff] }
 0x15c   :  { %3087 = vrcp.f32 %v1003_v32  ;;  %v5791_v32 = vld [vmem:[#allocation80_spill] sm:$0xff] }
 0x15d   :  { %3089 = vtanh.f32 %v4210_v58 }
 0x167   :  { %v3084_v41 = vpop.eup %3083 }
 0x168   :  { %v3086_v31 = vpop.eup %3085 }
 0x169   :  { %v3088_v40 = vpop.eup %3087  ;;  %v1026_v56 = vmul.f32 %v3086_v31, %v3084_v41  ;;  %v5792_v41 = vld [vmem:[#allocation81_spill] sm:$0xff]  ;;  %v5793_v31 = vld [vmem:[#allocation82_spill] sm:$0xff] }
 0x16a   :  { %v3090_v1 = vpop.eup %3089 }
 0x16b   :  { %v1027_v17 = vmul.f32 %v3090_v1, %v3088_v40  ;;  %v4213_v12 = vpack.c.bf16 %v1026_v56, %v1026_v56  ;;  %v5794_v40 = vld [vmem:[#allocation83_spill] sm:$0xff]  ;;  %v5795_v1 = vld [vmem:[#allocation84_spill] sm:$0xff]  ;;  %v5796_v56 = vld [vmem:[#allocation85_spill] sm:$0xff] }
 0x16d   :  { %v1037_v50 = vpack.c.bf16 %v1027_v17, %v1027_v17  ;;  %v5797_v17 = vld [vmem:[#allocation86_spill] sm:$0xff] }
 0x16f   :  { %1070 = vmatprep.mubr.bf16.mxu0 %v1037_v50  ;;  %1111 = vmatprep.mubr.bf16.mxu1 %v1037_v50 }
 0x170   :  { %1071 = vmatmul.mubr.bf16.vlgmr.msra.gmra.mxu0 %v4213_v12  ;;  %1112 = vmatmul.mubr.bf16.vlgmr.msra.gmra.mxu1 %v4213_v12 }
 0x171   :  { %1121 = vmatpush1.bf16.msra.mxu0 %v5781_v49  ;;  %1162 = vmatpush1.bf16.msra.mxu1 %v5782_v57 }
 0x172   :  { %1152 = vmatprep.mubr.bf16.mxu0 %v1037_v50  ;;  %1193 = vmatprep.mubr.bf16.mxu1 %v1037_v50  ;;  %v5798_v50 = vld [vmem:[#allocation87_spill] sm:$0xff] }
 0x173   :  { %1122 = vmatprep.subr.bf16.mxu0 %v5783_v25  ;;  %1163 = vmatprep.subr.bf16.mxu1 %v5784_v55 }
 0x175   :  { %1123 = vmatpush1.bf16.msra.mxu0 %v5785_v39  ;;  %1164 = vmatpush1.bf16.msra.mxu1 %v5786_v34 }
 0x176   :  { %1124 = vmatprep.subr.bf16.mxu0 %v5787_v18  ;;  %1165 = vmatprep.subr.bf16.mxu1 %v5788_v24  ;;  %v5799_v24 = vld [vmem:[#allocation88_spill] sm:$0xff] }
 0x179   :  { %1125 = vmatpush1.bf16.msra.mxu0 %v5789_v23  ;;  %1166 = vmatpush1.bf16.msra.mxu1 %v5790_v13  ;;  %v5800_v23 = vld [vmem:[#allocation89_spill] sm:$0xff]  ;;  %v5801_v13 = vld [vmem:[#allocation90_spill] sm:$0xff] }
 0x17a   :  { %1126 = vmatprep.subr.bf16.mxu0 %v5791_v32  ;;  %1167 = vmatprep.subr.bf16.mxu1 %v5792_v41  ;;  %v5802_v32 = vld [vmem:[#allocation91_spill] sm:$0xff]  ;;  %v5803_v41 = vld [vmem:[#allocation92_spill] sm:$0xff] }
 0x17d   :  { %1127 = vmatpush1.bf16.msra.mxu0 %v5793_v31  ;;  %1168 = vmatpush1.bf16.msra.mxu1 %v5794_v40  ;;  %v5804_v31 = vld [vmem:[#allocation93_spill] sm:$0xff]  ;;  %v5805_v40 = vld [vmem:[#allocation94_spill] sm:$0xff] }
 0x17e   :  { %1128 = vmatprep.subr.bf16.mxu0 %v5795_v1  ;;  %1169 = vmatprep.subr.bf16.mxu1 %v5796_v56  ;;  %v5806_v1 = vld [vmem:[#allocation95_spill] sm:$0xff]  ;;  %v5807_v56 = vld [vmem:[#allocation96_spill] sm:$0xff] }
 0x181   :  { %1129 = vmatpush1.bf16.msra.mxu0 %v5797_v17  ;;  %1170 = vmatpush1.bf16.msra.mxu1 %v5798_v50  ;;  %v5808_v17 = vld [vmem:[#allocation97_spill] sm:$0xff]  ;;  %v5809_v50 = vld [vmem:[#allocation98_spill] sm:$0xff] }
 0x182   :  { %1130 = vmatprep.subr.bf16.mxu0 %v5799_v24  ;;  %1171 = vmatprep.subr.bf16.mxu1 %v5800_v23  ;;  %v5810_v24 = vld [vmem:[#allocation99_spill] sm:$0xff]  ;;  %v5811_v23 = vld [vmem:[#allocation100_spill] sm:$0xff] }
 0x185   :  { %1131 = vmatpush1.bf16.msra.mxu0 %v5801_v13  ;;  %1172 = vmatpush1.bf16.msra.mxu1 %v5802_v32  ;;  %v5812_v13 = vld [vmem:[#allocation101_spill] sm:$0xff]  ;;  %v5813_v32 = vld [vmem:[#allocation102_spill] sm:$0xff] }
 0x186   :  { %1132 = vmatprep.subr.bf16.mxu0 %v5803_v41  ;;  %1173 = vmatprep.subr.bf16.mxu1 %v5804_v31  ;;  %v5814_v41 = vld [vmem:[#allocation103_spill] sm:$0xff]  ;;  %v5815_v31 = vld [vmem:[#allocation104_spill] sm:$0xff] }
 0x189   :  { %1133 = vmatpush1.bf16.msra.mxu0 %v5805_v40  ;;  %1174 = vmatpush1.bf16.msra.mxu1 %v5806_v1  ;;  %v5816_v40 = vld [vmem:[#allocation105_spill] sm:$0xff]  ;;  %v5817_v1 = vld [vmem:[#allocation106_spill] sm:$0xff] }
 0x18a   :  { %1134 = vmatprep.subr.bf16.mxu0 %v5807_v56  ;;  %1175 = vmatprep.subr.bf16.mxu1 %v5808_v17  ;;  %v5818_v56 = vld [vmem:[#allocation107_spill] sm:$0xff]  ;;  %v5819_v17 = vld [vmem:[#allocation108_spill] sm:$0xff] }
 0x18d   :  { %1135 = vmatpush1.bf16.msra.mxu0 %v5809_v50  ;;  %1176 = vmatpush1.bf16.msra.mxu1 %v5810_v24  ;;  %v5820_v50 = vld [vmem:[#allocation109_spill] sm:$0xff]  ;;  %v5821_v24 = vld [vmem:[#allocation110_spill] sm:$0xff] }
 0x18e   :  { %1136 = vmatprep.subr.bf16.mxu0 %v5811_v23  ;;  %1177 = vmatprep.subr.bf16.mxu1 %v5812_v13  ;;  %v5822_v23 = vld [vmem:[#allocation111_spill] sm:$0xff]  ;;  %v5823_v13 = vld [vmem:[#allocation112_spill] sm:$0xff] }
 0x191   :  { %1137 = vmatpush2.bf16.msra.mxu0 %v5813_v32  ;;  %1178 = vmatpush2.bf16.msra.mxu1 %v5814_v41  ;;  %v5824_v32 = vld [vmem:[#allocation113_spill] sm:$0xff]  ;;  %v5825_v41 = vld [vmem:[#allocation114_spill] sm:$0xff] }
 0x192   :  { %1138 = vmatprep.subr.bf16.mxu0 %v5815_v31  ;;  %1179 = vmatprep.subr.bf16.mxu1 %v5816_v40  ;;  %v5826_v31 = vld [vmem:[#allocation115_spill] sm:$0xff]  ;;  %v5827_v40 = vld [vmem:[#allocation116_spill] sm:$0xff] }
 0x195   :  { %1139 = vmatpush2.bf16.msra.mxu0 %v5817_v1  ;;  %1180 = vmatpush2.bf16.msra.mxu1 %v5818_v56  ;;  %v5828_v1 = vld [vmem:[#allocation117_spill] sm:$0xff]  ;;  %v5829_v56 = vld [vmem:[#allocation118_spill] sm:$0xff] }
 0x196   :  { %1140 = vmatprep.subr.bf16.mxu0 %v5819_v17  ;;  %1181 = vmatprep.subr.bf16.mxu1 %v5820_v50  ;;  %v5830_v17 = vld [vmem:[#allocation119_spill] sm:$0xff]  ;;  %v5831_v50 = vld [vmem:[#allocation120_spill] sm:$0xff] }
 0x199   :  { %1141 = vmatpush2.bf16.msra.mxu0 %v5821_v24  ;;  %1182 = vmatpush2.bf16.msra.mxu1 %v5822_v23  ;;  %v5832_v24 = vld [vmem:[#allocation121_spill] sm:$0xff] }
 0x19a   :  { %1142 = vmatprep.subr.bf16.mxu0 %v5823_v13  ;;  %1183 = vmatprep.subr.bf16.mxu1 %v5824_v32 }
 0x19d   :  { %1143 = vmatpush2.bf16.msra.mxu0 %v5825_v41  ;;  %1184 = vmatpush2.bf16.msra.mxu1 %v5826_v31 }
 0x19e   :  { %1144 = vmatprep.subr.bf16.mxu0 %v5827_v40  ;;  %1185 = vmatprep.subr.bf16.mxu1 %v5828_v1 }
 0x1a1   :  { %1145 = vmatpush2.bf16.msra.mxu0 %v5829_v56  ;;  %1186 = vmatpush2.bf16.msra.mxu1 %v5830_v17 }
 0x1a2   :  { %1146 = vmatprep.subr.bf16.mxu0 %v5831_v50  ;;  %1187 = vmatprep.subr.bf16.mxu1 %v5832_v24 }
 0x1a5   :  { %1147 = vmatpush2.bf16.msra.mxu0 %v4070_v26  ;;  %1188 = vmatpush2.bf16.msra.mxu1 %v4074_v16 }
 0x1a6   :  { %1148 = vmatprep.subr.bf16.mxu0 %v4076_v14  ;;  %1189 = vmatprep.subr.bf16.mxu1 %v4079_v0 }
 0x1a9   :  { %1149 = vmatpush2.bf16.msra.mxu0 %v4094_v63  ;;  %1190 = vmatpush2.bf16.msra.mxu1 %v4098_v48 }
 0x1aa   :  { %1150 = vmatprep.subr.bf16.mxu0 %v4100_v47  ;;  %1191 = vmatprep.subr.bf16.mxu1 %v4103_v42 }
 0x1ad   :  { %1151 = vmatpush2.bf16.msra.mxu0 %v4106_v3  ;;  %1192 = vmatpush2.bf16.msra.mxu1 %v4110_v2 }
 0x1ae   :  { %1268 = vmatprep.subr.bf16.mxu0 %v3352_v4  ;;  %1309 = vmatprep.subr.bf16.mxu1 %v3365_v9 }
 0x1b0   :  { %1153 = vmatmul.mubr.bf16.vlgmr.msra.gmra.mxu0 %v4213_v12  ;;  %1194 = vmatmul.mubr.bf16.vlgmr.msra.gmra.mxu1 %v4213_v12  ;;  %v5833_v12 = vld [vmem:[#allocation37_spill] sm:$0xff] }
 0x1b1   :  { %1269 = vmatpush1.bf16.msra.mxu0 %v3357_v6  ;;  %1310 = vmatpush1.bf16.msra.mxu1 %v3367_v10 }
 0x1b2   :  { %1270 = vmatprep.subr.bf16.mxu0 %v3369_v11  ;;  %1311 = vmatprep.subr.bf16.mxu1 %v3381_v15 }
 0x1b5   :  { %1271 = vmatpush1.bf16.msra.mxu0 %v3394_v19  ;;  %1312 = vmatpush1.bf16.msra.mxu1 %v3398_v20 }
 0x1b6   :  { %1272 = vmatprep.subr.bf16.mxu0 %v3400_v21  ;;  %1313 = vmatprep.subr.bf16.mxu1 %v3403_v22 }
 0x1b9   :  { %1273 = vmatpush1.bf16.msra.mxu0 %v3418_v27  ;;  %1314 = vmatpush1.bf16.msra.mxu1 %v3422_v28 }
 0x1ba   :  { %1274 = vmatprep.subr.bf16.mxu0 %v3424_v29  ;;  %1315 = vmatprep.subr.bf16.mxu1 %v3427_v30 }
 0x1bd   :  { %1275 = vmatpush1.bf16.msra.mxu0 %v3442_v35  ;;  %1316 = vmatpush1.bf16.msra.mxu1 %v3446_v36 }
 0x1be   :  { %1276 = vmatprep.subr.bf16.mxu0 %v3448_v37  ;;  %1317 = vmatprep.subr.bf16.mxu1 %v3451_v38 }
 0x1c1   :  { %1277 = vmatpush1.bf16.msra.mxu0 %v3466_v43  ;;  %1318 = vmatpush1.bf16.msra.mxu1 %v3470_v44 }
 0x1c2   :  { %1278 = vmatprep.subr.bf16.mxu0 %v3472_v45  ;;  %1319 = vmatprep.subr.bf16.mxu1 %v3475_v46 }
 0x1c5   :  { %1279 = vmatpush1.bf16.msra.mxu0 %v3490_v51  ;;  %1320 = vmatpush1.bf16.msra.mxu1 %v3494_v52  ;;  %v5834_v52 = vld [vmem:[#allocation38_spill] sm:$0xff] }
 0x1c6   :  { %1280 = vmatprep.subr.bf16.mxu0 %v3496_v53  ;;  %1321 = vmatprep.subr.bf16.mxu1 %v3499_v54  ;;  %v5835_v53 = vld [vmem:[#allocation39_spill] sm:$0xff]  ;;  %v5836_v54 = vld [vmem:[#allocation40_spill] sm:$0xff] }
 0x1c9   :  { %1281 = vmatpush1.bf16.msra.mxu0 %v3514_v59  ;;  %1322 = vmatpush1.bf16.msra.mxu1 %v3518_v60  ;;  %v5837_v59 = vld [vmem:[#allocation41_spill] sm:$0xff]  ;;  %v5838_v60 = vld [vmem:[#allocation42_spill] sm:$0xff] }
 0x1ca   :  { %1282 = vmatprep.subr.bf16.mxu0 %v3520_v61  ;;  %1323 = vmatprep.subr.bf16.mxu1 %v3523_v62  ;;  %v5839_v61 = vld [vmem:[#allocation43_spill] sm:$0xff]  ;;  %v5840_v62 = vld [vmem:[#allocation44_spill] sm:$0xff] }
 0x1cd   :  { %1283 = vmatpush1.bf16.msra.mxu0 %v3538_v5  ;;  %1324 = vmatpush1.bf16.msra.mxu1 %v3542_v7  ;;  %v5841_v5 = vld [vmem:[#allocation45_spill] sm:$0xff]  ;;  %v5842_v7 = vld [vmem:[#allocation46_spill] sm:$0xff] }
 0x1ce   :  { %1284 = vmatprep.subr.bf16.mxu0 %v3544_v8  ;;  %1325 = vmatprep.subr.bf16.mxu1 %v5833_v12  ;;  %v5843_v8 = vld [vmem:[#allocation47_spill] sm:$0xff]  ;;  %v5844_v12 = vld [vmem:[#allocation48_spill] sm:$0xff] }
 0x1d1   :  { %1285 = vmatpush2.bf16.msra.mxu0 %v5834_v52  ;;  %1326 = vmatpush2.bf16.msra.mxu1 %v5835_v53  ;;  %v5845_v52 = vld [vmem:[#allocation49_spill] sm:$0xff]  ;;  %v5846_v53 = vld [vmem:[#allocation50_spill] sm:$0xff] }
 0x1d2   :  { %1286 = vmatprep.subr.bf16.mxu0 %v5836_v54  ;;  %1327 = vmatprep.subr.bf16.mxu1 %v5837_v59  ;;  %v5847_v54 = vld [vmem:[#allocation51_spill] sm:$0xff]  ;;  %v5848_v59 = vld [vmem:[#allocation52_spill] sm:$0xff] }
 0x1d5   :  { %1287 = vmatpush2.bf16.msra.mxu0 %v5838_v60  ;;  %1328 = vmatpush2.bf16.msra.mxu1 %v5839_v61  ;;  %v5849_v60 = vld [vmem:[#allocation53_spill] sm:$0xff]  ;;  %v5850_v61 = vld [vmem:[#allocation54_spill] sm:$0xff] }
 0x1d6   :  { %1288 = vmatprep.subr.bf16.mxu0 %v5840_v62  ;;  %1329 = vmatprep.subr.bf16.mxu1 %v5841_v5  ;;  %v5851_v62 = vld [vmem:[#allocation55_spill] sm:$0xff]  ;;  %v5852_v5 = vld [vmem:[#allocation56_spill] sm:$0xff] }
 0x1d9   :  { %1289 = vmatpush2.bf16.msra.mxu0 %v5842_v7  ;;  %1330 = vmatpush2.bf16.msra.mxu1 %v5843_v8  ;;  %v5853_v7 = vld [vmem:[#allocation57_spill] sm:$0xff]  ;;  %v5854_v8 = vld [vmem:[#allocation58_spill] sm:$0xff] }
 0x1da   :  { %1290 = vmatprep.subr.bf16.mxu0 %v5844_v12  ;;  %1331 = vmatprep.subr.bf16.mxu1 %v5845_v52  ;;  %v5855_v12 = vld [vmem:[#allocation59_spill] sm:$0xff]  ;;  %v5856_v52 = vld [vmem:[#allocation60_spill] sm:$0xff] }
 0x1dd   :  { %1291 = vmatpush2.bf16.msra.mxu0 %v5846_v53  ;;  %1332 = vmatpush2.bf16.msra.mxu1 %v5847_v54  ;;  %v5857_v53 = vld [vmem:[#allocation61_spill] sm:$0xff]  ;;  %v5858_v54 = vld [vmem:[#allocation62_spill] sm:$0xff] }
 0x1de   :  { %1292 = vmatprep.subr.bf16.mxu0 %v5848_v59  ;;  %1333 = vmatprep.subr.bf16.mxu1 %v5849_v60  ;;  %v5859_v59 = vld [vmem:[#allocation63_spill] sm:$0xff]  ;;  %v5860_v60 = vld [vmem:[#allocation64_spill] sm:$0xff] }
 0x1e1   :  { %1293 = vmatpush2.bf16.msra.mxu0 %v5850_v61  ;;  %1334 = vmatpush2.bf16.msra.mxu1 %v5851_v62  ;;  %v5861_v61 = vld [vmem:[#allocation65_spill] sm:$0xff]  ;;  %v5862_v62 = vld [vmem:[#allocation66_spill] sm:$0xff] }
 0x1e2   :  { %1294 = vmatprep.subr.bf16.mxu0 %v5852_v5  ;;  %1335 = vmatprep.subr.bf16.mxu1 %v5853_v7  ;;  %v5863_v5 = vld [vmem:[#allocation67_spill] sm:$0xff]  ;;  %v5864_v7 = vld [vmem:[#allocation68_spill] sm:$0xff] }
 0x1e5   :  { %1295 = vmatpush2.bf16.msra.mxu0 %v5854_v8  ;;  %1336 = vmatpush2.bf16.msra.mxu1 %v5855_v12  ;;  %v5865_v8 = vld [vmem:[#allocation69_spill] sm:$0xff] }
 0x1e6   :  { %1296 = vmatprep.subr.bf16.mxu0 %v5856_v52  ;;  %1337 = vmatprep.subr.bf16.mxu1 %v5857_v53 }
 0x1e9   :  { %1297 = vmatpush2.bf16.msra.mxu0 %v5858_v54  ;;  %1338 = vmatpush2.bf16.msra.mxu1 %v5859_v59 }
 0x1ea   :  { %1298 = vmatprep.subr.bf16.mxu0 %v5860_v60  ;;  %1339 = vmatprep.subr.bf16.mxu1 %v5861_v61  ;;  %v1028_v61 = vld [vmem:[%s5358_s0 + $0x40] sm:$0xff] }
 0x1ed   :  { %1299 = vmatpush2.bf16.msra.mxu0 %v5862_v62  ;;  %1340 = vmatpush2.bf16.msra.mxu1 %v5863_v5  ;;  %v1030_v5 = vld [vmem:[%s5358_s0 + $0x50] sm:$0xff] }
 0x1ee   :  { %1350 = vmatprep.subr.bf16.mxu0 %v5864_v7  ;;  %1391 = vmatprep.subr.bf16.mxu1 %v5865_v8  ;;  %v1029_v8 = vld [vmem:[%s5358_s0 + $0x48] sm:$0xff] }
 0x230   :  { %v1072_v12 = vpop.f32.mrf.mxu0  ;;  %v1113_v52 = vpop.f32.mrf.mxu1 }
 0x231   :  { %v1202_v7 = vadd.f32 %v1072_v12, %v1028_v61  ;;  %v1204_v62 = vadd.f32 %v1113_v52, %v1030_v5 }
 0x232   :  { %v1074_v51 = vpop.f32.mrf.mxu0  ;;  %v1115_v53 = vpop.f32.mrf.mxu1 }
 0x233   :  { %v2963_v60 = vmul.f32 -1.442695, %v1204_v62 }
 0x234   :  { %v1076_v46 = vpop.f32.mrf.mxu0  ;;  %v1117_v54 = vpop.f32.mrf.mxu1 }
 0x235   :  { %v1031_v46 = vld [vmem:[%s5358_s0 + $0x58] sm:$0xff]  ;;  %v2961_v54 = vmul.f32 -1.442695, %v1202_v7 }
 0x236   :  { %v1077_v45 = vpop.f32.mrf.mxu0  ;;  %v1118_v59 = vpop.f32.mrf.mxu1 }
 0x237   :  { %v1203_v45 = vadd.f32 %v1074_v51, %v1029_v8  ;;  %v1205_v59 = vadd.f32 %v1115_v53, %v1031_v46  ;;  %3091 = vpow2.f32 %v2961_v54  ;;  %v1032_v51 = vld [vmem:[%s5358_s0 + $0x60] sm:$0xff]  ;;  %v1034_v53 = vld [vmem:[%s5358_s0 + $0x70] sm:$0xff] }
 0x238   :  { %3093 = vpow2.f32 %v2963_v60 }
 0x239   :  { %v2962_v44 = vmul.f32 -1.442695, %v1203_v45  ;;  %v2964_v43 = vmul.f32 -1.442695, %v1205_v59 }
 0x23b   :  { %3095 = vpow2.f32 %v2962_v44 }
 0x23c   :  { %3097 = vpow2.f32 %v2964_v43  ;;  %v1033_v43 = vld [vmem:[%s5358_s0 + $0x68] sm:$0xff] }
 0x244   :  { %v3092_v38 = vpop.eup %3091 }
 0x245   :  { %v3094_v37 = vpop.eup %3093  ;;  %v1228_v35 = vadd.f32 1.0, %v3092_v38 }
 0x246   :  { %v1230_v52 = vadd.f32 1.0, %v3094_v37 }
 0x247   :  { %3099 = vrcp.f32 %v1228_v35 }
 0x248   :  { %v3096_v36 = vpop.eup %3095  ;;  %3101 = vrcp.f32 %v1230_v52 }
 0x249   :  { %v3098_v61 = vpop.eup %3097  ;;  %v1229_v5 = vadd.f32 1.0, %v3096_v36  ;;  %v1035_v36 = vld [vmem:[%s5358_s0 + $0x78] sm:$0xff] }
 0x24a   :  { %v1231_v62 = vadd.f32 1.0, %v3098_v61 }
 0x24b   :  { %3103 = vrcp.f32 %v1229_v5 }
 0x254   :  { %v3100_v29 = vpop.eup %3099 }
 0x255   :  { %v3102_v52 = vpop.eup %3101 }
 0x270   :  { %v1154_v60 = vpop.f32.mrf.mxu0  ;;  %v1195_v44 = vpop.f32.mrf.mxu1 }
 0x271   :  { %v1206_v37 = vadd.f32 %v1154_v60, %v1032_v51  ;;  %v1208_v38 = vadd.f32 %v1195_v44, %v1034_v53  ;;  %v3104_v51 = vpop.eup %3103  ;;  %v1248_v60 = vmul.f32 %v3102_v52, %v4207_v33  ;;  %v5867_v52 = vld [vmem:[#allocation78_spill] sm:$0xff] }
 0x272   :  { %v1156_v7 = vpop.f32.mrf.mxu0  ;;  %v1197_v8 = vpop.f32.mrf.mxu1 }
 0x273   :  { %v2965_v12 = vmul.f32 -1.442695, %v1206_v37  ;;  %3105 = vtanh.f32 %v1208_v38  ;;  %v1207_v35 = vadd.f32 %v1156_v7, %v1033_v43  ;;  %v1209_v46 = vadd.f32 %v1197_v8, %v1035_v36 }
 0x274   :  { %3107 = vrcp.f32 %v1231_v62  ;;  %v1158_v45 = vpop.f32.mrf.mxu0  ;;  %v1199_v54 = vpop.f32.mrf.mxu1 }
 0x275   :  { %3109 = vpow2.f32 %v2965_v12  ;;  %v2966_v59 = vmul.f32 -1.442695, %v1207_v35 }
 0x276   :  { %3111 = vtanh.f32 %v1209_v46  ;;  %v1159_v61 = vpop.f32.mrf.mxu0  ;;  %v1200_v30 = vpop.f32.mrf.mxu1 }
 0x277   :  { %3113 = vpow2.f32 %v2966_v59 }
 0x280   :  { %v3106_v53 = vpop.eup %3105 }
 0x281   :  { %v3108_v5 = vpop.eup %3107  ;;  %v1250_v44 = vmul.f32 %v3106_v53, %v3100_v29  ;;  %v5869_v53 = vld [vmem:[#allocation80_spill] sm:$0xff] }
 0x282   :  { %v3110_v37 = vpop.eup %3109  ;;  %v1249_v7 = vmul.f32 %v3108_v5, %v4210_v58  ;;  %v5866_v58 = vld [vmem:[#allocation77_spill] sm:$0xff] }
 0x283   :  { %v3112_v43 = vpop.eup %3111  ;;  %v1232_v36 = vadd.f32 1.0, %v3110_v37  ;;  %v4372_v62 = vadd.f32 %v1250_v44, %v1248_v60  ;;  %v5870_v5 = vld [vmem:[#allocation81_spill] sm:$0xff]  ;;  %v5871_v60 = vld [vmem:[#allocation82_spill] sm:$0xff]  ;;  %v5872_v44 = vld [vmem:[#allocation83_spill] sm:$0xff] }
 0x284   :  { %v3114_v38 = vpop.eup %3113  ;;  %v1251_v8 = vmul.f32 %v3112_v43, %v3104_v51  ;;  %v5868_v51 = vld [vmem:[#allocation79_spill] sm:$0xff]  ;;  %v5873_v37 = vld [vmem:[#allocation84_spill] sm:$0xff]  ;;  %v5874_v43 = vld [vmem:[#allocation85_spill] sm:$0xff] }
 0x285   :  { %3115 = vrcp.f32 %v1232_v36  ;;  %v1233_v30 = vadd.f32 1.0, %v3114_v38  ;;  %v5875_v36 = vld [vmem:[#allocation86_spill] sm:$0xff]  ;;  %v5876_v38 = vld [vmem:[#allocation87_spill] sm:$0xff] }
 0x286   :  { %3117 = vtanh.f32 %v4372_v62  ;;  %v4376_v12 = vadd.f32 %v1251_v8, %v1249_v7  ;;  %v5877_v7 = vld [vmem:[#allocation88_spill] sm:$0xff]  ;;  %v5878_v8 = vld [vmem:[#allocation89_spill] sm:$0xff] }
 0x287   :  { %3119 = vrcp.f32 %v1233_v30  ;;  %v5879_v30 = vld [vmem:[#allocation90_spill] sm:$0xff] }
 0x288   :  { %3121 = vtanh.f32 %v4376_v12 }
 0x292   :  { %v3116_v33 = vpop.eup %3115 }
 0x293   :  { %v3118_v29 = vpop.eup %3117 }
 0x294   :  { %v3120_v35 = vpop.eup %3119  ;;  %v1256_v45 = vmul.f32 %v3118_v29, %v3116_v33  ;;  %v5880_v33 = vld [vmem:[#allocation91_spill] sm:$0xff]  ;;  %v5881_v29 = vld [vmem:[#allocation92_spill] sm:$0xff] }
 0x295   :  { %v3122_v46 = vpop.eup %3121 }
 0x296   :  { %v1257_v54 = vmul.f32 %v3122_v46, %v3120_v35  ;;  %v4379_v61 = vpack.c.bf16 %v1256_v45, %v1256_v45  ;;  %v5882_v35 = vld [vmem:[#allocation93_spill] sm:$0xff]  ;;  %v5883_v46 = vld [vmem:[#allocation94_spill] sm:$0xff]  ;;  %v5884_v45 = vld [vmem:[#allocation95_spill] sm:$0xff] }
 0x298   :  { %v1267_v59 = vpack.c.bf16 %v1257_v54, %v1257_v54  ;;  %v5885_v54 = vld [vmem:[#allocation96_spill] sm:$0xff] }
 0x29a   :  { %1300 = vmatprep.mubr.bf16.mxu0 %v1267_v59  ;;  %1341 = vmatprep.mubr.bf16.mxu1 %v1267_v59 }
 0x29b   :  { %1301 = vmatmul.mubr.bf16.vlgmr.msra.gmra.mxu0 %v4379_v61  ;;  %1342 = vmatmul.mubr.bf16.vlgmr.msra.gmra.mxu1 %v4379_v61 }
 0x29c   :  { %1351 = vmatpush1.bf16.msra.mxu0 %v5781_v49  ;;  %1392 = vmatpush1.bf16.msra.mxu1 %v5782_v57 }
 0x29d   :  { %1382 = vmatprep.mubr.bf16.mxu0 %v1267_v59  ;;  %1423 = vmatprep.mubr.bf16.mxu1 %v1267_v59  ;;  %v5886_v59 = vld [vmem:[#allocation97_spill] sm:$0xff] }
 0x29e   :  { %1352 = vmatprep.subr.bf16.mxu0 %v5783_v25  ;;  %1393 = vmatprep.subr.bf16.mxu1 %v5784_v55 }
 0x2a0   :  { %1353 = vmatpush1.bf16.msra.mxu0 %v5785_v39  ;;  %1394 = vmatpush1.bf16.msra.mxu1 %v5786_v34 }
 0x2a1   :  { %1354 = vmatprep.subr.bf16.mxu0 %v5787_v18  ;;  %1395 = vmatprep.subr.bf16.mxu1 %v5866_v58 }
 0x2a4   :  { %1355 = vmatpush1.bf16.msra.mxu0 %v5867_v52  ;;  %1396 = vmatpush1.bf16.msra.mxu1 %v5868_v51 }
 0x2a5   :  { %1356 = vmatprep.subr.bf16.mxu0 %v5869_v53  ;;  %1397 = vmatprep.subr.bf16.mxu1 %v5870_v5 }
 0x2a8   :  { %1357 = vmatpush1.bf16.msra.mxu0 %v5871_v60  ;;  %1398 = vmatpush1.bf16.msra.mxu1 %v5872_v44 }
 0x2a9   :  { %1358 = vmatprep.subr.bf16.mxu0 %v5873_v37  ;;  %1399 = vmatprep.subr.bf16.mxu1 %v5874_v43 }
 0x2ac   :  { %1359 = vmatpush1.bf16.msra.mxu0 %v5875_v36  ;;  %1400 = vmatpush1.bf16.msra.mxu1 %v5876_v38  ;;  %v5887_v38 = vld [vmem:[#allocation98_spill] sm:$0xff] }
 0x2ad   :  { %1360 = vmatprep.subr.bf16.mxu0 %v5877_v7  ;;  %1401 = vmatprep.subr.bf16.mxu1 %v5878_v8  ;;  %v5888_v7 = vld [vmem:[#allocation99_spill] sm:$0xff]  ;;  %v5889_v8 = vld [vmem:[#allocation100_spill] sm:$0xff] }
 0x2b0   :  { %1361 = vmatpush1.bf16.msra.mxu0 %v5879_v30  ;;  %1402 = vmatpush1.bf16.msra.mxu1 %v5880_v33  ;;  %v5890_v30 = vld [vmem:[#allocation101_spill] sm:$0xff]  ;;  %v5891_v33 = vld [vmem:[#allocation102_spill] sm:$0xff] }
 0x2b1   :  { %1362 = vmatprep.subr.bf16.mxu0 %v5881_v29  ;;  %1403 = vmatprep.subr.bf16.mxu1 %v5882_v35  ;;  %v5892_v29 = vld [vmem:[#allocation103_spill] sm:$0xff]  ;;  %v5893_v35 = vld [vmem:[#allocation104_spill] sm:$0xff] }
 0x2b4   :  { %1363 = vmatpush1.bf16.msra.mxu0 %v5883_v46  ;;  %1404 = vmatpush1.bf16.msra.mxu1 %v5884_v45  ;;  %v5894_v46 = vld [vmem:[#allocation105_spill] sm:$0xff]  ;;  %v5895_v45 = vld [vmem:[#allocation106_spill] sm:$0xff] }
 0x2b5   :  { %1364 = vmatprep.subr.bf16.mxu0 %v5885_v54  ;;  %1405 = vmatprep.subr.bf16.mxu1 %v5886_v59  ;;  %v5896_v54 = vld [vmem:[#allocation107_spill] sm:$0xff]  ;;  %v5897_v59 = vld [vmem:[#allocation108_spill] sm:$0xff] }
 0x2b8   :  { %1365 = vmatpush1.bf16.msra.mxu0 %v5887_v38  ;;  %1406 = vmatpush1.bf16.msra.mxu1 %v5888_v7  ;;  %v5898_v38 = vld [vmem:[#allocation109_spill] sm:$0xff]  ;;  %v5899_v7 = vld [vmem:[#allocation110_spill] sm:$0xff] }
 0x2b9   :  { %1366 = vmatprep.subr.bf16.mxu0 %v5889_v8  ;;  %1407 = vmatprep.subr.bf16.mxu1 %v5890_v30 }
 0x2bc   :  { %1367 = vmatpush2.bf16.msra.mxu0 %v5891_v33  ;;  %1408 = vmatpush2.bf16.msra.mxu1 %v5892_v29 }
 0x2bd   :  { %1368 = vmatprep.subr.bf16.mxu0 %v5893_v35  ;;  %1409 = vmatprep.subr.bf16.mxu1 %v5894_v46 }
 0x2c0   :  { %1369 = vmatpush2.bf16.msra.mxu0 %v5895_v45  ;;  %1410 = vmatpush2.bf16.msra.mxu1 %v5896_v54 }
 0x2c1   :  { %1370 = vmatprep.subr.bf16.mxu0 %v5897_v59  ;;  %1411 = vmatprep.subr.bf16.mxu1 %v5898_v38 }
 0x2c4   :  { %1371 = vmatpush2.bf16.msra.mxu0 %v5899_v7  ;;  %1412 = vmatpush2.bf16.msra.mxu1 %v5822_v23 }
 0x2c5   :  { %1372 = vmatprep.subr.bf16.mxu0 %v5823_v13  ;;  %1413 = vmatprep.subr.bf16.mxu1 %v5824_v32 }
 0x2c8   :  { %1373 = vmatpush2.bf16.msra.mxu0 %v5825_v41  ;;  %1414 = vmatpush2.bf16.msra.mxu1 %v5826_v31 }
 0x2c9   :  { %1374 = vmatprep.subr.bf16.mxu0 %v5827_v40  ;;  %1415 = vmatprep.subr.bf16.mxu1 %v5828_v1 }
 0x2cc   :  { %1375 = vmatpush2.bf16.msra.mxu0 %v5829_v56  ;;  %1416 = vmatpush2.bf16.msra.mxu1 %v5830_v17 }
 0x2cd   :  { %1376 = vmatprep.subr.bf16.mxu0 %v5831_v50  ;;  %1417 = vmatprep.subr.bf16.mxu1 %v5832_v24 }
 0x2d0   :  { %1377 = vmatpush2.bf16.msra.mxu0 %v4070_v26  ;;  %1418 = vmatpush2.bf16.msra.mxu1 %v4074_v16 }
 0x2d1   :  { %1378 = vmatprep.subr.bf16.mxu0 %v4076_v14  ;;  %1419 = vmatprep.subr.bf16.mxu1 %v4079_v0 }
 0x2d4   :  { %1379 = vmatpush2.bf16.msra.mxu0 %v4094_v63  ;;  %1420 = vmatpush2.bf16.msra.mxu1 %v4098_v48 }
 0x2d5   :  { %1380 = vmatprep.subr.bf16.mxu0 %v4100_v47  ;;  %1421 = vmatprep.subr.bf16.mxu1 %v4103_v42 }
 0x2d8   :  { %1381 = vmatpush2.bf16.msra.mxu0 %v4106_v3  ;;  %1422 = vmatpush2.bf16.msra.mxu1 %v4110_v2 }
 0x2d9   :  { %1498 = vmatprep.subr.bf16.mxu0 %v3352_v4  ;;  %1539 = vmatprep.subr.bf16.mxu1 %v3365_v9 }
 0x2db   :  { %1383 = vmatmul.mubr.bf16.vlgmr.msra.gmra.mxu0 %v4379_v61  ;;  %1424 = vmatmul.mubr.bf16.vlgmr.msra.gmra.mxu1 %v4379_v61  ;;  %v5900_v61 = vld [vmem:[#allocation16_spill] sm:$0xff] }
 0x2dc   :  { %1499 = vmatpush1.bf16.msra.mxu0 %v3357_v6  ;;  %1540 = vmatpush1.bf16.msra.mxu1 %v3367_v10  ;;  %v5901_v6 = vld [vmem:[#allocation17_spill] sm:$0xff]  ;;  %v5902_v10 = vld [vmem:[#allocation18_spill] sm:$0xff] }
 0x2dd   :  { %1500 = vmatprep.subr.bf16.mxu0 %v3369_v11  ;;  %1541 = vmatprep.subr.bf16.mxu1 %v3381_v15  ;;  %v5903_v11 = vld [vmem:[#allocation19_spill] sm:$0xff]  ;;  %v5904_v15 = vld [vmem:[#allocation20_spill] sm:$0xff] }
 0x2e0   :  { %1501 = vmatpush1.bf16.msra.mxu0 %v3394_v19  ;;  %1542 = vmatpush1.bf16.msra.mxu1 %v3398_v20  ;;  %v5905_v19 = vld [vmem:[#allocation21_spill] sm:$0xff]  ;;  %v5906_v20 = vld [vmem:[#allocation22_spill] sm:$0xff] }
 0x2e1   :  { %1502 = vmatprep.subr.bf16.mxu0 %v3400_v21  ;;  %1543 = vmatprep.subr.bf16.mxu1 %v3403_v22  ;;  %v5907_v21 = vld [vmem:[#allocation23_spill] sm:$0xff]  ;;  %v5908_v22 = vld [vmem:[#allocation24_spill] sm:$0xff] }
 0x2e4   :  { %1503 = vmatpush1.bf16.msra.mxu0 %v3418_v27  ;;  %1544 = vmatpush1.bf16.msra.mxu1 %v3422_v28  ;;  %v5909_v27 = vld [vmem:[#allocation25_spill] sm:$0xff]  ;;  %v5910_v28 = vld [vmem:[#allocation26_spill] sm:$0xff] }
 0x2e5   :  { %1504 = vmatprep.subr.bf16.mxu0 %v5900_v61  ;;  %1545 = vmatprep.subr.bf16.mxu1 %v5901_v6  ;;  %v5911_v61 = vld [vmem:[#allocation27_spill] sm:$0xff]  ;;  %v5912_v6 = vld [vmem:[#allocation28_spill] sm:$0xff] }
 0x2e8   :  { %1505 = vmatpush1.bf16.msra.mxu0 %v5902_v10  ;;  %1546 = vmatpush1.bf16.msra.mxu1 %v5903_v11  ;;  %v5913_v10 = vld [vmem:[#allocation29_spill] sm:$0xff]  ;;  %v5914_v11 = vld [vmem:[#allocation30_spill] sm:$0xff] }
 0x2e9   :  { %1506 = vmatprep.subr.bf16.mxu0 %v5904_v15  ;;  %1547 = vmatprep.subr.bf16.mxu1 %v5905_v19  ;;  %v5915_v15 = vld [vmem:[#allocation31_spill] sm:$0xff]  ;;  %v5916_v19 = vld [vmem:[#allocation32_spill] sm:$0xff] }
 0x2ec   :  { %1507 = vmatpush1.bf16.msra.mxu0 %v5906_v20  ;;  %1548 = vmatpush1.bf16.msra.mxu1 %v5907_v21  ;;  %v5917_v20 = vld [vmem:[#allocation33_spill] sm:$0xff]  ;;  %v5918_v21 = vld [vmem:[#allocation34_spill] sm:$0xff] }
 0x2ed   :  { %1508 = vmatprep.subr.bf16.mxu0 %v5908_v22  ;;  %1549 = vmatprep.subr.bf16.mxu1 %v5909_v27  ;;  %v5919_v22 = vld [vmem:[#allocation35_spill] sm:$0xff]  ;;  %v5920_v27 = vld [vmem:[#allocation36_spill] sm:$0xff] }
 0x2f0   :  { %1509 = vmatpush1.bf16.msra.mxu0 %v5910_v28  ;;  %1550 = vmatpush1.bf16.msra.mxu1 %v5911_v61  ;;  %v5921_v28 = vld [vmem:[#allocation37_spill] sm:$0xff]  ;;  %v5922_v61 = vld [vmem:[#allocation38_spill] sm:$0xff] }
 0x2f1   :  { %1510 = vmatprep.subr.bf16.mxu0 %v5912_v6  ;;  %1551 = vmatprep.subr.bf16.mxu1 %v5913_v10  ;;  %v5923_v6 = vld [vmem:[#allocation39_spill] sm:$0xff]  ;;  %v5924_v10 = vld [vmem:[#allocation40_spill] sm:$0xff] }
 0x2f4   :  { %1511 = vmatpush1.bf16.msra.mxu0 %v5914_v11  ;;  %1552 = vmatpush1.bf16.msra.mxu1 %v5915_v15  ;;  %v5925_v11 = vld [vmem:[#allocation41_spill] sm:$0xff]  ;;  %v5926_v15 = vld [vmem:[#allocation42_spill] sm:$0xff] }
 0x2f5   :  { %1512 = vmatprep.subr.bf16.mxu0 %v5916_v19  ;;  %1553 = vmatprep.subr.bf16.mxu1 %v5917_v20  ;;  %v5927_v19 = vld [vmem:[#allocation43_spill] sm:$0xff]  ;;  %v5928_v20 = vld [vmem:[#allocation44_spill] sm:$0xff] }
 0x2f8   :  { %1513 = vmatpush1.bf16.msra.mxu0 %v5918_v21  ;;  %1554 = vmatpush1.bf16.msra.mxu1 %v5919_v22  ;;  %v5929_v21 = vld [vmem:[#allocation45_spill] sm:$0xff]  ;;  %v5930_v22 = vld [vmem:[#allocation46_spill] sm:$0xff] }
 0x2f9   :  { %1514 = vmatprep.subr.bf16.mxu0 %v5920_v27  ;;  %1555 = vmatprep.subr.bf16.mxu1 %v5921_v28  ;;  %v5931_v27 = vld [vmem:[#allocation47_spill] sm:$0xff]  ;;  %v5932_v28 = vld [vmem:[#allocation48_spill] sm:$0xff] }
 0x2fc   :  { %1515 = vmatpush2.bf16.msra.mxu0 %v5922_v61  ;;  %1556 = vmatpush2.bf16.msra.mxu1 %v5923_v6  ;;  %v5933_v61 = vld [vmem:[#allocation49_spill] sm:$0xff]  ;;  %v5934_v6 = vld [vmem:[#allocation50_spill] sm:$0xff] }
 0x2fd   :  { %1516 = vmatprep.subr.bf16.mxu0 %v5924_v10  ;;  %1557 = vmatprep.subr.bf16.mxu1 %v5925_v11  ;;  %v5935_v10 = vld [vmem:[#allocation51_spill] sm:$0xff]  ;;  %v5936_v11 = vld [vmem:[#allocation52_spill] sm:$0xff] }
 0x300   :  { %1517 = vmatpush2.bf16.msra.mxu0 %v5926_v15  ;;  %1558 = vmatpush2.bf16.msra.mxu1 %v5927_v19  ;;  %v5937_v15 = vld [vmem:[#allocation53_spill] sm:$0xff]  ;;  %v5938_v19 = vld [vmem:[#allocation54_spill] sm:$0xff] }
 0x301   :  { %1518 = vmatprep.subr.bf16.mxu0 %v5928_v20  ;;  %1559 = vmatprep.subr.bf16.mxu1 %v5929_v21  ;;  %v5939_v20 = vld [vmem:[#allocation55_spill] sm:$0xff]  ;;  %v5940_v21 = vld [vmem:[#allocation56_spill] sm:$0xff] }
 0x304   :  { %1519 = vmatpush2.bf16.msra.mxu0 %v5930_v22  ;;  %1560 = vmatpush2.bf16.msra.mxu1 %v5931_v27  ;;  %v5941_v22 = vld [vmem:[#allocation57_spill] sm:$0xff]  ;;  %v5942_v27 = vld [vmem:[#allocation58_spill] sm:$0xff] }
 0x305   :  { %1520 = vmatprep.subr.bf16.mxu0 %v5932_v28  ;;  %1561 = vmatprep.subr.bf16.mxu1 %v5933_v61  ;;  %v5943_v28 = vld [vmem:[#allocation59_spill] sm:$0xff]  ;;  %v5944_v61 = vld [vmem:[#allocation60_spill] sm:$0xff] }
 0x308   :  { %1521 = vmatpush2.bf16.msra.mxu0 %v5934_v6  ;;  %1562 = vmatpush2.bf16.msra.mxu1 %v5935_v10  ;;  %v5945_v6 = vld [vmem:[#allocation61_spill] sm:$0xff]  ;;  %v5946_v10 = vld [vmem:[#allocation62_spill] sm:$0xff] }
 0x309   :  { %1522 = vmatprep.subr.bf16.mxu0 %v5936_v11  ;;  %1563 = vmatprep.subr.bf16.mxu1 %v5937_v15  ;;  %v5947_v11 = vld [vmem:[#allocation63_spill] sm:$0xff]  ;;  %v5948_v15 = vld [vmem:[#allocation64_spill] sm:$0xff] }
 0x30c   :  { %1523 = vmatpush2.bf16.msra.mxu0 %v5938_v19  ;;  %1564 = vmatpush2.bf16.msra.mxu1 %v5939_v20  ;;  %v5949_v19 = vld [vmem:[#allocation65_spill] sm:$0xff]  ;;  %v5950_v20 = vld [vmem:[#allocation66_spill] sm:$0xff] }
 0x30d   :  { %1524 = vmatprep.subr.bf16.mxu0 %v5940_v21  ;;  %1565 = vmatprep.subr.bf16.mxu1 %v5941_v22  ;;  %v5951_v21 = vld [vmem:[#allocation67_spill] sm:$0xff]  ;;  %v5952_v22 = vld [vmem:[#allocation68_spill] sm:$0xff] }
 0x310   :  { %1525 = vmatpush2.bf16.msra.mxu0 %v5942_v27  ;;  %1566 = vmatpush2.bf16.msra.mxu1 %v5943_v28  ;;  %v5953_v27 = vld [vmem:[#allocation69_spill] sm:$0xff] }
 0x311   :  { %1526 = vmatprep.subr.bf16.mxu0 %v5944_v61  ;;  %1567 = vmatprep.subr.bf16.mxu1 %v5945_v6 }
 0x314   :  { %1527 = vmatpush2.bf16.msra.mxu0 %v5946_v10  ;;  %1568 = vmatpush2.bf16.msra.mxu1 %v5947_v11 }
 0x315   :  { %1528 = vmatprep.subr.bf16.mxu0 %v5948_v15  ;;  %1569 = vmatprep.subr.bf16.mxu1 %v5949_v19  ;;  %v1258_v19 = vld [vmem:[%s5358_s0 + $0x80] sm:$0xff] }
 0x318   :  { %1529 = vmatpush2.bf16.msra.mxu0 %v5950_v20  ;;  %1570 = vmatpush2.bf16.msra.mxu1 %v5951_v21  ;;  %v1260_v21 = vld [vmem:[%s5358_s0 + $0x90] sm:$0xff] }
 0x319   :  { %1580 = vmatprep.subr.bf16.mxu0 %v5952_v22  ;;  %1621 = vmatprep.subr.bf16.mxu1 %v5953_v27  ;;  %v1259_v27 = vld [vmem:[%s5358_s0 + $0x88] sm:$0xff] }
 0x35b   :  { %v1302_v28 = vpop.f32.mrf.mxu0  ;;  %v1343_v61 = vpop.f32.mrf.mxu1 }
 0x35c   :  { %v1432_v22 = vadd.f32 %v1302_v28, %v1258_v19  ;;  %v1434_v20 = vadd.f32 %v1343_v61, %v1260_v21 }
 0x35d   :  { %v1304_v9 = vpop.f32.mrf.mxu0  ;;  %v1345_v6 = vpop.f32.mrf.mxu1 }
 0x35e   :  { %v2969_v15 = vmul.f32 -1.442695, %v1434_v20 }
 0x35f   :  { %v1306_v4 = vpop.f32.mrf.mxu0  ;;  %v1347_v10 = vpop.f32.mrf.mxu1 }
 0x360   :  { %v1261_v4 = vld [vmem:[%s5358_s0 + $0x98] sm:$0xff]  ;;  %v1433_v10 = vadd.f32 %v1304_v9, %v1259_v27  ;;  %v1262_v9 = vld [vmem:[%s5358_s0 + $0xa0] sm:$0xff]  ;;  %v1263_v27 = vld [vmem:[%s5358_s0 + $0xa8] sm:$0xff] }
 0x361   :  { %v1307_v2 = vpop.f32.mrf.mxu0  ;;  %v1348_v11 = vpop.f32.mrf.mxu1 }
 0x362   :  { %v2967_v11 = vmul.f32 -1.442695, %v1432_v22  ;;  %v1435_v2 = vadd.f32 %v1345_v6, %v1261_v4  ;;  %v2968_v3 = vmul.f32 -1.442695, %v1433_v10  ;;  %v1264_v6 = vld [vmem:[%s5358_s0 + $0xb0] sm:$0xff] }
 0x364   :  { %3123 = vpow2.f32 %v2967_v11  ;;  %v2970_v42 = vmul.f32 -1.442695, %v1435_v2 }
 0x365   :  { %3125 = vpow2.f32 %v2969_v15 }
 0x366   :  { %3127 = vpow2.f32 %v2968_v3 }
 0x367   :  { %3129 = vpow2.f32 %v2970_v42  ;;  %v1265_v42 = vld [vmem:[%s5358_s0 + $0xb8] sm:$0xff] }
 0x371   :  { %v3124_v47 = vpop.eup %3123 }
 0x372   :  { %v3126_v48 = vpop.eup %3125  ;;  %v1458_v0 = vadd.f32 1.0, %v3124_v47 }
 0x373   :  { %v3128_v63 = vpop.eup %3127  ;;  %v1460_v21 = vadd.f32 1.0, %v3126_v48 }
 0x374   :  { %v3130_v19 = vpop.eup %3129  ;;  %v1459_v28 = vadd.f32 1.0, %v3128_v63  ;;  %3131 = vrcp.f32 %v1458_v0 }
 0x375   :  { %v1461_v20 = vadd.f32 1.0, %v3130_v19  ;;  %3133 = vrcp.f32 %v1460_v21 }
 0x376   :  { %3135 = vrcp.f32 %v1459_v28 }
 0x381   :  { %v3132_v16 = vpop.eup %3131 }
 0x382   :  { %v3134_v21 = vpop.eup %3133 }
 0x39b   :  { %v1384_v15 = vpop.f32.mrf.mxu0  ;;  %v1425_v22 = vpop.f32.mrf.mxu1 }
 0x39c   :  { %v1436_v47 = vadd.f32 %v1384_v15, %v1262_v9  ;;  %v1438_v48 = vadd.f32 %v1425_v22, %v1264_v6  ;;  %v3136_v9 = vpop.eup %3135  ;;  %v1478_v15 = vmul.f32 %v3134_v21, %v4372_v62  ;;  %v5955_v21 = vld [vmem:[#allocation88_spill] sm:$0xff] }
 0x39d   :  { %v1386_v3 = vpop.f32.mrf.mxu0  ;;  %v1427_v63 = vpop.f32.mrf.mxu1 }
 0x39e   :  { %v2971_v61 = vmul.f32 -1.442695, %v1436_v47  ;;  %3137 = vtanh.f32 %v1438_v48  ;;  %v1437_v0 = vadd.f32 %v1386_v3, %v1263_v27  ;;  %v1439_v4 = vadd.f32 %v1427_v63, %v1265_v42 }
 0x39f   :  { %3139 = vrcp.f32 %v1461_v20  ;;  %v1388_v10 = vpop.f32.mrf.mxu0  ;;  %v1429_v11 = vpop.f32.mrf.mxu1 }
 0x3a0   :  { %3141 = vpow2.f32 %v2971_v61  ;;  %v2972_v2 = vmul.f32 -1.442695, %v1437_v0 }
 0x3a1   :  { %3143 = vtanh.f32 %v1439_v4  ;;  %v1389_v19 = vpop.f32.mrf.mxu0  ;;  %v1430_v14 = vpop.f32.mrf.mxu1 }
 0x3a2   :  { %3145 = vpow2.f32 %v2972_v2 }
 0x3ab   :  { %v3138_v6 = vpop.eup %3137 }
 0x3ac   :  { %v3140_v28 = vpop.eup %3139  ;;  %v1480_v22 = vmul.f32 %v3138_v6, %v3132_v16  ;;  %v5957_v6 = vld [vmem:[#allocation90_spill] sm:$0xff] }
 0x3ad   :  { %v3142_v47 = vpop.eup %3141  ;;  %v1479_v3 = vmul.f32 %v3140_v28, %v4376_v12  ;;  %v5954_v12 = vld [vmem:[#allocation87_spill] sm:$0xff] }
 0x3ae   :  { %v3144_v27 = vpop.eup %3143  ;;  %v1462_v42 = vadd.f32 1.0, %v3142_v47  ;;  %v4538_v20 = vadd.f32 %v1480_v22, %v1478_v15  ;;  %v5958_v28 = vld [vmem:[#allocation91_spill] sm:$0xff]  ;;  %v5959_v15 = vld [vmem:[#allocation92_spill] sm:$0xff]  ;;  %v5960_v22 = vld [vmem:[#allocation93_spill] sm:$0xff] }
 0x3af   :  { %v3146_v48 = vpop.eup %3145  ;;  %v1481_v63 = vmul.f32 %v3144_v27, %v3136_v9  ;;  %v5956_v9 = vld [vmem:[#allocation89_spill] sm:$0xff]  ;;  %v5961_v47 = vld [vmem:[#allocation94_spill] sm:$0xff]  ;;  %v5962_v27 = vld [vmem:[#allocation95_spill] sm:$0xff] }
 0x3b0   :  { %3147 = vrcp.f32 %v1462_v42  ;;  %v1463_v14 = vadd.f32 1.0, %v3146_v48  ;;  %v5963_v42 = vld [vmem:[#allocation96_spill] sm:$0xff]  ;;  %v5964_v48 = vld [vmem:[#allocation97_spill] sm:$0xff] }
 0x3b1   :  { %3149 = vtanh.f32 %v4538_v20  ;;  %v4542_v61 = vadd.f32 %v1481_v63, %v1479_v3  ;;  %v5965_v3 = vld [vmem:[#allocation98_spill] sm:$0xff]  ;;  %v5966_v63 = vld [vmem:[#allocation99_spill] sm:$0xff] }
 0x3b2   :  { %3151 = vrcp.f32 %v1463_v14  ;;  %v5967_v14 = vld [vmem:[#allocation123_spill] sm:$0xff] }
 0x3b3   :  { %3153 = vtanh.f32 %v4542_v61 }
 0x3bd   :  { %v3148_v62 = vpop.eup %3147 }
 0x3be   :  { %v3150_v16 = vpop.eup %3149 }
 0x3bf   :  { %v3152_v0 = vpop.eup %3151  ;;  %v1486_v10 = vmul.f32 %v3150_v16, %v3148_v62  ;;  %v5968_v62 = vld [vmem:[#allocation124_spill] sm:$0xff]  ;;  %v5969_v16 = vld [vmem:[#allocation125_spill] sm:$0xff] }
 0x3c0   :  { %v3154_v4 = vpop.eup %3153 }
 0x3c1   :  { %v1487_v11 = vmul.f32 %v3154_v4, %v3152_v0  ;;  %v4545_v19 = vpack.c.bf16 %v1486_v10, %v1486_v10  ;;  %v5970_v0 = vld [vmem:[#allocation126_spill] sm:$0xff]  ;;  %v5971_v4 = vld [vmem:[#allocation127_spill] sm:$0xff]  ;;  %v5972_v10 = vld [vmem:[#allocation128_spill] sm:$0xff] }
 0x3c3   :  { %v1497_v2 = vpack.c.bf16 %v1487_v11, %v1487_v11  ;;  %v5973_v11 = vld [vmem:[#allocation129_spill] sm:$0xff] }
 0x3c5   :  { %1530 = vmatprep.mubr.bf16.mxu0 %v1497_v2  ;;  %1571 = vmatprep.mubr.bf16.mxu1 %v1497_v2 }
 0x3c6   :  { %1531 = vmatmul.mubr.bf16.vlgmr.msra.gmra.mxu0 %v4545_v19  ;;  %1572 = vmatmul.mubr.bf16.vlgmr.msra.gmra.mxu1 %v4545_v19 }
 0x3c7   :  { %1581 = vmatpush1.bf16.msra.mxu0 %v5781_v49  ;;  %1622 = vmatpush1.bf16.msra.mxu1 %v5782_v57 }
 0x3c8   :  { %1612 = vmatprep.mubr.bf16.mxu0 %v1497_v2  ;;  %1653 = vmatprep.mubr.bf16.mxu1 %v1497_v2  ;;  %v5974_v2 = vld [vmem:[#allocation130_spill] sm:$0xff] }
 0x3c9   :  { %1582 = vmatprep.subr.bf16.mxu0 %v5783_v25  ;;  %1623 = vmatprep.subr.bf16.mxu1 %v5784_v55 }
 0x3cb   :  { %1583 = vmatpush1.bf16.msra.mxu0 %v5785_v39  ;;  %1624 = vmatpush1.bf16.msra.mxu1 %v5786_v34 }
 0x3cc   :  { %1584 = vmatprep.subr.bf16.mxu0 %v5787_v18  ;;  %1625 = vmatprep.subr.bf16.mxu1 %v5866_v58 }
 0x3cf   :  { %1585 = vmatpush1.bf16.msra.mxu0 %v5867_v52  ;;  %1626 = vmatpush1.bf16.msra.mxu1 %v5868_v51 }
 0x3d0   :  { %1586 = vmatprep.subr.bf16.mxu0 %v5869_v53  ;;  %1627 = vmatprep.subr.bf16.mxu1 %v5870_v5 }
 0x3d3   :  { %1587 = vmatpush1.bf16.msra.mxu0 %v5871_v60  ;;  %1628 = vmatpush1.bf16.msra.mxu1 %v5872_v44 }
 0x3d4   :  { %1588 = vmatprep.subr.bf16.mxu0 %v5873_v37  ;;  %1629 = vmatprep.subr.bf16.mxu1 %v5874_v43 }
 0x3d7   :  { %1589 = vmatpush1.bf16.msra.mxu0 %v5875_v36  ;;  %1630 = vmatpush1.bf16.msra.mxu1 %v5954_v12 }
 0x3d8   :  { %1590 = vmatprep.subr.bf16.mxu0 %v5955_v21  ;;  %1631 = vmatprep.subr.bf16.mxu1 %v5956_v9 }
 0x3db   :  { %1591 = vmatpush1.bf16.msra.mxu0 %v5957_v6  ;;  %1632 = vmatpush1.bf16.msra.mxu1 %v5958_v28 }
 0x3dc   :  { %1592 = vmatprep.subr.bf16.mxu0 %v5959_v15  ;;  %1633 = vmatprep.subr.bf16.mxu1 %v5960_v22 }
 0x3df   :  { %1593 = vmatpush1.bf16.msra.mxu0 %v5961_v47  ;;  %1634 = vmatpush1.bf16.msra.mxu1 %v5962_v27 }
 0x3e0   :  { %1594 = vmatprep.subr.bf16.mxu0 %v5963_v42  ;;  %1635 = vmatprep.subr.bf16.mxu1 %v5964_v48 }
 0x3e3   :  { %1595 = vmatpush1.bf16.msra.mxu0 %v5965_v3  ;;  %1636 = vmatpush1.bf16.msra.mxu1 %v5966_v63 }
 0x3e4   :  { %1596 = vmatprep.subr.bf16.mxu0 %v5889_v8  ;;  %1637 = vmatprep.subr.bf16.mxu1 %v5890_v30 }
 0x3e7   :  { %1597 = vmatpush2.bf16.msra.mxu0 %v5891_v33  ;;  %1638 = vmatpush2.bf16.msra.mxu1 %v5892_v29 }
 0x3e8   :  { %1598 = vmatprep.subr.bf16.mxu0 %v5893_v35  ;;  %1639 = vmatprep.subr.bf16.mxu1 %v5894_v46 }
 0x3eb   :  { %1599 = vmatpush2.bf16.msra.mxu0 %v5895_v45  ;;  %1640 = vmatpush2.bf16.msra.mxu1 %v5896_v54 }
 0x3ec   :  { %1600 = vmatprep.subr.bf16.mxu0 %v5897_v59  ;;  %1641 = vmatprep.subr.bf16.mxu1 %v5898_v38 }
 0x3ef   :  { %1601 = vmatpush2.bf16.msra.mxu0 %v5899_v7  ;;  %1642 = vmatpush2.bf16.msra.mxu1 %v5822_v23 }
 0x3f0   :  { %1602 = vmatprep.subr.bf16.mxu0 %v5823_v13  ;;  %1643 = vmatprep.subr.bf16.mxu1 %v5824_v32 }
 0x3f3   :  { %1603 = vmatpush2.bf16.msra.mxu0 %v5825_v41  ;;  %1644 = vmatpush2.bf16.msra.mxu1 %v5826_v31 }
 0x3f4   :  { %1604 = vmatprep.subr.bf16.mxu0 %v5827_v40  ;;  %1645 = vmatprep.subr.bf16.mxu1 %v5828_v1 }
 0x3f7   :  { %1605 = vmatpush2.bf16.msra.mxu0 %v5829_v56  ;;  %1646 = vmatpush2.bf16.msra.mxu1 %v5830_v17 }
 0x3f8   :  { %1606 = vmatprep.subr.bf16.mxu0 %v5831_v50  ;;  %1647 = vmatprep.subr.bf16.mxu1 %v5832_v24  ;;  %v5975_v50 = vld [vmem:[#allocation131_spill] sm:$0xff]  ;;  %v5976_v24 = vld [vmem:[#allocation4_spill] sm:$0xff] }
 0x3fb   :  { %1607 = vmatpush2.bf16.msra.mxu0 %v4070_v26  ;;  %1648 = vmatpush2.bf16.msra.mxu1 %v5967_v14  ;;  %v5977_v26 = vld [vmem:[#allocation6_spill] sm:$0xff] }
 0x3fc   :  { %1608 = vmatprep.subr.bf16.mxu0 %v5968_v62  ;;  %1649 = vmatprep.subr.bf16.mxu1 %v5969_v16  ;;  %v5978_v16 = vld [vmem:[#allocation5_spill] sm:$0xff]  ;;  %v5987_v62 = vld [vmem:[#allocation15_spill] sm:$0xff] }
 0x3ff   :  { %1609 = vmatpush2.bf16.msra.mxu0 %v5970_v0  ;;  %1650 = vmatpush2.bf16.msra.mxu1 %v5971_v4  ;;  %v5979_v0 = vld [vmem:[#allocation7_spill] sm:$0xff]  ;;  %v5980_v4 = vld [vmem:[#allocation8_spill] sm:$0xff] }
 0x400   :  { %1610 = vmatprep.subr.bf16.mxu0 %v5972_v10  ;;  %1651 = vmatprep.subr.bf16.mxu1 %v5973_v11  ;;  %v5981_v10 = vld [vmem:[#allocation9_spill] sm:$0xff]  ;;  %v5982_v11 = vld [vmem:[#allocation10_spill] sm:$0xff] }
 0x403   :  { %1611 = vmatpush2.bf16.msra.mxu0 %v5974_v2  ;;  %1652 = vmatpush2.bf16.msra.mxu1 %v5975_v50  ;;  %v5983_v2 = vld [vmem:[#allocation11_spill] sm:$0xff]  ;;  %v5984_v50 = vld [vmem:[#allocation12_spill] sm:$0xff] }
 0x404   :  { %1728 = vmatprep.subr.bf16.mxu0 %v5976_v24  ;;  %1769 = vmatprep.subr.bf16.mxu1 %v5977_v26  ;;  %v5985_v24 = vld [vmem:[#allocation13_spill] sm:$0xff]  ;;  %v5986_v26 = vld [vmem:[#allocation14_spill] sm:$0xff] }
 0x406   :  { %1613 = vmatmul.mubr.bf16.vlgmr.msra.gmra.mxu0 %v4545_v19  ;;  %1654 = vmatmul.mubr.bf16.vlgmr.msra.gmra.mxu1 %v4545_v19  ;;  %v5988_v19 = vld [vmem:[#allocation16_spill] sm:$0xff] }
 0x407   :  { %1729 = vmatpush1.bf16.msra.mxu0 %v5978_v16  ;;  %1770 = vmatpush1.bf16.msra.mxu1 %v5979_v0  ;;  %v5989_v16 = vld [vmem:[#allocation17_spill] sm:$0xff]  ;;  %v5990_v0 = vld [vmem:[#allocation18_spill] sm:$0xff] }
 0x408   :  { %1730 = vmatprep.subr.bf16.mxu0 %v5980_v4  ;;  %1771 = vmatprep.subr.bf16.mxu1 %v5981_v10  ;;  %v5991_v4 = vld [vmem:[#allocation19_spill] sm:$0xff]  ;;  %v5992_v10 = vld [vmem:[#allocation20_spill] sm:$0xff] }
 0x40b   :  { %1731 = vmatpush1.bf16.msra.mxu0 %v5982_v11  ;;  %1772 = vmatpush1.bf16.msra.mxu1 %v5983_v2  ;;  %v5993_v11 = vld [vmem:[#allocation21_spill] sm:$0xff]  ;;  %v5994_v2 = vld [vmem:[#allocation22_spill] sm:$0xff] }
 0x40c   :  { %1732 = vmatprep.subr.bf16.mxu0 %v5984_v50  ;;  %1773 = vmatprep.subr.bf16.mxu1 %v5985_v24  ;;  %v5995_v50 = vld [vmem:[#allocation23_spill] sm:$0xff]  ;;  %v5996_v24 = vld [vmem:[#allocation24_spill] sm:$0xff] }
 0x40f   :  { %1733 = vmatpush1.bf16.msra.mxu0 %v5986_v26  ;;  %1774 = vmatpush1.bf16.msra.mxu1 %v5987_v62  ;;  %v5997_v26 = vld [vmem:[#allocation25_spill] sm:$0xff]  ;;  %v5998_v62 = vld [vmem:[#allocation26_spill] sm:$0xff] }
 0x410   :  { %1734 = vmatprep.subr.bf16.mxu0 %v5988_v19  ;;  %1775 = vmatprep.subr.bf16.mxu1 %v5989_v16  ;;  %v5999_v19 = vld [vmem:[#allocation27_spill] sm:$0xff]  ;;  %v6000_v16 = vld [vmem:[#allocation28_spill] sm:$0xff] }
 0x413   :  { %1735 = vmatpush1.bf16.msra.mxu0 %v5990_v0  ;;  %1776 = vmatpush1.bf16.msra.mxu1 %v5991_v4  ;;  %v6001_v0 = vld [vmem:[#allocation29_spill] sm:$0xff]  ;;  %v6002_v4 = vld [vmem:[#allocation30_spill] sm:$0xff] }
 0x414   :  { %1736 = vmatprep.subr.bf16.mxu0 %v5992_v10  ;;  %1777 = vmatprep.subr.bf16.mxu1 %v5993_v11  ;;  %v6003_v10 = vld [vmem:[#allocation31_spill] sm:$0xff]  ;;  %v6004_v11 = vld [vmem:[#allocation32_spill] sm:$0xff] }
 0x417   :  { %1737 = vmatpush1.bf16.msra.mxu0 %v5994_v2  ;;  %1778 = vmatpush1.bf16.msra.mxu1 %v5995_v50  ;;  %v6005_v2 = vld [vmem:[#allocation33_spill] sm:$0xff]  ;;  %v6006_v50 = vld [vmem:[#allocation34_spill] sm:$0xff] }
 0x418   :  { %1738 = vmatprep.subr.bf16.mxu0 %v5996_v24  ;;  %1779 = vmatprep.subr.bf16.mxu1 %v5997_v26  ;;  %v6007_v24 = vld [vmem:[#allocation35_spill] sm:$0xff]  ;;  %v6008_v26 = vld [vmem:[#allocation36_spill] sm:$0xff] }
 0x41b   :  { %1739 = vmatpush1.bf16.msra.mxu0 %v5998_v62  ;;  %1780 = vmatpush1.bf16.msra.mxu1 %v5999_v19  ;;  %v6009_v62 = vld [vmem:[#allocation37_spill] sm:$0xff]  ;;  %v6010_v19 = vld [vmem:[#allocation38_spill] sm:$0xff] }
 0x41c   :  { %1740 = vmatprep.subr.bf16.mxu0 %v6000_v16  ;;  %1781 = vmatprep.subr.bf16.mxu1 %v6001_v0  ;;  %v6011_v16 = vld [vmem:[#allocation39_spill] sm:$0xff]  ;;  %v6012_v0 = vld [vmem:[#allocation40_spill] sm:$0xff] }
 0x41f   :  { %1741 = vmatpush1.bf16.msra.mxu0 %v6002_v4  ;;  %1782 = vmatpush1.bf16.msra.mxu1 %v6003_v10  ;;  %v6013_v4 = vld [vmem:[#allocation41_spill] sm:$0xff]  ;;  %v6014_v10 = vld [vmem:[#allocation42_spill] sm:$0xff] }
 0x420   :  { %1742 = vmatprep.subr.bf16.mxu0 %v6004_v11  ;;  %1783 = vmatprep.subr.bf16.mxu1 %v6005_v2  ;;  %v6015_v11 = vld [vmem:[#allocation43_spill] sm:$0xff]  ;;  %v6016_v2 = vld [vmem:[#allocation44_spill] sm:$0xff] }
 0x423   :  { %1743 = vmatpush1.bf16.msra.mxu0 %v6006_v50  ;;  %1784 = vmatpush1.bf16.msra.mxu1 %v6007_v24  ;;  %v6017_v50 = vld [vmem:[#allocation45_spill] sm:$0xff]  ;;  %v6018_v24 = vld [vmem:[#allocation46_spill] sm:$0xff] }
 0x424   :  { %1744 = vmatprep.subr.bf16.mxu0 %v6008_v26  ;;  %1785 = vmatprep.subr.bf16.mxu1 %v6009_v62  ;;  %v6019_v26 = vld [vmem:[#allocation47_spill] sm:$0xff]  ;;  %v6020_v62 = vld [vmem:[#allocation48_spill] sm:$0xff] }
 0x427   :  { %1745 = vmatpush2.bf16.msra.mxu0 %v6010_v19  ;;  %1786 = vmatpush2.bf16.msra.mxu1 %v6011_v16  ;;  %v6021_v19 = vld [vmem:[#allocation49_spill] sm:$0xff]  ;;  %v6022_v16 = vld [vmem:[#allocation50_spill] sm:$0xff] }
 0x428   :  { %1746 = vmatprep.subr.bf16.mxu0 %v6012_v0  ;;  %1787 = vmatprep.subr.bf16.mxu1 %v6013_v4  ;;  %v6023_v0 = vld [vmem:[#allocation51_spill] sm:$0xff]  ;;  %v6024_v4 = vld [vmem:[#allocation52_spill] sm:$0xff] }
 0x42b   :  { %1747 = vmatpush2.bf16.msra.mxu0 %v6014_v10  ;;  %1788 = vmatpush2.bf16.msra.mxu1 %v6015_v11  ;;  %v6025_v10 = vld [vmem:[#allocation53_spill] sm:$0xff]  ;;  %v6026_v11 = vld [vmem:[#allocation54_spill] sm:$0xff] }
 0x42c   :  { %1748 = vmatprep.subr.bf16.mxu0 %v6016_v2  ;;  %1789 = vmatprep.subr.bf16.mxu1 %v6017_v50  ;;  %v6027_v2 = vld [vmem:[#allocation55_spill] sm:$0xff]  ;;  %v6028_v50 = vld [vmem:[#allocation56_spill] sm:$0xff] }
 0x42f   :  { %1749 = vmatpush2.bf16.msra.mxu0 %v6018_v24  ;;  %1790 = vmatpush2.bf16.msra.mxu1 %v6019_v26  ;;  %v6029_v24 = vld [vmem:[#allocation57_spill] sm:$0xff]  ;;  %v6030_v26 = vld [vmem:[#allocation58_spill] sm:$0xff] }
 0x430   :  { %1750 = vmatprep.subr.bf16.mxu0 %v6020_v62  ;;  %1791 = vmatprep.subr.bf16.mxu1 %v6021_v19  ;;  %v6031_v62 = vld [vmem:[#allocation59_spill] sm:$0xff]  ;;  %v6032_v19 = vld [vmem:[#allocation60_spill] sm:$0xff] }
 0x433   :  { %1751 = vmatpush2.bf16.msra.mxu0 %v6022_v16  ;;  %1792 = vmatpush2.bf16.msra.mxu1 %v6023_v0  ;;  %v6033_v16 = vld [vmem:[#allocation61_spill] sm:$0xff]  ;;  %v6034_v0 = vld [vmem:[#allocation62_spill] sm:$0xff] }
 0x434   :  { %1752 = vmatprep.subr.bf16.mxu0 %v6024_v4  ;;  %1793 = vmatprep.subr.bf16.mxu1 %v6025_v10  ;;  %v6035_v4 = vld [vmem:[#allocation63_spill] sm:$0xff]  ;;  %v6036_v10 = vld [vmem:[#allocation64_spill] sm:$0xff] }
 0x437   :  { %1753 = vmatpush2.bf16.msra.mxu0 %v6026_v11  ;;  %1794 = vmatpush2.bf16.msra.mxu1 %v6027_v2  ;;  %v6037_v11 = vld [vmem:[#allocation65_spill] sm:$0xff]  ;;  %v6038_v2 = vld [vmem:[#allocation66_spill] sm:$0xff] }
 0x438   :  { %1754 = vmatprep.subr.bf16.mxu0 %v6028_v50  ;;  %1795 = vmatprep.subr.bf16.mxu1 %v6029_v24  ;;  %v6039_v50 = vld [vmem:[#allocation67_spill] sm:$0xff]  ;;  %v6040_v24 = vld [vmem:[#allocation68_spill] sm:$0xff] }
 0x43b   :  { %1755 = vmatpush2.bf16.msra.mxu0 %v6030_v26  ;;  %1796 = vmatpush2.bf16.msra.mxu1 %v6031_v62  ;;  %v6041_v26 = vld [vmem:[#allocation69_spill] sm:$0xff] }
 0x43c   :  { %1756 = vmatprep.subr.bf16.mxu0 %v6032_v19  ;;  %1797 = vmatprep.subr.bf16.mxu1 %v6033_v16 }
 0x43f   :  { %1757 = vmatpush2.bf16.msra.mxu0 %v6034_v0  ;;  %1798 = vmatpush2.bf16.msra.mxu1 %v6035_v4 }
 0x440   :  { %1758 = vmatprep.subr.bf16.mxu0 %v6036_v10  ;;  %1799 = vmatprep.subr.bf16.mxu1 %v6037_v11  ;;  %v1488_v11 = vld [vmem:[%s5358_s0 + $0xc0] sm:$0xff] }
 0x443   :  { %1759 = vmatpush2.bf16.msra.mxu0 %v6038_v2  ;;  %1800 = vmatpush2.bf16.msra.mxu1 %v6039_v50  ;;  %v1490_v50 = vld [vmem:[%s5358_s0 + $0xd0] sm:$0xff] }
 0x444   :  { %1810 = vmatprep.subr.bf16.mxu0 %v6040_v24  ;;  %1851 = vmatprep.subr.bf16.mxu1 %v6041_v26  ;;  %v1489_v26 = vld [vmem:[%s5358_s0 + $0xc8] sm:$0xff] }
 0x486   :  { %v1532_v62 = vpop.f32.mrf.mxu0  ;;  %v1573_v19 = vpop.f32.mrf.mxu1 }
 0x487   :  { %v1662_v24 = vadd.f32 %v1532_v62, %v1488_v11  ;;  %v1664_v2 = vadd.f32 %v1573_v19, %v1490_v50 }
 0x488   :  { %v1534_v14 = vpop.f32.mrf.mxu0  ;;  %v1575_v16 = vpop.f32.mrf.mxu1 }
 0x489   :  { %v2975_v10 = vmul.f32 -1.442695, %v1664_v2 }
 0x48a   :  { %v1536_v17 = vpop.f32.mrf.mxu0  ;;  %v1577_v0 = vpop.f32.mrf.mxu1 }
 0x48b   :  { %v1491_v17 = vld [vmem:[%s5358_s0 + $0xd8] sm:$0xff]  ;;  %v2973_v0 = vmul.f32 -1.442695, %v1662_v24  ;;  %v1494_v24 = vld [vmem:[%s5358_s0 + $0xf0] sm:$0xff] }
 0x48c   :  { %v1537_v56 = vpop.f32.mrf.mxu0  ;;  %v1578_v4 = vpop.f32.mrf.mxu1 }
 0x48d   :  { %v1663_v56 = vadd.f32 %v1534_v14, %v1489_v26  ;;  %v1665_v4 = vadd.f32 %v1575_v16, %v1491_v17  ;;  %3155 = vpow2.f32 %v2973_v0  ;;  %v1492_v26 = vld [vmem:[%s5358_s0 + $0xe0] sm:$0xff] }
 0x48e   :  { %3157 = vpow2.f32 %v2975_v10 }
 0x48f   :  { %v2974_v1 = vmul.f32 -1.442695, %v1663_v56  ;;  %v2976_v40 = vmul.f32 -1.442695, %v1665_v4 }
 0x491   :  { %3159 = vpow2.f32 %v2974_v1 }
 0x492   :  { %3161 = vpow2.f32 %v2976_v40  ;;  %v1493_v40 = vld [vmem:[%s5358_s0 + $0xe8] sm:$0xff] }
 0x49a   :  { %v3156_v31 = vpop.eup %3155 }
 0x49b   :  { %v3158_v41 = vpop.eup %3157  ;;  %v1688_v13 = vadd.f32 1.0, %v3156_v31 }
 0x49c   :  { %v1690_v50 = vadd.f32 1.0, %v3158_v41 }
 0x49d   :  { %3163 = vrcp.f32 %v1688_v13 }
 0x49e   :  { %v3160_v32 = vpop.eup %3159  ;;  %3165 = vrcp.f32 %v1690_v50 }
 0x49f   :  { %v3162_v62 = vpop.eup %3161  ;;  %v1689_v11 = vadd.f32 1.0, %v3160_v32  ;;  %v1495_v32 = vld [vmem:[%s5358_s0 + $0xf8] sm:$0xff] }
 0x4a0   :  { %v1691_v14 = vadd.f32 1.0, %v3162_v62 }
 0x4a1   :  { %3167 = vrcp.f32 %v1689_v11 }
 0x4aa   :  { %v3164_v7 = vpop.eup %3163 }
 0x4ab   :  { %v3166_v50 = vpop.eup %3165 }
 0x4c6   :  { %v1614_v16 = vpop.f32.mrf.mxu0  ;;  %v1655_v1 = vpop.f32.mrf.mxu1 }
 0x4c7   :  { %v1666_v41 = vadd.f32 %v1614_v16, %v1492_v26  ;;  %v1668_v31 = vadd.f32 %v1655_v1, %v1494_v24  ;;  %v3168_v26 = vpop.eup %3167  ;;  %v1708_v16 = vmul.f32 %v3166_v50, %v4538_v20  ;;  %v6043_v50 = vld [vmem:[#allocation111_spill] sm:$0xff] }
 0x4c8   :  { %v1616_v10 = vpop.f32.mrf.mxu0  ;;  %v1657_v2 = vpop.f32.mrf.mxu1 }
 0x4c9   :  { %v2977_v19 = vmul.f32 -1.442695, %v1666_v41  ;;  %3169 = vtanh.f32 %v1668_v31  ;;  %v1667_v13 = vadd.f32 %v1616_v10, %v1493_v40  ;;  %v1669_v17 = vadd.f32 %v1657_v2, %v1495_v32 }
 0x4ca   :  { %3171 = vrcp.f32 %v1691_v14  ;;  %v1618_v56 = vpop.f32.mrf.mxu0  ;;  %v1659_v0 = vpop.f32.mrf.mxu1 }
 0x4cb   :  { %3173 = vpow2.f32 %v2977_v19  ;;  %v2978_v4 = vmul.f32 -1.442695, %v1667_v13 }
 0x4cc   :  { %3175 = vtanh.f32 %v1669_v17  ;;  %v1619_v62 = vpop.f32.mrf.mxu0  ;;  %v1660_v23 = vpop.f32.mrf.mxu1 }
 0x4cd   :  { %3177 = vpow2.f32 %v2978_v4 }
 0x4d6   :  { %v3170_v24 = vpop.eup %3169 }
 0x4d7   :  { %v3172_v11 = vpop.eup %3171  ;;  %v1710_v1 = vmul.f32 %v3170_v24, %v3164_v7  ;;  %v6045_v24 = vld [vmem:[#allocation113_spill] sm:$0xff] }
 0x4d8   :  { %v3174_v41 = vpop.eup %3173  ;;  %v1709_v10 = vmul.f32 %v3172_v11, %v4542_v61  ;;  %v6042_v61 = vld [vmem:[#allocation110_spill] sm:$0xff] }
 0x4d9   :  { %v3176_v40 = vpop.eup %3175  ;;  %v1692_v32 = vadd.f32 1.0, %v3174_v41  ;;  %v4704_v14 = vadd.f32 %v1710_v1, %v1708_v16  ;;  %v6046_v11 = vld [vmem:[#allocation114_spill] sm:$0xff]  ;;  %v6047_v16 = vld [vmem:[#allocation115_spill] sm:$0xff]  ;;  %v6048_v1 = vld [vmem:[#allocation116_spill] sm:$0xff] }
 0x4da   :  { %v3178_v31 = vpop.eup %3177  ;;  %v1711_v2 = vmul.f32 %v3176_v40, %v3168_v26  ;;  %v6044_v26 = vld [vmem:[#allocation112_spill] sm:$0xff]  ;;  %v6049_v41 = vld [vmem:[#allocation117_spill] sm:$0xff]  ;;  %v6050_v40 = vld [vmem:[#allocation118_spill] sm:$0xff] }
 0x4db   :  { %3179 = vrcp.f32 %v1692_v32  ;;  %v1693_v23 = vadd.f32 1.0, %v3178_v31  ;;  %v6051_v32 = vld [vmem:[#allocation119_spill] sm:$0xff]  ;;  %v6052_v31 = vld [vmem:[#allocation120_spill] sm:$0xff] }
 0x4dc   :  { %3181 = vtanh.f32 %v4704_v14  ;;  %v4708_v19 = vadd.f32 %v1711_v2, %v1709_v10  ;;  %v6053_v10 = vld [vmem:[#allocation121_spill] sm:$0xff]  ;;  %v6054_v2 = vld [vmem:[#allocation122_spill] sm:$0xff] }
 0x4dd   :  { %3183 = vrcp.f32 %v1693_v23  ;;  %v6055_v23 = vld [vmem:[#allocation123_spill] sm:$0xff] }
 0x4de   :  { %3185 = vtanh.f32 %v4708_v19 }
 0x4e8   :  { %v3180_v20 = vpop.eup %3179 }
 0x4e9   :  { %v3182_v7 = vpop.eup %3181 }
 0x4ea   :  { %v3184_v13 = vpop.eup %3183  ;;  %v1716_v56 = vmul.f32 %v3182_v7, %v3180_v20  ;;  %v6056_v20 = vld [vmem:[#allocation124_spill] sm:$0xff]  ;;  %v6057_v7 = vld [vmem:[#allocation125_spill] sm:$0xff] }
 0x4eb   :  { %v3186_v17 = vpop.eup %3185 }
 0x4ec   :  { %v1717_v0 = vmul.f32 %v3186_v17, %v3184_v13  ;;  %v4711_v62 = vpack.c.bf16 %v1716_v56, %v1716_v56  ;;  %v6058_v13 = vld [vmem:[#allocation126_spill] sm:$0xff]  ;;  %v6059_v17 = vld [vmem:[#allocation127_spill] sm:$0xff]  ;;  %v6060_v56 = vld [vmem:[#allocation128_spill] sm:$0xff] }
 0x4ee   :  { %v1727_v4 = vpack.c.bf16 %v1717_v0, %v1717_v0  ;;  %v6061_v0 = vld [vmem:[#allocation129_spill] sm:$0xff] }
 0x4f0   :  { %1760 = vmatprep.mubr.bf16.mxu0 %v1727_v4  ;;  %1801 = vmatprep.mubr.bf16.mxu1 %v1727_v4 }
 0x4f1   :  { %1761 = vmatmul.mubr.bf16.vlgmr.msra.gmra.mxu0 %v4711_v62  ;;  %1802 = vmatmul.mubr.bf16.vlgmr.msra.gmra.mxu1 %v4711_v62 }
 0x4f2   :  { %1811 = vmatpush1.bf16.msra.mxu0 %v5781_v49  ;;  %1852 = vmatpush1.bf16.msra.mxu1 %v5782_v57 }
 0x4f3   :  { %1842 = vmatprep.mubr.bf16.mxu0 %v1727_v4  ;;  %1883 = vmatprep.mubr.bf16.mxu1 %v1727_v4  ;;  %v6062_v4 = vld [vmem:[#allocation130_spill] sm:$0xff] }
 0x4f4   :  { %1812 = vmatprep.subr.bf16.mxu0 %v5783_v25  ;;  %1853 = vmatprep.subr.bf16.mxu1 %v5784_v55 }
 0x4f6   :  { %1813 = vmatpush1.bf16.msra.mxu0 %v5785_v39  ;;  %1854 = vmatpush1.bf16.msra.mxu1 %v5786_v34 }
 0x4f7   :  { %1814 = vmatprep.subr.bf16.mxu0 %v5787_v18  ;;  %1855 = vmatprep.subr.bf16.mxu1 %v5866_v58 }
 0x4fa   :  { %1815 = vmatpush1.bf16.msra.mxu0 %v5867_v52  ;;  %1856 = vmatpush1.bf16.msra.mxu1 %v5868_v51 }
 0x4fb   :  { %1816 = vmatprep.subr.bf16.mxu0 %v5869_v53  ;;  %1857 = vmatprep.subr.bf16.mxu1 %v5870_v5 }
 0x4fe   :  { %1817 = vmatpush1.bf16.msra.mxu0 %v5871_v60  ;;  %1858 = vmatpush1.bf16.msra.mxu1 %v5872_v44 }
 0x4ff   :  { %1818 = vmatprep.subr.bf16.mxu0 %v5873_v37  ;;  %1859 = vmatprep.subr.bf16.mxu1 %v5874_v43 }
 0x502   :  { %1819 = vmatpush1.bf16.msra.mxu0 %v5875_v36  ;;  %1860 = vmatpush1.bf16.msra.mxu1 %v5954_v12 }
 0x503   :  { %1820 = vmatprep.subr.bf16.mxu0 %v5955_v21  ;;  %1861 = vmatprep.subr.bf16.mxu1 %v5956_v9 }
 0x506   :  { %1821 = vmatpush1.bf16.msra.mxu0 %v5957_v6  ;;  %1862 = vmatpush1.bf16.msra.mxu1 %v5958_v28 }
 0x507   :  { %1822 = vmatprep.subr.bf16.mxu0 %v5959_v15  ;;  %1863 = vmatprep.subr.bf16.mxu1 %v5960_v22 }
 0x50a   :  { %1823 = vmatpush1.bf16.msra.mxu0 %v5961_v47  ;;  %1864 = vmatpush1.bf16.msra.mxu1 %v5962_v27 }
 0x50b   :  { %1824 = vmatprep.subr.bf16.mxu0 %v5963_v42  ;;  %1865 = vmatprep.subr.bf16.mxu1 %v5964_v48 }
 0x50e   :  { %1825 = vmatpush1.bf16.msra.mxu0 %v5965_v3  ;;  %1866 = vmatpush1.bf16.msra.mxu1 %v5966_v63 }
 0x50f   :  { %1826 = vmatprep.subr.bf16.mxu0 %v5889_v8  ;;  %1867 = vmatprep.subr.bf16.mxu1 %v5890_v30 }
 0x512   :  { %1827 = vmatpush2.bf16.msra.mxu0 %v5891_v33  ;;  %1868 = vmatpush2.bf16.msra.mxu1 %v5892_v29 }
 0x513   :  { %1828 = vmatprep.subr.bf16.mxu0 %v5893_v35  ;;  %1869 = vmatprep.subr.bf16.mxu1 %v5894_v46 }
 0x516   :  { %1829 = vmatpush2.bf16.msra.mxu0 %v5895_v45  ;;  %1870 = vmatpush2.bf16.msra.mxu1 %v5896_v54 }
 0x517   :  { %1830 = vmatprep.subr.bf16.mxu0 %v5897_v59  ;;  %1871 = vmatprep.subr.bf16.mxu1 %v5898_v38 }
 0x51a   :  { %1831 = vmatpush2.bf16.msra.mxu0 %v6042_v61  ;;  %1872 = vmatpush2.bf16.msra.mxu1 %v6043_v50 }
 0x51b   :  { %1832 = vmatprep.subr.bf16.mxu0 %v6044_v26  ;;  %1873 = vmatprep.subr.bf16.mxu1 %v6045_v24 }
 0x51e   :  { %1833 = vmatpush2.bf16.msra.mxu0 %v6046_v11  ;;  %1874 = vmatpush2.bf16.msra.mxu1 %v6047_v16 }
 0x51f   :  { %1834 = vmatprep.subr.bf16.mxu0 %v6048_v1  ;;  %1875 = vmatprep.subr.bf16.mxu1 %v6049_v41 }
 0x522   :  { %1835 = vmatpush2.bf16.msra.mxu0 %v6050_v40  ;;  %1876 = vmatpush2.bf16.msra.mxu1 %v6051_v32 }
 0x523   :  { %1836 = vmatprep.subr.bf16.mxu0 %v6052_v31  ;;  %1877 = vmatprep.subr.bf16.mxu1 %v6053_v10  ;;  %v6063_v31 = vld [vmem:[#allocation131_spill] sm:$0xff]  ;;  %v6064_v10 = vld [vmem:[#allocation4_spill] sm:$0xff] }
 0x526   :  { %1837 = vmatpush2.bf16.msra.mxu0 %v6054_v2  ;;  %1878 = vmatpush2.bf16.msra.mxu1 %v6055_v23  ;;  %v6065_v2 = vld [vmem:[#allocation6_spill] sm:$0xff] }
 0x527   :  { %1838 = vmatprep.subr.bf16.mxu0 %v6056_v20  ;;  %1879 = vmatprep.subr.bf16.mxu1 %v6057_v7  ;;  %v6066_v7 = vld [vmem:[#allocation5_spill] sm:$0xff]  ;;  %v6075_v20 = vld [vmem:[#allocation15_spill] sm:$0xff] }
 0x52a   :  { %1839 = vmatpush2.bf16.msra.mxu0 %v6058_v13  ;;  %1880 = vmatpush2.bf16.msra.mxu1 %v6059_v17  ;;  %v6067_v13 = vld [vmem:[#allocation7_spill] sm:$0xff]  ;;  %v6068_v17 = vld [vmem:[#allocation8_spill] sm:$0xff] }
 0x52b   :  { %1840 = vmatprep.subr.bf16.mxu0 %v6060_v56  ;;  %1881 = vmatprep.subr.bf16.mxu1 %v6061_v0  ;;  %v6069_v56 = vld [vmem:[#allocation9_spill] sm:$0xff]  ;;  %v6070_v0 = vld [vmem:[#allocation10_spill] sm:$0xff] }
 0x52e   :  { %1841 = vmatpush2.bf16.msra.mxu0 %v6062_v4  ;;  %1882 = vmatpush2.bf16.msra.mxu1 %v6063_v31  ;;  %v6071_v4 = vld [vmem:[#allocation11_spill] sm:$0xff]  ;;  %v6072_v31 = vld [vmem:[#allocation12_spill] sm:$0xff] }
 0x52f   :  { %1958 = vmatprep.subr.bf16.mxu0 %v6064_v10  ;;  %1999 = vmatprep.subr.bf16.mxu1 %v6065_v2  ;;  %v6073_v10 = vld [vmem:[#allocation13_spill] sm:$0xff]  ;;  %v6074_v2 = vld [vmem:[#allocation14_spill] sm:$0xff] }
 0x531   :  { %1843 = vmatmul.mubr.bf16.vlgmr.msra.gmra.mxu0 %v4711_v62  ;;  %1884 = vmatmul.mubr.bf16.vlgmr.msra.gmra.mxu1 %v4711_v62  ;;  %v6076_v62 = vld [vmem:[#allocation16_spill] sm:$0xff] }
 0x532   :  { %1959 = vmatpush1.bf16.msra.mxu0 %v6066_v7  ;;  %2000 = vmatpush1.bf16.msra.mxu1 %v6067_v13  ;;  %v6077_v7 = vld [vmem:[#allocation17_spill] sm:$0xff]  ;;  %v6078_v13 = vld [vmem:[#allocation18_spill] sm:$0xff] }
 0x533   :  { %1960 = vmatprep.subr.bf16.mxu0 %v6068_v17  ;;  %2001 = vmatprep.subr.bf16.mxu1 %v6069_v56  ;;  %v6079_v17 = vld [vmem:[#allocation19_spill] sm:$0xff]  ;;  %v6080_v56 = vld [vmem:[#allocation20_spill] sm:$0xff] }
 0x536   :  { %1961 = vmatpush1.bf16.msra.mxu0 %v6070_v0  ;;  %2002 = vmatpush1.bf16.msra.mxu1 %v6071_v4  ;;  %v6081_v0 = vld [vmem:[#allocation21_spill] sm:$0xff]  ;;  %v6082_v4 = vld [vmem:[#allocation22_spill] sm:$0xff] }
 0x537   :  { %1962 = vmatprep.subr.bf16.mxu0 %v6072_v31  ;;  %2003 = vmatprep.subr.bf16.mxu1 %v6073_v10  ;;  %v6083_v31 = vld [vmem:[#allocation23_spill] sm:$0xff]  ;;  %v6084_v10 = vld [vmem:[#allocation24_spill] sm:$0xff] }
 0x53a   :  { %1963 = vmatpush1.bf16.msra.mxu0 %v6074_v2  ;;  %2004 = vmatpush1.bf16.msra.mxu1 %v6075_v20  ;;  %v6085_v2 = vld [vmem:[#allocation25_spill] sm:$0xff]  ;;  %v6086_v20 = vld [vmem:[#allocation26_spill] sm:$0xff] }
 0x53b   :  { %1964 = vmatprep.subr.bf16.mxu0 %v6076_v62  ;;  %2005 = vmatprep.subr.bf16.mxu1 %v6077_v7  ;;  %v6087_v62 = vld [vmem:[#allocation27_spill] sm:$0xff]  ;;  %v6088_v7 = vld [vmem:[#allocation28_spill] sm:$0xff] }
 0x53e   :  { %1965 = vmatpush1.bf16.msra.mxu0 %v6078_v13  ;;  %2006 = vmatpush1.bf16.msra.mxu1 %v6079_v17  ;;  %v6089_v13 = vld [vmem:[#allocation29_spill] sm:$0xff]  ;;  %v6090_v17 = vld [vmem:[#allocation30_spill] sm:$0xff] }
 0x53f   :  { %1966 = vmatprep.subr.bf16.mxu0 %v6080_v56  ;;  %2007 = vmatprep.subr.bf16.mxu1 %v6081_v0  ;;  %v6091_v56 = vld [vmem:[#allocation31_spill] sm:$0xff]  ;;  %v6092_v0 = vld [vmem:[#allocation32_spill] sm:$0xff] }
 0x542   :  { %1967 = vmatpush1.bf16.msra.mxu0 %v6082_v4  ;;  %2008 = vmatpush1.bf16.msra.mxu1 %v6083_v31  ;;  %v6093_v4 = vld [vmem:[#allocation33_spill] sm:$0xff]  ;;  %v6094_v31 = vld [vmem:[#allocation34_spill] sm:$0xff] }
 0x543   :  { %1968 = vmatprep.subr.bf16.mxu0 %v6084_v10  ;;  %2009 = vmatprep.subr.bf16.mxu1 %v6085_v2  ;;  %v6095_v10 = vld [vmem:[#allocation35_spill] sm:$0xff]  ;;  %v6096_v2 = vld [vmem:[#allocation36_spill] sm:$0xff] }
 0x546   :  { %1969 = vmatpush1.bf16.msra.mxu0 %v6086_v20  ;;  %2010 = vmatpush1.bf16.msra.mxu1 %v6087_v62  ;;  %v6097_v20 = vld [vmem:[#allocation37_spill] sm:$0xff]  ;;  %v6098_v62 = vld [vmem:[#allocation38_spill] sm:$0xff] }
 0x547   :  { %1970 = vmatprep.subr.bf16.mxu0 %v6088_v7  ;;  %2011 = vmatprep.subr.bf16.mxu1 %v6089_v13  ;;  %v6099_v7 = vld [vmem:[#allocation39_spill] sm:$0xff]  ;;  %v6100_v13 = vld [vmem:[#allocation40_spill] sm:$0xff] }
 0x54a   :  { %1971 = vmatpush1.bf16.msra.mxu0 %v6090_v17  ;;  %2012 = vmatpush1.bf16.msra.mxu1 %v6091_v56  ;;  %v6101_v17 = vld [vmem:[#allocation41_spill] sm:$0xff]  ;;  %v6102_v56 = vld [vmem:[#allocation42_spill] sm:$0xff] }
 0x54b   :  { %1972 = vmatprep.subr.bf16.mxu0 %v6092_v0  ;;  %2013 = vmatprep.subr.bf16.mxu1 %v6093_v4  ;;  %v6103_v0 = vld [vmem:[#allocation43_spill] sm:$0xff]  ;;  %v6104_v4 = vld [vmem:[#allocation44_spill] sm:$0xff] }
 0x54e   :  { %1973 = vmatpush1.bf16.msra.mxu0 %v6094_v31  ;;  %2014 = vmatpush1.bf16.msra.mxu1 %v6095_v10  ;;  %v6105_v31 = vld [vmem:[#allocation45_spill] sm:$0xff]  ;;  %v6106_v10 = vld [vmem:[#allocation46_spill] sm:$0xff] }
 0x54f   :  { %1974 = vmatprep.subr.bf16.mxu0 %v6096_v2  ;;  %2015 = vmatprep.subr.bf16.mxu1 %v6097_v20  ;;  %v6107_v2 = vld [vmem:[#allocation47_spill] sm:$0xff]  ;;  %v6108_v20 = vld [vmem:[#allocation48_spill] sm:$0xff] }
 0x552   :  { %1975 = vmatpush2.bf16.msra.mxu0 %v6098_v62  ;;  %2016 = vmatpush2.bf16.msra.mxu1 %v6099_v7  ;;  %v6109_v62 = vld [vmem:[#allocation49_spill] sm:$0xff]  ;;  %v6110_v7 = vld [vmem:[#allocation50_spill] sm:$0xff] }
 0x553   :  { %1976 = vmatprep.subr.bf16.mxu0 %v6100_v13  ;;  %2017 = vmatprep.subr.bf16.mxu1 %v6101_v17  ;;  %v6111_v13 = vld [vmem:[#allocation51_spill] sm:$0xff]  ;;  %v6112_v17 = vld [vmem:[#allocation52_spill] sm:$0xff] }
 0x556   :  { %1977 = vmatpush2.bf16.msra.mxu0 %v6102_v56  ;;  %2018 = vmatpush2.bf16.msra.mxu1 %v6103_v0  ;;  %v6113_v56 = vld [vmem:[#allocation53_spill] sm:$0xff]  ;;  %v6114_v0 = vld [vmem:[#allocation54_spill] sm:$0xff] }
 0x557   :  { %1978 = vmatprep.subr.bf16.mxu0 %v6104_v4  ;;  %2019 = vmatprep.subr.bf16.mxu1 %v6105_v31  ;;  %v6115_v4 = vld [vmem:[#allocation55_spill] sm:$0xff]  ;;  %v6116_v31 = vld [vmem:[#allocation56_spill] sm:$0xff] }
 0x55a   :  { %1979 = vmatpush2.bf16.msra.mxu0 %v6106_v10  ;;  %2020 = vmatpush2.bf16.msra.mxu1 %v6107_v2  ;;  %v6117_v10 = vld [vmem:[#allocation57_spill] sm:$0xff]  ;;  %v6118_v2 = vld [vmem:[#allocation58_spill] sm:$0xff] }
 0x55b   :  { %1980 = vmatprep.subr.bf16.mxu0 %v6108_v20  ;;  %2021 = vmatprep.subr.bf16.mxu1 %v6109_v62  ;;  %v6119_v20 = vld [vmem:[#allocation59_spill] sm:$0xff]  ;;  %v6120_v62 = vld [vmem:[#allocation60_spill] sm:$0xff] }
 0x55e   :  { %1981 = vmatpush2.bf16.msra.mxu0 %v6110_v7  ;;  %2022 = vmatpush2.bf16.msra.mxu1 %v6111_v13  ;;  %v6121_v7 = vld [vmem:[#allocation61_spill] sm:$0xff]  ;;  %v6122_v13 = vld [vmem:[#allocation62_spill] sm:$0xff] }
 0x55f   :  { %1982 = vmatprep.subr.bf16.mxu0 %v6112_v17  ;;  %2023 = vmatprep.subr.bf16.mxu1 %v6113_v56  ;;  %v6123_v17 = vld [vmem:[#allocation63_spill] sm:$0xff]  ;;  %v6124_v56 = vld [vmem:[#allocation64_spill] sm:$0xff] }
 0x562   :  { %1983 = vmatpush2.bf16.msra.mxu0 %v6114_v0  ;;  %2024 = vmatpush2.bf16.msra.mxu1 %v6115_v4  ;;  %v6125_v0 = vld [vmem:[#allocation65_spill] sm:$0xff]  ;;  %v6126_v4 = vld [vmem:[#allocation66_spill] sm:$0xff] }
 0x563   :  { %1984 = vmatprep.subr.bf16.mxu0 %v6116_v31  ;;  %2025 = vmatprep.subr.bf16.mxu1 %v6117_v10  ;;  %v6127_v31 = vld [vmem:[#allocation67_spill] sm:$0xff]  ;;  %v6128_v10 = vld [vmem:[#allocation68_spill] sm:$0xff] }
 0x566   :  { %1985 = vmatpush2.bf16.msra.mxu0 %v6118_v2  ;;  %2026 = vmatpush2.bf16.msra.mxu1 %v6119_v20  ;;  %v6129_v2 = vld [vmem:[#allocation69_spill] sm:$0xff] }
 0x567   :  { %1986 = vmatprep.subr.bf16.mxu0 %v6120_v62  ;;  %2027 = vmatprep.subr.bf16.mxu1 %v6121_v7 }
 0x56a   :  { %1987 = vmatpush2.bf16.msra.mxu0 %v6122_v13  ;;  %2028 = vmatpush2.bf16.msra.mxu1 %v6123_v17 }
 0x56b   :  { %1988 = vmatprep.subr.bf16.mxu0 %v6124_v56  ;;  %2029 = vmatprep.subr.bf16.mxu1 %v6125_v0  ;;  %v1718_v0 = vld [vmem:[%s5358_s0 + $0x100] sm:$0xff] }
 0x56e   :  { %1989 = vmatpush2.bf16.msra.mxu0 %v6126_v4  ;;  %2030 = vmatpush2.bf16.msra.mxu1 %v6127_v31  ;;  %v1720_v31 = vld [vmem:[%s5358_s0 + $0x110] sm:$0xff] }
 0x56f   :  { %2040 = vmatprep.subr.bf16.mxu0 %v6128_v10  ;;  %2081 = vmatprep.subr.bf16.mxu1 %v6129_v2  ;;  %v1719_v2 = vld [vmem:[%s5358_s0 + $0x108] sm:$0xff] }
 0x5b1   :  { %v1762_v20 = vpop.f32.mrf.mxu0  ;;  %v1803_v62 = vpop.f32.mrf.mxu1 }
 0x5b2   :  { %v1892_v10 = vadd.f32 %v1762_v20, %v1718_v0  ;;  %v1894_v4 = vadd.f32 %v1803_v62, %v1720_v31 }
 0x5b3   :  { %v1764_v23 = vpop.f32.mrf.mxu0  ;;  %v1805_v7 = vpop.f32.mrf.mxu1 }
 0x5b4   :  { %v2981_v56 = vmul.f32 -1.442695, %v1894_v4 }
 0x5b5   :  { %v1766_v32 = vpop.f32.mrf.mxu0  ;;  %v1807_v13 = vpop.f32.mrf.mxu1 }
 0x5b6   :  { %v1721_v32 = vld [vmem:[%s5358_s0 + $0x118] sm:$0xff]  ;;  %v2979_v13 = vmul.f32 -1.442695, %v1892_v10  ;;  %v1724_v10 = vld [vmem:[%s5358_s0 + $0x130] sm:$0xff] }
 0x5b7   :  { %v1767_v40 = vpop.f32.mrf.mxu0  ;;  %v1808_v17 = vpop.f32.mrf.mxu1 }
 0x5b8   :  { %v1893_v40 = vadd.f32 %v1764_v23, %v1719_v2  ;;  %v1895_v17 = vadd.f32 %v1805_v7, %v1721_v32  ;;  %3187 = vpow2.f32 %v2979_v13  ;;  %v1722_v2 = vld [vmem:[%s5358_s0 + $0x120] sm:$0xff] }
 0x5b9   :  { %3189 = vpow2.f32 %v2981_v56 }
 0x5ba   :  { %v2980_v41 = vmul.f32 -1.442695, %v1893_v40  ;;  %v2982_v1 = vmul.f32 -1.442695, %v1895_v17 }
 0x5bc   :  { %3191 = vpow2.f32 %v2980_v41 }
 0x5bd   :  { %3193 = vpow2.f32 %v2982_v1  ;;  %v1723_v1 = vld [vmem:[%s5358_s0 + $0x128] sm:$0xff] }
 0x5c5   :  { %v3188_v16 = vpop.eup %3187 }
 0x5c6   :  { %v3190_v11 = vpop.eup %3189  ;;  %v1918_v26 = vadd.f32 1.0, %v3188_v16 }
 0x5c7   :  { %v1920_v31 = vadd.f32 1.0, %v3190_v11 }
 0x5c8   :  { %3195 = vrcp.f32 %v1918_v26 }
 0x5c9   :  { %v3192_v24 = vpop.eup %3191  ;;  %3197 = vrcp.f32 %v1920_v31 }
 0x5ca   :  { %v3194_v20 = vpop.eup %3193  ;;  %v1919_v0 = vadd.f32 1.0, %v3192_v24  ;;  %v1725_v24 = vld [vmem:[%s5358_s0 + $0x138] sm:$0xff] }
 0x5cb   :  { %v1921_v23 = vadd.f32 1.0, %v3194_v20 }
 0x5cc   :  { %3199 = vrcp.f32 %v1919_v0 }
 0x5d5   :  { %v3196_v61 = vpop.eup %3195 }
 0x5d6   :  { %v3198_v31 = vpop.eup %3197 }
 0x5f1   :  { %v1844_v7 = vpop.f32.mrf.mxu0  ;;  %v1885_v41 = vpop.f32.mrf.mxu1 }
 0x5f2   :  { %v1896_v11 = vadd.f32 %v1844_v7, %v1722_v2  ;;  %v1898_v16 = vadd.f32 %v1885_v41, %v1724_v10  ;;  %v3200_v2 = vpop.eup %3199  ;;  %v1938_v7 = vmul.f32 %v3198_v31, %v4704_v14  ;;  %v6131_v31 = vld [vmem:[#allocation111_spill] sm:$0xff] }
 0x5f3   :  { %v1846_v56 = vpop.f32.mrf.mxu0  ;;  %v1887_v4 = vpop.f32.mrf.mxu1 }
 0x5f4   :  { %v2983_v62 = vmul.f32 -1.442695, %v1896_v11  ;;  %3201 = vtanh.f32 %v1898_v16  ;;  %v1897_v26 = vadd.f32 %v1846_v56, %v1723_v1  ;;  %v1899_v32 = vadd.f32 %v1887_v4, %v1725_v24 }
 0x5f5   :  { %3203 = vrcp.f32 %v1921_v23  ;;  %v1848_v40 = vpop.f32.mrf.mxu0  ;;  %v1889_v13 = vpop.f32.mrf.mxu1 }
 0x5f6   :  { %3205 = vpow2.f32 %v2983_v62  ;;  %v2984_v17 = vmul.f32 -1.442695, %v1897_v26 }
 0x5f7   :  { %3207 = vtanh.f32 %v1899_v32  ;;  %v1849_v20 = vpop.f32.mrf.mxu0  ;;  %v1890_v50 = vpop.f32.mrf.mxu1 }
 0x5f8   :  { %3209 = vpow2.f32 %v2984_v17 }
 0x601   :  { %v3202_v10 = vpop.eup %3201 }
 0x602   :  { %v3204_v0 = vpop.eup %3203  ;;  %v1940_v41 = vmul.f32 %v3202_v10, %v3196_v61  ;;  %v6133_v10 = vld [vmem:[#allocation113_spill] sm:$0xff] }
 0x603   :  { %v3206_v11 = vpop.eup %3205  ;;  %v1939_v56 = vmul.f32 %v3204_v0, %v4708_v19  ;;  %v6130_v19 = vld [vmem:[#allocation110_spill] sm:$0xff] }
 0x604   :  { %v3208_v1 = vpop.eup %3207  ;;  %v1922_v24 = vadd.f32 1.0, %v3206_v11  ;;  %v4870_v23 = vadd.f32 %v1940_v41, %v1938_v7  ;;  %v6134_v0 = vld [vmem:[#allocation114_spill] sm:$0xff]  ;;  %v6135_v7 = vld [vmem:[#allocation115_spill] sm:$0xff]  ;;  %v6136_v41 = vld [vmem:[#allocation116_spill] sm:$0xff] }
 0x605   :  { %v3210_v16 = vpop.eup %3209  ;;  %v1941_v4 = vmul.f32 %v3208_v1, %v3200_v2  ;;  %v6132_v2 = vld [vmem:[#allocation112_spill] sm:$0xff]  ;;  %v6137_v11 = vld [vmem:[#allocation117_spill] sm:$0xff]  ;;  %v6138_v1 = vld [vmem:[#allocation118_spill] sm:$0xff] }
 0x606   :  { %3211 = vrcp.f32 %v1922_v24  ;;  %v1923_v50 = vadd.f32 1.0, %v3210_v16  ;;  %v6139_v24 = vld [vmem:[#allocation119_spill] sm:$0xff]  ;;  %v6140_v16 = vld [vmem:[#allocation120_spill] sm:$0xff] }
 0x607   :  { %3213 = vtanh.f32 %v4870_v23  ;;  %v4874_v62 = vadd.f32 %v1941_v4, %v1939_v56  ;;  %v6141_v56 = vld [vmem:[#allocation121_spill] sm:$0xff]  ;;  %v6142_v4 = vld [vmem:[#allocation122_spill] sm:$0xff] }
 0x608   :  { %3215 = vrcp.f32 %v1923_v50  ;;  %v6143_v50 = vld [vmem:[#allocation123_spill] sm:$0xff] }
 0x609   :  { %3217 = vtanh.f32 %v4874_v62 }
 0x613   :  { %v3212_v14 = vpop.eup %3211 }
 0x614   :  { %v3214_v61 = vpop.eup %3213 }
 0x615   :  { %v3216_v26 = vpop.eup %3215  ;;  %v1946_v40 = vmul.f32 %v3214_v61, %v3212_v14  ;;  %v6144_v14 = vld [vmem:[#allocation124_spill] sm:$0xff]  ;;  %v6145_v61 = vld [vmem:[#allocation125_spill] sm:$0xff] }
 0x616   :  { %v3218_v32 = vpop.eup %3217 }
 0x617   :  { %v1947_v13 = vmul.f32 %v3218_v32, %v3216_v26  ;;  %v4877_v20 = vpack.c.bf16 %v1946_v40, %v1946_v40  ;;  %v6146_v26 = vld [vmem:[#allocation126_spill] sm:$0xff]  ;;  %v6147_v32 = vld [vmem:[#allocation127_spill] sm:$0xff]  ;;  %v6148_v40 = vld [vmem:[#allocation128_spill] sm:$0xff] }
 0x619   :  { %v1957_v17 = vpack.c.bf16 %v1947_v13, %v1947_v13  ;;  %v6149_v13 = vld [vmem:[#allocation129_spill] sm:$0xff] }
 0x61b   :  { %1990 = vmatprep.mubr.bf16.mxu0 %v1957_v17  ;;  %2031 = vmatprep.mubr.bf16.mxu1 %v1957_v17 }
 0x61c   :  { %1991 = vmatmul.mubr.bf16.vlgmr.msra.gmra.mxu0 %v4877_v20  ;;  %2032 = vmatmul.mubr.bf16.vlgmr.msra.gmra.mxu1 %v4877_v20 }
 0x61d   :  { %2041 = vmatpush1.bf16.msra.mxu0 %v5781_v49  ;;  %2082 = vmatpush1.bf16.msra.mxu1 %v5782_v57 }
 0x61e   :  { %2072 = vmatprep.mubr.bf16.mxu0 %v1957_v17  ;;  %2113 = vmatprep.mubr.bf16.mxu1 %v1957_v17  ;;  %v6150_v17 = vld [vmem:[#allocation130_spill] sm:$0xff] }
 0x61f   :  { %2042 = vmatprep.subr.bf16.mxu0 %v5783_v25  ;;  %2083 = vmatprep.subr.bf16.mxu1 %v5784_v55 }
 0x621   :  { %2043 = vmatpush1.bf16.msra.mxu0 %v5785_v39  ;;  %2084 = vmatpush1.bf16.msra.mxu1 %v5786_v34 }
 0x622   :  { %2044 = vmatprep.subr.bf16.mxu0 %v5787_v18  ;;  %2085 = vmatprep.subr.bf16.mxu1 %v5866_v58 }
 0x625   :  { %2045 = vmatpush1.bf16.msra.mxu0 %v5867_v52  ;;  %2086 = vmatpush1.bf16.msra.mxu1 %v5868_v51 }
 0x626   :  { %2046 = vmatprep.subr.bf16.mxu0 %v5869_v53  ;;  %2087 = vmatprep.subr.bf16.mxu1 %v5870_v5 }
 0x629   :  { %2047 = vmatpush1.bf16.msra.mxu0 %v5871_v60  ;;  %2088 = vmatpush1.bf16.msra.mxu1 %v5872_v44 }
 0x62a   :  { %2048 = vmatprep.subr.bf16.mxu0 %v5873_v37  ;;  %2089 = vmatprep.subr.bf16.mxu1 %v5874_v43 }
 0x62d   :  { %2049 = vmatpush1.bf16.msra.mxu0 %v5875_v36  ;;  %2090 = vmatpush1.bf16.msra.mxu1 %v5954_v12 }
 0x62e   :  { %2050 = vmatprep.subr.bf16.mxu0 %v5955_v21  ;;  %2091 = vmatprep.subr.bf16.mxu1 %v5956_v9 }
 0x631   :  { %2051 = vmatpush1.bf16.msra.mxu0 %v5957_v6  ;;  %2092 = vmatpush1.bf16.msra.mxu1 %v5958_v28 }
 0x632   :  { %2052 = vmatprep.subr.bf16.mxu0 %v5959_v15  ;;  %2093 = vmatprep.subr.bf16.mxu1 %v5960_v22 }
 0x635   :  { %2053 = vmatpush1.bf16.msra.mxu0 %v5961_v47  ;;  %2094 = vmatpush1.bf16.msra.mxu1 %v5962_v27 }
 0x636   :  { %2054 = vmatprep.subr.bf16.mxu0 %v5963_v42  ;;  %2095 = vmatprep.subr.bf16.mxu1 %v5964_v48 }
 0x639   :  { %2055 = vmatpush1.bf16.msra.mxu0 %v5965_v3  ;;  %2096 = vmatpush1.bf16.msra.mxu1 %v5966_v63 }
 0x63a   :  { %2056 = vmatprep.subr.bf16.mxu0 %v5889_v8  ;;  %2097 = vmatprep.subr.bf16.mxu1 %v5890_v30 }
 0x63d   :  { %2057 = vmatpush2.bf16.msra.mxu0 %v5891_v33  ;;  %2098 = vmatpush2.bf16.msra.mxu1 %v5892_v29 }
 0x63e   :  { %2058 = vmatprep.subr.bf16.mxu0 %v5893_v35  ;;  %2099 = vmatprep.subr.bf16.mxu1 %v5894_v46 }
 0x641   :  { %2059 = vmatpush2.bf16.msra.mxu0 %v5895_v45  ;;  %2100 = vmatpush2.bf16.msra.mxu1 %v5896_v54 }
 0x642   :  { %2060 = vmatprep.subr.bf16.mxu0 %v5897_v59  ;;  %2101 = vmatprep.subr.bf16.mxu1 %v5898_v38 }
 0x645   :  { %2061 = vmatpush2.bf16.msra.mxu0 %v6130_v19  ;;  %2102 = vmatpush2.bf16.msra.mxu1 %v6131_v31 }
 0x646   :  { %2062 = vmatprep.subr.bf16.mxu0 %v6132_v2  ;;  %2103 = vmatprep.subr.bf16.mxu1 %v6133_v10 }
 0x649   :  { %2063 = vmatpush2.bf16.msra.mxu0 %v6134_v0  ;;  %2104 = vmatpush2.bf16.msra.mxu1 %v6135_v7 }
 0x64a   :  { %2064 = vmatprep.subr.bf16.mxu0 %v6136_v41  ;;  %2105 = vmatprep.subr.bf16.mxu1 %v6137_v11 }
 0x64d   :  { %2065 = vmatpush2.bf16.msra.mxu0 %v6138_v1  ;;  %2106 = vmatpush2.bf16.msra.mxu1 %v6139_v24 }
 0x64e   :  { %2066 = vmatprep.subr.bf16.mxu0 %v6140_v16  ;;  %2107 = vmatprep.subr.bf16.mxu1 %v6141_v56  ;;  %v6151_v16 = vld [vmem:[#allocation131_spill] sm:$0xff]  ;;  %v6152_v56 = vld [vmem:[#allocation4_spill] sm:$0xff] }
 0x651   :  { %2067 = vmatpush2.bf16.msra.mxu0 %v6142_v4  ;;  %2108 = vmatpush2.bf16.msra.mxu1 %v6143_v50  ;;  %v6153_v4 = vld [vmem:[#allocation6_spill] sm:$0xff] }
 0x652   :  { %2068 = vmatprep.subr.bf16.mxu0 %v6144_v14  ;;  %2109 = vmatprep.subr.bf16.mxu1 %v6145_v61  ;;  %v6154_v61 = vld [vmem:[#allocation5_spill] sm:$0xff]  ;;  %v6163_v14 = vld [vmem:[#allocation15_spill] sm:$0xff] }
 0x655   :  { %2069 = vmatpush2.bf16.msra.mxu0 %v6146_v26  ;;  %2110 = vmatpush2.bf16.msra.mxu1 %v6147_v32  ;;  %v6155_v26 = vld [vmem:[#allocation7_spill] sm:$0xff]  ;;  %v6156_v32 = vld [vmem:[#allocation8_spill] sm:$0xff] }
 0x656   :  { %2070 = vmatprep.subr.bf16.mxu0 %v6148_v40  ;;  %2111 = vmatprep.subr.bf16.mxu1 %v6149_v13  ;;  %v6157_v40 = vld [vmem:[#allocation9_spill] sm:$0xff]  ;;  %v6158_v13 = vld [vmem:[#allocation10_spill] sm:$0xff] }
 0x659   :  { %2071 = vmatpush2.bf16.msra.mxu0 %v6150_v17  ;;  %2112 = vmatpush2.bf16.msra.mxu1 %v6151_v16  ;;  %v6159_v17 = vld [vmem:[#allocation11_spill] sm:$0xff]  ;;  %v6160_v16 = vld [vmem:[#allocation12_spill] sm:$0xff] }
 0x65a   :  { %2188 = vmatprep.subr.bf16.mxu0 %v6152_v56  ;;  %2229 = vmatprep.subr.bf16.mxu1 %v6153_v4  ;;  %v6161_v56 = vld [vmem:[#allocation13_spill] sm:$0xff]  ;;  %v6162_v4 = vld [vmem:[#allocation14_spill] sm:$0xff] }
 0x65c   :  { %2073 = vmatmul.mubr.bf16.vlgmr.msra.gmra.mxu0 %v4877_v20  ;;  %2114 = vmatmul.mubr.bf16.vlgmr.msra.gmra.mxu1 %v4877_v20  ;;  %v6164_v20 = vld [vmem:[#allocation16_spill] sm:$0xff] }
 0x65d   :  { %2189 = vmatpush1.bf16.msra.mxu0 %v6154_v61  ;;  %2230 = vmatpush1.bf16.msra.mxu1 %v6155_v26  ;;  %v6165_v61 = vld [vmem:[#allocation17_spill] sm:$0xff]  ;;  %v6166_v26 = vld [vmem:[#allocation18_spill] sm:$0xff] }
 0x65e   :  { %2190 = vmatprep.subr.bf16.mxu0 %v6156_v32  ;;  %2231 = vmatprep.subr.bf16.mxu1 %v6157_v40  ;;  %v6167_v32 = vld [vmem:[#allocation19_spill] sm:$0xff]  ;;  %v6168_v40 = vld [vmem:[#allocation20_spill] sm:$0xff] }
 0x661   :  { %2191 = vmatpush1.bf16.msra.mxu0 %v6158_v13  ;;  %2232 = vmatpush1.bf16.msra.mxu1 %v6159_v17  ;;  %v6169_v13 = vld [vmem:[#allocation21_spill] sm:$0xff]  ;;  %v6170_v17 = vld [vmem:[#allocation22_spill] sm:$0xff] }
 0x662   :  { %2192 = vmatprep.subr.bf16.mxu0 %v6160_v16  ;;  %2233 = vmatprep.subr.bf16.mxu1 %v6161_v56  ;;  %v6171_v16 = vld [vmem:[#allocation23_spill] sm:$0xff]  ;;  %v6172_v56 = vld [vmem:[#allocation24_spill] sm:$0xff] }
 0x665   :  { %2193 = vmatpush1.bf16.msra.mxu0 %v6162_v4  ;;  %2234 = vmatpush1.bf16.msra.mxu1 %v6163_v14  ;;  %v6173_v4 = vld [vmem:[#allocation25_spill] sm:$0xff]  ;;  %v6174_v14 = vld [vmem:[#allocation26_spill] sm:$0xff] }
 0x666   :  { %2194 = vmatprep.subr.bf16.mxu0 %v6164_v20  ;;  %2235 = vmatprep.subr.bf16.mxu1 %v6165_v61  ;;  %v6175_v20 = vld [vmem:[#allocation27_spill] sm:$0xff]  ;;  %v6176_v61 = vld [vmem:[#allocation28_spill] sm:$0xff] }
 0x669   :  { %2195 = vmatpush1.bf16.msra.mxu0 %v6166_v26  ;;  %2236 = vmatpush1.bf16.msra.mxu1 %v6167_v32  ;;  %v6177_v26 = vld [vmem:[#allocation29_spill] sm:$0xff]  ;;  %v6178_v32 = vld [vmem:[#allocation30_spill] sm:$0xff] }
 0x66a   :  { %2196 = vmatprep.subr.bf16.mxu0 %v6168_v40  ;;  %2237 = vmatprep.subr.bf16.mxu1 %v6169_v13  ;;  %v6179_v40 = vld [vmem:[#allocation31_spill] sm:$0xff]  ;;  %v6180_v13 = vld [vmem:[#allocation32_spill] sm:$0xff] }
 0x66d   :  { %2197 = vmatpush1.bf16.msra.mxu0 %v6170_v17  ;;  %2238 = vmatpush1.bf16.msra.mxu1 %v6171_v16  ;;  %v6181_v17 = vld [vmem:[#allocation33_spill] sm:$0xff]  ;;  %v6182_v16 = vld [vmem:[#allocation34_spill] sm:$0xff] }
 0x66e   :  { %2198 = vmatprep.subr.bf16.mxu0 %v6172_v56  ;;  %2239 = vmatprep.subr.bf16.mxu1 %v6173_v4  ;;  %v6183_v56 = vld [vmem:[#allocation35_spill] sm:$0xff]  ;;  %v6184_v4 = vld [vmem:[#allocation36_spill] sm:$0xff] }
 0x671   :  { %2199 = vmatpush1.bf16.msra.mxu0 %v6174_v14  ;;  %2240 = vmatpush1.bf16.msra.mxu1 %v6175_v20  ;;  %v6185_v14 = vld [vmem:[#allocation37_spill] sm:$0xff]  ;;  %v6186_v20 = vld [vmem:[#allocation38_spill] sm:$0xff] }
 0x672   :  { %2200 = vmatprep.subr.bf16.mxu0 %v6176_v61  ;;  %2241 = vmatprep.subr.bf16.mxu1 %v6177_v26  ;;  %v6187_v61 = vld [vmem:[#allocation39_spill] sm:$0xff]  ;;  %v6188_v26 = vld [vmem:[#allocation40_spill] sm:$0xff] }
 0x675   :  { %2201 = vmatpush1.bf16.msra.mxu0 %v6178_v32  ;;  %2242 = vmatpush1.bf16.msra.mxu1 %v6179_v40  ;;  %v6189_v32 = vld [vmem:[#allocation41_spill] sm:$0xff]  ;;  %v6190_v40 = vld [vmem:[#allocation42_spill] sm:$0xff] }
 0x676   :  { %2202 = vmatprep.subr.bf16.mxu0 %v6180_v13  ;;  %2243 = vmatprep.subr.bf16.mxu1 %v6181_v17  ;;  %v6191_v13 = vld [vmem:[#allocation43_spill] sm:$0xff]  ;;  %v6192_v17 = vld [vmem:[#allocation44_spill] sm:$0xff] }
 0x679   :  { %2203 = vmatpush1.bf16.msra.mxu0 %v6182_v16  ;;  %2244 = vmatpush1.bf16.msra.mxu1 %v6183_v56  ;;  %v6193_v16 = vld [vmem:[#allocation45_spill] sm:$0xff]  ;;  %v6194_v56 = vld [vmem:[#allocation46_spill] sm:$0xff] }
 0x67a   :  { %2204 = vmatprep.subr.bf16.mxu0 %v6184_v4  ;;  %2245 = vmatprep.subr.bf16.mxu1 %v6185_v14  ;;  %v6195_v4 = vld [vmem:[#allocation47_spill] sm:$0xff]  ;;  %v6196_v14 = vld [vmem:[#allocation48_spill] sm:$0xff] }
 0x67d   :  { %2205 = vmatpush2.bf16.msra.mxu0 %v6186_v20  ;;  %2246 = vmatpush2.bf16.msra.mxu1 %v6187_v61  ;;  %v6197_v20 = vld [vmem:[#allocation49_spill] sm:$0xff]  ;;  %v6198_v61 = vld [vmem:[#allocation50_spill] sm:$0xff] }
 0x67e   :  { %2206 = vmatprep.subr.bf16.mxu0 %v6188_v26  ;;  %2247 = vmatprep.subr.bf16.mxu1 %v6189_v32  ;;  %v6199_v26 = vld [vmem:[#allocation51_spill] sm:$0xff]  ;;  %v6200_v32 = vld [vmem:[#allocation52_spill] sm:$0xff] }
 0x681   :  { %2207 = vmatpush2.bf16.msra.mxu0 %v6190_v40  ;;  %2248 = vmatpush2.bf16.msra.mxu1 %v6191_v13  ;;  %v6201_v40 = vld [vmem:[#allocation53_spill] sm:$0xff]  ;;  %v6202_v13 = vld [vmem:[#allocation54_spill] sm:$0xff] }
 0x682   :  { %2208 = vmatprep.subr.bf16.mxu0 %v6192_v17  ;;  %2249 = vmatprep.subr.bf16.mxu1 %v6193_v16  ;;  %v6203_v17 = vld [vmem:[#allocation55_spill] sm:$0xff]  ;;  %v6204_v16 = vld [vmem:[#allocation56_spill] sm:$0xff] }
 0x685   :  { %2209 = vmatpush2.bf16.msra.mxu0 %v6194_v56  ;;  %2250 = vmatpush2.bf16.msra.mxu1 %v6195_v4  ;;  %v6205_v56 = vld [vmem:[#allocation57_spill] sm:$0xff]  ;;  %v6206_v4 = vld [vmem:[#allocation58_spill] sm:$0xff] }
 0x686   :  { %2210 = vmatprep.subr.bf16.mxu0 %v6196_v14  ;;  %2251 = vmatprep.subr.bf16.mxu1 %v6197_v20  ;;  %v6207_v14 = vld [vmem:[#allocation59_spill] sm:$0xff]  ;;  %v6208_v20 = vld [vmem:[#allocation60_spill] sm:$0xff] }
 0x689   :  { %2211 = vmatpush2.bf16.msra.mxu0 %v6198_v61  ;;  %2252 = vmatpush2.bf16.msra.mxu1 %v6199_v26  ;;  %v6209_v61 = vld [vmem:[#allocation61_spill] sm:$0xff]  ;;  %v6210_v26 = vld [vmem:[#allocation62_spill] sm:$0xff] }
 0x68a   :  { %2212 = vmatprep.subr.bf16.mxu0 %v6200_v32  ;;  %2253 = vmatprep.subr.bf16.mxu1 %v6201_v40  ;;  %v6211_v32 = vld [vmem:[#allocation63_spill] sm:$0xff]  ;;  %v6212_v40 = vld [vmem:[#allocation64_spill] sm:$0xff] }
 0x68d   :  { %2213 = vmatpush2.bf16.msra.mxu0 %v6202_v13  ;;  %2254 = vmatpush2.bf16.msra.mxu1 %v6203_v17  ;;  %v6213_v13 = vld [vmem:[#allocation65_spill] sm:$0xff]  ;;  %v6214_v17 = vld [vmem:[#allocation66_spill] sm:$0xff] }
 0x68e   :  { %2214 = vmatprep.subr.bf16.mxu0 %v6204_v16  ;;  %2255 = vmatprep.subr.bf16.mxu1 %v6205_v56  ;;  %v6215_v16 = vld [vmem:[#allocation67_spill] sm:$0xff]  ;;  %v6216_v56 = vld [vmem:[#allocation68_spill] sm:$0xff] }
 0x691   :  { %2215 = vmatpush2.bf16.msra.mxu0 %v6206_v4  ;;  %2256 = vmatpush2.bf16.msra.mxu1 %v6207_v14  ;;  %v6217_v4 = vld [vmem:[#allocation69_spill] sm:$0xff] }
 0x692   :  { %2216 = vmatprep.subr.bf16.mxu0 %v6208_v20  ;;  %2257 = vmatprep.subr.bf16.mxu1 %v6209_v61 }
 0x695   :  { %2217 = vmatpush2.bf16.msra.mxu0 %v6210_v26  ;;  %2258 = vmatpush2.bf16.msra.mxu1 %v6211_v32 }
 0x696   :  { %2218 = vmatprep.subr.bf16.mxu0 %v6212_v40  ;;  %2259 = vmatprep.subr.bf16.mxu1 %v6213_v13  ;;  %v1948_v13 = vld [vmem:[%s5358_s0 + $0x140] sm:$0xff] }
 0x699   :  { %2219 = vmatpush2.bf16.msra.mxu0 %v6214_v17  ;;  %2260 = vmatpush2.bf16.msra.mxu1 %v6215_v16  ;;  %v1950_v16 = vld [vmem:[%s5358_s0 + $0x150] sm:$0xff] }
 0x69a   :  { %2270 = vmatprep.subr.bf16.mxu0 %v6216_v56  ;;  %2311 = vmatprep.subr.bf16.mxu1 %v6217_v4  ;;  %v1949_v4 = vld [vmem:[%s5358_s0 + $0x148] sm:$0xff] }
 0x6dc   :  { %v1992_v14 = vpop.f32.mrf.mxu0  ;;  %v2033_v20 = vpop.f32.mrf.mxu1 }
 0x6dd   :  { %v2122_v56 = vadd.f32 %v1992_v14, %v1948_v13  ;;  %v2124_v17 = vadd.f32 %v2033_v20, %v1950_v16 }
 0x6de   :  { %v1994_v50 = vpop.f32.mrf.mxu0  ;;  %v2035_v61 = vpop.f32.mrf.mxu1 }
 0x6df   :  { %v2987_v40 = vmul.f32 -1.442695, %v2124_v17 }
 0x6e0   :  { %v1996_v24 = vpop.f32.mrf.mxu0  ;;  %v2037_v26 = vpop.f32.mrf.mxu1 }
 0x6e1   :  { %v1951_v24 = vld [vmem:[%s5358_s0 + $0x158] sm:$0xff]  ;;  %v2985_v26 = vmul.f32 -1.442695, %v2122_v56  ;;  %v1954_v56 = vld [vmem:[%s5358_s0 + $0x170] sm:$0xff] }
 0x6e2   :  { %v1997_v1 = vpop.f32.mrf.mxu0  ;;  %v2038_v32 = vpop.f32.mrf.mxu1 }
 0x6e3   :  { %v2123_v1 = vadd.f32 %v1994_v50, %v1949_v4  ;;  %v2125_v32 = vadd.f32 %v2035_v61, %v1951_v24  ;;  %3219 = vpow2.f32 %v2985_v26  ;;  %v1952_v4 = vld [vmem:[%s5358_s0 + $0x160] sm:$0xff] }
 0x6e4   :  { %3221 = vpow2.f32 %v2987_v40 }
 0x6e5   :  { %v2986_v11 = vmul.f32 -1.442695, %v2123_v1  ;;  %v2988_v41 = vmul.f32 -1.442695, %v2125_v32 }
 0x6e7   :  { %3223 = vpow2.f32 %v2986_v11 }
 0x6e8   :  { %3225 = vpow2.f32 %v2988_v41  ;;  %v1953_v41 = vld [vmem:[%s5358_s0 + $0x168] sm:$0xff] }
 0x6f0   :  { %v3220_v7 = vpop.eup %3219 }
 0x6f1   :  { %v3222_v0 = vpop.eup %3221  ;;  %v2148_v2 = vadd.f32 1.0, %v3220_v7 }
 0x6f2   :  { %v2150_v16 = vadd.f32 1.0, %v3222_v0 }
 0x6f3   :  { %3227 = vrcp.f32 %v2148_v2 }
 0x6f4   :  { %v3224_v10 = vpop.eup %3223  ;;  %3229 = vrcp.f32 %v2150_v16 }
 0x6f5   :  { %v3226_v14 = vpop.eup %3225  ;;  %v2149_v13 = vadd.f32 1.0, %v3224_v10  ;;  %v1955_v10 = vld [vmem:[%s5358_s0 + $0x178] sm:$0xff] }
 0x6f6   :  { %v2151_v50 = vadd.f32 1.0, %v3226_v14 }
 0x6f7   :  { %3231 = vrcp.f32 %v2149_v13 }
 0x700   :  { %v3228_v19 = vpop.eup %3227 }
 0x701   :  { %v3230_v16 = vpop.eup %3229 }
 0x71c   :  { %v2074_v61 = vpop.f32.mrf.mxu0  ;;  %v2115_v11 = vpop.f32.mrf.mxu1 }
 0x71d   :  { %v2126_v0 = vadd.f32 %v2074_v61, %v1952_v4  ;;  %v2128_v7 = vadd.f32 %v2115_v11, %v1954_v56  ;;  %v3232_v4 = vpop.eup %3231  ;;  %v2168_v61 = vmul.f32 %v3230_v16, %v4870_v23  ;;  %v6219_v16 = vld [vmem:[#allocation111_spill] sm:$0xff] }
 0x71e   :  { %v2076_v40 = vpop.f32.mrf.mxu0  ;;  %v2117_v17 = vpop.f32.mrf.mxu1 }
 0x71f   :  { %v2989_v20 = vmul.f32 -1.442695, %v2126_v0  ;;  %3233 = vtanh.f32 %v2128_v7  ;;  %v2127_v2 = vadd.f32 %v2076_v40, %v1953_v41  ;;  %v2129_v24 = vadd.f32 %v2117_v17, %v1955_v10 }
 0x720   :  { %3235 = vrcp.f32 %v2151_v50  ;;  %v2078_v1 = vpop.f32.mrf.mxu0  ;;  %v2119_v26 = vpop.f32.mrf.mxu1 }
 0x721   :  { %3237 = vpow2.f32 %v2989_v20  ;;  %v2990_v32 = vmul.f32 -1.442695, %v2127_v2 }
 0x722   :  { %3239 = vtanh.f32 %v2129_v24  ;;  %v2079_v14 = vpop.f32.mrf.mxu0  ;;  %v2120_v31 = vpop.f32.mrf.mxu1 }
 0x723   :  { %3241 = vpow2.f32 %v2990_v32 }
 0x72c   :  { %v3234_v56 = vpop.eup %3233 }
 0x72d   :  { %v3236_v13 = vpop.eup %3235  ;;  %v2170_v11 = vmul.f32 %v3234_v56, %v3228_v19  ;;  %v6221_v56 = vld [vmem:[#allocation113_spill] sm:$0xff] }
 0x72e   :  { %v3238_v0 = vpop.eup %3237  ;;  %v2169_v40 = vmul.f32 %v3236_v13, %v4874_v62  ;;  %v6218_v62 = vld [vmem:[#allocation110_spill] sm:$0xff] }
 0x72f   :  { %v3240_v41 = vpop.eup %3239  ;;  %v2152_v10 = vadd.f32 1.0, %v3238_v0  ;;  %v5036_v50 = vadd.f32 %v2170_v11, %v2168_v61  ;;  %v6222_v13 = vld [vmem:[#allocation114_spill] sm:$0xff]  ;;  %v6223_v61 = vld [vmem:[#allocation115_spill] sm:$0xff]  ;;  %v6224_v11 = vld [vmem:[#allocation116_spill] sm:$0xff] }
 0x730   :  { %v3242_v7 = vpop.eup %3241  ;;  %v2171_v17 = vmul.f32 %v3240_v41, %v3232_v4  ;;  %v6220_v4 = vld [vmem:[#allocation112_spill] sm:$0xff]  ;;  %v6225_v0 = vld [vmem:[#allocation117_spill] sm:$0xff]  ;;  %v6226_v41 = vld [vmem:[#allocation118_spill] sm:$0xff] }
 0x731   :  { %3243 = vrcp.f32 %v2152_v10  ;;  %v2153_v31 = vadd.f32 1.0, %v3242_v7  ;;  %v6227_v10 = vld [vmem:[#allocation119_spill] sm:$0xff]  ;;  %v6228_v7 = vld [vmem:[#allocation120_spill] sm:$0xff] }
 0x732   :  { %3245 = vtanh.f32 %v5036_v50  ;;  %v5040_v20 = vadd.f32 %v2171_v17, %v2169_v40  ;;  %v6229_v40 = vld [vmem:[#allocation121_spill] sm:$0xff]  ;;  %v6230_v17 = vld [vmem:[#allocation122_spill] sm:$0xff] }
 0x733   :  { %3247 = vrcp.f32 %v2153_v31  ;;  %v6231_v31 = vld [vmem:[#allocation123_spill] sm:$0xff] }
 0x734   :  { %3249 = vtanh.f32 %v5040_v20 }
 0x73e   :  { %v3244_v23 = vpop.eup %3243 }
 0x73f   :  { %v3246_v19 = vpop.eup %3245 }
 0x740   :  { %v3248_v2 = vpop.eup %3247  ;;  %v2176_v1 = vmul.f32 %v3246_v19, %v3244_v23  ;;  %v6232_v23 = vld [vmem:[#allocation124_spill] sm:$0xff]  ;;  %v6233_v19 = vld [vmem:[#allocation125_spill] sm:$0xff] }
 0x741   :  { %v3250_v24 = vpop.eup %3249 }
 0x742   :  { %v2177_v26 = vmul.f32 %v3250_v24, %v3248_v2  ;;  %v5043_v14 = vpack.c.bf16 %v2176_v1, %v2176_v1  ;;  %v6234_v2 = vld [vmem:[#allocation126_spill] sm:$0xff]  ;;  %v6235_v24 = vld [vmem:[#allocation127_spill] sm:$0xff]  ;;  %v6236_v1 = vld [vmem:[#allocation128_spill] sm:$0xff] }
 0x744   :  { %v2187_v32 = vpack.c.bf16 %v2177_v26, %v2177_v26  ;;  %v6237_v26 = vld [vmem:[#allocation129_spill] sm:$0xff] }
 0x746   :  { %2220 = vmatprep.mubr.bf16.mxu0 %v2187_v32  ;;  %2261 = vmatprep.mubr.bf16.mxu1 %v2187_v32 }
 0x747   :  { %2221 = vmatmul.mubr.bf16.vlgmr.msra.gmra.mxu0 %v5043_v14  ;;  %2262 = vmatmul.mubr.bf16.vlgmr.msra.gmra.mxu1 %v5043_v14 }
 0x748   :  { %2271 = vmatpush1.bf16.msra.mxu0 %v5781_v49  ;;  %2312 = vmatpush1.bf16.msra.mxu1 %v5782_v57 }
 0x749   :  { %2302 = vmatprep.mubr.bf16.mxu0 %v2187_v32  ;;  %2343 = vmatprep.mubr.bf16.mxu1 %v2187_v32  ;;  %v6238_v32 = vld [vmem:[#allocation130_spill] sm:$0xff] }
 0x74a   :  { %2272 = vmatprep.subr.bf16.mxu0 %v5783_v25  ;;  %2313 = vmatprep.subr.bf16.mxu1 %v5784_v55 }
 0x74c   :  { %2273 = vmatpush1.bf16.msra.mxu0 %v5785_v39  ;;  %2314 = vmatpush1.bf16.msra.mxu1 %v5786_v34 }
 0x74d   :  { %2274 = vmatprep.subr.bf16.mxu0 %v5787_v18  ;;  %2315 = vmatprep.subr.bf16.mxu1 %v5866_v58 }
 0x750   :  { %2275 = vmatpush1.bf16.msra.mxu0 %v5867_v52  ;;  %2316 = vmatpush1.bf16.msra.mxu1 %v5868_v51 }
 0x751   :  { %2276 = vmatprep.subr.bf16.mxu0 %v5869_v53  ;;  %2317 = vmatprep.subr.bf16.mxu1 %v5870_v5 }
 0x754   :  { %2277 = vmatpush1.bf16.msra.mxu0 %v5871_v60  ;;  %2318 = vmatpush1.bf16.msra.mxu1 %v5872_v44 }
 0x755   :  { %2278 = vmatprep.subr.bf16.mxu0 %v5873_v37  ;;  %2319 = vmatprep.subr.bf16.mxu1 %v5874_v43 }
 0x758   :  { %2279 = vmatpush1.bf16.msra.mxu0 %v5875_v36  ;;  %2320 = vmatpush1.bf16.msra.mxu1 %v5954_v12 }
 0x759   :  { %2280 = vmatprep.subr.bf16.mxu0 %v5955_v21  ;;  %2321 = vmatprep.subr.bf16.mxu1 %v5956_v9 }
 0x75c   :  { %2281 = vmatpush1.bf16.msra.mxu0 %v5957_v6  ;;  %2322 = vmatpush1.bf16.msra.mxu1 %v5958_v28 }
 0x75d   :  { %2282 = vmatprep.subr.bf16.mxu0 %v5959_v15  ;;  %2323 = vmatprep.subr.bf16.mxu1 %v5960_v22 }
 0x760   :  { %2283 = vmatpush1.bf16.msra.mxu0 %v5961_v47  ;;  %2324 = vmatpush1.bf16.msra.mxu1 %v5962_v27 }
 0x761   :  { %2284 = vmatprep.subr.bf16.mxu0 %v5963_v42  ;;  %2325 = vmatprep.subr.bf16.mxu1 %v5964_v48 }
 0x764   :  { %2285 = vmatpush1.bf16.msra.mxu0 %v5965_v3  ;;  %2326 = vmatpush1.bf16.msra.mxu1 %v5966_v63 }
 0x765   :  { %2286 = vmatprep.subr.bf16.mxu0 %v5889_v8  ;;  %2327 = vmatprep.subr.bf16.mxu1 %v5890_v30 }
 0x768   :  { %2287 = vmatpush2.bf16.msra.mxu0 %v5891_v33  ;;  %2328 = vmatpush2.bf16.msra.mxu1 %v5892_v29 }
 0x769   :  { %2288 = vmatprep.subr.bf16.mxu0 %v5893_v35  ;;  %2329 = vmatprep.subr.bf16.mxu1 %v5894_v46 }
 0x76c   :  { %2289 = vmatpush2.bf16.msra.mxu0 %v5895_v45  ;;  %2330 = vmatpush2.bf16.msra.mxu1 %v5896_v54 }
 0x76d   :  { %2290 = vmatprep.subr.bf16.mxu0 %v5897_v59  ;;  %2331 = vmatprep.subr.bf16.mxu1 %v5898_v38 }
 0x770   :  { %2291 = vmatpush2.bf16.msra.mxu0 %v6218_v62  ;;  %2332 = vmatpush2.bf16.msra.mxu1 %v6219_v16 }
 0x771   :  { %2292 = vmatprep.subr.bf16.mxu0 %v6220_v4  ;;  %2333 = vmatprep.subr.bf16.mxu1 %v6221_v56 }
 0x774   :  { %2293 = vmatpush2.bf16.msra.mxu0 %v6222_v13  ;;  %2334 = vmatpush2.bf16.msra.mxu1 %v6223_v61 }
 0x775   :  { %2294 = vmatprep.subr.bf16.mxu0 %v6224_v11  ;;  %2335 = vmatprep.subr.bf16.mxu1 %v6225_v0 }
 0x778   :  { %2295 = vmatpush2.bf16.msra.mxu0 %v6226_v41  ;;  %2336 = vmatpush2.bf16.msra.mxu1 %v6227_v10 }
 0x779   :  { %2296 = vmatprep.subr.bf16.mxu0 %v6228_v7  ;;  %2337 = vmatprep.subr.bf16.mxu1 %v6229_v40  ;;  %v6239_v7 = vld [vmem:[#allocation131_spill] sm:$0xff]  ;;  %v6240_v40 = vld [vmem:[#allocation4_spill] sm:$0xff] }
 0x77c   :  { %2297 = vmatpush2.bf16.msra.mxu0 %v6230_v17  ;;  %2338 = vmatpush2.bf16.msra.mxu1 %v6231_v31  ;;  %v6241_v17 = vld [vmem:[#allocation6_spill] sm:$0xff] }
 0x77d   :  { %2298 = vmatprep.subr.bf16.mxu0 %v6232_v23  ;;  %2339 = vmatprep.subr.bf16.mxu1 %v6233_v19  ;;  %v6242_v19 = vld [vmem:[#allocation5_spill] sm:$0xff]  ;;  %v6251_v23 = vld [vmem:[#allocation15_spill] sm:$0xff] }
 0x780   :  { %2299 = vmatpush2.bf16.msra.mxu0 %v6234_v2  ;;  %2340 = vmatpush2.bf16.msra.mxu1 %v6235_v24  ;;  %v6243_v2 = vld [vmem:[#allocation7_spill] sm:$0xff]  ;;  %v6244_v24 = vld [vmem:[#allocation8_spill] sm:$0xff] }
 0x781   :  { %2300 = vmatprep.subr.bf16.mxu0 %v6236_v1  ;;  %2341 = vmatprep.subr.bf16.mxu1 %v6237_v26  ;;  %v6245_v1 = vld [vmem:[#allocation9_spill] sm:$0xff]  ;;  %v6246_v26 = vld [vmem:[#allocation10_spill] sm:$0xff] }
 0x784   :  { %2301 = vmatpush2.bf16.msra.mxu0 %v6238_v32  ;;  %2342 = vmatpush2.bf16.msra.mxu1 %v6239_v7  ;;  %v6247_v32 = vld [vmem:[#allocation11_spill] sm:$0xff]  ;;  %v6248_v7 = vld [vmem:[#allocation12_spill] sm:$0xff] }
 0x785   :  { %2418 = vmatprep.subr.bf16.mxu0 %v6240_v40  ;;  %2459 = vmatprep.subr.bf16.mxu1 %v6241_v17  ;;  %v6249_v40 = vld [vmem:[#allocation13_spill] sm:$0xff]  ;;  %v6250_v17 = vld [vmem:[#allocation14_spill] sm:$0xff] }
 0x787   :  { %2303 = vmatmul.mubr.bf16.vlgmr.msra.gmra.mxu0 %v5043_v14  ;;  %2344 = vmatmul.mubr.bf16.vlgmr.msra.gmra.mxu1 %v5043_v14  ;;  %v6252_v14 = vld [vmem:[#allocation16_spill] sm:$0xff] }
 0x788   :  { %2419 = vmatpush1.bf16.msra.mxu0 %v6242_v19  ;;  %2460 = vmatpush1.bf16.msra.mxu1 %v6243_v2  ;;  %v6253_v19 = vld [vmem:[#allocation17_spill] sm:$0xff]  ;;  %v6254_v2 = vld [vmem:[#allocation18_spill] sm:$0xff] }
 0x789   :  { %2420 = vmatprep.subr.bf16.mxu0 %v6244_v24  ;;  %2461 = vmatprep.subr.bf16.mxu1 %v6245_v1  ;;  %v6255_v24 = vld [vmem:[#allocation19_spill] sm:$0xff]  ;;  %v6256_v1 = vld [vmem:[#allocation20_spill] sm:$0xff] }
 0x78c   :  { %2421 = vmatpush1.bf16.msra.mxu0 %v6246_v26  ;;  %2462 = vmatpush1.bf16.msra.mxu1 %v6247_v32  ;;  %v6257_v26 = vld [vmem:[#allocation21_spill] sm:$0xff]  ;;  %v6258_v32 = vld [vmem:[#allocation22_spill] sm:$0xff] }
 0x78d   :  { %2422 = vmatprep.subr.bf16.mxu0 %v6248_v7  ;;  %2463 = vmatprep.subr.bf16.mxu1 %v6249_v40  ;;  %v6259_v7 = vld [vmem:[#allocation23_spill] sm:$0xff]  ;;  %v6260_v40 = vld [vmem:[#allocation24_spill] sm:$0xff] }
 0x790   :  { %2423 = vmatpush1.bf16.msra.mxu0 %v6250_v17  ;;  %2464 = vmatpush1.bf16.msra.mxu1 %v6251_v23  ;;  %v6261_v17 = vld [vmem:[#allocation25_spill] sm:$0xff]  ;;  %v6262_v23 = vld [vmem:[#allocation26_spill] sm:$0xff] }
 0x791   :  { %2424 = vmatprep.subr.bf16.mxu0 %v6252_v14  ;;  %2465 = vmatprep.subr.bf16.mxu1 %v6253_v19  ;;  %v6263_v14 = vld [vmem:[#allocation27_spill] sm:$0xff]  ;;  %v6264_v19 = vld [vmem:[#allocation28_spill] sm:$0xff] }
 0x794   :  { %2425 = vmatpush1.bf16.msra.mxu0 %v6254_v2  ;;  %2466 = vmatpush1.bf16.msra.mxu1 %v6255_v24  ;;  %v6265_v2 = vld [vmem:[#allocation29_spill] sm:$0xff]  ;;  %v6266_v24 = vld [vmem:[#allocation30_spill] sm:$0xff] }
 0x795   :  { %2426 = vmatprep.subr.bf16.mxu0 %v6256_v1  ;;  %2467 = vmatprep.subr.bf16.mxu1 %v6257_v26  ;;  %v6267_v1 = vld [vmem:[#allocation31_spill] sm:$0xff]  ;;  %v6268_v26 = vld [vmem:[#allocation32_spill] sm:$0xff] }
 0x798   :  { %2427 = vmatpush1.bf16.msra.mxu0 %v6258_v32  ;;  %2468 = vmatpush1.bf16.msra.mxu1 %v6259_v7  ;;  %v6269_v32 = vld [vmem:[#allocation33_spill] sm:$0xff]  ;;  %v6270_v7 = vld [vmem:[#allocation34_spill] sm:$0xff] }
 0x799   :  { %2428 = vmatprep.subr.bf16.mxu0 %v6260_v40  ;;  %2469 = vmatprep.subr.bf16.mxu1 %v6261_v17  ;;  %v6271_v40 = vld [vmem:[#allocation35_spill] sm:$0xff]  ;;  %v6272_v17 = vld [vmem:[#allocation36_spill] sm:$0xff] }
 0x79c   :  { %2429 = vmatpush1.bf16.msra.mxu0 %v6262_v23  ;;  %2470 = vmatpush1.bf16.msra.mxu1 %v6263_v14  ;;  %v6273_v23 = vld [vmem:[#allocation37_spill] sm:$0xff]  ;;  %v6274_v14 = vld [vmem:[#allocation38_spill] sm:$0xff] }
 0x79d   :  { %2430 = vmatprep.subr.bf16.mxu0 %v6264_v19  ;;  %2471 = vmatprep.subr.bf16.mxu1 %v6265_v2  ;;  %v6275_v19 = vld [vmem:[#allocation39_spill] sm:$0xff]  ;;  %v6276_v2 = vld [vmem:[#allocation40_spill] sm:$0xff] }
 0x7a0   :  { %2431 = vmatpush1.bf16.msra.mxu0 %v6266_v24  ;;  %2472 = vmatpush1.bf16.msra.mxu1 %v6267_v1  ;;  %v6277_v24 = vld [vmem:[#allocation41_spill] sm:$0xff]  ;;  %v6278_v1 = vld [vmem:[#allocation42_spill] sm:$0xff] }
 0x7a1   :  { %2432 = vmatprep.subr.bf16.mxu0 %v6268_v26  ;;  %2473 = vmatprep.subr.bf16.mxu1 %v6269_v32  ;;  %v6279_v26 = vld [vmem:[#allocation43_spill] sm:$0xff]  ;;  %v6280_v32 = vld [vmem:[#allocation44_spill] sm:$0xff] }
 0x7a4   :  { %2433 = vmatpush1.bf16.msra.mxu0 %v6270_v7  ;;  %2474 = vmatpush1.bf16.msra.mxu1 %v6271_v40  ;;  %v6281_v7 = vld [vmem:[#allocation45_spill] sm:$0xff]  ;;  %v6282_v40 = vld [vmem:[#allocation46_spill] sm:$0xff] }
 0x7a5   :  { %2434 = vmatprep.subr.bf16.mxu0 %v6272_v17  ;;  %2475 = vmatprep.subr.bf16.mxu1 %v6273_v23  ;;  %v6283_v17 = vld [vmem:[#allocation47_spill] sm:$0xff]  ;;  %v6284_v23 = vld [vmem:[#allocation48_spill] sm:$0xff] }
 0x7a8   :  { %2435 = vmatpush2.bf16.msra.mxu0 %v6274_v14  ;;  %2476 = vmatpush2.bf16.msra.mxu1 %v6275_v19  ;;  %v6285_v14 = vld [vmem:[#allocation49_spill] sm:$0xff]  ;;  %v6286_v19 = vld [vmem:[#allocation50_spill] sm:$0xff] }
 0x7a9   :  { %2436 = vmatprep.subr.bf16.mxu0 %v6276_v2  ;;  %2477 = vmatprep.subr.bf16.mxu1 %v6277_v24  ;;  %v6287_v2 = vld [vmem:[#allocation51_spill] sm:$0xff]  ;;  %v6288_v24 = vld [vmem:[#allocation52_spill] sm:$0xff] }
 0x7ac   :  { %2437 = vmatpush2.bf16.msra.mxu0 %v6278_v1  ;;  %2478 = vmatpush2.bf16.msra.mxu1 %v6279_v26  ;;  %v6289_v1 = vld [vmem:[#allocation53_spill] sm:$0xff]  ;;  %v6290_v26 = vld [vmem:[#allocation54_spill] sm:$0xff] }
 0x7ad   :  { %2438 = vmatprep.subr.bf16.mxu0 %v6280_v32  ;;  %2479 = vmatprep.subr.bf16.mxu1 %v6281_v7  ;;  %v6291_v32 = vld [vmem:[#allocation55_spill] sm:$0xff]  ;;  %v6292_v7 = vld [vmem:[#allocation56_spill] sm:$0xff] }
 0x7b0   :  { %2439 = vmatpush2.bf16.msra.mxu0 %v6282_v40  ;;  %2480 = vmatpush2.bf16.msra.mxu1 %v6283_v17  ;;  %v6293_v40 = vld [vmem:[#allocation57_spill] sm:$0xff]  ;;  %v6294_v17 = vld [vmem:[#allocation58_spill] sm:$0xff] }
 0x7b1   :  { %2440 = vmatprep.subr.bf16.mxu0 %v6284_v23  ;;  %2481 = vmatprep.subr.bf16.mxu1 %v6285_v14  ;;  %v6295_v23 = vld [vmem:[#allocation59_spill] sm:$0xff]  ;;  %v6296_v14 = vld [vmem:[#allocation60_spill] sm:$0xff] }
 0x7b4   :  { %2441 = vmatpush2.bf16.msra.mxu0 %v6286_v19  ;;  %2482 = vmatpush2.bf16.msra.mxu1 %v6287_v2  ;;  %v6297_v19 = vld [vmem:[#allocation61_spill] sm:$0xff]  ;;  %v6298_v2 = vld [vmem:[#allocation62_spill] sm:$0xff] }
 0x7b5   :  { %2442 = vmatprep.subr.bf16.mxu0 %v6288_v24  ;;  %2483 = vmatprep.subr.bf16.mxu1 %v6289_v1  ;;  %v6299_v24 = vld [vmem:[#allocation63_spill] sm:$0xff]  ;;  %v6300_v1 = vld [vmem:[#allocation64_spill] sm:$0xff] }
 0x7b8   :  { %2443 = vmatpush2.bf16.msra.mxu0 %v6290_v26  ;;  %2484 = vmatpush2.bf16.msra.mxu1 %v6291_v32  ;;  %v6301_v26 = vld [vmem:[#allocation65_spill] sm:$0xff]  ;;  %v6302_v32 = vld [vmem:[#allocation66_spill] sm:$0xff] }
 0x7b9   :  { %2444 = vmatprep.subr.bf16.mxu0 %v6292_v7  ;;  %2485 = vmatprep.subr.bf16.mxu1 %v6293_v40  ;;  %v6303_v7 = vld [vmem:[#allocation67_spill] sm:$0xff]  ;;  %v6304_v40 = vld [vmem:[#allocation68_spill] sm:$0xff] }
 0x7bc   :  { %2445 = vmatpush2.bf16.msra.mxu0 %v6294_v17  ;;  %2486 = vmatpush2.bf16.msra.mxu1 %v6295_v23  ;;  %v6305_v17 = vld [vmem:[#allocation69_spill] sm:$0xff] }
 0x7bd   :  { %2446 = vmatprep.subr.bf16.mxu0 %v6296_v14  ;;  %2487 = vmatprep.subr.bf16.mxu1 %v6297_v19 }
 0x7c0   :  { %2447 = vmatpush2.bf16.msra.mxu0 %v6298_v2  ;;  %2488 = vmatpush2.bf16.msra.mxu1 %v6299_v24 }
 0x7c1   :  { %2448 = vmatprep.subr.bf16.mxu0 %v6300_v1  ;;  %2489 = vmatprep.subr.bf16.mxu1 %v6301_v26  ;;  %v2178_v1 = vld [vmem:[%s5358_s0 + $0x180] sm:$0xff]  ;;  %v2180_v26 = vld [vmem:[%s5358_s0 + $0x190] sm:$0xff] }
 0x7c4   :  { %2449 = vmatpush2.bf16.msra.mxu0 %v6302_v32  ;;  %2490 = vmatpush2.bf16.msra.mxu1 %v6303_v7  ;;  %v2179_v32 = vld [vmem:[%s5358_s0 + $0x188] sm:$0xff] }
 0x7c5   :  { %2500 = vmatprep.subr.bf16.mxu0 %v6304_v40  ;;  %2541 = vmatprep.subr.bf16.mxu1 %v6305_v17 }
 0x807   :  { %v2222_v23 = vpop.f32.mrf.mxu0  ;;  %v2263_v14 = vpop.f32.mrf.mxu1 }
 0x808   :  { %v2352_v7 = vadd.f32 %v2222_v23, %v2178_v1  ;;  %v2354_v40 = vadd.f32 %v2263_v14, %v2180_v26 }
 0x809   :  { %v2224_v31 = vpop.f32.mrf.mxu0  ;;  %v2265_v19 = vpop.f32.mrf.mxu1 }
 0x80a   :  { %v2991_v17 = vmul.f32 -1.442695, %v2352_v7 }
 0x80b   :  { %v2226_v10 = vpop.f32.mrf.mxu0  ;;  %v2267_v2 = vpop.f32.mrf.mxu1 }
 0x80c   :  { %v2181_v10 = vld [vmem:[%s5358_s0 + $0x198] sm:$0xff]  ;;  %3251 = vpow2.f32 %v2991_v17 }
 0x80d   :  { %v2227_v41 = vpop.f32.mrf.mxu0  ;;  %v2268_v24 = vpop.f32.mrf.mxu1  ;;  %v2355_v2 = vadd.f32 %v2265_v19, %v2181_v10  ;;  %v2184_v19 = vld [vmem:[%s5358_s0 + $0x1b0] sm:$0xff] }
 0x80e   :  { %v2353_v41 = vadd.f32 %v2224_v31, %v2179_v32  ;;  %v2993_v24 = vmul.f32 -1.442695, %v2354_v40  ;;  %v2182_v31 = vld [vmem:[%s5358_s0 + $0x1a0] sm:$0xff] }
 0x80f   :  { %v2994_v11 = vmul.f32 -1.442695, %v2355_v2 }
 0x810   :  { %v2992_v0 = vmul.f32 -1.442695, %v2353_v41  ;;  %3253 = vpow2.f32 %v2993_v24 }
 0x812   :  { %3255 = vpow2.f32 %v2992_v0 }
 0x813   :  { %3257 = vpow2.f32 %v2994_v11  ;;  %v2183_v11 = vld [vmem:[%s5358_s0 + $0x1a8] sm:$0xff] }
 0x819   :  { %v3252_v61 = vpop.eup %3251 }
 0x81a   :  { %v2378_v4 = vadd.f32 1.0, %v3252_v61 }
 0x81c   :  { %3259 = vrcp.f32 %v2378_v4 }
 0x81d   :  { %v3254_v13 = vpop.eup %3253 }
 0x81e   :  { %v2380_v14 = vadd.f32 1.0, %v3254_v13 }
 0x81f   :  { %v3256_v56 = vpop.eup %3255 }
 0x820   :  { %v3258_v23 = vpop.eup %3257  ;;  %v2379_v1 = vadd.f32 1.0, %v3256_v56  ;;  %v2185_v56 = vld [vmem:[%s5358_s0 + $0x1b8] sm:$0xff]  ;;  %3261 = vrcp.f32 %v2380_v14 }
 0x821   :  { %v2381_v26 = vadd.f32 1.0, %v3258_v23 }
 0x822   :  { %3263 = vrcp.f32 %v2379_v1 }
 0x829   :  { %v3260_v62 = vpop.eup %3259 }
 0x82d   :  { %v3262_v14 = vpop.eup %3261 }
 0x847   :  { %v2304_v32 = vpop.f32.mrf.mxu0  ;;  %v2345_v0 = vpop.f32.mrf.mxu1 }
 0x848   :  { %v2356_v13 = vadd.f32 %v2304_v32, %v2182_v31  ;;  %v2358_v61 = vadd.f32 %v2345_v0, %v2184_v19  ;;  %v3264_v31 = vpop.eup %3263  ;;  %v2398_v32 = vmul.f32 %v3262_v14, %v5036_v50 }
 0x849   :  { %v2306_v7 = vpop.f32.mrf.mxu0  ;;  %v2347_v40 = vpop.f32.mrf.mxu1 }
 0x84a   :  { %v2995_v10 = vmul.f32 -1.442695, %v2356_v13  ;;  %3265 = vtanh.f32 %v2358_v61  ;;  %v2357_v4 = vadd.f32 %v2306_v7, %v2183_v11  ;;  %v2359_v41 = vadd.f32 %v2347_v40, %v2185_v56 }
 0x84b   :  { %3267 = vrcp.f32 %v2381_v26  ;;  %v2308_v17 = vpop.f32.mrf.mxu0  ;;  %v2349_v2 = vpop.f32.mrf.mxu1 }
 0x84c   :  { %3269 = vpow2.f32 %v2995_v10  ;;  %v2996_v24 = vmul.f32 -1.442695, %v2357_v4 }
 0x84d   :  { %3271 = vtanh.f32 %v2359_v41  ;;  %v2309_v23 = vpop.f32.mrf.mxu0  ;;  %v2350_v16 = vpop.f32.mrf.mxu1 }
 0x84e   :  { %3273 = vpow2.f32 %v2996_v24 }
 0x857   :  { %v3266_v19 = vpop.eup %3265 }
 0x858   :  { %v3268_v1 = vpop.eup %3267  ;;  %v2400_v0 = vmul.f32 %v3266_v19, %v3260_v62 }
 0x859   :  { %v3270_v13 = vpop.eup %3269  ;;  %v2399_v7 = vmul.f32 %v3268_v1, %v5040_v20 }
 0x85a   :  { %v3272_v11 = vpop.eup %3271  ;;  %v2382_v56 = vadd.f32 1.0, %v3270_v13  ;;  %v5202_v26 = vadd.f32 %v2400_v0, %v2398_v32  ;;  %v2408_v0 = vld [vmem:[%s5358_s0 + $0x1c0] sm:$0xff]  ;;  %v2410_v13 = vld [vmem:[%s5358_s0 + $0x1d0] sm:$0xff] }
 0x85b   :  { %v3274_v61 = vpop.eup %3273  ;;  %v2401_v40 = vmul.f32 %v3272_v11, %v3264_v31  ;;  %v2409_v11 = vld [vmem:[%s5358_s0 + $0x1c8] sm:$0xff] }
 0x85c   :  { %3275 = vrcp.f32 %v2382_v56  ;;  %v2383_v16 = vadd.f32 1.0, %v3274_v61 }
 0x85d   :  { %3277 = vtanh.f32 %v5202_v26  ;;  %v5206_v10 = vadd.f32 %v2401_v40, %v2399_v7  ;;  %v2411_v7 = vld [vmem:[%s5358_s0 + $0x1d8] sm:$0xff] }
 0x85e   :  { %3279 = vrcp.f32 %v2383_v16 }
 0x85f   :  { %3281 = vtanh.f32 %v5206_v10 }
 0x869   :  { %v3276_v50 = vpop.eup %3275 }
 0x86a   :  { %v3278_v62 = vpop.eup %3277 }
 0x86b   :  { %v3280_v4 = vpop.eup %3279  ;;  %v2406_v17 = vmul.f32 %v3278_v62, %v3276_v50 }
 0x86c   :  { %v3282_v41 = vpop.eup %3281 }
 0x86d   :  { %v2407_v2 = vmul.f32 %v3282_v41, %v3280_v4  ;;  %v5209_v23 = vpack.c.bf16 %v2406_v17, %v2406_v17 }
 0x86f   :  { %v2417_v24 = vpack.c.bf16 %v2407_v2, %v2407_v2 }
 0x871   :  { %2450 = vmatprep.mubr.bf16.mxu0 %v2417_v24  ;;  %2491 = vmatprep.mubr.bf16.mxu1 %v2417_v24 }
 0x872   :  { %2451 = vmatmul.mubr.bf16.vlgmr.msra.gmra.mxu0 %v5209_v23  ;;  %2492 = vmatmul.mubr.bf16.vlgmr.msra.gmra.mxu1 %v5209_v23 }
 0x873   :  { %2501 = vmatpush1.bf16.msra.mxu0 %v5781_v49  ;;  %2542 = vmatpush1.bf16.msra.mxu1 %v5782_v57  ;;  %v6306_v49 = vld [vmem:[#allocation110_spill] sm:$0xff]  ;;  %v6307_v57 = vld [vmem:[#allocation111_spill] sm:$0xff] }
 0x874   :  { %2532 = vmatprep.mubr.bf16.mxu0 %v2417_v24  ;;  %2573 = vmatprep.mubr.bf16.mxu1 %v2417_v24 }
 0x875   :  { %2502 = vmatprep.subr.bf16.mxu0 %v5783_v25  ;;  %2543 = vmatprep.subr.bf16.mxu1 %v5784_v55  ;;  %v6308_v25 = vld [vmem:[#allocation112_spill] sm:$0xff]  ;;  %v6309_v55 = vld [vmem:[#allocation113_spill] sm:$0xff] }
 0x877   :  { %2503 = vmatpush1.bf16.msra.mxu0 %v5785_v39  ;;  %2544 = vmatpush1.bf16.msra.mxu1 %v5786_v34  ;;  %v6310_v39 = vld [vmem:[#allocation114_spill] sm:$0xff]  ;;  %v6311_v34 = vld [vmem:[#allocation115_spill] sm:$0xff] }
 0x878   :  { %2504 = vmatprep.subr.bf16.mxu0 %v5787_v18  ;;  %2545 = vmatprep.subr.bf16.mxu1 %v5866_v58  ;;  %v6312_v18 = vld [vmem:[#allocation116_spill] sm:$0xff]  ;;  %v6313_v58 = vld [vmem:[#allocation117_spill] sm:$0xff] }
 0x87b   :  { %2505 = vmatpush1.bf16.msra.mxu0 %v5867_v52  ;;  %2546 = vmatpush1.bf16.msra.mxu1 %v5868_v51  ;;  %v6314_v52 = vld [vmem:[#allocation118_spill] sm:$0xff]  ;;  %v6315_v51 = vld [vmem:[#allocation119_spill] sm:$0xff] }
 0x87c   :  { %2506 = vmatprep.subr.bf16.mxu0 %v5869_v53  ;;  %2547 = vmatprep.subr.bf16.mxu1 %v5870_v5  ;;  %v6316_v53 = vld [vmem:[#allocation120_spill] sm:$0xff]  ;;  %v6317_v5 = vld [vmem:[#allocation121_spill] sm:$0xff] }
 0x87f   :  { %2507 = vmatpush1.bf16.msra.mxu0 %v5871_v60  ;;  %2548 = vmatpush1.bf16.msra.mxu1 %v5872_v44  ;;  %v6318_v60 = vld [vmem:[#allocation122_spill] sm:$0xff]  ;;  %v6319_v44 = vld [vmem:[#allocation123_spill] sm:$0xff] }
 0x880   :  { %2508 = vmatprep.subr.bf16.mxu0 %v5873_v37  ;;  %2549 = vmatprep.subr.bf16.mxu1 %v5874_v43  ;;  %v6320_v37 = vld [vmem:[#allocation124_spill] sm:$0xff]  ;;  %v6321_v43 = vld [vmem:[#allocation125_spill] sm:$0xff] }
 0x883   :  { %2509 = vmatpush1.bf16.msra.mxu0 %v5875_v36  ;;  %2550 = vmatpush1.bf16.msra.mxu1 %v5954_v12  ;;  %v6322_v36 = vld [vmem:[#allocation126_spill] sm:$0xff]  ;;  %v3048_v12 = vld [vmem:[%s5359_s2 + $0x28] sm:$0xff]  }
 0x884   :  { %2510 = vmatprep.subr.bf16.mxu0 %v5955_v21  ;;  %2551 = vmatprep.subr.bf16.mxu1 %v5956_v9  ;;  %v3049_v21 = vld [vmem:[%s5359_s2 + $0x60] sm:$0xff]  }
 0x885   :  { %v3050_v9 = vld [vmem:[%s5359_s2 + $0x20] sm:$0xff]  }
 0x887   :  { %2511 = vmatpush1.bf16.msra.mxu0 %v5957_v6  ;;  %2552 = vmatpush1.bf16.msra.mxu1 %v5958_v28  ;;  %v3051_v6 = vld [vmem:[%s5359_s2 + $0x58] sm:$0xff]  }
 0x888   :  { %2512 = vmatprep.subr.bf16.mxu0 %v5959_v15  ;;  %2553 = vmatprep.subr.bf16.mxu1 %v5960_v22  ;;  %v3052_v28 = vld [vmem:[%s5359_s2 + $0x18] sm:$0xff]   ;;  %v3053_v15 = vld [vmem:[%s5359_s2 + $0x50] sm:$0xff]  }
 0x889   :  { %v3054_v22 = vld [vmem:[%s5359_s2 + $0x10] sm:$0xff]  }
 0x88b   :  { %2513 = vmatpush1.bf16.msra.mxu0 %v5961_v47  ;;  %2554 = vmatpush1.bf16.msra.mxu1 %v5962_v27  ;;  %v3055_v47 = vld [vmem:[%s5359_s2 + $0x48] sm:$0xff]  }
 0x88c   :  { %2514 = vmatprep.subr.bf16.mxu0 %v5963_v42  ;;  %2555 = vmatprep.subr.bf16.mxu1 %v5964_v48  ;;  %v3056_v27 = vld [vmem:[%s5359_s2 + $0x8] sm:$0xff]   ;;  %v3057_v42 = vld [vmem:[%s5359_s2 + $0x40] sm:$0xff]  }
 0x88d   :  { %v3058_v48 = vld [vmem:[%s5359_s2] sm:$0xff]  }
 0x88f   :  { %2515 = vmatpush1.bf16.msra.mxu0 %v5965_v3  ;;  %2556 = vmatpush1.bf16.msra.mxu1 %v5966_v63 }
 0x890   :  { %2516 = vmatprep.subr.bf16.mxu0 %v5889_v8  ;;  %2557 = vmatprep.subr.bf16.mxu1 %v5890_v30  ;;  %v6324_v8 = vld [vmem:[#allocation128_spill] sm:$0xff]  ;;  %v6325_v30 = vld [vmem:[#allocation129_spill] sm:$0xff] }
 0x893   :  { %2517 = vmatpush2.bf16.msra.mxu0 %v5891_v33  ;;  %2558 = vmatpush2.bf16.msra.mxu1 %v5892_v29  ;;  %v6326_v33 = vld [vmem:[#allocation130_spill] sm:$0xff]  ;;  %v6327_v29 = vld [vmem:[#allocation131_spill] sm:$0xff] }
 0x894   :  { %2518 = vmatprep.subr.bf16.mxu0 %v5893_v35  ;;  %2559 = vmatprep.subr.bf16.mxu1 %v5894_v46  ;;  %v3043_v35 = vld [vmem:[%s5359_s2 + $0x78] sm:$0xff]  }
 0x895   :  { %v3044_v46 = vld [vmem:[%s5359_s2 + $0x38] sm:$0xff]  }
 0x897   :  { %2519 = vmatpush2.bf16.msra.mxu0 %v5895_v45  ;;  %2560 = vmatpush2.bf16.msra.mxu1 %v5896_v54  ;;  %v3045_v45 = vld [vmem:[%s5359_s2 + $0x70] sm:$0xff]  }
 0x898   :  { %2520 = vmatprep.subr.bf16.mxu0 %v5897_v59  ;;  %2561 = vmatprep.subr.bf16.mxu1 %v5898_v38  ;;  %v6323_v38 = vld [vmem:[#allocation127_spill] sm:$0xff]  ;;  %v3046_v54 = vld [vmem:[%s5359_s2 + $0x30] sm:$0xff]   ;;  %v3047_v59 = vld [vmem:[%s5359_s2 + $0x68] sm:$0xff]  }
 0x89b   :  { %2521 = vmatpush2.bf16.msra.mxu0 %v6306_v49  ;;  %2562 = vmatpush2.bf16.msra.mxu1 %v6307_v57 }
 0x89c   :  { %2522 = vmatprep.subr.bf16.mxu0 %v6308_v25  ;;  %2563 = vmatprep.subr.bf16.mxu1 %v6309_v55  ;;  %v2412_v55 = vld [vmem:[%s5358_s0 + $0x1e0] sm:$0xff] }
 0x89f   :  { %2523 = vmatpush2.bf16.msra.mxu0 %v6310_v39  ;;  %2564 = vmatpush2.bf16.msra.mxu1 %v6311_v34  ;;  %v2414_v39 = vld [vmem:[%s5358_s0 + $0x1f0] sm:$0xff] }
 0x8a0   :  { %2524 = vmatprep.subr.bf16.mxu0 %v6312_v18  ;;  %2565 = vmatprep.subr.bf16.mxu1 %v6313_v58 }
 0x8a3   :  { %2525 = vmatpush2.bf16.msra.mxu0 %v6314_v52  ;;  %2566 = vmatpush2.bf16.msra.mxu1 %v6315_v51  ;;  %v2413_v52 = vld [vmem:[%s5358_s0 + $0x1e8] sm:$0xff]  ;;  %v2415_v51 = vld [vmem:[%s5358_s0 + $0x1f8] sm:$0xff] }
 0x8a4   :  { %2526 = vmatprep.subr.bf16.mxu0 %v6316_v53  ;;  %2567 = vmatprep.subr.bf16.mxu1 %v6317_v5 }
 0x8a7   :  { %2527 = vmatpush2.bf16.msra.mxu0 %v6318_v60  ;;  %2568 = vmatpush2.bf16.msra.mxu1 %v6319_v44 }
 0x8a8   :  { %2528 = vmatprep.subr.bf16.mxu0 %v6320_v37  ;;  %2569 = vmatprep.subr.bf16.mxu1 %v6321_v43 }
 0x8ab   :  { %2529 = vmatpush2.bf16.msra.mxu0 %v6322_v36  ;;  %2570 = vmatpush2.bf16.msra.mxu1 %v6323_v38 }
 0x8ac   :  { %2530 = vmatprep.subr.bf16.mxu0 %v6324_v8  ;;  %2571 = vmatprep.subr.bf16.mxu1 %v6325_v30 }
 0x8af   :  { %2531 = vmatpush2.bf16.msra.mxu0 %v6326_v33  ;;  %2572 = vmatpush2.bf16.msra.mxu1 %v6327_v29 }
 0x8b0   :  { %3020 = vmatprep.subr.bf16.mxu0 %v3043_v35 }
 0x8b2   :  { %2533 = vmatmul.mubr.bf16.vlgmr.msra.gmra.mxu0 %v5209_v23  ;;  %2574 = vmatmul.mubr.bf16.vlgmr.msra.gmra.mxu1 %v5209_v23 }
 0x8b3   :  { %3021 = vmatpush3.bf16.msra.mxu0 %v3044_v46 }
 0x8b4   :  { %3022 = vmatprep.subr.bf16.mxu0 %v3045_v45 }
 0x8b7   :  { %3023 = vmatpush3.bf16.msra.mxu0 %v3046_v54 }
 0x8b8   :  { %3024 = vmatprep.subr.bf16.mxu0 %v3047_v59 }
 0x8bb   :  { %3025 = vmatpush3.bf16.msra.mxu0 %v3048_v12 }
 0x8bc   :  { %3026 = vmatprep.subr.bf16.mxu0 %v3049_v21 }
 0x8bf   :  { %3027 = vmatpush3.bf16.msra.mxu0 %v3050_v9 }
 0x8c0   :  { %3028 = vmatprep.subr.bf16.mxu0 %v3051_v6 }
 0x8c3   :  { %3029 = vmatpush3.bf16.msra.mxu0 %v3052_v28 }
 0x8c4   :  { %3030 = vmatprep.subr.bf16.mxu0 %v3053_v15 }
 0x8c7   :  { %3031 = vmatpush3.bf16.msra.mxu0 %v3054_v22 }
 0x8c8   :  { %3032 = vmatprep.subr.bf16.mxu0 %v3055_v47 }
 0x8cb   :  { %3033 = vmatpush3.bf16.msra.mxu0 %v3056_v27 }
 0x8cc   :  { %3034 = vmatprep.subr.bf16.mxu0 %v3057_v42 }
 0x8cf   :  { %3035 = vmatpush3.bf16.msra.mxu0 %v3058_v48 }
 0x932   :  { %v2452_v3 = vpop.f32.mrf.mxu0  ;;  %v2493_v63 = vpop.f32.mrf.mxu1 }
 0x933   :  { %v2582_v56 = vadd.f32 %v2452_v3, %v2408_v0  ;;  %v2584_v61 = vadd.f32 %v2493_v63, %v2410_v13 }
 0x934   :  { %v2454_v20 = vpop.f32.mrf.mxu0  ;;  %v2495_v14 = vpop.f32.mrf.mxu1 }
 0x935   :  { %v2583_v40 = vadd.f32 %v2454_v20, %v2409_v11  ;;  %v2997_v16 = vmul.f32 -1.442695, %v2582_v56  ;;  %v2585_v50 = vadd.f32 %v2495_v14, %v2411_v7  ;;  %v2999_v62 = vmul.f32 -1.442695, %v2584_v61 }
 0x936   :  { %v2456_v31 = vpop.f32.mrf.mxu0  ;;  %v2497_v19 = vpop.f32.mrf.mxu1 }
 0x937   :  { %v2998_v4 = vmul.f32 -1.442695, %v2583_v40  ;;  %3283 = vpow2.f32 %v2997_v16  ;;  %v3000_v41 = vmul.f32 -1.442695, %v2585_v50 }
 0x938   :  { %v2457_v1 = vpop.f32.mrf.mxu0  ;;  %v2498_v32 = vpop.f32.mrf.mxu1  ;;  %3285 = vpow2.f32 %v2999_v62 }
 0x939   :  { %3287 = vpow2.f32 %v2998_v4 }
 0x93a   :  { %3289 = vpow2.f32 %v3000_v41 }
 0x944   :  { %v3284_v17 = vpop.eup %3283 }
 0x945   :  { %v3286_v2 = vpop.eup %3285  ;;  %v2608_v23 = vadd.f32 1.0, %v3284_v17 }
 0x946   :  { %v3288_v24 = vpop.eup %3287  ;;  %v2610_v57 = vadd.f32 1.0, %v3286_v2 }
 0x947   :  { %v3290_v49 = vpop.eup %3289  ;;  %v2609_v25 = vadd.f32 1.0, %v3288_v24  ;;  %3291 = vrcp.f32 %v2608_v23 }
 0x948   :  { %v2611_v34 = vadd.f32 1.0, %v3290_v49  ;;  %3293 = vrcp.f32 %v2610_v57 }
 0x949   :  { %3295 = vrcp.f32 %v2609_v25 }
 0x954   :  { %v3292_v35 = vpop.eup %3291 }
 0x955   :  { %v3294_v46 = vpop.eup %3293 }
 0x956   :  { %v3296_v45 = vpop.eup %3295  ;;  %v2628_v12 = vmul.f32 %v3294_v46, %v5202_v26 }
 0x972   :  { %v2534_v18 = vpop.f32.mrf.mxu0  ;;  %v2575_v58 = vpop.f32.mrf.mxu1 }
 0x973   :  { %v2586_v53 = vadd.f32 %v2534_v18, %v2412_v55  ;;  %v2588_v5 = vadd.f32 %v2575_v58, %v2414_v39 }
 0x974   :  { %v2536_v60 = vpop.f32.mrf.mxu0  ;;  %v2577_v44 = vpop.f32.mrf.mxu1 }
 0x975   :  { %v3001_v37 = vmul.f32 -1.442695, %v2586_v53  ;;  %3297 = vtanh.f32 %v2588_v5  ;;  %v2587_v43 = vadd.f32 %v2536_v60, %v2413_v52  ;;  %v2589_v36 = vadd.f32 %v2577_v44, %v2415_v51 }
 0x976   :  { %3299 = vrcp.f32 %v2611_v34  ;;  %v2538_v38 = vpop.f32.mrf.mxu0  ;;  %v2579_v8 = vpop.f32.mrf.mxu1 }
 0x977   :  { %3301 = vpow2.f32 %v3001_v37  ;;  %v3002_v30 = vmul.f32 -1.442695, %v2587_v43 }
 0x978   :  { %3303 = vtanh.f32 %v2589_v36  ;;  %v2539_v33 = vpop.f32.mrf.mxu0  ;;  %v2580_v29 = vpop.f32.mrf.mxu1 }
 0x979   :  { %3305 = vpow2.f32 %v3002_v30 }
 0x982   :  { %v3298_v54 = vpop.eup %3297 }
 0x983   :  { %v3300_v59 = vpop.eup %3299  ;;  %v2630_v21 = vmul.f32 %v3298_v54, %v3292_v35 }
 0x984   :  { %v3302_v9 = vpop.eup %3301  ;;  %v2629_v47 = vmul.f32 %v3300_v59, %v5206_v10  ;;  %v3003_v10 = vld [vmem:[%s5360_s3] ss:$0 sm:$0xff] }
 0x985   :  { %v3304_v6 = vpop.eup %3303  ;;  %v2612_v28 = vadd.f32 1.0, %v3302_v9  ;;  %v2632_v15 = vadd.f32 %v2630_v21, %v2628_v12 }
 0x986   :  { %v3306_v22 = vpop.eup %3305  ;;  %v2631_v27 = vmul.f32 %v3304_v6, %v3296_v45 }
 0x987   :  { %3307 = vrcp.f32 %v2612_v28  ;;  %v2613_v42 = vadd.f32 1.0, %v3306_v22 }
 0x988   :  { %3309 = vtanh.f32 %v2632_v15  ;;  %v2633_v48 = vadd.f32 %v2631_v27, %v2629_v47 }
 0x989   :  { %3311 = vrcp.f32 %v2613_v42 }
 0x98a   :  { %3313 = vtanh.f32 %v2633_v48 }
 0x994   :  { %v3308_v3 = vpop.eup %3307 }
 0x995   :  { %v3310_v63 = vpop.eup %3309 }
 0x996   :  { %v3312_v20 = vpop.eup %3311  ;;  %v2636_v26 = vmul.f32 %v3310_v63, %v3308_v3 }
 0x997   :  { %v3314_v14 = vpop.eup %3313 }
 0x998   :  { %v2637_v31 = vmul.f32 %v3314_v14, %v3312_v20  ;;  %v2645_v1 = vpack.c.bf16 %v2636_v26, %v2636_v26 }
 0x99a   :  { %v2646_v19 = vpack.c.bf16 %v2637_v31, %v2637_v31 }
 0x99c   :  { %2814 = vmatprep.mubr.bf16.mxu0 %v2646_v19 }
 0x99d   :  { %2815 = vmatmul.mubr.bf16.vlgmr.msra.gmra.mxu0 %v2645_v1 }
 0xa5d   :  { %v3036_v32 = vpop.f32.mrf.mxu0 }
 0xa5f   :  { %v3037_v0 = vpop.f32.mrf.mxu0 }
 0xa60   :  { %v3038_v13 = vadd.f32 %v3037_v0, %v3036_v32 }
 0xa61   :  { %v3039_v11 = vpop.f32.mrf.mxu0 }
 0xa62   :  { %v2817_v56 = vadd.f32 %v3038_v13, %v3003_v10 }
 0xa63   :  { %v3040_v61 = vpop.f32.mrf.mxu0 }
 0xa64   :  { %2822 = vst [vmem:[%s5361_s4] sm:$0xff] %v2817_v56 }

</bundles_post_ra>
